<compile_context>
chip_gen: v6e
topology: v6e:2x2x1
jax: 0.10.0
libtpu: 0.0.40
codegen_flags: <defaults>
</compile_context>

<pallas_src>
import numpy as np
import jax
import jax.numpy as jnp
from jax.experimental import pallas as pl
from jax.experimental.pallas import tpu as pltpu

EPS = 1e-5  # torch.nn.BatchNorm2d default


def _round_up(v, m):
    return -(-v // m) * m


# ----------------------------------------------------------------- in-kernel helpers
def _pad_input(x_ref, grid_ref, B, H, W, wp, gd):
    """Zero-fill the flat padded grid and write the (B*H, W, C) input into its interior.
    The zero ring / guard rows implement 'same' conv padding for free."""
    grid_ref[...] = jnp.zeros_like(grid_ref)
    # Statically unrolled: B*H is small here.  For large batch*height switch to a
    # fori_loop / manual DMA gather.
    for j in range(B * H):
        b, y = divmod(j, H)
        dst = gd + (b * (H + 2) + y + 1) * wp + 1
        grid_ref[dst:dst + W, :] = x_ref[j]


def _pack_taps(grid_ref, offs, gd, R):
    """Pack shifted views of the padded grid along lanes -> (R, len(offs)*C) f32.
    One packing pass per conv input; the bf16 cast happens once on the packed slab."""
    return jnp.concatenate([grid_ref[gd + d:gd + d + R, :] for d in offs], axis=-1)


def _bn_train(a, gamma, beta, mask, count):
    """Train-mode BatchNorm (biased variance) over masked rows; two-pass f32 stats."""
    inv_n = 1.0 / count
    mean = jnp.sum(a * mask, axis=0, keepdims=True) * inv_n
    d = (a - mean) * mask
    var = jnp.sum(d * d, axis=0, keepdims=True) * inv_n
    scale = gamma * jax.lax.rsqrt(var + EPS)
    return (a - mean) * scale + beta


def _bn_train_phased(a, gamma, beta, mask, count, phases, P):
    """BatchNorm where `a` packs `phases` spatial phases of the same P channels along
    lanes ([phase0 | phase1 | ...]); statistics are pooled across the phases."""
    inv_n = 1.0 / count

    def fold(v):                       # (1, phases*P) -> (1, P)
        acc = v[:, 0:P]
        for p in range(1, phases):
            acc = acc + v[:, p * P:(p + 1) * P]
        return acc

    def tile(v):                       # (1, P) -> (1, phases*P)
        return jnp.concatenate([v] * phases, axis=-1)

    mean = tile(fold(jnp.sum(a * mask, axis=0, keepdims=True)) * inv_n)
    d = (a - mean) * mask
    var = tile(fold(jnp.sum(d * d, axis=0, keepdims=True)) * inv_n)
    scale = tile(gamma) * jax.lax.rsqrt(var + EPS)
    return (a - mean) * scale + tile(beta)


# ---------------------------------------------------------------------- the kernels
def _make_kernel_stride1(C, wp, gd, R, n, offs9, B, H, W):
    def kernel(x_ref, mask_ref, w2_ref, g2_ref, b2_ref, w1_ref, g1_ref, b1_ref,
               o_ref, grid_ref):
        _pad_input(x_ref, grid_ref, B, H, W, wp, gd)
        mask = mask_ref[...]

        # conv2: one packed MXU matmul (K = 9*C), bf16 inputs / f32 accumulation.
        xp9 = _pack_taps(grid_ref, offs9, gd, R)                      # (R, 9C) f32
        a2 = jnp.dot(xp9.astype(jnp.bfloat16), w2_ref[...],
                     preferred_element_type=jnp.float32)
        h = jnp.maximum(_bn_train(a2, g2_ref[...], b2_ref[...], mask, n), 0.0) * mask
        # TODO(synk): Dropout2d(0.01) train-mode channel masking -> identity here.

        # Re-stage h on the (already zero-ringed) grid and run conv1 the same way.
        grid_ref[gd:gd + R, :] = h
        hp9 = _pack_taps(grid_ref, offs9, gd, R)
        a1 = jnp.dot(hp9.astype(jnp.bfloat16), w1_ref[...],
                     preferred_element_type=jnp.float32)
        out = _bn_train(a1, g1_ref[...], b1_ref[...], mask, n)
        out = out + xp9[:, 4 * C:5 * C]      # identity shortcut (exact f32, tap d=0)
        o_ref[...] = jnp.maximum(out, 0.0)   # ring rows are discarded by the wrapper

    return kernel


def _make_kernel_stride2(C, P, wp, gd, R, n, offs9, B, H, W):
    def kernel(x_ref, mask_ref, w2_ref, g2_ref, b2_ref,
               wd1_ref, g1_ref, b1_ref, wds_ref, gs_ref, bs_ref,
               o_ref, grid_ref):
        _pad_input(x_ref, grid_ref, B, H, W, wp, gd)
        mask = mask_ref[...]

        # conv2 -> bn2 -> relu (packed taps, single matmul)
        xp9 = _pack_taps(grid_ref, offs9, gd, R)                      # (R, 9C) f32
        a2 = jnp.dot(xp9.astype(jnp.bfloat16), w2_ref[...],
                     preferred_element_type=jnp.float32)
        h = jnp.maximum(_bn_train(a2, g2_ref[...], b2_ref[...], mask, n), 0.0) * mask
        # TODO(synk): Dropout2d(0.01) train-mode channel masking -> identity here.

        # The shortcut deconv only needs taps {0, +1, +wp, +wp+1}: a sub-slice of xp9.
        xp4 = jnp.concatenate([xp9[:, 4 * C:6 * C], xp9[:, 7 * C:9 * C]], axis=-1)

        grid_ref[gd:gd + R, :] = h
        hp4 = _pack_taps(grid_ref, (0, 1, wp, wp + 1), gd, R)         # (R, 4C) f32

        # ConvTranspose2d(k=3, s=2, p=1, op=1): the 4 output-parity phases are packed
        # along output lanes -> one (R,4C)@(4C,4P) matmul per branch.  The constant
        # deconv biases are omitted: they cancel exactly under train-mode BatchNorm.
        main = jnp.dot(hp4.astype(jnp.bfloat16), wd1_ref[...],
                       preferred_element_type=jnp.float32)            # (R, 4P)
        sc = jnp.dot(xp4.astype(jnp.bfloat16), wds_ref[...],
                     preferred_element_type=jnp.float32)              # (R, 4P)
        main = _bn_train_phased(main, g1_ref[...], b1_ref[...], mask, 4.0 * n, 4, P)
        sc = _bn_train_phased(sc, gs_ref[...], bs_ref[...], mask, 4.0 * n, 4, P)
        o_ref[...] = jnp.maximum(main + sc, 0.0)   # lane-dense (R, 4P) store

    return kernel


# --------------------------------------------------------------------------- wrapper
def _pack_conv9(w):   # Conv2d weight (Cout, Cin, 3, 3) -> (9*Cin, Cout) bf16
    co, ci = w.shape[0], w.shape[1]
    wt = jnp.transpose(jnp.asarray(w, jnp.float32), (2, 3, 1, 0))     # (3,3,Cin,Cout)
    return wt.reshape(9 * ci, co).astype(jnp.bfloat16)


def _pack_deconv(w):  # ConvTranspose2d weight (Cin, Cout, 3, 3) -> (4*Cin, 4*Cout) bf16
    w = np.asarray(jax.device_get(w), np.float32)
    ci, co = w.shape[0], w.shape[1]
    wd = np.zeros((4 * ci, 4 * co), np.float32)

    def put(tap, phase, ky, kx):      # tap order: [d=0, d=+1, d=+wp, d=+wp+1]
        wd[tap * ci:(tap + 1) * ci, phase * co:(phase + 1) * co] = w[:, :, ky, kx]

    put(0, 0, 1, 1)                                   # p00
    put(1, 1, 1, 0); put(0, 1, 1, 2)                  # p01
    put(2, 2, 0, 1); put(0, 2, 2, 1)                  # p10
    put(3, 3, 0, 0); put(2, 3, 0, 2); put(1, 3, 2, 0); put(0, 3, 2, 2)   # p11
    return jnp.asarray(wd, jnp.bfloat16)


def _row(v):
    return jnp.asarray(v, jnp.float32).reshape(1, -1)


def make_basic_block_dec(params, in_planes, stride, B, H, W):
    """Returns forward(x_nchw) equivalent to BasicBlockDec(in_planes, stride)."""
    C = in_planes
    P = in_planes // stride
    wp = _round_up(W + 2, 8)              # sublane-aligned row pitch of the padded grid
    gd = _round_up(wp + 1, 16)            # aligned guard rows covering the widest shift
    R = B * (H + 2) * wp                  # rows of the flat padded grid
    Rg = R + 2 * gd
    n = float(B * H * W)
    offs9 = [(ky - 1) * wp + (kx - 1) for ky in range(3) for kx in range(3)]

    mask_np = np.zeros((B, H + 2, wp, 1), np.float32)
    mask_np[:, 1:H + 1, 1:W + 1, :] = 1.0
    mask = jnp.asarray(mask_np.reshape(R, 1))

    vmem = pl.BlockSpec(memory_space=pltpu.MemorySpace.VMEM)
    cparams = pltpu.CompilerParams(vmem_limit_bytes=32 * 1024 * 1024)

    w2 = _pack_conv9(params["w_conv2"])
    g2, b2 = _row(params["bn2_g"]), _row(params["bn2_b"])
    g1, b1 = _row(params["bn1_g"]), _row(params["bn1_b"])

    if stride == 1:
        w1 = _pack_conv9(params["w_conv1"])
        consts = (w2, g2, b2, w1, g1, b1)
        call = pl.pallas_call(
            _make_kernel_stride1(C, wp, gd, R, n, offs9, B, H, W),
            out_shape=jax.ShapeDtypeStruct((R, C), jnp.float32),
            in_specs=[vmem] * (2 + len(consts)),
            out_specs=vmem,
            scratch_shapes=[pltpu.VMEM((Rg, C), jnp.float32)],
            compiler_params=cparams,
        )
    else:
        wd1 = _pack_deconv(params["w_conv1"])
        wds = _pack_deconv(params["w_sc"])
        gs, bs = _row(params["bnsc_g"]), _row(params["bnsc_b"])
        consts = (w2, g2, b2, wd1, g1, b1, wds, gs, bs)
        call = pl.pallas_call(
            _make_kernel_stride2(C, P, wp, gd, R, n, offs9, B, H, W),
            out_shape=jax.ShapeDtypeStruct((R, 4 * P), jnp.float32),
            in_specs=[vmem] * (2 + len(consts)),
            out_specs=vmem,
            scratch_shapes=[pltpu.VMEM((Rg, C), jnp.float32)],
            compiler_params=cparams,
        )

    @jax.jit
    def forward(x_nchw):
        # No wrapper-side padding: the kernel pads onto its flat grid internally.
        xr = jnp.transpose(x_nchw, (0, 2, 3, 1)).reshape(B * H, W, C)
        out = call(xr, mask, *consts)
        if stride == 1:
            y = out.reshape(B, H + 2, wp, C)[:, 1:H + 1, 1:W + 1, :]
            return jnp.transpose(y, (0, 3, 1, 2))                     # (B, C, H, W)
        y = out.reshape(B, H + 2, wp, 2, 2, P)[:, 1:H + 1, 1:W + 1]   # (B,H,W,py,px,P)
        y = jnp.transpose(y, (0, 5, 1, 3, 2, 4))                      # (B,P,H,py,W,px)
        return y.reshape(B, P, 2 * H, 2 * W)

    return forward


# ----------------------------------------------------------------- params / reference
def init_params(key, in_planes, stride):
    planes = in_planes // stride
    ks = jax.random.split(key, 12)
    nrm = lambda k, shp, s: s * jax.random.normal(k, shp, jnp.float32)
    p = {
        "w_conv2": nrm(ks[0], (in_planes, in_planes, 3, 3), 0.08),    # Conv2d (O,I,kh,kw)
        "bn2_g": 1.0 + nrm(ks[1], (in_planes,), 0.1),
        "bn2_b": nrm(ks[2], (in_planes,), 0.1),
        "bn1_g": 1.0 + nrm(ks[3], (planes,), 0.1),
        "bn1_b": nrm(ks[4], (planes,), 0.1),
    }
    if stride == 1:
        p["w_conv1"] = nrm(ks[5], (planes, in_planes, 3, 3), 0.08)    # Conv2d (O,I,kh,kw)
    else:
        p["w_conv1"] = nrm(ks[5], (in_planes, planes, 3, 3), 0.08)    # ConvT (I,O,kh,kw)
        p["b_conv1"] = nrm(ks[6], (planes,), 0.1)
        p["w_sc"] = nrm(ks[7], (in_planes, planes, 3, 3), 0.08)
        p["b_sc"] = nrm(ks[8], (planes,), 0.1)
        p["bnsc_g"] = 1.0 + nrm(ks[9], (planes,), 0.1)
        p["bnsc_b"] = nrm(ks[10], (planes,), 0.1)
    return p


def reference_forward(x, params, stride):
    def bn(h, gamma, beta):
        mean = h.mean(axis=(0, 2, 3), keepdims=True)
        var = ((h - mean) ** 2).mean(axis=(0, 2, 3), keepdims=True)   # biased (train)
        return (h - mean) * jax.lax.rsqrt(var + EPS) * gamma.reshape(1, -1, 1, 1) \
               + beta.reshape(1, -1, 1, 1)

    def conv3(h, w):
        return jax.lax.conv_general_dilated(
            h, w, (1, 1), [(1, 1), (1, 1)],
            dimension_numbers=("NCHW", "OIHW", "NCHW"),
            precision=jax.lax.Precision.HIGHEST)

    def deconv2x(h, w, bias):   # ConvTranspose2d k=3, s=2, p=1, output_padding=1, +bias
        wc = jnp.flip(jnp.transpose(w, (1, 0, 2, 3)), axis=(2, 3))
        y = jax.lax.conv_general_dilated(
            h, wc, (1, 1), [(1, 2), (1, 2)], lhs_dilation=(2, 2),
            dimension_numbers=("NCHW", "OIHW", "NCHW"),
            precision=jax.lax.Precision.HIGHEST)
        return y + bias.reshape(1, -1, 1, 1)

    h = jnp.maximum(bn(conv3(x, params["w_conv2"]), params["bn2_g"], params["bn2_b"]), 0.0)
    if stride == 1:
        out = bn(conv3(h, params["w_conv1"]), params["bn1_g"], params["bn1_b"]) + x
    else:
        out = bn(deconv2x(h, params["w_conv1"], params["b_conv1"]),
                 params["bn1_g"], params["bn1_b"])
        out = out + bn(deconv2x(x, params["w_sc"], params["b_sc"]),
                       params["bnsc_g"], params["bnsc_b"])
    return jnp.maximum(out, 0.0)


# ------------------------------------------------------------------------------ main
if __name__ == "__main__":
    B, IN_PLANES, H, W = 2, 16, 8, 8
    key = jax.random.PRNGKey(0)
    kx, kp1, kp2 = jax.random.split(key, 3)
    x = jax.random.normal(kx, (B, IN_PLANES, H, W), jnp.float32)

    for stride, kp in ((1, kp1), (2, kp2)):
        params = init_params(kp, IN_PLANES, stride)
        fwd = make_basic_block_dec(params, IN_PLANES, stride, B, H, W)
        y = jax.block_until_ready(fwd(x))
        planes = IN_PLANES // stride
        assert y.shape == (B, planes, H * stride, W * stride), (stride, y.shape)
        y_ref = jax.block_until_ready(reference_forward(x, params, stride))
        diff = float(jnp.max(jnp.abs(y - y_ref)))
        assert np.allclose(np.asarray(y), np.asarray(y_ref), atol=5e-2, rtol=5e-2), \
            f"stride={stride}: max abs diff {diff}"

    print("KERNEL_OK")
</pallas_src>

<mosaic_0001>
module attributes {stable_mosaic.version = 11 : i64} {
  func.func @kernel(%arg0: memref<16x8x16xf32, #tpu.memory_space<vmem>>, %arg1: memref<320x1xf32, #tpu.memory_space<vmem>>, %arg2: memref<144x16xbf16, #tpu.memory_space<vmem>>, %arg3: memref<1x16xf32, #tpu.memory_space<vmem>>, %arg4: memref<1x16xf32, #tpu.memory_space<vmem>>, %arg5: memref<144x16xbf16, #tpu.memory_space<vmem>>, %arg6: memref<1x16xf32, #tpu.memory_space<vmem>>, %arg7: memref<1x16xf32, #tpu.memory_space<vmem>>, %arg8: memref<320x16xf32, #tpu.memory_space<vmem>>, %arg9: memref<384x16xf32, #tpu.memory_space<vmem>>) attributes {dimension_semantics = [], scalar_prefetch = 0 : i64, scratch_operands = 1 : i64, tpu.core_type = #tpu.core_type<tc>} {
    %cst = arith.constant 0.000000e+00 : f32
    %0 = vector.broadcast %cst : f32 to vector<384x16xf32>
    %c0 = arith.constant 0 : index
    %c0_0 = arith.constant 0 : index
    %1 = vector.load %arg9[%c0, %c0_0] : memref<384x16xf32, #tpu.memory_space<vmem>>, vector<384x16xf32>
    tpu.vector_store %arg9[%c0, %c0_0], %0 {strides = array<i32>} : memref<384x16xf32, #tpu.memory_space<vmem>>, vector<384x16xf32>,
    %c0_1 = arith.constant 0 : index
    %c0_2 = arith.constant 0 : index
    %c0_3 = arith.constant 0 : index
    %2 = vector.load %arg0[%c0_1, %c0_2, %c0_3] : memref<16x8x16xf32, #tpu.memory_space<vmem>>, vector<1x8x16xf32>
    %3 = vector.shape_cast %2 : vector<1x8x16xf32> to vector<8x16xf32>
    %c49 = arith.constant 49 : index
    %c0_4 = arith.constant 0 : index
    %4 = vector.load %arg9[%c49, %c0_4] : memref<384x16xf32, #tpu.memory_space<vmem>>, vector<8x16xf32>
    tpu.vector_store %arg9[%c49, %c0_4], %3 {strides = array<i32>} : memref<384x16xf32, #tpu.memory_space<vmem>>, vector<8x16xf32>,
    %c1 = arith.constant 1 : index
    %c0_5 = arith.constant 0 : index
    %c0_6 = arith.constant 0 : index
    %5 = vector.load %arg0[%c1, %c0_5, %c0_6] : memref<16x8x16xf32, #tpu.memory_space<vmem>>, vector<1x8x16xf32>
    %6 = vector.shape_cast %5 : vector<1x8x16xf32> to vector<8x16xf32>
    %c65 = arith.constant 65 : index
    %c0_7 = arith.constant 0 : index
    %7 = vector.load %arg9[%c65, %c0_7] : memref<384x16xf32, #tpu.memory_space<vmem>>, vector<8x16xf32>
    tpu.vector_store %arg9[%c65, %c0_7], %6 {strides = array<i32>} : memref<384x16xf32, #tpu.memory_space<vmem>>, vector<8x16xf32>,
    %c2 = arith.constant 2 : index
    %c0_8 = arith.constant 0 : index
    %c0_9 = arith.constant 0 : index
    %8 = vector.load %arg0[%c2, %c0_8, %c0_9] : memref<16x8x16xf32, #tpu.memory_space<vmem>>, vector<1x8x16xf32>
    %9 = vector.shape_cast %8 : vector<1x8x16xf32> to vector<8x16xf32>
    %c81 = arith.constant 81 : index
    %c0_10 = arith.constant 0 : index
    %10 = vector.load %arg9[%c81, %c0_10] : memref<384x16xf32, #tpu.memory_space<vmem>>, vector<8x16xf32>
    tpu.vector_store %arg9[%c81, %c0_10], %9 {strides = array<i32>} : memref<384x16xf32, #tpu.memory_space<vmem>>, vector<8x16xf32>,
    %c3 = arith.constant 3 : index
    %c0_11 = arith.constant 0 : index
    %c0_12 = arith.constant 0 : index
    %11 = vector.load %arg0[%c3, %c0_11, %c0_12] : memref<16x8x16xf32, #tpu.memory_space<vmem>>, vector<1x8x16xf32>
    %12 = vector.shape_cast %11 : vector<1x8x16xf32> to vector<8x16xf32>
    %c97 = arith.constant 97 : index
    %c0_13 = arith.constant 0 : index
    %13 = vector.load %arg9[%c97, %c0_13] : memref<384x16xf32, #tpu.memory_space<vmem>>, vector<8x16xf32>
    tpu.vector_store %arg9[%c97, %c0_13], %12 {strides = array<i32>} : memref<384x16xf32, #tpu.memory_space<vmem>>, vector<8x16xf32>,
    %c4 = arith.constant 4 : index
    %c0_14 = arith.constant 0 : index
    %c0_15 = arith.constant 0 : index
    %14 = vector.load %arg0[%c4, %c0_14, %c0_15] : memref<16x8x16xf32, #tpu.memory_space<vmem>>, vector<1x8x16xf32>
    %15 = vector.shape_cast %14 : vector<1x8x16xf32> to vector<8x16xf32>
    %c113 = arith.constant 113 : index
    %c0_16 = arith.constant 0 : index
    %16 = vector.load %arg9[%c113, %c0_16] : memref<384x16xf32, #tpu.memory_space<vmem>>, vector<8x16xf32>
    tpu.vector_store %arg9[%c113, %c0_16], %15 {strides = array<i32>} : memref<384x16xf32, #tpu.memory_space<vmem>>, vector<8x16xf32>,
    %c5 = arith.constant 5 : index
    %c0_17 = arith.constant 0 : index
    %c0_18 = arith.constant 0 : index
    %17 = vector.load %arg0[%c5, %c0_17, %c0_18] : memref<16x8x16xf32, #tpu.memory_space<vmem>>, vector<1x8x16xf32>
    %18 = vector.shape_cast %17 : vector<1x8x16xf32> to vector<8x16xf32>
    %c129 = arith.constant 129 : index
    %c0_19 = arith.constant 0 : index
    %19 = vector.load %arg9[%c129, %c0_19] : memref<384x16xf32, #tpu.memory_space<vmem>>, vector<8x16xf32>
    tpu.vector_store %arg9[%c129, %c0_19], %18 {strides = array<i32>} : memref<384x16xf32, #tpu.memory_space<vmem>>, vector<8x16xf32>,
    %c6 = arith.constant 6 : index
    %c0_20 = arith.constant 0 : index
    %c0_21 = arith.constant 0 : index
    %20 = vector.load %arg0[%c6, %c0_20, %c0_21] : memref<16x8x16xf32, #tpu.memory_space<vmem>>, vector<1x8x16xf32>
    %21 = vector.shape_cast %20 : vector<1x8x16xf32> to vector<8x16xf32>
    %c145 = arith.constant 145 : index
    %c0_22 = arith.constant 0 : index
    %22 = vector.load %arg9[%c145, %c0_22] : memref<384x16xf32, #tpu.memory_space<vmem>>, vector<8x16xf32>
    tpu.vector_store %arg9[%c145, %c0_22], %21 {strides = array<i32>} : memref<384x16xf32, #tpu.memory_space<vmem>>, vector<8x16xf32>,
    %c7 = arith.constant 7 : index
    %c0_23 = arith.constant 0 : index
    %c0_24 = arith.constant 0 : index
    %23 = vector.load %arg0[%c7, %c0_23, %c0_24] : memref<16x8x16xf32, #tpu.memory_space<vmem>>, vector<1x8x16xf32>
    %24 = vector.shape_cast %23 : vector<1x8x16xf32> to vector<8x16xf32>
    %c161 = arith.constant 161 : index
    %c0_25 = arith.constant 0 : index
    %25 = vector.load %arg9[%c161, %c0_25] : memref<384x16xf32, #tpu.memory_space<vmem>>, vector<8x16xf32>
    tpu.vector_store %arg9[%c161, %c0_25], %24 {strides = array<i32>} : memref<384x16xf32, #tpu.memory_space<vmem>>, vector<8x16xf32>,
    %c8 = arith.constant 8 : index
    %c0_26 = arith.constant 0 : index
    %c0_27 = arith.constant 0 : index
    %26 = vector.load %arg0[%c8, %c0_26, %c0_27] : memref<16x8x16xf32, #tpu.memory_space<vmem>>, vector<1x8x16xf32>
    %27 = vector.shape_cast %26 : vector<1x8x16xf32> to vector<8x16xf32>
    %c209 = arith.constant 209 : index
    %c0_28 = arith.constant 0 : index
    %28 = vector.load %arg9[%c209, %c0_28] : memref<384x16xf32, #tpu.memory_space<vmem>>, vector<8x16xf32>
    tpu.vector_store %arg9[%c209, %c0_28], %27 {strides = array<i32>} : memref<384x16xf32, #tpu.memory_space<vmem>>, vector<8x16xf32>,
    %c9 = arith.constant 9 : index
    %c0_29 = arith.constant 0 : index
    %c0_30 = arith.constant 0 : index
    %29 = vector.load %arg0[%c9, %c0_29, %c0_30] : memref<16x8x16xf32, #tpu.memory_space<vmem>>, vector<1x8x16xf32>
    %30 = vector.shape_cast %29 : vector<1x8x16xf32> to vector<8x16xf32>
    %c225 = arith.constant 225 : index
    %c0_31 = arith.constant 0 : index
    %31 = vector.load %arg9[%c225, %c0_31] : memref<384x16xf32, #tpu.memory_space<vmem>>, vector<8x16xf32>
    tpu.vector_store %arg9[%c225, %c0_31], %30 {strides = array<i32>} : memref<384x16xf32, #tpu.memory_space<vmem>>, vector<8x16xf32>,
    %c10 = arith.constant 10 : index
    %c0_32 = arith.constant 0 : index
    %c0_33 = arith.constant 0 : index
    %32 = vector.load %arg0[%c10, %c0_32, %c0_33] : memref<16x8x16xf32, #tpu.memory_space<vmem>>, vector<1x8x16xf32>
    %33 = vector.shape_cast %32 : vector<1x8x16xf32> to vector<8x16xf32>
    %c241 = arith.constant 241 : index
    %c0_34 = arith.constant 0 : index
    %34 = vector.load %arg9[%c241, %c0_34] : memref<384x16xf32, #tpu.memory_space<vmem>>, vector<8x16xf32>
    tpu.vector_store %arg9[%c241, %c0_34], %33 {strides = array<i32>} : memref<384x16xf32, #tpu.memory_space<vmem>>, vector<8x16xf32>,
    %c11 = arith.constant 11 : index
    %c0_35 = arith.constant 0 : index
    %c0_36 = arith.constant 0 : index
    %35 = vector.load %arg0[%c11, %c0_35, %c0_36] : memref<16x8x16xf32, #tpu.memory_space<vmem>>, vector<1x8x16xf32>
    %36 = vector.shape_cast %35 : vector<1x8x16xf32> to vector<8x16xf32>
    %c257 = arith.constant 257 : index
    %c0_37 = arith.constant 0 : index
    %37 = vector.load %arg9[%c257, %c0_37] : memref<384x16xf32, #tpu.memory_space<vmem>>, vector<8x16xf32>
    tpu.vector_store %arg9[%c257, %c0_37], %36 {strides = array<i32>} : memref<384x16xf32, #tpu.memory_space<vmem>>, vector<8x16xf32>,
    %c12 = arith.constant 12 : index
    %c0_38 = arith.constant 0 : index
    %c0_39 = arith.constant 0 : index
    %38 = vector.load %arg0[%c12, %c0_38, %c0_39] : memref<16x8x16xf32, #tpu.memory_space<vmem>>, vector<1x8x16xf32>
    %39 = vector.shape_cast %38 : vector<1x8x16xf32> to vector<8x16xf32>
    %c273 = arith.constant 273 : index
    %c0_40 = arith.constant 0 : index
    %40 = vector.load %arg9[%c273, %c0_40] : memref<384x16xf32, #tpu.memory_space<vmem>>, vector<8x16xf32>
    tpu.vector_store %arg9[%c273, %c0_40], %39 {strides = array<i32>} : memref<384x16xf32, #tpu.memory_space<vmem>>, vector<8x16xf32>,
    %c13 = arith.constant 13 : index
    %c0_41 = arith.constant 0 : index
    %c0_42 = arith.constant 0 : index
    %41 = vector.load %arg0[%c13, %c0_41, %c0_42] : memref<16x8x16xf32, #tpu.memory_space<vmem>>, vector<1x8x16xf32>
    %42 = vector.shape_cast %41 : vector<1x8x16xf32> to vector<8x16xf32>
    %c289 = arith.constant 289 : index
    %c0_43 = arith.constant 0 : index
    %43 = vector.load %arg9[%c289, %c0_43] : memref<384x16xf32, #tpu.memory_space<vmem>>, vector<8x16xf32>
    tpu.vector_store %arg9[%c289, %c0_43], %42 {strides = array<i32>} : memref<384x16xf32, #tpu.memory_space<vmem>>, vector<8x16xf32>,
    %c14 = arith.constant 14 : index
    %c0_44 = arith.constant 0 : index
    %c0_45 = arith.constant 0 : index
    %44 = vector.load %arg0[%c14, %c0_44, %c0_45] : memref<16x8x16xf32, #tpu.memory_space<vmem>>, vector<1x8x16xf32>
    %45 = vector.shape_cast %44 : vector<1x8x16xf32> to vector<8x16xf32>
    %c305 = arith.constant 305 : index
    %c0_46 = arith.constant 0 : index
    %46 = vector.load %arg9[%c305, %c0_46] : memref<384x16xf32, #tpu.memory_space<vmem>>, vector<8x16xf32>
    tpu.vector_store %arg9[%c305, %c0_46], %45 {strides = array<i32>} : memref<384x16xf32, #tpu.memory_space<vmem>>, vector<8x16xf32>,
    %c15 = arith.constant 15 : index
    %c0_47 = arith.constant 0 : index
    %c0_48 = arith.constant 0 : index
    %47 = vector.load %arg0[%c15, %c0_47, %c0_48] : memref<16x8x16xf32, #tpu.memory_space<vmem>>, vector<1x8x16xf32>
    %48 = vector.shape_cast %47 : vector<1x8x16xf32> to vector<8x16xf32>
    %c321 = arith.constant 321 : index
    %c0_49 = arith.constant 0 : index
    %49 = vector.load %arg9[%c321, %c0_49] : memref<384x16xf32, #tpu.memory_space<vmem>>, vector<8x16xf32>
    tpu.vector_store %arg9[%c321, %c0_49], %48 {strides = array<i32>} : memref<384x16xf32, #tpu.memory_space<vmem>>, vector<8x16xf32>,
    %c0_50 = arith.constant 0 : index
    %c0_51 = arith.constant 0 : index
    %50 = vector.load %arg1[%c0_50, %c0_51] : memref<320x1xf32, #tpu.memory_space<vmem>>, vector<320x1xf32>
    %c15_52 = arith.constant 15 : index
    %c0_53 = arith.constant 0 : index
    %51 = vector.load %arg9[%c15_52, %c0_53] : memref<384x16xf32, #tpu.memory_space<vmem>>, vector<320x16xf32>
    %c16 = arith.constant 16 : index
    %c0_54 = arith.constant 0 : index
    %52 = vector.load %arg9[%c16, %c0_54] : memref<384x16xf32, #tpu.memory_space<vmem>>, vector<320x16xf32>
    %c17 = arith.constant 17 : index
    %c0_55 = arith.constant 0 : index
    %53 = vector.load %arg9[%c17, %c0_55] : memref<384x16xf32, #tpu.memory_space<vmem>>, vector<320x16xf32>
    %c31 = arith.constant 31 : index
    %c0_56 = arith.constant 0 : index
    %54 = vector.load %arg9[%c31, %c0_56] : memref<384x16xf32, #tpu.memory_space<vmem>>, vector<320x16xf32>
    %c32 = arith.constant 32 : index
    %c0_57 = arith.constant 0 : index
    %55 = vector.load %arg9[%c32, %c0_57] : memref<384x16xf32, #tpu.memory_space<vmem>>, vector<320x16xf32>
    %c33 = arith.constant 33 : index
    %c0_58 = arith.constant 0 : index
    %56 = vector.load %arg9[%c33, %c0_58] : memref<384x16xf32, #tpu.memory_space<vmem>>, vector<320x16xf32>
    %c47 = arith.constant 47 : index
    %c0_59 = arith.constant 0 : index
    %57 = vector.load %arg9[%c47, %c0_59] : memref<384x16xf32, #tpu.memory_space<vmem>>, vector<320x16xf32>
    %c48 = arith.constant 48 : index
    %c0_60 = arith.constant 0 : index
    %58 = vector.load %arg9[%c48, %c0_60] : memref<384x16xf32, #tpu.memory_space<vmem>>, vector<320x16xf32>
    %c49_61 = arith.constant 49 : index
    %c0_62 = arith.constant 0 : index
    %59 = vector.load %arg9[%c49_61, %c0_62] : memref<384x16xf32, #tpu.memory_space<vmem>>, vector<320x16xf32>
    %60 = tpu.concatenate %51, %52, %53, %54, %55, %56, %57, %58, %59 in 1 : vector<320x16xf32>, vector<320x16xf32>, vector<320x16xf32>, vector<320x16xf32>, vector<320x16xf32>, vector<320x16xf32>, vector<320x16xf32>, vector<320x16xf32>, vector<320x16xf32> -> vector<320x144xf32>
    %61 = arith.truncf %60 : vector<320x144xf32> to vector<320x144xbf16>
    %c0_63 = arith.constant 0 : index
    %c0_64 = arith.constant 0 : index
    %62 = vector.load %arg2[%c0_63, %c0_64] : memref<144x16xbf16, #tpu.memory_space<vmem>>, vector<144x16xbf16>
    %cst_65 = arith.constant dense<0.000000e+00> : vector<320x16xf32>
    %63 = tpu.matmul %61, %62, %cst_65 {dimension_numbers = #tpu.dot_dimension_numbers<[1], [0], [0], [1], [0, 0, 1, 1], [], []>} : vector<320x144xbf16>, vector<144x16xbf16>, vector<320x16xf32> -> vector<320x16xf32>
    %c0_66 = arith.constant 0 : index
    %c0_67 = arith.constant 0 : index
    %64 = vector.load %arg3[%c0_66, %c0_67] : memref<1x16xf32, #tpu.memory_space<vmem>>, vector<1x16xf32>
    %c0_68 = arith.constant 0 : index
    %c0_69 = arith.constant 0 : index
    %65 = vector.load %arg4[%c0_68, %c0_69] : memref<1x16xf32, #tpu.memory_space<vmem>>, vector<1x16xf32>
    %66 = vector.broadcast %50 : vector<320x1xf32> to vector<320x16xf32>
    %67 = arith.mulf %63, %66 : vector<320x16xf32>
    %cst_70 = arith.constant dense<0.000000e+00> : vector<16xf32>
    %68 = vector.multi_reduction <add>, %67, %cst_70 [0] : vector<320x16xf32> to vector<16xf32>
    %69 = vector.shape_cast %68 : vector<16xf32> to vector<1x16xf32>
    %cst_71 = arith.constant 7.812500e-03 : f32
    %70 = vector.broadcast %cst_71 : f32 to vector<1x16xf32>
    %71 = arith.mulf %69, %70 : vector<1x16xf32>
    %72 = vector.broadcast %71 : vector<1x16xf32> to vector<320x16xf32>
    %73 = arith.subf %63, %72 : vector<320x16xf32>
    %74 = vector.broadcast %50 : vector<320x1xf32> to vector<320x16xf32>
    %75 = arith.mulf %73, %74 : vector<320x16xf32>
    %76 = arith.mulf %75, %75 : vector<320x16xf32>
    %cst_72 = arith.constant dense<0.000000e+00> : vector<16xf32>
    %77 = vector.multi_reduction <add>, %76, %cst_72 [0] : vector<320x16xf32> to vector<16xf32>
    %78 = vector.shape_cast %77 : vector<16xf32> to vector<1x16xf32>
    %cst_73 = arith.constant 7.812500e-03 : f32
    %79 = vector.broadcast %cst_73 : f32 to vector<1x16xf32>
    %80 = arith.mulf %78, %79 : vector<1x16xf32>
    %cst_74 = arith.constant 9.99999974E-6 : f32
    %81 = vector.broadcast %cst_74 : f32 to vector<1x16xf32>
    %82 = arith.addf %80, %81 : vector<1x16xf32>
    %83 = math.rsqrt %82 : vector<1x16xf32>
    %84 = arith.mulf %64, %83 : vector<1x16xf32>
    %85 = vector.broadcast %71 : vector<1x16xf32> to vector<320x16xf32>
    %86 = arith.subf %63, %85 : vector<320x16xf32>
    %87 = vector.broadcast %84 : vector<1x16xf32> to vector<320x16xf32>
    %88 = arith.mulf %86, %87 : vector<320x16xf32>
    %89 = vector.broadcast %65 : vector<1x16xf32> to vector<320x16xf32>
    %90 = arith.addf %88, %89 : vector<320x16xf32>
    %cst_75 = arith.constant 0.000000e+00 : f32
    %91 = vector.broadcast %cst_75 : f32 to vector<320x16xf32>
    %92 = arith.maximumf %90, %91 : vector<320x16xf32>
    %93 = vector.broadcast %50 : vector<320x1xf32> to vector<320x16xf32>
    %94 = arith.mulf %92, %93 : vector<320x16xf32>
    %c32_76 = arith.constant 32 : index
    %c0_77 = arith.constant 0 : index
    %95 = vector.load %arg9[%c32_76, %c0_77] : memref<384x16xf32, #tpu.memory_space<vmem>>, vector<320x16xf32>
    tpu.vector_store %arg9[%c32_76, %c0_77], %94 {strides = array<i32>} : memref<384x16xf32, #tpu.memory_space<vmem>>, vector<320x16xf32>,
    %c15_78 = arith.constant 15 : index
    %c0_79 = arith.constant 0 : index
    %96 = vector.load %arg9[%c15_78, %c0_79] : memref<384x16xf32, #tpu.memory_space<vmem>>, vector<320x16xf32>
    %c16_80 = arith.constant 16 : index
    %c0_81 = arith.constant 0 : index
    %97 = vector.load %arg9[%c16_80, %c0_81] : memref<384x16xf32, #tpu.memory_space<vmem>>, vector<320x16xf32>
    %c17_82 = arith.constant 17 : index
    %c0_83 = arith.constant 0 : index
    %98 = vector.load %arg9[%c17_82, %c0_83] : memref<384x16xf32, #tpu.memory_space<vmem>>, vector<320x16xf32>
    %c31_84 = arith.constant 31 : index
    %c0_85 = arith.constant 0 : index
    %99 = vector.load %arg9[%c31_84, %c0_85] : memref<384x16xf32, #tpu.memory_space<vmem>>, vector<320x16xf32>
    %c32_86 = arith.constant 32 : index
    %c0_87 = arith.constant 0 : index
    %100 = vector.load %arg9[%c32_86, %c0_87] : memref<384x16xf32, #tpu.memory_space<vmem>>, vector<320x16xf32>
    %c33_88 = arith.constant 33 : index
    %c0_89 = arith.constant 0 : index
    %101 = vector.load %arg9[%c33_88, %c0_89] : memref<384x16xf32, #tpu.memory_space<vmem>>, vector<320x16xf32>
    %c47_90 = arith.constant 47 : index
    %c0_91 = arith.constant 0 : index
    %102 = vector.load %arg9[%c47_90, %c0_91] : memref<384x16xf32, #tpu.memory_space<vmem>>, vector<320x16xf32>
    %c48_92 = arith.constant 48 : index
    %c0_93 = arith.constant 0 : index
    %103 = vector.load %arg9[%c48_92, %c0_93] : memref<384x16xf32, #tpu.memory_space<vmem>>, vector<320x16xf32>
    %c49_94 = arith.constant 49 : index
    %c0_95 = arith.constant 0 : index
    %104 = vector.load %arg9[%c49_94, %c0_95] : memref<384x16xf32, #tpu.memory_space<vmem>>, vector<320x16xf32>
    %105 = tpu.concatenate %96, %97, %98, %99, %100, %101, %102, %103, %104 in 1 : vector<320x16xf32>, vector<320x16xf32>, vector<320x16xf32>, vector<320x16xf32>, vector<320x16xf32>, vector<320x16xf32>, vector<320x16xf32>, vector<320x16xf32>, vector<320x16xf32> -> vector<320x144xf32>
    %106 = arith.truncf %105 : vector<320x144xf32> to vector<320x144xbf16>
    %c0_96 = arith.constant 0 : index
    %c0_97 = arith.constant 0 : index
    %107 = vector.load %arg5[%c0_96, %c0_97] : memref<144x16xbf16, #tpu.memory_space<vmem>>, vector<144x16xbf16>
    %cst_98 = arith.constant dense<0.000000e+00> : vector<320x16xf32>
    %108 = tpu.matmul %106, %107, %cst_98 {dimension_numbers = #tpu.dot_dimension_numbers<[1], [0], [0], [1], [0, 0, 1, 1], [], []>} : vector<320x144xbf16>, vector<144x16xbf16>, vector<320x16xf32> -> vector<320x16xf32>
    %c0_99 = arith.constant 0 : index
    %c0_100 = arith.constant 0 : index
    %109 = vector.load %arg6[%c0_99, %c0_100] : memref<1x16xf32, #tpu.memory_space<vmem>>, vector<1x16xf32>
    %c0_101 = arith.constant 0 : index
    %c0_102 = arith.constant 0 : index
    %110 = vector.load %arg7[%c0_101, %c0_102] : memref<1x16xf32, #tpu.memory_space<vmem>>, vector<1x16xf32>
    %111 = vector.broadcast %50 : vector<320x1xf32> to vector<320x16xf32>
    %112 = arith.mulf %108, %111 : vector<320x16xf32>
    %cst_103 = arith.constant dense<0.000000e+00> : vector<16xf32>
    %113 = vector.multi_reduction <add>, %112, %cst_103 [0] : vector<320x16xf32> to vector<16xf32>
    %114 = vector.shape_cast %113 : vector<16xf32> to vector<1x16xf32>
    %cst_104 = arith.constant 7.812500e-03 : f32
    %115 = vector.broadcast %cst_104 : f32 to vector<1x16xf32>
    %116 = arith.mulf %114, %115 : vector<1x16xf32>
    %117 = vector.broadcast %116 : vector<1x16xf32> to vector<320x16xf32>
    %118 = arith.subf %108, %117 : vector<320x16xf32>
    %119 = vector.broadcast %50 : vector<320x1xf32> to vector<320x16xf32>
    %120 = arith.mulf %118, %119 : vector<320x16xf32>
    %121 = arith.mulf %120, %120 : vector<320x16xf32>
    %cst_105 = arith.constant dense<0.000000e+00> : vector<16xf32>
    %122 = vector.multi_reduction <add>, %121, %cst_105 [0] : vector<320x16xf32> to vector<16xf32>
    %123 = vector.shape_cast %122 : vector<16xf32> to vector<1x16xf32>
    %cst_106 = arith.constant 7.812500e-03 : f32
    %124 = vector.broadcast %cst_106 : f32 to vector<1x16xf32>
    %125 = arith.mulf %123, %124 : vector<1x16xf32>
    %cst_107 = arith.constant 9.99999974E-6 : f32
    %126 = vector.broadcast %cst_107 : f32 to vector<1x16xf32>
    %127 = arith.addf %125, %126 : vector<1x16xf32>
    %128 = math.rsqrt %127 : vector<1x16xf32>
    %129 = arith.mulf %109, %128 : vector<1x16xf32>
    %130 = vector.broadcast %116 : vector<1x16xf32> to vector<320x16xf32>
    %131 = arith.subf %108, %130 : vector<320x16xf32>
    %132 = vector.broadcast %129 : vector<1x16xf32> to vector<320x16xf32>
    %133 = arith.mulf %131, %132 : vector<320x16xf32>
    %134 = vector.broadcast %110 : vector<1x16xf32> to vector<320x16xf32>
    %135 = arith.addf %133, %134 : vector<320x16xf32>
    %136 = vector.extract_strided_slice %60 {offsets = [0, 64], sizes = [320, 16], strides = [1, 1]} : vector<320x144xf32> to vector<320x16xf32>
    %137 = arith.addf %135, %136 : vector<320x16xf32>
    %cst_108 = arith.constant 0.000000e+00 : f32
    %138 = vector.broadcast %cst_108 : f32 to vector<320x16xf32>
    %139 = arith.maximumf %137, %138 : vector<320x16xf32>
    %c0_109 = arith.constant 0 : index
    %c0_110 = arith.constant 0 : index
    %140 = vector.load %arg8[%c0_109, %c0_110] : memref<320x16xf32, #tpu.memory_space<vmem>>, vector<320x16xf32>
    tpu.vector_store %arg8[%c0_109, %c0_110], %139 {strides = array<i32>} : memref<320x16xf32, #tpu.memory_space<vmem>>, vector<320x16xf32>,
    return
  }
}

</mosaic_0001>

<bundles_post_ra>
// kernel: forward.1
= control target key start
LH: loop header
LB: loop body
LE: loop exit
PB: predicated region body
PF: predicated region fallthrough
CT: control target
= control target key end

     0   :  { %13 = vsyncpa [#allocation4], 0  ;;  %s10473_s0 = inlined_call_operand.hbm [shape: f32[16,8,16], index: 0, kind: input, shape index: {}]   ;;  %s10474_s1 = inlined_call_operand.hbm [shape: f32[320,1], index: 1, kind: input, shape index: {}]   ;;  %s10475_s2 = inlined_call_operand.hbm [shape: bf16[144,16], index: 2, kind: input, shape index: {}]   ;;  %s10476_s3 = inlined_call_operand.vmem [shape: f32[1,16], index: 3, kind: input, shape index: {}]   ;;  %s10477_s4 = inlined_call_operand.vmem [shape: f32[1,16], index: 4, kind: input, shape index: {}]   ;;  %s10478_s5 = inlined_call_operand.hbm [shape: bf16[144,16], index: 5, kind: input, shape index: {}]   ;;  %s10479_s6 = inlined_call_operand.vmem [shape: f32[1,16], index: 6, kind: input, shape index: {}]   ;;  %s10480_s7 = inlined_call_operand.vmem [shape: f32[1,16], index: 7, kind: input, shape index: {}]   ;;  %s10481_s8 = inlined_call_operand.vmem [shape: f32[320,16], index: 8, kind: output, shape index: {}]  }
   0x1   :  { %14 = vsyncpa [#allocation6], 0 }
   0x2   :  { %15 = vsyncpa [#allocation9], 0  ;;  %s6160_s27 = smov [#allocation5]   ;;  %s6161_s29 = smov [#allocation3]  }
   0x3   :  { %s33_s28 = sshll.u32 %s6160_s27, 4  ;;  %s21_s30 = sshll.u32 %s6161_s29, 4  ;;  %s34_s28 = int_to_ptr.vmem [resolvable:$true] %s33_s28  ;;  %s22_s30 = int_to_ptr.vmem [resolvable:$true] %s21_s30 }
   0x4   :  { %s6082_s9 = scalar_lea.vmem %s34_s28, 5120  ;;  %p6087_p1 = scmp.lt.s32.totalorder %s34_s28, %s34_s28 }
   0x5   :  { %p6083_p0 = scmp.ne.s32.totalorder %s34_s28, %s6082_s9  ;;  %p6088_p2 = scmp.lt.s32.totalorder %s6082_s9, %s6082_s9 }
   0x7   :  { %p6089_p3 = por %p6088_p2, %p6087_p1 }
   0x9   :  { %p6090_p4 = pnand %p6089_p3, %p6083_p0 }
   0xb   :  { %6093 = shalt.err (!%p6090_p4)
}
   0xc   :  { %s6162_s10 = smov 128   ;;  %s6163_s11 = smov 8  }
   0xd   :  { %39 = dma.hbm_to_vmem [thread:$0]  %s10474_s1, 5120, %s34_s28, [#allocation6], %s6162_s10, %s6162_s10, %s6163_s11  }
   0xe   :  { %s6102_s14 = scalar_lea.vmem %s22_s30, 2048  ;;  %p6107_p6 = scmp.lt.s32.totalorder %s22_s30, %s22_s30 }
   0xf   :  { %p6103_p5 = scmp.ne.s32.totalorder %s22_s30, %s6102_s14  ;;  %p6108_p7 = scmp.lt.s32.totalorder %s6102_s14, %s6102_s14 }
  0x11   :  { %p6109_p8 = por %p6108_p7, %p6107_p6 }
  0x13   :  { %p6110_p9 = pnand %p6109_p8, %p6103_p5 }
  0x15   :  { %6113 = shalt.err (!%p6110_p9)
}
  0x16   :  { %27 = dma.hbm_to_vmem [thread:$0]  %s10473_s0, 2048, %s22_s30, [#allocation4], %s6162_s10, %s6162_s10, %s6163_s11  }
  0x17   :  { %s6164_s17 = smov [#allocation7]  }
  0x18   :  { %s45_s18 = sshll.u32 %s6164_s17, 4  ;;  %s46_s18 = int_to_ptr.vmem [resolvable:$true] %s45_s18 }
  0x19   :  { %s6122_s19 = scalar_lea.vmem %s46_s18, 1152  ;;  %p6127_p11 = scmp.lt.s32.totalorder %s46_s18, %s46_s18 }
  0x1a   :  { %p6123_p10 = scmp.ne.s32.totalorder %s46_s18, %s6122_s19  ;;  %p6128_p12 = scmp.lt.s32.totalorder %s6122_s19, %s6122_s19 }
  0x1c   :  { %p6129_p13 = por %p6128_p12, %p6127_p11 }
  0x1e   :  { %p6130_p0 = pnand %p6129_p13, %p6123_p10 }
  0x20   :  { %6133 = shalt.err (!%p6130_p0)
}
  0x21   :  { %s6165_s1 = smov 64   ;;  %s6166_s20 = smov 4  }
  0x22   :  { %51 = dma.hbm_to_vmem [thread:$0]  %s10475_s2, 1152, %s46_s18, [#allocation6], %s6165_s1, %s6165_s1, %s6166_s20  }
  0x23   :  { %s6167_s23 = smov [#allocation8]  }
  0x24   :  { %s61_s0 = sshll.u32 %s6167_s23, 4  ;;  %s62_s0 = int_to_ptr.vmem [resolvable:$true] %s61_s0 }
  0x25   :  { %s6142_s24 = scalar_lea.vmem %s62_s0, 1152  ;;  %p6147_p2 = scmp.lt.s32.totalorder %s62_s0, %s62_s0 }
  0x26   :  { %p6143_p1 = scmp.ne.s32.totalorder %s62_s0, %s6142_s24  ;;  %p6148_p3 = scmp.lt.s32.totalorder %s6142_s24, %s6142_s24 }
  0x28   :  { %p6149_p4 = por %p6148_p3, %p6147_p2 }
  0x2a   :  { %p6150_p5 = pnand %p6149_p4, %p6143_p1 }
  0x2c   :  { %6153 = shalt.err (!%p6150_p5)
}
  0x2d   :  { %67 = dma.hbm_to_vmem [thread:$0]  %s10478_s5, 1152, %s62_s0, [#allocation9], %s6165_s1, %s6165_s1, %s6166_s20  }
  0x2e   :  { %6154 = dma.done.wait [#allocation4], 2048  }
  0x2f   :  { %6155 = vsyncadd [#allocation4], 4294965248 }
  0x30   :  { %6156 = dma.done.wait [#allocation6], 6272  }
  0x31   :  { %6157 = vsyncadd [#allocation6], 4294961024 }
  0x32   :  { %6158 = dma.done.wait [#allocation9], 1152  }
  0x33   :  { %6159 = vsyncadd [#allocation9], 4294966144  ;;  %vm85_vm0 = vcmask 130048   ;;  %v6168_v0 = vmov 0.0   ;;  %v134_v1 = vld [vmem:[#allocation3] sm:$0xff]  ;;  %v137_v2 = vld [vmem:[#allocation3 + $0x8] sm:$0xff] }
  0x34   :  { %87 = vst.msk [vmem:[#allocation2 + $0x8] sm:$0xff] %vm85_vm0, %v6168_v0  ;;  %88 = vst.msk [vmem:[#allocation2 + $0x10] sm:$0xff] %vm85_vm0, %v6168_v0  ;;  %v140_v3 = vld [vmem:[#allocation3 + $0x10] sm:$0xff]  ;;  %s6169_s2 = smov 16   ;;  %v143_v8 = vld [vmem:[#allocation3 + $0x18] sm:$0xff]  ;;  %s6170_s5 = smov 32  }
  0x35   :  { %89 = vst.msk [vmem:[#allocation2 + $0x18] sm:$0xff] %vm85_vm0, %v6168_v0  ;;  %90 = vst.msk [vmem:[#allocation2 + $0x20] sm:$0xff] %vm85_vm0, %v6168_v0  ;;  %v146_v9 = vld [vmem:[#allocation3 + $0x20] sm:$0xff]  ;;  %v149_v10 = vld [vmem:[#allocation3 + $0x28] sm:$0xff]  ;;  %s6171_s27 = smov 48   ;;  %s6173_s28 = smov 80  }
  0x36   :  { %91 = vst.msk [vmem:[#allocation2 + $0x28] sm:$0xff] %vm85_vm0, %v6168_v0  ;;  %92 = vst.msk [vmem:[#allocation2 + $0x30] sm:$0xff] %vm85_vm0, %v6168_v0  ;;  %v152_v11 = vld [vmem:[#allocation3 + $0x30] sm:$0xff]  ;;  %v155_v12 = vld [vmem:[#allocation3 + $0x38] sm:$0xff]  ;;  %s6174_s29 = smov 96   ;;  %s6175_s30 = smov 112  }
  0x37   :  { %93 = vst.msk [vmem:[#allocation2 + $0x38] sm:$0xff] %vm85_vm0, %v6168_v0  ;;  %94 = vst.msk [vmem:[#allocation2 + $0x40] sm:$0xff] %vm85_vm0, %v6168_v0  ;;  %v158_v13 = vld [vmem:[#allocation3 + $0x40] sm:$0xff]  ;;  %v161_v14 = vld [vmem:[#allocation3 + $0x48] sm:$0xff]  ;;  %vm1361_vm1 = vcmask 261120   ;;  %vm1402_vm2 = vcmask 392192  }
  0x38   :  { %95 = vst.msk [vmem:[#allocation2 + $0x48] sm:$0xff] %vm85_vm0, %v6168_v0  ;;  %96 = vst.msk [vmem:[#allocation2 + $0x50] sm:$0xff] %vm85_vm0, %v6168_v0  ;;  %v164_v15 = vld [vmem:[#allocation3 + $0x50] sm:$0xff]  ;;  %v167_v16 = vld [vmem:[#allocation3 + $0x58] sm:$0xff]  ;;  %vm1443_vm3 = vcmask 523264   ;;  %vm1484_vm4 = vcmask 654336  }
  0x39   :  { %97 = vst.msk [vmem:[#allocation2 + $0x58] sm:$0xff] %vm85_vm0, %v6168_v0  ;;  %98 = vst.msk [vmem:[#allocation2 + $0x60] sm:$0xff] %vm85_vm0, %v6168_v0  ;;  %v170_v17 = vld [vmem:[#allocation3 + $0x60] sm:$0xff]  ;;  %v173_v18 = vld [vmem:[#allocation3 + $0x68] sm:$0xff]  ;;  %vm1525_vm5 = vcmask 785408   ;;  %vm1566_vm6 = vcmask 916480  }
  0x3a   :  { %99 = vst.msk [vmem:[#allocation2 + $0x68] sm:$0xff] %vm85_vm0, %v6168_v0  ;;  %100 = vst.msk [vmem:[#allocation2 + $0x70] sm:$0xff] %vm85_vm0, %v6168_v0  ;;  %v176_v19 = vld [vmem:[#allocation3 + $0x70] sm:$0xff]  ;;  %v179_v20 = vld [vmem:[#allocation3 + $0x78] sm:$0xff] }
  0x3b   :  { %101 = vst.msk [vmem:[#allocation2 + $0x78] sm:$0xff] %vm85_vm0, %v6168_v0  ;;  %102 = vst.msk [vmem:[#allocation2 + $0x80] sm:$0xff] %vm85_vm0, %v6168_v0  ;;  %v261_v5 = vld [vmem:[#allocation2 + $0x10] sm:$0xff] }
  0x3c   :  { %103 = vst.msk [vmem:[#allocation2 + $0x88] sm:$0xff] %vm85_vm0, %v6168_v0  ;;  %104 = vst.msk [vmem:[#allocation2 + $0x90] sm:$0xff] %vm85_vm0, %v6168_v0  ;;  %v6283_v4 = vld [vmem:[#allocation2 + $0x20] sm:$0xff]  ;;  %393 = vrot.lane.b32.xlu0 %v261_v5, %s6169_s2  ;;  %v262_v7 = vld [vmem:[#allocation2 + $0x18] sm:$0xff] }
  0x3d   :  { %105 = vst.msk [vmem:[#allocation2 + $0x98] sm:$0xff] %vm85_vm0, %v6168_v0  ;;  %106 = vst.msk [vmem:[#allocation2 + $0xa0] sm:$0xff] %vm85_vm0, %v6168_v0  ;;  %v6285_v6 = vld [vmem:[#allocation2 + $0x28] sm:$0xff]  ;;  %397 = vrot.lane.b32.xlu1 %v6283_v4, %s6169_s2  ;;  %v302_v57 = vld [vmem:[#allocation2 + $0x19] sm:$0xff] }
  0x3e   :  { %107 = vst.msk [vmem:[#allocation2 + $0xa8] sm:$0xff] %vm85_vm0, %v6168_v0  ;;  %108 = vst.msk [vmem:[#allocation2 + $0xb0] sm:$0xff] %vm85_vm0, %v6168_v0  ;;  %v301_v58 = vld [vmem:[#allocation2 + $0x11] sm:$0xff]  ;;  %v6401_v59 = vld [vmem:[#allocation2 + $0x29] sm:$0xff] }
  0x3f   :  { %109 = vst.msk [vmem:[#allocation2 + $0xb8] sm:$0xff] %vm85_vm0, %v6168_v0  ;;  %110 = vst.msk [vmem:[#allocation2 + $0xc0] sm:$0xff] %vm85_vm0, %v6168_v0  ;;  %v6403_v60 = vld [vmem:[#allocation2 + $0x21] sm:$0xff]  ;;  %v6409_v61 = vld [vmem:[#allocation2 + $0x39] sm:$0xff] }
  0x40   :  { %111 = vst.msk [vmem:[#allocation2 + $0xc8] sm:$0xff] %vm85_vm0, %v6168_v0  ;;  %112 = vst.msk [vmem:[#allocation2 + $0xd0] sm:$0xff] %vm85_vm0, %v6168_v0  ;;  %395 = vrot.lane.b32.xlu0 %v262_v7, %s6169_s2  ;;  %v6417_v63 = vld [vmem:[#allocation2 + $0x49] sm:$0xff] }
  0x41   :  { %113 = vst.msk [vmem:[#allocation2 + $0xd8] sm:$0xff] %vm85_vm0, %v6168_v0  ;;  %114 = vst.msk [vmem:[#allocation2 + $0xe0] sm:$0xff] %vm85_vm0, %v6168_v0  ;;  %399 = vrot.lane.b32.xlu1 %v6285_v6, %s6169_s2 }
  0x42   :  { %115 = vst.msk [vmem:[#allocation2 + $0xe8] sm:$0xff] %vm85_vm0, %v6168_v0  ;;  %116 = vst.msk [vmem:[#allocation2 + $0xf0] sm:$0xff] %vm85_vm0, %v6168_v0  ;;  %v6441_v7 = vld [vmem:[#allocation2 + $0x79] sm:$0xff] }
  0x43   :  { %117 = vst.msk [vmem:[#allocation2 + $0xf8] sm:$0xff] %vm85_vm0, %v6168_v0  ;;  %118 = vst.msk [vmem:[#allocation2 + $0x100] sm:$0xff] %vm85_vm0, %v6168_v0 }
  0x44   :  { %119 = vst.msk [vmem:[#allocation2 + $0x108] sm:$0xff] %vm85_vm0, %v6168_v0  ;;  %120 = vst.msk [vmem:[#allocation2 + $0x110] sm:$0xff] %vm85_vm0, %v6168_v0 }
  0x45   :  { %121 = vst.msk [vmem:[#allocation2 + $0x118] sm:$0xff] %vm85_vm0, %v6168_v0  ;;  %122 = vst.msk [vmem:[#allocation2 + $0x120] sm:$0xff] %vm85_vm0, %v6168_v0  ;;  %v6375_v38 = vld [vmem:[#allocation2 + $0xb0] sm:$0xff] }
  0x46   :  { %123 = vst.msk [vmem:[#allocation2 + $0x128] sm:$0xff] %vm85_vm0, %v6168_v0  ;;  %124 = vst.msk [vmem:[#allocation2 + $0x130] sm:$0xff] %vm85_vm0, %v6168_v0  ;;  %v6373_v37 = vld [vmem:[#allocation2 + $0xb8] sm:$0xff]  ;;  %v283_v40 = vld [vmem:[#allocation2 + $0xc0] sm:$0xff] }
  0x47   :  { %125 = vst.msk [vmem:[#allocation2 + $0x138] sm:$0xff] %vm85_vm0, %v6168_v0  ;;  %126 = vst.msk [vmem:[#allocation2 + $0x140] sm:$0xff] %vm85_vm0, %v6168_v0  ;;  %v284_v39 = vld [vmem:[#allocation2 + $0xc8] sm:$0xff] }
  0x48   :  { %127 = vst.msk [vmem:[#allocation2 + $0x148] sm:$0xff] %vm85_vm0, %v6168_v0  ;;  %128 = vst.msk [vmem:[#allocation2 + $0x150] sm:$0xff] %vm85_vm0, %v6168_v0 }
  0x49   :  { %129 = vst.msk [vmem:[#allocation2 + $0x158] sm:$0xff] %vm85_vm0, %v6168_v0  ;;  %130 = vst.msk [vmem:[#allocation2 + $0x160] sm:$0xff] %vm85_vm0, %v6168_v0 }
  0x4a   :  { %131 = vst.msk [vmem:[#allocation2 + $0x168] sm:$0xff] %vm85_vm0, %v6168_v0  ;;  %132 = vst.msk [vmem:[#allocation2 + $0x170] sm:$0xff] %vm85_vm0, %v6168_v0 }
  0x4b   :  { %135 = vst.msk [vmem:[#allocation2 + $0x31] sm:$0xff] %vm85_vm0, %v134_v1  ;;  %138 = vst.msk [vmem:[#allocation2 + $0x41] sm:$0xff] %vm85_vm0, %v137_v2  ;;  %v6425_v1 = vld [vmem:[#allocation2 + $0x59] sm:$0xff] }
  0x4c   :  { %141 = vst.msk [vmem:[#allocation2 + $0x51] sm:$0xff] %vm85_vm0, %v140_v3  ;;  %144 = vst.msk [vmem:[#allocation2 + $0x61] sm:$0xff] %vm85_vm0, %v143_v8  ;;  %v6433_v3 = vld [vmem:[#allocation2 + $0x69] sm:$0xff] }
  0x4d   :  { %147 = vst.msk [vmem:[#allocation2 + $0x71] sm:$0xff] %vm85_vm0, %v146_v9  ;;  %150 = vst.msk [vmem:[#allocation2 + $0x81] sm:$0xff] %vm85_vm0, %v149_v10  ;;  %v6449_v9 = vld [vmem:[#allocation2 + $0x89] sm:$0xff] }
  0x4e   :  { %153 = vst.msk [vmem:[#allocation2 + $0x91] sm:$0xff] %vm85_vm0, %v152_v11  ;;  %156 = vst.msk [vmem:[#allocation2 + $0xa1] sm:$0xff] %vm85_vm0, %v155_v12  ;;  %v6457_v11 = vld [vmem:[#allocation2 + $0x99] sm:$0xff] }
  0x4f   :  { %159 = vst.msk [vmem:[#allocation2 + $0xd1] sm:$0xff] %vm85_vm0, %v158_v13  ;;  %162 = vst.msk [vmem:[#allocation2 + $0xe1] sm:$0xff] %vm85_vm0, %v161_v14  ;;  %v6465_v13 = vld [vmem:[#allocation2 + $0xa9] sm:$0xff] }
  0x50   :  { %165 = vst.msk [vmem:[#allocation2 + $0xf1] sm:$0xff] %vm85_vm0, %v164_v15  ;;  %168 = vst.msk [vmem:[#allocation2 + $0x101] sm:$0xff] %vm85_vm0, %v167_v16 }
  0x51   :  { %171 = vst.msk [vmem:[#allocation2 + $0x111] sm:$0xff] %vm85_vm0, %v170_v17  ;;  %174 = vst.msk [vmem:[#allocation2 + $0x121] sm:$0xff] %vm85_vm0, %v173_v18  ;;  %v6477_v17 = vld [vmem:[#allocation2 + $0xb9] sm:$0xff]  ;;  %v6479_v18 = vld [vmem:[#allocation2 + $0xb1] sm:$0xff] }
  0x52   :  { %v6306_v21 = vld [vmem:[#allocation2 + $0x38] sm:$0xff]  ;;  %v6308_v22 = vld [vmem:[#allocation2 + $0x30] sm:$0xff]  ;;  %177 = vst.msk [vmem:[#allocation2 + $0x131] sm:$0xff] %vm85_vm0, %v176_v19  ;;  %180 = vst.msk [vmem:[#allocation2 + $0x141] sm:$0xff] %vm85_vm0, %v179_v20 }
  0x53   :  { %403 = vrot.lane.b32.xlu1 %v6306_v21, %s6169_s2  ;;  %401 = vrot.lane.b32.xlu0 %v6308_v22, %s6169_s2  ;;  %v6317_v23 = vld [vmem:[#allocation2 + $0x48] sm:$0xff]  ;;  %v6319_v24 = vld [vmem:[#allocation2 + $0x40] sm:$0xff]  ;;  %v6325_v25 = vld [vmem:[#allocation2 + $0x58] sm:$0xff]  ;;  %10710 = vst [vmem:[#allocation13_spill] sm:$0xff] %v6373_v37 }
  0x54   :  { %v6327_v26 = vld [vmem:[#allocation2 + $0x50] sm:$0xff]  ;;  %v6333_v27 = vld [vmem:[#allocation2 + $0x68] sm:$0xff]  ;;  %v6335_v28 = vld [vmem:[#allocation2 + $0x60] sm:$0xff]  ;;  %10711 = vst [vmem:[#allocation14_spill] sm:$0xff] %v6375_v38 }
  0x55   :  { %v6341_v29 = vld [vmem:[#allocation2 + $0x78] sm:$0xff]  ;;  %v6343_v30 = vld [vmem:[#allocation2 + $0x70] sm:$0xff]  ;;  %v6349_v31 = vld [vmem:[#allocation2 + $0x88] sm:$0xff]  ;;  %10714 = vst [vmem:[#allocation17_spill] sm:$0xff] %v6477_v17 }
  0x56   :  { %v6351_v32 = vld [vmem:[#allocation2 + $0x80] sm:$0xff]  ;;  %v6357_v33 = vld [vmem:[#allocation2 + $0x98] sm:$0xff]  ;;  %v6359_v34 = vld [vmem:[#allocation2 + $0x90] sm:$0xff]  ;;  %10715 = vst [vmem:[#allocation18_spill] sm:$0xff] %v6479_v18 }
  0x57   :  { %407 = vrot.lane.b32.xlu1 %v6317_v23, %s6169_s2  ;;  %405 = vrot.lane.b32.xlu0 %v6319_v24, %s6169_s2  ;;  %v6365_v35 = vld [vmem:[#allocation2 + $0xa8] sm:$0xff]  ;;  %v6367_v36 = vld [vmem:[#allocation2 + $0xa0] sm:$0xff]  ;;  %v286_v41 = vld [vmem:[#allocation2 + $0xd8] sm:$0xff] }
  0x58   :  { %v285_v42 = vld [vmem:[#allocation2 + $0xd0] sm:$0xff]  ;;  %v288_v43 = vld [vmem:[#allocation2 + $0xe8] sm:$0xff]  ;;  %v287_v44 = vld [vmem:[#allocation2 + $0xe0] sm:$0xff] }
  0x59   :  { %v290_v45 = vld [vmem:[#allocation2 + $0xf8] sm:$0xff]  ;;  %v289_v46 = vld [vmem:[#allocation2 + $0xf0] sm:$0xff]  ;;  %v292_v47 = vld [vmem:[#allocation2 + $0x108] sm:$0xff] }
  0x5a   :  { %v291_v48 = vld [vmem:[#allocation2 + $0x100] sm:$0xff]  ;;  %v294_v49 = vld [vmem:[#allocation2 + $0x118] sm:$0xff]  ;;  %v293_v50 = vld [vmem:[#allocation2 + $0x110] sm:$0xff] }
  0x5b   :  { %411 = vrot.lane.b32.xlu1 %v6325_v25, %s6169_s2  ;;  %409 = vrot.lane.b32.xlu0 %v6327_v26, %s6169_s2  ;;  %v296_v51 = vld [vmem:[#allocation2 + $0x128] sm:$0xff]  ;;  %v295_v52 = vld [vmem:[#allocation2 + $0x120] sm:$0xff]  ;;  %v298_v53 = vld [vmem:[#allocation2 + $0x138] sm:$0xff] }
  0x5c   :  { %v297_v54 = vld [vmem:[#allocation2 + $0x130] sm:$0xff]  ;;  %v300_v55 = vld [vmem:[#allocation2 + $0x148] sm:$0xff]  ;;  %v299_v56 = vld [vmem:[#allocation2 + $0x140] sm:$0xff] }
  0x5d   :  { %v6411_v62 = vld [vmem:[#allocation2 + $0x31] sm:$0xff]  ;;  %v6419_v0 = vld [vmem:[#allocation2 + $0x41] sm:$0xff] }
  0x5e   :  { %v6427_v2 = vld [vmem:[#allocation2 + $0x51] sm:$0xff]  ;;  %v6435_v5 = vld [vmem:[#allocation2 + $0x61] sm:$0xff] }
  0x5f   :  { %415 = vrot.lane.b32.xlu1 %v6333_v27, %s6169_s2  ;;  %413 = vrot.lane.b32.xlu0 %v6335_v28, %s6169_s2  ;;  %v6443_v8 = vld [vmem:[#allocation2 + $0x71] sm:$0xff]  ;;  %v6451_v10 = vld [vmem:[#allocation2 + $0x81] sm:$0xff] }
  0x60   :  { %v6459_v12 = vld [vmem:[#allocation2 + $0x91] sm:$0xff]  ;;  %v6467_v14 = vld [vmem:[#allocation2 + $0xa1] sm:$0xff] }
  0x61   :  { %10712 = vst [vmem:[#allocation15_spill] sm:$0xff] %v6467_v14 }
  0x63   :  { %419 = vrot.lane.b32.xlu1 %v6341_v29, %s6169_s2  ;;  %417 = vrot.lane.b32.xlu0 %v6343_v30, %s6169_s2 }
  0x67   :  { %423 = vrot.lane.b32.xlu1 %v6349_v31, %s6169_s2  ;;  %421 = vrot.lane.b32.xlu0 %v6351_v32, %s6169_s2 }
  0x6b   :  { %427 = vrot.lane.b32.xlu1 %v6357_v33, %s6169_s2  ;;  %425 = vrot.lane.b32.xlu0 %v6359_v34, %s6169_s2 }
  0x6f   :  { %431 = vrot.lane.b32.xlu1 %v6365_v35, %s6169_s2  ;;  %429 = vrot.lane.b32.xlu0 %v6367_v36, %s6169_s2 }
  0x73   :  { %435 = vrot.lane.b32.xlu1 %v6373_v37, %s6169_s2  ;;  %433 = vrot.lane.b32.xlu0 %v6375_v38, %s6169_s2  ;;  %v6679_v38 = vld [vmem:[#allocation2 + $0xb7] sm:$0xff]  ;;  %v6681_v37 = vld [vmem:[#allocation2 + $0xaf] sm:$0xff] }
  0x74   :  { %10763 = vst [vmem:[#allocation66_spill] sm:$0xff] %v6679_v38  ;;  %10764 = vst [vmem:[#allocation67_spill] sm:$0xff] %v6681_v37 }
  0x77   :  { %439 = vrot.lane.b32.xlu1 %v284_v39, %s6169_s2  ;;  %437 = vrot.lane.b32.xlu0 %v283_v40, %s6169_s2  ;;  %v6489_v39 = vld [vmem:[#allocation2 + $0xc9] sm:$0xff]  ;;  %v6491_v40 = vld [vmem:[#allocation2 + $0xc1] sm:$0xff] }
  0x78   :  { %10717 = vst [vmem:[#allocation20_spill] sm:$0xff] %v6489_v39  ;;  %10718 = vst [vmem:[#allocation21_spill] sm:$0xff] %v6491_v40 }
  0x7b   :  { %443 = vrot.lane.b32.xlu1 %v286_v41, %s6169_s2  ;;  %441 = vrot.lane.b32.xlu0 %v285_v42, %s6169_s2 }
  0x7f   :  { %447 = vrot.lane.b32.xlu1 %v288_v43, %s6169_s2  ;;  %445 = vrot.lane.b32.xlu0 %v287_v44, %s6169_s2  ;;  %v6501_v43 = vld [vmem:[#allocation2 + $0xd9] sm:$0xff]  ;;  %v6503_v44 = vld [vmem:[#allocation2 + $0xd1] sm:$0xff] }
  0x80   :  { %10721 = vst [vmem:[#allocation24_spill] sm:$0xff] %v6501_v43  ;;  %10722 = vst [vmem:[#allocation25_spill] sm:$0xff] %v6503_v44 }
  0x83   :  { %451 = vrot.lane.b32.xlu1 %v290_v45, %s6169_s2  ;;  %449 = vrot.lane.b32.xlu0 %v289_v46, %s6169_s2 }
  0x87   :  { %455 = vrot.lane.b32.xlu1 %v292_v47, %s6169_s2  ;;  %453 = vrot.lane.b32.xlu0 %v291_v48, %s6169_s2  ;;  %v6513_v47 = vld [vmem:[#allocation2 + $0xe9] sm:$0xff]  ;;  %v6515_v48 = vld [vmem:[#allocation2 + $0xe1] sm:$0xff] }
  0x88   :  { %10725 = vst [vmem:[#allocation28_spill] sm:$0xff] %v6513_v47  ;;  %10726 = vst [vmem:[#allocation29_spill] sm:$0xff] %v6515_v48 }
  0x8b   :  { %459 = vrot.lane.b32.xlu1 %v294_v49, %s6169_s2  ;;  %457 = vrot.lane.b32.xlu0 %v293_v50, %s6169_s2 }
  0x8f   :  { %463 = vrot.lane.b32.xlu1 %v296_v51, %s6169_s2  ;;  %461 = vrot.lane.b32.xlu0 %v295_v52, %s6169_s2  ;;  %v6525_v51 = vld [vmem:[#allocation2 + $0xf9] sm:$0xff]  ;;  %v6527_v52 = vld [vmem:[#allocation2 + $0xf1] sm:$0xff] }
  0x90   :  { %10729 = vst [vmem:[#allocation32_spill] sm:$0xff] %v6525_v51  ;;  %10730 = vst [vmem:[#allocation33_spill] sm:$0xff] %v6527_v52 }
  0x93   :  { %467 = vrot.lane.b32.xlu1 %v298_v53, %s6169_s2  ;;  %465 = vrot.lane.b32.xlu0 %v297_v54, %s6169_s2 }
  0x97   :  { %471 = vrot.lane.b32.xlu1 %v300_v55, %s6169_s2  ;;  %469 = vrot.lane.b32.xlu0 %v299_v56, %s6169_s2  ;;  %v332_v55 = vld [vmem:[#allocation2 + $0x109] sm:$0xff]  ;;  %v331_v56 = vld [vmem:[#allocation2 + $0x101] sm:$0xff] }
  0x9b   :  { %555 = vrot.lane.b32.xlu1 %v302_v57, %s6170_s5  ;;  %553 = vrot.lane.b32.xlu0 %v301_v58, %s6170_s5 }
  0x9f   :  { %559 = vrot.lane.b32.xlu1 %v6401_v59, %s6170_s5  ;;  %557 = vrot.lane.b32.xlu0 %v6403_v60, %s6170_s5 }
  0xa3   :  { %563 = vrot.lane.b32.xlu1 %v6409_v61, %s6170_s5  ;;  %561 = vrot.lane.b32.xlu0 %v6411_v62, %s6170_s5 }
  0xa7   :  { %567 = vrot.lane.b32.xlu1 %v6417_v63, %s6170_s5  ;;  %565 = vrot.lane.b32.xlu0 %v6419_v0, %s6170_s5 }
  0xab   :  { %571 = vrot.lane.b32.xlu1 %v6425_v1, %s6170_s5  ;;  %569 = vrot.lane.b32.xlu0 %v6427_v2, %s6170_s5 }
  0xae   :  { %v6471_v16 = vpop.permute.xlu0 %393 }
  0xaf   :  { %575 = vrot.lane.b32.xlu1 %v6433_v3, %s6170_s5  ;;  %573 = vrot.lane.b32.xlu0 %v6435_v5, %s6170_s5  ;;  %v6469_v15 = vpop.permute.xlu1 %397 }
  0xb0   :  { %10713 = vst [vmem:[#allocation16_spill] sm:$0xff] %v6469_v15  ;;  %v6697_v15 = vld [vmem:[#allocation2 + $0xbf] sm:$0xff] }
  0xb1   :  { %10768 = vst [vmem:[#allocation71_spill] sm:$0xff] %v6697_v15 }
  0xb2   :  { %v6483_v20 = vpop.permute.xlu0 %395 }
  0xb3   :  { %579 = vrot.lane.b32.xlu1 %v6441_v7, %s6170_s5  ;;  %577 = vrot.lane.b32.xlu0 %v6443_v8, %s6170_s5  ;;  %v6481_v19 = vpop.permute.xlu1 %399 }
  0xb4   :  { %10716 = vst [vmem:[#allocation19_spill] sm:$0xff] %v6481_v19 }
  0xb7   :  { %583 = vrot.lane.b32.xlu1 %v6449_v9, %s6170_s5  ;;  %581 = vrot.lane.b32.xlu0 %v6451_v10, %s6170_s5 }
  0xbb   :  { %587 = vrot.lane.b32.xlu1 %v6457_v11, %s6170_s5  ;;  %585 = vrot.lane.b32.xlu0 %v6459_v12, %s6170_s5 }
  0xbf   :  { %591 = vrot.lane.b32.xlu1 %v6465_v13, %s6170_s5  ;;  %589 = vrot.lane.b32.xlu0 %v6467_v14, %s6170_s5  ;;  %v6710_v14 = vld [vmem:[#allocation2 + $0xcf] sm:$0xff] }
  0xc0   :  { %10772 = vst [vmem:[#allocation75_spill] sm:$0xff] %v6710_v14 }
  0xc3   :  { %595 = vrot.lane.b32.xlu1 %v6477_v17, %s6170_s5  ;;  %593 = vrot.lane.b32.xlu0 %v6479_v18, %s6170_s5  ;;  %v6667_v18 = vld [vmem:[#allocation2 + $0xa7] sm:$0xff]  ;;  %v6669_v17 = vld [vmem:[#allocation2 + $0x9f] sm:$0xff] }
  0xc5   :  { %v6493_v41 = vpop.permute.xlu1 %403  ;;  %v6495_v42 = vpop.permute.xlu0 %401 }
  0xc6   :  { %10719 = vst [vmem:[#allocation22_spill] sm:$0xff] %v6493_v41  ;;  %10720 = vst [vmem:[#allocation23_spill] sm:$0xff] %v6495_v42  ;;  %v6655_v42 = vld [vmem:[#allocation2 + $0x97] sm:$0xff]  ;;  %v6657_v41 = vld [vmem:[#allocation2 + $0x8f] sm:$0xff] }
  0xc7   :  { %599 = vrot.lane.b32.xlu1 %v6489_v39, %s6170_s5  ;;  %597 = vrot.lane.b32.xlu0 %v6491_v40, %s6170_s5  ;;  %v6643_v40 = vld [vmem:[#allocation2 + $0x87] sm:$0xff]  ;;  %v6645_v39 = vld [vmem:[#allocation2 + $0x7f] sm:$0xff] }
  0xc9   :  { %v6505_v45 = vpop.permute.xlu1 %407  ;;  %v6507_v46 = vpop.permute.xlu0 %405 }
  0xca   :  { %10723 = vst [vmem:[#allocation26_spill] sm:$0xff] %v6505_v45  ;;  %10724 = vst [vmem:[#allocation27_spill] sm:$0xff] %v6507_v46  ;;  %v6631_v46 = vld [vmem:[#allocation2 + $0x77] sm:$0xff]  ;;  %v6633_v45 = vld [vmem:[#allocation2 + $0x6f] sm:$0xff] }
  0xcb   :  { %603 = vrot.lane.b32.xlu1 %v6501_v43, %s6170_s5  ;;  %601 = vrot.lane.b32.xlu0 %v6503_v44, %s6170_s5  ;;  %v6619_v44 = vld [vmem:[#allocation2 + $0x67] sm:$0xff]  ;;  %v6621_v43 = vld [vmem:[#allocation2 + $0x5f] sm:$0xff] }
  0xcd   :  { %v6517_v49 = vpop.permute.xlu1 %411  ;;  %v6519_v50 = vpop.permute.xlu0 %409 }
  0xce   :  { %10727 = vst [vmem:[#allocation30_spill] sm:$0xff] %v6517_v49  ;;  %10728 = vst [vmem:[#allocation31_spill] sm:$0xff] %v6519_v50  ;;  %v6609_v49 = vld [vmem:[#allocation2 + $0x4f] sm:$0xff] }
  0xcf   :  { %607 = vrot.lane.b32.xlu1 %v6513_v47, %s6170_s5  ;;  %605 = vrot.lane.b32.xlu0 %v6515_v48, %s6170_s5  ;;  %v334_v48 = vld [vmem:[#allocation2 + $0x119] sm:$0xff] }
  0xd1   :  { %v6529_v53 = vpop.permute.xlu1 %415  ;;  %v6531_v54 = vpop.permute.xlu0 %413 }
  0xd2   :  { %10731 = vst [vmem:[#allocation34_spill] sm:$0xff] %v6529_v53  ;;  %10732 = vst [vmem:[#allocation35_spill] sm:$0xff] %v6531_v54  ;;  %v333_v53 = vld [vmem:[#allocation2 + $0x111] sm:$0xff] }
  0xd3   :  { %611 = vrot.lane.b32.xlu1 %v6525_v51, %s6170_s5  ;;  %609 = vrot.lane.b32.xlu0 %v6527_v52, %s6170_s5  ;;  %v336_v52 = vld [vmem:[#allocation2 + $0x129] sm:$0xff]  ;;  %v335_v51 = vld [vmem:[#allocation2 + $0x121] sm:$0xff] }
  0xd5   :  { %v6537_v57 = vpop.permute.xlu1 %419  ;;  %v6539_v58 = vpop.permute.xlu0 %417 }
  0xd6   :  { %10733 = vst [vmem:[#allocation36_spill] sm:$0xff] %v6537_v57  ;;  %10734 = vst [vmem:[#allocation37_spill] sm:$0xff] %v6539_v58 }
  0xd7   :  { %615 = vrot.lane.b32.xlu1 %v332_v55, %s6170_s5  ;;  %613 = vrot.lane.b32.xlu0 %v331_v56, %s6170_s5  ;;  %v338_v55 = vld [vmem:[#allocation2 + $0x139] sm:$0xff]  ;;  %v337_v56 = vld [vmem:[#allocation2 + $0x131] sm:$0xff] }
  0xd9   :  { %v6543_v47 = vpop.permute.xlu1 %423  ;;  %v6545_v54 = vpop.permute.xlu0 %421 }
  0xda   :  { %10735 = vst [vmem:[#allocation38_spill] sm:$0xff] %v6543_v47  ;;  %10736 = vst [vmem:[#allocation39_spill] sm:$0xff] %v6545_v54 }
  0xdb   :  { %619 = vrot.lane.b32.xlu1 %v334_v48, %s6170_s5  ;;  %617 = vrot.lane.b32.xlu0 %v333_v53, %s6170_s5  ;;  %v340_v48 = vld [vmem:[#allocation2 + $0x149] sm:$0xff]  ;;  %v339_v53 = vld [vmem:[#allocation2 + $0x141] sm:$0xff] }
  0xdd   :  { %v6549_v50 = vpop.permute.xlu1 %427  ;;  %v6551_v57 = vpop.permute.xlu0 %425 }
  0xde   :  { %10737 = vst [vmem:[#allocation40_spill] sm:$0xff] %v6549_v50  ;;  %10738 = vst [vmem:[#allocation41_spill] sm:$0xff] %v6551_v57  ;;  %v6607_v57 = vld [vmem:[#allocation2 + $0x57] sm:$0xff] }
  0xdf   :  { %623 = vrot.lane.b32.xlu1 %v336_v52, %s6170_s5  ;;  %621 = vrot.lane.b32.xlu0 %v335_v51, %s6170_s5 }
  0xe1   :  { %v6555_v58 = vpop.permute.xlu1 %431  ;;  %v6557_v47 = vpop.permute.xlu0 %429 }
  0xe2   :  { %10739 = vst [vmem:[#allocation42_spill] sm:$0xff] %v6555_v58  ;;  %10740 = vst [vmem:[#allocation43_spill] sm:$0xff] %v6557_v47  ;;  %v6571_v58 = vld [vmem:[#allocation2 + $0x1f] sm:$0xff]  ;;  %v6573_v47 = vld [vmem:[#allocation2 + $0x27] sm:$0xff] }
  0xe3   :  { %627 = vrot.lane.b32.xlu1 %v338_v55, %s6170_s5  ;;  %625 = vrot.lane.b32.xlu0 %v337_v56, %s6170_s5  ;;  %10745 = vst [vmem:[#allocation48_spill] sm:$0xff] %v6571_v58  ;;  %10746 = vst [vmem:[#allocation49_spill] sm:$0xff] %v6573_v47 }
  0xe5   :  { %v6561_v54 = vpop.permute.xlu1 %435  ;;  %v6563_v50 = vpop.permute.xlu0 %433 }
  0xe6   :  { %10741 = vst [vmem:[#allocation44_spill] sm:$0xff] %v6561_v54  ;;  %10742 = vst [vmem:[#allocation45_spill] sm:$0xff] %v6563_v50  ;;  %v6595_v50 = vld [vmem:[#allocation2 + $0x47] sm:$0xff]  ;;  %v6597_v54 = vld [vmem:[#allocation2 + $0x3f] sm:$0xff] }
  0xe7   :  { %631 = vrot.lane.b32.xlu1 %v340_v48, %s6170_s5  ;;  %629 = vrot.lane.b32.xlu0 %v339_v53, %s6170_s5  ;;  %v6583_v48 = vld [vmem:[#allocation2 + $0x37] sm:$0xff]  ;;  %v6585_v53 = vld [vmem:[#allocation2 + $0x2f] sm:$0xff] }
  0xe9   :  { %v6567_v51 = vpop.permute.xlu1 %439  ;;  %v6569_v52 = vpop.permute.xlu0 %437 }
  0xea   :  { %10743 = vst [vmem:[#allocation46_spill] sm:$0xff] %v6567_v51  ;;  %10744 = vst [vmem:[#allocation47_spill] sm:$0xff] %v6569_v52 }
  0xeb   :  { %715 = vrot.lane.b32.xlu1 %v6573_v47, %s6171_s27  ;;  %713 = vrot.lane.b32.xlu0 %v6571_v58, %s6171_s27  ;;  %v6695_v58 = vld [vmem:[#allocation2 + $0xc7] sm:$0xff] }
  0xec   :  { %10767 = vst [vmem:[#allocation70_spill] sm:$0xff] %v6695_v58 }
  0xed   :  { %v6579_v55 = vpop.permute.xlu1 %443  ;;  %v6581_v56 = vpop.permute.xlu0 %441 }
  0xee   :  { %10747 = vst [vmem:[#allocation50_spill] sm:$0xff] %v6579_v55  ;;  %10748 = vst [vmem:[#allocation51_spill] sm:$0xff] %v6581_v56 }
  0xef   :  { %719 = vrot.lane.b32.xlu1 %v6583_v48, %s6171_s27  ;;  %717 = vrot.lane.b32.xlu0 %v6585_v53, %s6171_s27 }
  0xf1   :  { %v6591_v52 = vpop.permute.xlu1 %447  ;;  %v6593_v51 = vpop.permute.xlu0 %445 }
  0xf2   :  { %10749 = vst [vmem:[#allocation52_spill] sm:$0xff] %v6591_v52  ;;  %10750 = vst [vmem:[#allocation53_spill] sm:$0xff] %v6593_v51 }
  0xf3   :  { %723 = vrot.lane.b32.xlu1 %v6595_v50, %s6171_s27  ;;  %721 = vrot.lane.b32.xlu0 %v6597_v54, %s6171_s27 }
  0xf5   :  { %v6603_v56 = vpop.permute.xlu1 %451  ;;  %v6605_v55 = vpop.permute.xlu0 %449 }
  0xf6   :  { %10751 = vst [vmem:[#allocation54_spill] sm:$0xff] %v6603_v56  ;;  %10752 = vst [vmem:[#allocation55_spill] sm:$0xff] %v6605_v55 }
  0xf7   :  { %727 = vrot.lane.b32.xlu1 %v6607_v57, %s6171_s27  ;;  %725 = vrot.lane.b32.xlu0 %v6609_v49, %s6171_s27 }
  0xf9   :  { %v6615_v51 = vpop.permute.xlu1 %455  ;;  %v6617_v52 = vpop.permute.xlu0 %453 }
  0xfa   :  { %10753 = vst [vmem:[#allocation56_spill] sm:$0xff] %v6615_v51  ;;  %10754 = vst [vmem:[#allocation57_spill] sm:$0xff] %v6617_v52 }
  0xfb   :  { %731 = vrot.lane.b32.xlu1 %v6619_v44, %s6171_s27  ;;  %729 = vrot.lane.b32.xlu0 %v6621_v43, %s6171_s27 }
  0xfd   :  { %v6627_v55 = vpop.permute.xlu1 %459  ;;  %v6629_v56 = vpop.permute.xlu0 %457 }
  0xfe   :  { %10755 = vst [vmem:[#allocation58_spill] sm:$0xff] %v6627_v55  ;;  %10756 = vst [vmem:[#allocation59_spill] sm:$0xff] %v6629_v56 }
  0xff   :  { %735 = vrot.lane.b32.xlu1 %v6631_v46, %s6171_s27  ;;  %733 = vrot.lane.b32.xlu0 %v6633_v45, %s6171_s27 }
 0x101   :  { %v6639_v52 = vpop.permute.xlu1 %463  ;;  %v6641_v51 = vpop.permute.xlu0 %461 }
 0x102   :  { %10757 = vst [vmem:[#allocation60_spill] sm:$0xff] %v6639_v52  ;;  %10758 = vst [vmem:[#allocation61_spill] sm:$0xff] %v6641_v51 }
 0x103   :  { %739 = vrot.lane.b32.xlu1 %v6643_v40, %s6171_s27  ;;  %737 = vrot.lane.b32.xlu0 %v6645_v39, %s6171_s27 }
 0x105   :  { %v6651_v56 = vpop.permute.xlu1 %467  ;;  %v6653_v55 = vpop.permute.xlu0 %465 }
 0x106   :  { %10759 = vst [vmem:[#allocation62_spill] sm:$0xff] %v6651_v56  ;;  %10760 = vst [vmem:[#allocation63_spill] sm:$0xff] %v6653_v55 }
 0x107   :  { %743 = vrot.lane.b32.xlu1 %v6655_v42, %s6171_s27  ;;  %741 = vrot.lane.b32.xlu0 %v6657_v41, %s6171_s27 }
 0x109   :  { %v6663_v51 = vpop.permute.xlu1 %471  ;;  %v6665_v52 = vpop.permute.xlu0 %469 }
 0x10a   :  { %10761 = vst [vmem:[#allocation64_spill] sm:$0xff] %v6663_v51  ;;  %10762 = vst [vmem:[#allocation65_spill] sm:$0xff] %v6665_v52  ;;  %v10513_v52 = vmov 0   ;;  %v5960_v51 = vld [vmem:[#allocation7 + $0x38] sm:$0xff]  }
 0x10b   :  { %747 = vrot.lane.b32.xlu1 %v6667_v18, %s6171_s27  ;;  %745 = vrot.lane.b32.xlu0 %v6669_v17, %s6171_s27 }
 0x10c   :  { %1779 = vmatprep.subr.bf16.mxu0 %v10513_v52  ;;  %5259 = vset.pattern.permute.xlu1 %v10513_v52 }
 0x10d   :  { %v6675_v55 = vpop.permute.xlu1 %555  ;;  %v6677_v56 = vpop.permute.xlu0 %553  ;;  %5258 = vset.pattern.permute.xlu0 %v10513_v52  ;;  %4273 = vmatprep.subr.bf16.mxu1 %v10513_v52 }
 0x10e   :  { %1780 = vmatpush1.bf16.msra.mxu0 %v5960_v51  ;;  %v5962_v51 = vld [vmem:[#allocation7 + $0x28] sm:$0xff]  }
 0x10f   :  { %751 = vrot.lane.b32.xlu1 %v6679_v38, %s6171_s27  ;;  %749 = vrot.lane.b32.xlu0 %v6681_v37, %s6171_s27  ;;  %v6708_v38 = vld [vmem:[#allocation2 + $0xd7] sm:$0xff] }
 0x110   :  { %1781 = vmatprep.subr.bf16.mxu0 %v10513_v52  ;;  %10771 = vst [vmem:[#allocation74_spill] sm:$0xff] %v6708_v38 }
 0x111   :  { %v6689_v47 = vpop.permute.xlu1 %559  ;;  %v6691_v19 = vpop.permute.xlu0 %557 }
 0x112   :  { %10765 = vst [vmem:[#allocation68_spill] sm:$0xff] %v6689_v47  ;;  %10766 = vst [vmem:[#allocation69_spill] sm:$0xff] %v6691_v19  ;;  %v5961_v47 = vld [vmem:[#allocation7 + $0x30] sm:$0xff]  }
 0x113   :  { %755 = vrot.lane.b32.xlu1 %v6695_v58, %s6171_s27  ;;  %753 = vrot.lane.b32.xlu0 %v6697_v15, %s6171_s27 }
 0x114   :  { %1782 = vmatpush1.bf16.msra.mxu0 %v5961_v47  ;;  %v5963_v47 = vld [vmem:[#allocation7 + $0x20] sm:$0xff]  }
 0x115   :  { %v6704_v37 = vpop.permute.xlu1 %563  ;;  %v6706_v19 = vpop.permute.xlu0 %561  ;;  %1783 = vmatprep.subr.bf16.mxu0 %v10513_v52 }
 0x116   :  { %10769 = vst [vmem:[#allocation72_spill] sm:$0xff] %v6704_v37  ;;  %10770 = vst [vmem:[#allocation73_spill] sm:$0xff] %v6706_v19  ;;  %v6721_v37 = vld [vmem:[#allocation2 + $0xe7] sm:$0xff]  ;;  %v6723_v19 = vld [vmem:[#allocation2 + $0xdf] sm:$0xff] }
 0x117   :  { %759 = vrot.lane.b32.xlu1 %v6708_v38, %s6171_s27  ;;  %757 = vrot.lane.b32.xlu0 %v6710_v14, %s6171_s27  ;;  %10775 = vst [vmem:[#allocation78_spill] sm:$0xff] %v6721_v37  ;;  %10776 = vst [vmem:[#allocation79_spill] sm:$0xff] %v6723_v19 }
 0x118   :  { %1784 = vmatpush1.bf16.msra.mxu0 %v5962_v51  ;;  %v5964_v51 = vld [vmem:[#allocation7 + $0x18] sm:$0xff]  }
 0x119   :  { %v6717_v15 = vpop.permute.xlu1 %567  ;;  %v6719_v58 = vpop.permute.xlu0 %565  ;;  %1785 = vmatprep.subr.bf16.mxu0 %v10513_v52 }
 0x11a   :  { %10773 = vst [vmem:[#allocation76_spill] sm:$0xff] %v6717_v15  ;;  %10774 = vst [vmem:[#allocation77_spill] sm:$0xff] %v6719_v58  ;;  %v6734_v15 = vld [vmem:[#allocation2 + $0xf7] sm:$0xff]  ;;  %v6736_v58 = vld [vmem:[#allocation2 + $0xef] sm:$0xff] }
 0x11b   :  { %763 = vrot.lane.b32.xlu1 %v6721_v37, %s6171_s27  ;;  %761 = vrot.lane.b32.xlu0 %v6723_v19, %s6171_s27  ;;  %10779 = vst [vmem:[#allocation82_spill] sm:$0xff] %v6734_v15  ;;  %10780 = vst [vmem:[#allocation83_spill] sm:$0xff] %v6736_v58 }
 0x11c   :  { %1786 = vmatpush1.bf16.msra.mxu0 %v5963_v47  ;;  %v5965_v47 = vld [vmem:[#allocation7 + $0x10] sm:$0xff]  }
 0x11d   :  { %v6730_v14 = vpop.permute.xlu1 %571  ;;  %v6732_v38 = vpop.permute.xlu0 %569  ;;  %1787 = vmatprep.subr.bf16.mxu0 %v10513_v52 }
 0x11e   :  { %10777 = vst [vmem:[#allocation80_spill] sm:$0xff] %v6730_v14  ;;  %10778 = vst [vmem:[#allocation81_spill] sm:$0xff] %v6732_v38  ;;  %v6747_v14 = vld [vmem:[#allocation2 + $0x107] sm:$0xff]  ;;  %v6749_v38 = vld [vmem:[#allocation2 + $0xff] sm:$0xff] }
 0x11f   :  { %767 = vrot.lane.b32.xlu1 %v6734_v15, %s6171_s27  ;;  %765 = vrot.lane.b32.xlu0 %v6736_v58, %s6171_s27  ;;  %10783 = vst [vmem:[#allocation86_spill] sm:$0xff] %v6747_v14  ;;  %10784 = vst [vmem:[#allocation87_spill] sm:$0xff] %v6749_v38 }
 0x120   :  { %1788 = vmatpush1.bf16.msra.mxu0 %v5964_v51  ;;  %v5966_v51 = vld [vmem:[#allocation7 + $0x8] sm:$0xff]  }
 0x121   :  { %v6743_v19 = vpop.permute.xlu1 %575  ;;  %v6745_v37 = vpop.permute.xlu0 %573  ;;  %1789 = vmatprep.subr.bf16.mxu0 %v10513_v52 }
 0x122   :  { %10781 = vst [vmem:[#allocation84_spill] sm:$0xff] %v6743_v19  ;;  %10782 = vst [vmem:[#allocation85_spill] sm:$0xff] %v6745_v37  ;;  %v6760_v19 = vld [vmem:[#allocation2 + $0x117] sm:$0xff]  ;;  %v6762_v37 = vld [vmem:[#allocation2 + $0x10f] sm:$0xff] }
 0x123   :  { %771 = vrot.lane.b32.xlu1 %v6747_v14, %s6171_s27  ;;  %769 = vrot.lane.b32.xlu0 %v6749_v38, %s6171_s27  ;;  %10787 = vst [vmem:[#allocation90_spill] sm:$0xff] %v6760_v19  ;;  %10788 = vst [vmem:[#allocation91_spill] sm:$0xff] %v6762_v37 }
 0x124   :  { %1790 = vmatpush1.bf16.msra.mxu0 %v5965_v47  ;;  %v5967_v47 = vld [vmem:[#allocation7] sm:$0xff]  }
 0x125   :  { %v6756_v58 = vpop.permute.xlu1 %579  ;;  %v6758_v15 = vpop.permute.xlu0 %577  ;;  %1791 = vmatprep.subr.bf16.mxu0 %v10513_v52 }
 0x126   :  { %10785 = vst [vmem:[#allocation88_spill] sm:$0xff] %v6756_v58  ;;  %10786 = vst [vmem:[#allocation89_spill] sm:$0xff] %v6758_v15  ;;  %v6773_v58 = vld [vmem:[#allocation2 + $0x127] sm:$0xff]  ;;  %v6775_v15 = vld [vmem:[#allocation2 + $0x11f] sm:$0xff] }
 0x127   :  { %775 = vrot.lane.b32.xlu1 %v6760_v19, %s6171_s27  ;;  %773 = vrot.lane.b32.xlu0 %v6762_v37, %s6171_s27  ;;  %10791 = vst [vmem:[#allocation94_spill] sm:$0xff] %v6773_v58  ;;  %10792 = vst [vmem:[#allocation95_spill] sm:$0xff] %v6775_v15 }
 0x128   :  { %1792 = vmatpush1.bf16.msra.mxu0 %v5966_v51  ;;  %v5968_v51 = vld [vmem:[#allocation7 + $0x40] sm:$0xff]  }
 0x129   :  { %v6769_v38 = vpop.permute.xlu1 %583  ;;  %v6771_v14 = vpop.permute.xlu0 %581  ;;  %1793 = vmatprep.subr.bf16.mxu0 %v10513_v52 }
 0x12a   :  { %10789 = vst [vmem:[#allocation92_spill] sm:$0xff] %v6769_v38  ;;  %10790 = vst [vmem:[#allocation93_spill] sm:$0xff] %v6771_v14  ;;  %v6786_v38 = vld [vmem:[#allocation2 + $0x137] sm:$0xff]  ;;  %v6788_v14 = vld [vmem:[#allocation2 + $0x12f] sm:$0xff] }
 0x12b   :  { %779 = vrot.lane.b32.xlu1 %v6773_v58, %s6171_s27  ;;  %777 = vrot.lane.b32.xlu0 %v6775_v15, %s6171_s27  ;;  %10794 = vst [vmem:[#allocation97_spill] sm:$0xff] %v6786_v38  ;;  %10795 = vst [vmem:[#allocation98_spill] sm:$0xff] %v6788_v14 }
 0x12c   :  { %1794 = vmatpush1.bf16.msra.mxu0 %v5967_v47 }
 0x12d   :  { %v6782_v37 = vpop.permute.xlu1 %587  ;;  %v6784_v19 = vpop.permute.xlu0 %585  ;;  %1809 = vmatprep.subr.bf16.mxu0 %v10513_v52 }
 0x12e   :  { %10793 = vst [vmem:[#allocation96_spill] sm:$0xff] %v6784_v19  ;;  %v1608_v19 = vpack.c.bf16 %v6409_v61, %v6411_v62 }
 0x12f   :  { %783 = vrot.lane.b32.xlu1 %v6786_v38, %s6171_s27  ;;  %781 = vrot.lane.b32.xlu0 %v6788_v14, %s6171_s27 }
 0x130   :  { %1810 = vmatpush2.bf16.msra.mxu0 %v5968_v51  ;;  %5191 = vmatprep.mubr.msk.bf16.mxu0 %vm85_vm0, %v1608_v19 }
 0x131   :  { %v6795_v15 = vpop.permute.xlu1 %591  ;;  %v6797_v58 = vpop.permute.xlu0 %589 }
 0x132   :  { %10796 = vst [vmem:[#allocation99_spill] sm:$0xff] %v6795_v15  ;;  %10797 = vst [vmem:[#allocation100_spill] sm:$0xff] %v6797_v58 }
 0x133   :  { %837 = vrot.lane.b32.xlu1 %v6285_v6, %s6165_s1  ;;  %835 = vrot.lane.b32.xlu0 %v6283_v4, %s6165_s1 }
 0x135   :  { %v6806_v47 = vpop.permute.xlu1 %595  ;;  %v6808_v52 = vpop.permute.xlu0 %593 }
 0x136   :  { %10798 = vst [vmem:[#allocation101_spill] sm:$0xff] %v6806_v47  ;;  %10799 = vst [vmem:[#allocation102_spill] sm:$0xff] %v6808_v52 }
 0x137   :  { %959 = vrot.lane.b32.xlu1 %v6401_v59, %s6173_s28  ;;  %957 = vrot.lane.b32.xlu0 %v6403_v60, %s6173_s28 }
 0x139   :  { %v6814_v51 = vpop.permute.xlu1 %599  ;;  %v6816_v58 = vpop.permute.xlu0 %597 }
 0x13a   :  { %10800 = vst [vmem:[#allocation103_spill] sm:$0xff] %v6814_v51  ;;  %10801 = vst [vmem:[#allocation104_spill] sm:$0xff] %v6816_v58 }
 0x13b   :  { %1081 = vrot.lane.b32.xlu1 %v6583_v48, %s6174_s29  ;;  %1079 = vrot.lane.b32.xlu0 %v6585_v53, %s6174_s29 }
 0x13d   :  { %v6822_v4 = vpop.permute.xlu1 %603  ;;  %v6824_v6 = vpop.permute.xlu0 %601 }
 0x13e   :  { %10802 = vst [vmem:[#allocation105_spill] sm:$0xff] %v6822_v4  ;;  %10803 = vst [vmem:[#allocation106_spill] sm:$0xff] %v6824_v6 }
 0x13f   :  { %1203 = vrot.lane.b32.xlu1 %v6306_v21, %s6175_s30  ;;  %1201 = vrot.lane.b32.xlu0 %v6308_v22, %s6175_s30 }
 0x141   :  { %v6830_v59 = vpop.permute.xlu1 %607  ;;  %v6832_v60 = vpop.permute.xlu0 %605 }
 0x142   :  { %10804 = vst [vmem:[#allocation107_spill] sm:$0xff] %v6830_v59  ;;  %10805 = vst [vmem:[#allocation108_spill] sm:$0xff] %v6832_v60 }
 0x143   :  { %841 = vrot.lane.b32.xlu1 %v6306_v21, %s6165_s1  ;;  %839 = vrot.lane.b32.xlu0 %v6308_v22, %s6165_s1 }
 0x145   :  { %v6838_v19 = vpop.permute.xlu1 %611  ;;  %v6840_v6 = vpop.permute.xlu0 %609 }
 0x146   :  { %10806 = vst [vmem:[#allocation109_spill] sm:$0xff] %v6838_v19  ;;  %10807 = vst [vmem:[#allocation110_spill] sm:$0xff] %v6840_v6 }
 0x147   :  { %963 = vrot.lane.b32.xlu1 %v6409_v61, %s6173_s28  ;;  %961 = vrot.lane.b32.xlu0 %v6411_v62, %s6173_s28 }
 0x149   :  { %v6846_v4 = vpop.permute.xlu1 %615  ;;  %v6848_v59 = vpop.permute.xlu0 %613 }
 0x14a   :  { %10808 = vst [vmem:[#allocation111_spill] sm:$0xff] %v6846_v4  ;;  %10809 = vst [vmem:[#allocation112_spill] sm:$0xff] %v6848_v59 }
 0x14b   :  { %1085 = vrot.lane.b32.xlu1 %v6595_v50, %s6174_s29  ;;  %1083 = vrot.lane.b32.xlu0 %v6597_v54, %s6174_s29 }
 0x14d   :  { %v6854_v21 = vpop.permute.xlu1 %619  ;;  %v6856_v22 = vpop.permute.xlu0 %617 }
 0x14e   :  { %10810 = vst [vmem:[#allocation113_spill] sm:$0xff] %v6854_v21  ;;  %10811 = vst [vmem:[#allocation114_spill] sm:$0xff] %v6856_v22 }
 0x14f   :  { %1207 = vrot.lane.b32.xlu1 %v6317_v23, %s6175_s30  ;;  %1205 = vrot.lane.b32.xlu0 %v6319_v24, %s6175_s30 }
 0x151   :  { %v6862_v61 = vpop.permute.xlu1 %623  ;;  %v6864_v62 = vpop.permute.xlu0 %621 }
 0x152   :  { %10812 = vst [vmem:[#allocation115_spill] sm:$0xff] %v6862_v61  ;;  %10813 = vst [vmem:[#allocation116_spill] sm:$0xff] %v6864_v62 }
 0x153   :  { %845 = vrot.lane.b32.xlu1 %v6317_v23, %s6165_s1  ;;  %843 = vrot.lane.b32.xlu0 %v6319_v24, %s6165_s1 }
 0x155   :  { %v6870_v59 = vpop.permute.xlu1 %627  ;;  %v6872_v21 = vpop.permute.xlu0 %625 }
 0x156   :  { %10814 = vst [vmem:[#allocation117_spill] sm:$0xff] %v6870_v59  ;;  %10815 = vst [vmem:[#allocation118_spill] sm:$0xff] %v6872_v21 }
 0x157   :  { %967 = vrot.lane.b32.xlu1 %v6417_v63, %s6173_s28  ;;  %965 = vrot.lane.b32.xlu0 %v6419_v0, %s6173_s28 }
 0x159   :  { %v6878_v22 = vpop.permute.xlu1 %631  ;;  %v6880_v61 = vpop.permute.xlu0 %629 }
 0x15a   :  { %10816 = vst [vmem:[#allocation119_spill] sm:$0xff] %v6878_v22  ;;  %10817 = vst [vmem:[#allocation120_spill] sm:$0xff] %v6880_v61 }
 0x15b   :  { %1089 = vrot.lane.b32.xlu1 %v6607_v57, %s6174_s29  ;;  %1087 = vrot.lane.b32.xlu0 %v6609_v49, %s6174_s29 }
 0x15d   :  { %v6886_v23 = vpop.permute.xlu1 %715  ;;  %v6888_v24 = vpop.permute.xlu0 %713 }
 0x15f   :  { %1211 = vrot.lane.b32.xlu1 %v6325_v25, %s6175_s30  ;;  %1209 = vrot.lane.b32.xlu0 %v6327_v26, %s6175_s30 }
 0x161   :  { %v6894_v21 = vpop.permute.xlu1 %719  ;;  %v6896_v22 = vpop.permute.xlu0 %717 }
 0x163   :  { %849 = vrot.lane.b32.xlu1 %v6325_v25, %s6165_s1  ;;  %847 = vrot.lane.b32.xlu0 %v6327_v26, %s6165_s1 }
 0x165   :  { %v6902_v61 = vpop.permute.xlu1 %723  ;;  %v6904_v59 = vpop.permute.xlu0 %721 }
 0x167   :  { %971 = vrot.lane.b32.xlu1 %v6425_v1, %s6173_s28  ;;  %969 = vrot.lane.b32.xlu0 %v6427_v2, %s6173_s28 }
 0x169   :  { %v6910_v62 = vpop.permute.xlu1 %727  ;;  %v6912_v4 = vpop.permute.xlu0 %725 }
 0x16b   :  { %1093 = vrot.lane.b32.xlu1 %v6619_v44, %s6174_s29  ;;  %1091 = vrot.lane.b32.xlu0 %v6621_v43, %s6174_s29 }
 0x16d   :  { %v6918_v25 = vpop.permute.xlu1 %731  ;;  %v6920_v26 = vpop.permute.xlu0 %729 }
 0x16f   :  { %1215 = vrot.lane.b32.xlu1 %v6333_v27, %s6175_s30  ;;  %1213 = vrot.lane.b32.xlu0 %v6335_v28, %s6175_s30 }
 0x171   :  { %v6926_v6 = vpop.permute.xlu1 %735  ;;  %v6928_v19 = vpop.permute.xlu0 %733 }
 0x173   :  { %853 = vrot.lane.b32.xlu1 %v6333_v27, %s6165_s1  ;;  %851 = vrot.lane.b32.xlu0 %v6335_v28, %s6165_s1 }
 0x175   :  { %v6934_v60 = vpop.permute.xlu1 %739  ;;  %v6936_v58 = vpop.permute.xlu0 %737 }
 0x177   :  { %975 = vrot.lane.b32.xlu1 %v6433_v3, %s6173_s28  ;;  %973 = vrot.lane.b32.xlu0 %v6435_v5, %s6173_s28 }
 0x179   :  { %v6942_v51 = vpop.permute.xlu1 %743  ;;  %v6944_v52 = vpop.permute.xlu0 %741 }
 0x17b   :  { %1097 = vrot.lane.b32.xlu1 %v6631_v46, %s6174_s29  ;;  %1095 = vrot.lane.b32.xlu0 %v6633_v45, %s6174_s29 }
 0x17d   :  { %v6950_v27 = vpop.permute.xlu1 %747  ;;  %v6952_v28 = vpop.permute.xlu0 %745 }
 0x17e   :  { %10818 = vst [vmem:[#allocation121_spill] sm:$0xff] %v6952_v28 }
 0x17f   :  { %1219 = vrot.lane.b32.xlu1 %v6341_v29, %s6175_s30  ;;  %1217 = vrot.lane.b32.xlu0 %v6343_v30, %s6175_s30 }
 0x181   :  { %v6958_v47 = vpop.permute.xlu1 %751  ;;  %v6960_v15 = vpop.permute.xlu0 %749 }
 0x182   :  { %10819 = vst [vmem:[#allocation122_spill] sm:$0xff] %v6958_v47 }
 0x183   :  { %857 = vrot.lane.b32.xlu1 %v6341_v29, %s6165_s1  ;;  %855 = vrot.lane.b32.xlu0 %v6343_v30, %s6165_s1 }
 0x185   :  { %v6966_v14 = vpop.permute.xlu1 %755  ;;  %v6968_v38 = vpop.permute.xlu0 %753 }
 0x186   :  { %10820 = vst [vmem:[#allocation123_spill] sm:$0xff] %v6966_v14  ;;  %10821 = vst [vmem:[#allocation124_spill] sm:$0xff] %v6968_v38 }
 0x187   :  { %979 = vrot.lane.b32.xlu1 %v6441_v7, %s6173_s28  ;;  %977 = vrot.lane.b32.xlu0 %v6443_v8, %s6173_s28 }
 0x189   :  { %v6974_v28 = vpop.permute.xlu1 %759  ;;  %v6976_v47 = vpop.permute.xlu0 %757 }
 0x18a   :  { %10822 = vst [vmem:[#allocation125_spill] sm:$0xff] %v6974_v28  ;;  %10823 = vst [vmem:[#allocation126_spill] sm:$0xff] %v6976_v47 }
 0x18b   :  { %1101 = vrot.lane.b32.xlu1 %v6643_v40, %s6174_s29  ;;  %1099 = vrot.lane.b32.xlu0 %v6645_v39, %s6174_s29 }
 0x18d   :  { %v6982_v29 = vpop.permute.xlu1 %763  ;;  %v6984_v30 = vpop.permute.xlu0 %761 }
 0x18e   :  { %10824 = vst [vmem:[#allocation127_spill] sm:$0xff] %v6982_v29  ;;  %10825 = vst [vmem:[#allocation128_spill] sm:$0xff] %v6984_v30 }
 0x18f   :  { %1223 = vrot.lane.b32.xlu1 %v6349_v31, %s6175_s30  ;;  %1221 = vrot.lane.b32.xlu0 %v6351_v32, %s6175_s30 }
 0x191   :  { %v6990_v38 = vpop.permute.xlu1 %767  ;;  %v6992_v28 = vpop.permute.xlu0 %765 }
 0x192   :  { %10826 = vst [vmem:[#allocation129_spill] sm:$0xff] %v6990_v38  ;;  %10827 = vst [vmem:[#allocation130_spill] sm:$0xff] %v6992_v28 }
 0x193   :  { %861 = vrot.lane.b32.xlu1 %v6349_v31, %s6165_s1  ;;  %859 = vrot.lane.b32.xlu0 %v6351_v32, %s6165_s1 }
 0x195   :  { %v6998_v47 = vpop.permute.xlu1 %771  ;;  %v7000_v29 = vpop.permute.xlu0 %769 }
 0x196   :  { %10828 = vst [vmem:[#allocation131_spill] sm:$0xff] %v6998_v47  ;;  %10829 = vst [vmem:[#allocation132_spill] sm:$0xff] %v7000_v29  ;;  %v222_v47 = vld [vmem:[#allocation2 + $0x17] sm:$0xff] }
 0x197   :  { %983 = vrot.lane.b32.xlu1 %v6449_v9, %s6173_s28  ;;  %981 = vrot.lane.b32.xlu0 %v6451_v10, %s6173_s28 }
 0x199   :  { %v7006_v30 = vpop.permute.xlu1 %775  ;;  %v7008_v38 = vpop.permute.xlu0 %773 }
 0x19a   :  { %10830 = vst [vmem:[#allocation133_spill] sm:$0xff] %v7006_v30  ;;  %10831 = vst [vmem:[#allocation134_spill] sm:$0xff] %v7008_v38 }
 0x19b   :  { %1105 = vrot.lane.b32.xlu1 %v6655_v42, %s6174_s29  ;;  %1103 = vrot.lane.b32.xlu0 %v6657_v41, %s6174_s29 }
 0x19d   :  { %v7014_v31 = vpop.permute.xlu1 %779  ;;  %v7016_v32 = vpop.permute.xlu0 %777 }
 0x19e   :  { %10832 = vst [vmem:[#allocation135_spill] sm:$0xff] %v7014_v31  ;;  %10833 = vst [vmem:[#allocation136_spill] sm:$0xff] %v7016_v32  ;;  %v221_v32 = vld [vmem:[#allocation2 + $0xf] sm:$0xff] }
 0x19f   :  { %1227 = vrot.lane.b32.xlu1 %v6357_v33, %s6175_s30  ;;  %1225 = vrot.lane.b32.xlu0 %v6359_v34, %s6175_s30 }
 0x1a1   :  { %v7022_v29 = vpop.permute.xlu1 %783  ;;  %v7024_v30 = vpop.permute.xlu0 %781 }
 0x1a2   :  { %10834 = vst [vmem:[#allocation137_spill] sm:$0xff] %v7022_v29  ;;  %10835 = vst [vmem:[#allocation138_spill] sm:$0xff] %v7024_v30 }
 0x1a3   :  { %865 = vrot.lane.b32.xlu1 %v6357_v33, %s6165_s1  ;;  %863 = vrot.lane.b32.xlu0 %v6359_v34, %s6165_s1  ;;  %v1321_v33 = vsel %vm85_vm0, %v221_v32, %v6471_v16  ;;  %v1322_v34 = vsel %vm85_vm0, %v222_v47, %v6483_v20 }
 0x1a5   :  { %v838_v38 = vpop.permute.xlu1 %837  ;;  %v836_v31 = vpop.permute.xlu0 %835 }
 0x1a7   :  { %987 = vrot.lane.b32.xlu1 %v6457_v11, %s6173_s28  ;;  %985 = vrot.lane.b32.xlu0 %v6459_v12, %s6173_s28  ;;  %v1363_v11 = vsel %vm1361_vm1, %v1322_v34, %v6675_v55  ;;  %v1362_v12 = vsel %vm1361_vm1, %v1321_v33, %v6677_v56  ;;  %v1610_v33 = vpack.c.bf16 %v6417_v63, %v6419_v0  ;;  %v10839_v34 = vld [vmem:[#allocation66_spill] sm:$0xff] }
 0x1a9   :  { %v960_v28 = vpop.permute.xlu1 %959  ;;  %v958_v29 = vpop.permute.xlu0 %957 }
 0x1ab   :  { %1109 = vrot.lane.b32.xlu1 %v6667_v18, %s6174_s29  ;;  %1107 = vrot.lane.b32.xlu0 %v6669_v17, %s6174_s29  ;;  %v1404_v18 = vsel %vm1402_vm2, %v1363_v11, %v6886_v23  ;;  %v1403_v17 = vsel %vm1402_vm2, %v1362_v12, %v6888_v24  ;;  %v10842_v11 = vld [vmem:[#allocation48_spill] sm:$0xff] }
 0x1ac   :  { %v1445_v16 = vsel %vm1443_vm3, %v1404_v18, %v838_v38  ;;  %v1444_v20 = vsel %vm1443_vm3, %v1403_v17, %v836_v31  ;;  %v10843_v18 = vld [vmem:[#allocation19_spill] sm:$0xff]  ;;  %v10844_v17 = vld [vmem:[#allocation49_spill] sm:$0xff] }
 0x1ad   :  { %v1082_v30 = vpop.permute.xlu1 %1081  ;;  %v1080_v14 = vpop.permute.xlu0 %1079  ;;  %v1486_v55 = vsel %vm1484_vm4, %v1445_v16, %v960_v28  ;;  %v1485_v56 = vsel %vm1484_vm4, %v1444_v20, %v958_v29  ;;  %v1324_v16 = vsel %vm85_vm0, %v10844_v17, %v10843_v18  ;;  %v1612_v18 = vpack.c.bf16 %v6425_v1, %v6427_v2  ;;  %v5982_v17 = vld [vmem:[#allocation2 + $0xb8] sm:$0xff] }
 0x1ae   :  { %v1527_v47 = vsel %vm1525_vm5, %v1486_v55, %v1082_v30  ;;  %v1526_v23 = vsel %vm1525_vm5, %v1485_v56, %v1080_v14  ;;  %v10838_v30 = vld [vmem:[#allocation15_spill] sm:$0xff]  ;;  %v10846_v55 = vld [vmem:[#allocation69_spill] sm:$0xff] }
 0x1af   :  { %1231 = vrot.lane.b32.xlu1 %v6365_v35, %s6175_s30  ;;  %1229 = vrot.lane.b32.xlu0 %v6367_v36, %s6175_s30 }
 0x1b1   :  { %v1204_v24 = vpop.permute.xlu1 %1203  ;;  %v1202_v32 = vpop.permute.xlu0 %1201 }
 0x1b2   :  { %v7061_v38 = vsel %vm1566_vm6, %v1527_v47, %v1204_v24  ;;  %v7064_v31 = vsel %vm1566_vm6, %v1526_v23, %v1202_v32 }
 0x1b3   :  { %10836 = vst [vmem:[#allocation139_spill] sm:$0xff] %v7061_v38  ;;  %10837 = vst [vmem:[#allocation140_spill] sm:$0xff] %v7064_v31  ;;  %v1607_v28 = vpack.c.bf16 %v7061_v38, %v7064_v31  ;;  %869 = vrot.lane.b32.xlu1 %v6365_v35, %s6165_s1  ;;  %867 = vrot.lane.b32.xlu0 %v6367_v36, %s6165_s1  ;;  %v10840_v35 = vld [vmem:[#allocation67_spill] sm:$0xff]  ;;  %v10841_v36 = vld [vmem:[#allocation16_spill] sm:$0xff] }
 0x1b4   :  { %v1323_v12 = vsel %vm85_vm0, %v10842_v11, %v10841_v36 }
 0x1b5   :  { %v842_v14 = vpop.permute.xlu1 %841  ;;  %v840_v29 = vpop.permute.xlu0 %839  ;;  %1812 = vmatmul.mubr.bf16.vlgmr.msra.gmra.mxu0 %v1607_v28  ;;  %v1364_v56 = vsel %vm1361_vm1, %v1323_v12, %v10846_v55  ;;  %v10852_v55 = vld [vmem:[#allocation18_spill] sm:$0xff] }
 0x1b6   :  { %5192 = vmatprep.mubr.msk.bf16.mxu0 %vm85_vm0, %v1610_v33  ;;  %v1405_v32 = vsel %vm1402_vm2, %v1364_v56, %v6896_v22  ;;  %v10853_v56 = vld [vmem:[#allocation70_spill] sm:$0xff] }
 0x1b7   :  { %991 = vrot.lane.b32.xlu1 %v6465_v13, %s6173_s28  ;;  %989 = vrot.lane.b32.xlu0 %v10838_v30, %s6173_s28  ;;  %v10845_v13 = vld [vmem:[#allocation68_spill] sm:$0xff]  ;;  %v1446_v28 = vsel %vm1443_vm3, %v1405_v32, %v840_v29  ;;  %v10847_v30 = vld [vmem:[#allocation13_spill] sm:$0xff]  ;;  %v10856_v32 = vld [vmem:[#allocation23_spill] sm:$0xff] }
 0x1b8   :  { %v1365_v20 = vsel %vm1361_vm1, %v1324_v16, %v10845_v13 }
 0x1b9   :  { %v964_v63 = vpop.permute.xlu1 %963  ;;  %v962_v0 = vpop.permute.xlu0 %961  ;;  %v1406_v24 = vsel %vm1402_vm2, %v1365_v20, %v6894_v21  ;;  %v10851_v20 = vld [vmem:[#allocation17_spill] sm:$0xff] }
 0x1ba   :  { %v1447_v33 = vsel %vm1443_vm3, %v1406_v24, %v842_v14  ;;  %v1487_v36 = vsel %vm1484_vm4, %v1446_v28, %v962_v0  ;;  %v5983_v0 = vld [vmem:[#allocation2 + $0xb0] sm:$0xff]  ;;  %v10857_v28 = vld [vmem:[#allocation72_spill] sm:$0xff] }
 0x1bb   :  { %1113 = vrot.lane.b32.xlu1 %v10839_v34, %s6174_s29  ;;  %1111 = vrot.lane.b32.xlu0 %v10840_v35, %s6174_s29  ;;  %v10848_v34 = vld [vmem:[#allocation14_spill] sm:$0xff]  ;;  %v1488_v35 = vsel %vm1484_vm4, %v1447_v33, %v964_v63  ;;  %v1325_v33 = vsel %vm85_vm0, %v6585_v53, %v10856_v32  ;;  %v5985_v53 = vld [vmem:[#allocation2 + $0xc0] sm:$0xff] }
 0x1bc   :  { %v10864_v32 = vld [vmem:[#allocation75_spill] sm:$0xff] }
 0x1bd   :  { %v1086_v47 = vpop.permute.xlu1 %1085  ;;  %v1084_v23 = vpop.permute.xlu0 %1083 }
 0x1be   :  { %v1529_v11 = vsel %vm1525_vm5, %v1488_v35, %v1086_v47  ;;  %v1528_v21 = vsel %vm1525_vm5, %v1487_v36, %v1084_v23  ;;  %v10854_v47 = vld [vmem:[#allocation71_spill] sm:$0xff]  ;;  %v10855_v23 = vld [vmem:[#allocation22_spill] sm:$0xff] }
 0x1bf   :  { %1235 = vrot.lane.b32.xlu1 %v10847_v30, %s6175_s30  ;;  %1233 = vrot.lane.b32.xlu0 %v10848_v34, %s6175_s30  ;;  %v1326_v24 = vsel %vm85_vm0, %v6583_v48, %v10855_v23  ;;  %v10858_v34 = vld [vmem:[#allocation73_spill] sm:$0xff] }
 0x1c0   :  { %v1367_v30 = vsel %vm1361_vm1, %v1326_v24, %v10857_v28  ;;  %v1366_v35 = vsel %vm1361_vm1, %v1325_v33, %v10858_v34  ;;  %v10862_v23 = vld [vmem:[#allocation21_spill] sm:$0xff]  ;;  %v10865_v33 = vld [vmem:[#allocation26_spill] sm:$0xff] }
 0x1c1   :  { %v1208_v12 = vpop.permute.xlu1 %1207  ;;  %v1206_v22 = vpop.permute.xlu0 %1205  ;;  %v1328_v28 = vsel %vm85_vm0, %v6595_v50, %v10865_v33 }
 0x1c2   :  { %v7108_v14 = vsel %vm1566_vm6, %v1529_v11, %v1208_v12  ;;  %v7111_v29 = vsel %vm1566_vm6, %v1528_v21, %v1206_v22  ;;  %v1408_v21 = vsel %vm1402_vm2, %v1367_v30, %v6902_v61  ;;  %v1407_v12 = vsel %vm1402_vm2, %v1366_v35, %v6904_v59  ;;  %v10866_v30 = vld [vmem:[#allocation27_spill] sm:$0xff]  ;;  %v10867_v35 = vld [vmem:[#allocation76_spill] sm:$0xff] }
 0x1c3   :  { %10849 = vst [vmem:[#allocation15_spill] sm:$0xff] %v7108_v14  ;;  %10850 = vst [vmem:[#allocation66_spill] sm:$0xff] %v7111_v29  ;;  %v1609_v63 = vpack.c.bf16 %v7108_v14, %v7111_v29  ;;  %873 = vrot.lane.b32.xlu1 %v5982_v17, %s6165_s1  ;;  %871 = vrot.lane.b32.xlu0 %v5983_v0, %s6165_s1  ;;  %v1327_v34 = vsel %vm85_vm0, %v6597_v54, %v10866_v30  ;;  %v5987_v54 = vld [vmem:[#allocation2 + $0xd0] sm:$0xff] }
 0x1c5   :  { %v846_v16 = vpop.permute.xlu1 %845  ;;  %v844_v13 = vpop.permute.xlu0 %843  ;;  %1820 = vmatmul.mubr.bf16.gmra.mxu0 %v1609_v63 }
 0x1c6   :  { %5193 = vmatprep.mubr.msk.bf16.mxu0 %vm85_vm0, %v1612_v18  ;;  %v1449_v48 = vsel %vm1443_vm3, %v1408_v21, %v846_v16  ;;  %v1448_v22 = vsel %vm1443_vm3, %v1407_v12, %v844_v13  ;;  %v5984_v18 = vld [vmem:[#allocation2 + $0xc8] sm:$0xff] }
 0x1c7   :  { %995 = vrot.lane.b32.xlu1 %v10851_v20, %s6173_s28  ;;  %993 = vrot.lane.b32.xlu0 %v10852_v55, %s6173_s28  ;;  %v1614_v55 = vpack.c.bf16 %v6433_v3, %v6435_v5  ;;  %v10863_v5 = vld [vmem:[#allocation74_spill] sm:$0xff] }
 0x1c9   :  { %v968_v1 = vpop.permute.xlu1 %967  ;;  %v966_v2 = vpop.permute.xlu0 %965 }
 0x1ca   :  { %v1490_v63 = vsel %vm1484_vm4, %v1449_v48, %v968_v1  ;;  %v1489_v17 = vsel %vm1484_vm4, %v1448_v22, %v966_v2 }
 0x1cb   :  { %1117 = vrot.lane.b32.xlu1 %v10853_v56, %s6174_s29  ;;  %1115 = vrot.lane.b32.xlu0 %v10854_v47, %s6174_s29  ;;  %v10861_v47 = vld [vmem:[#allocation20_spill] sm:$0xff] }
 0x1cd   :  { %v1090_v36 = vpop.permute.xlu1 %1089  ;;  %v1088_v11 = vpop.permute.xlu0 %1087 }
 0x1ce   :  { %v1531_v0 = vsel %vm1525_vm5, %v1490_v63, %v1090_v36  ;;  %v1530_v61 = vsel %vm1525_vm5, %v1489_v17, %v1088_v11  ;;  %v1369_v36 = vsel %vm1361_vm1, %v1328_v28, %v10867_v35  ;;  %v10868_v11 = vld [vmem:[#allocation77_spill] sm:$0xff]  ;;  %v5986_v63 = vld [vmem:[#allocation2 + $0xd8] sm:$0xff]  ;;  %v10876_v28 = vld [vmem:[#allocation31_spill] sm:$0xff] }
 0x1cf   :  { %1239 = vrot.lane.b32.xlu1 %v5984_v18, %s6175_s30  ;;  %1237 = vrot.lane.b32.xlu0 %v5985_v53, %s6175_s30  ;;  %v1368_v21 = vsel %vm1361_vm1, %v1327_v34, %v10868_v11  ;;  %v1410_v22 = vsel %vm1402_vm2, %v1369_v36, %v6910_v62  ;;  %v1329_v30 = vsel %vm85_vm0, %v6609_v49, %v10876_v28  ;;  %v10877_v34 = vld [vmem:[#allocation80_spill] sm:$0xff]  ;;  %v10878_v36 = vld [vmem:[#allocation81_spill] sm:$0xff]  ;;  %v5989_v49 = vld [vmem:[#allocation2 + $0xe0] sm:$0xff] }
 0x1d0   :  { %v1370_v11 = vsel %vm1361_vm1, %v1329_v30, %v10878_v36 }
 0x1d1   :  { %v1212_v20 = vpop.permute.xlu1 %1211  ;;  %v1210_v59 = vpop.permute.xlu0 %1209 }
 0x1d2   :  { %v7151_v16 = vsel %vm1566_vm6, %v1531_v0, %v1212_v20  ;;  %v7154_v13 = vsel %vm1566_vm6, %v1530_v61, %v1210_v59 }
 0x1d3   :  { %10859 = vst [vmem:[#allocation67_spill] sm:$0xff] %v7151_v16  ;;  %10860 = vst [vmem:[#allocation16_spill] sm:$0xff] %v7154_v13  ;;  %v1611_v1 = vpack.c.bf16 %v7151_v16, %v7154_v13  ;;  %877 = vrot.lane.b32.xlu1 %v5984_v18, %s6165_s1  ;;  %875 = vrot.lane.b32.xlu0 %v5985_v53, %s6165_s1  ;;  %v1409_v18 = vsel %vm1402_vm2, %v1368_v21, %v6912_v4 }
 0x1d5   :  { %v850_v2 = vpop.permute.xlu1 %849  ;;  %v848_v56 = vpop.permute.xlu0 %847  ;;  %1828 = vmatmul.mubr.bf16.gmra.mxu0 %v1611_v1  ;;  %v1616_v1 = vpack.c.bf16 %v6441_v7, %v6443_v8  ;;  %v10873_v8 = vld [vmem:[#allocation78_spill] sm:$0xff] }
 0x1d6   :  { %5194 = vmatprep.mubr.msk.bf16.mxu0 %vm85_vm0, %v1614_v55  ;;  %v1451_v50 = vsel %vm1443_vm3, %v1410_v22, %v850_v2  ;;  %v1450_v53 = vsel %vm1443_vm3, %v1409_v18, %v848_v56  ;;  %v1411_v22 = vsel %vm1402_vm2, %v1370_v11, %v6920_v26 }
 0x1d7   :  { %999 = vrot.lane.b32.xlu1 %v10861_v47, %s6173_s28  ;;  %997 = vrot.lane.b32.xlu0 %v10862_v23, %s6173_s28  ;;  %v10871_v23 = vld [vmem:[#allocation24_spill] sm:$0xff] }
 0x1d9   :  { %v972_v24 = vpop.permute.xlu1 %971  ;;  %v970_v3 = vpop.permute.xlu0 %969 }
 0x1da   :  { %v1492_v17 = vsel %vm1484_vm4, %v1451_v50, %v972_v24  ;;  %v1491_v0 = vsel %vm1484_vm4, %v1450_v53, %v970_v3  ;;  %v10872_v24 = vld [vmem:[#allocation25_spill] sm:$0xff]  ;;  %v5988_v50 = vld [vmem:[#allocation2 + $0xe8] sm:$0xff] }
 0x1db   :  { %1121 = vrot.lane.b32.xlu1 %v10863_v5, %s6174_s29  ;;  %1119 = vrot.lane.b32.xlu0 %v10864_v32, %s6174_s29  ;;  %v10874_v5 = vld [vmem:[#allocation79_spill] sm:$0xff]  ;;  %v10875_v32 = vld [vmem:[#allocation30_spill] sm:$0xff] }
 0x1dc   :  { %v1330_v33 = vsel %vm85_vm0, %v6607_v57, %v10875_v32 }
 0x1dd   :  { %v1094_v12 = vpop.permute.xlu1 %1093  ;;  %v1092_v48 = vpop.permute.xlu0 %1091  ;;  %v1371_v35 = vsel %vm1361_vm1, %v1330_v33, %v10877_v34  ;;  %v10888_v33 = vld [vmem:[#allocation85_spill] sm:$0xff] }
 0x1de   :  { %v1533_v61 = vsel %vm1525_vm5, %v1492_v17, %v1094_v12  ;;  %v1532_v62 = vsel %vm1525_vm5, %v1491_v0, %v1092_v48  ;;  %v1412_v48 = vsel %vm1402_vm2, %v1371_v35, %v6918_v25 }
 0x1df   :  { %1243 = vrot.lane.b32.xlu1 %v5986_v63, %s6175_s30  ;;  %1241 = vrot.lane.b32.xlu0 %v5987_v54, %s6175_s30 }
 0x1e1   :  { %v1216_v20 = vpop.permute.xlu1 %1215  ;;  %v1214_v4 = vpop.permute.xlu0 %1213 }
 0x1e2   :  { %v7194_v59 = vsel %vm1566_vm6, %v1533_v61, %v1216_v20  ;;  %v7197_v55 = vsel %vm1566_vm6, %v1532_v62, %v1214_v4  ;;  %v1618_v62 = vpack.c.bf16 %v6449_v9, %v6451_v10  ;;  %v10883_v10 = vld [vmem:[#allocation82_spill] sm:$0xff] }
 0x1e3   :  { %10869 = vst [vmem:[#allocation48_spill] sm:$0xff] %v7194_v59  ;;  %10870 = vst [vmem:[#allocation19_spill] sm:$0xff] %v7197_v55  ;;  %v1613_v2 = vpack.c.bf16 %v7194_v59, %v7197_v55  ;;  %881 = vrot.lane.b32.xlu1 %v5986_v63, %s6165_s1  ;;  %879 = vrot.lane.b32.xlu0 %v5987_v54, %s6165_s1 }
 0x1e5   :  { %v854_v56 = vpop.permute.xlu1 %853  ;;  %v852_v47 = vpop.permute.xlu0 %851  ;;  %1836 = vmatmul.mubr.bf16.gmra.mxu0 %v1613_v2  ;;  %v10881_v2 = vld [vmem:[#allocation28_spill] sm:$0xff] }
 0x1e6   :  { %5195 = vmatprep.mubr.msk.bf16.mxu0 %vm85_vm0, %v1616_v1  ;;  %v1453_v57 = vsel %vm1443_vm3, %v1412_v48, %v854_v56  ;;  %v1452_v18 = vsel %vm1443_vm3, %v1411_v22, %v852_v47  ;;  %v10882_v56 = vld [vmem:[#allocation29_spill] sm:$0xff] }
 0x1e7   :  { %1003 = vrot.lane.b32.xlu1 %v10871_v23, %s6173_s28  ;;  %1001 = vrot.lane.b32.xlu0 %v10872_v24, %s6173_s28  ;;  %v10884_v23 = vld [vmem:[#allocation83_spill] sm:$0xff]  ;;  %v10885_v24 = vld [vmem:[#allocation34_spill] sm:$0xff] }
 0x1e9   :  { %v976_v3 = vpop.permute.xlu1 %975  ;;  %v974_v7 = vpop.permute.xlu0 %973 }
 0x1ea   :  { %v1494_v53 = vsel %vm1484_vm4, %v1453_v57, %v976_v3  ;;  %v1493_v63 = vsel %vm1484_vm4, %v1452_v18, %v974_v7  ;;  %v1332_v3 = vsel %vm85_vm0, %v6619_v44, %v10885_v24  ;;  %v10886_v7 = vld [vmem:[#allocation35_spill] sm:$0xff] }
 0x1eb   :  { %1125 = vrot.lane.b32.xlu1 %v10873_v8, %s6174_s29  ;;  %1123 = vrot.lane.b32.xlu0 %v10874_v5, %s6174_s29  ;;  %v1331_v8 = vsel %vm85_vm0, %v6621_v43, %v10886_v7  ;;  %v10887_v5 = vld [vmem:[#allocation84_spill] sm:$0xff]  ;;  %v5991_v43 = vld [vmem:[#allocation2 + $0xf0] sm:$0xff] }
 0x1ec   :  { %v1373_v32 = vsel %vm1361_vm1, %v1332_v3, %v10887_v5  ;;  %v1372_v28 = vsel %vm1361_vm1, %v1331_v8, %v10888_v33  ;;  %v10898_v3 = vld [vmem:[#allocation89_spill] sm:$0xff] }
 0x1ed   :  { %v1098_v21 = vpop.permute.xlu1 %1097  ;;  %v1096_v12 = vpop.permute.xlu0 %1095  ;;  %v1414_v35 = vsel %vm1402_vm2, %v1373_v32, %v6926_v6  ;;  %v1413_v36 = vsel %vm1402_vm2, %v1372_v28, %v6928_v19 }
 0x1ee   :  { %v1535_v54 = vsel %vm1525_vm5, %v1494_v53, %v1098_v21  ;;  %v1534_v25 = vsel %vm1525_vm5, %v1493_v63, %v1096_v12  ;;  %v5990_v21 = vld [vmem:[#allocation2 + $0xf8] sm:$0xff] }
 0x1ef   :  { %1247 = vrot.lane.b32.xlu1 %v5988_v50, %s6175_s30  ;;  %1245 = vrot.lane.b32.xlu0 %v5989_v49, %s6175_s30  ;;  %v5993_v53 = vld [vmem:[#allocation2 + $0x91] sm:$0xff] }
 0x1f1   :  { %v1220_v17 = vpop.permute.xlu1 %1219  ;;  %v1218_v26 = vpop.permute.xlu0 %1217 }
 0x1f2   :  { %v7237_v0 = vsel %vm1566_vm6, %v1535_v54, %v1220_v17  ;;  %v7240_v61 = vsel %vm1566_vm6, %v1534_v25, %v1218_v26  ;;  %v10891_v26 = vld [vmem:[#allocation32_spill] sm:$0xff] }
 0x1f3   :  { %10879 = vst [vmem:[#allocation49_spill] sm:$0xff] %v7237_v0  ;;  %10880 = vst [vmem:[#allocation68_spill] sm:$0xff] %v7240_v61  ;;  %v1615_v20 = vpack.c.bf16 %v7237_v0, %v7240_v61  ;;  %885 = vrot.lane.b32.xlu1 %v5988_v50, %s6165_s1  ;;  %883 = vrot.lane.b32.xlu0 %v5989_v49, %s6165_s1  ;;  %v5992_v49 = vld [vmem:[#allocation2 + $0x99] sm:$0xff] }
 0x1f4   :  { %v1620_v63 = vpack.c.bf16 %v5992_v49, %v5993_v53  ;;  %v7335_v49 = vld [vmem:[#allocation2 + $0x101] sm:$0xff] }
 0x1f5   :  { %v858_v4 = vpop.permute.xlu1 %857  ;;  %v856_v1 = vpop.permute.xlu0 %855  ;;  %1844 = vmatmul.mubr.bf16.gmra.mxu0 %v1615_v20 }
 0x1f6   :  { %5196 = vmatprep.mubr.msk.bf16.mxu0 %vm85_vm0, %v1618_v62  ;;  %v1455_v44 = vsel %vm1443_vm3, %v1414_v35, %v858_v4  ;;  %v1454_v11 = vsel %vm1443_vm3, %v1413_v36, %v856_v1  ;;  %v10892_v62 = vld [vmem:[#allocation33_spill] sm:$0xff]  ;;  %v10893_v1 = vld [vmem:[#allocation86_spill] sm:$0xff] }
 0x1f7   :  { %1007 = vrot.lane.b32.xlu1 %v10881_v2, %s6173_s28  ;;  %1005 = vrot.lane.b32.xlu0 %v10882_v56, %s6173_s28  ;;  %v10894_v2 = vld [vmem:[#allocation87_spill] sm:$0xff]  ;;  %v10895_v56 = vld [vmem:[#allocation36_spill] sm:$0xff] }
 0x1f9   :  { %v980_v47 = vpop.permute.xlu1 %979  ;;  %v978_v9 = vpop.permute.xlu0 %977 }
 0x1fa   :  { %v1496_v12 = vsel %vm1484_vm4, %v1455_v44, %v980_v47  ;;  %v1495_v48 = vsel %vm1484_vm4, %v1454_v11, %v978_v9  ;;  %v1334_v47 = vsel %vm85_vm0, %v6631_v46, %v10895_v56  ;;  %v10896_v9 = vld [vmem:[#allocation37_spill] sm:$0xff] }
 0x1fb   :  { %1129 = vrot.lane.b32.xlu1 %v10883_v10, %s6174_s29  ;;  %1127 = vrot.lane.b32.xlu0 %v10884_v23, %s6174_s29  ;;  %v1333_v10 = vsel %vm85_vm0, %v6633_v45, %v10896_v9  ;;  %v10897_v23 = vld [vmem:[#allocation88_spill] sm:$0xff]  ;;  %v5995_v45 = vld [vmem:[#allocation2 + $0x100] sm:$0xff] }
 0x1fc   :  { %v1375_v24 = vsel %vm1361_vm1, %v1334_v47, %v10897_v23  ;;  %v1374_v7 = vsel %vm1361_vm1, %v1333_v10, %v10898_v3  ;;  %v6000_v3 = vld [vmem:[#allocation2 + $0x118] sm:$0xff] }
 0x1fd   :  { %v1102_v30 = vpop.permute.xlu1 %1101  ;;  %v1100_v34 = vpop.permute.xlu0 %1099  ;;  %v1416_v32 = vsel %vm1402_vm2, %v1375_v24, %v6934_v60  ;;  %v1415_v33 = vsel %vm1402_vm2, %v1374_v7, %v6936_v58 }
 0x1fe   :  { %v1537_v22 = vsel %vm1525_vm5, %v1496_v12, %v1102_v30  ;;  %v1536_v6 = vsel %vm1525_vm5, %v1495_v48, %v1100_v34  ;;  %v5994_v30 = vld [vmem:[#allocation2 + $0x108] sm:$0xff] }
 0x1ff   :  { %1251 = vrot.lane.b32.xlu1 %v5990_v21, %s6175_s30  ;;  %1249 = vrot.lane.b32.xlu0 %v5991_v43, %s6175_s30  ;;  %v5997_v12 = vld [vmem:[#allocation2 + $0xa1] sm:$0xff] }
 0x201   :  { %v1224_v57 = vpop.permute.xlu1 %1223  ;;  %v1222_v19 = vpop.permute.xlu0 %1221 }
 0x202   :  { %v7280_v18 = vsel %vm1566_vm6, %v1537_v22, %v1224_v57  ;;  %v7283_v50 = vsel %vm1566_vm6, %v1536_v6, %v1222_v19  ;;  %v7331_v19 = vld [vmem:[#allocation2 + $0x109] sm:$0xff] }
 0x203   :  { %10889 = vst [vmem:[#allocation69_spill] sm:$0xff] %v7280_v18  ;;  %10890 = vst [vmem:[#allocation13_spill] sm:$0xff] %v7283_v50  ;;  %v1617_v54 = vpack.c.bf16 %v7280_v18, %v7283_v50  ;;  %889 = vrot.lane.b32.xlu1 %v5990_v21, %s6165_s1  ;;  %887 = vrot.lane.b32.xlu0 %v5991_v43, %s6165_s1  ;;  %v5996_v43 = vld [vmem:[#allocation2 + $0xa9] sm:$0xff] }
 0x204   :  { %v1622_v48 = vpack.c.bf16 %v5996_v43, %v5997_v12  ;;  %v10909_v12 = vld [vmem:[#allocation94_spill] sm:$0xff] }
 0x205   :  { %v862_v25 = vpop.permute.xlu1 %861  ;;  %v860_v17 = vpop.permute.xlu0 %859  ;;  %1852 = vmatmul.mubr.bf16.gmra.mxu0 %v1617_v54  ;;  %v10901_v54 = vld [vmem:[#allocation90_spill] sm:$0xff] }
 0x206   :  { %5197 = vmatprep.mubr.msk.bf16.mxu0 %vm85_vm0, %v1620_v63  ;;  %v1457_v46 = vsel %vm1443_vm3, %v1416_v32, %v862_v25  ;;  %v1456_v28 = vsel %vm1443_vm3, %v1415_v33, %v860_v17  ;;  %v10902_v25 = vld [vmem:[#allocation91_spill] sm:$0xff]  ;;  %v10903_v17 = vld [vmem:[#allocation38_spill] sm:$0xff] }
 0x207   :  { %1011 = vrot.lane.b32.xlu1 %v10891_v26, %s6173_s28  ;;  %1009 = vrot.lane.b32.xlu0 %v10892_v62, %s6173_s28  ;;  %v1336_v26 = vsel %vm85_vm0, %v6643_v40, %v10903_v17  ;;  %v10904_v62 = vld [vmem:[#allocation39_spill] sm:$0xff] }
 0x209   :  { %v984_v20 = vpop.permute.xlu1 %983  ;;  %v982_v4 = vpop.permute.xlu0 %981 }
 0x20a   :  { %v1498_v34 = vsel %vm1484_vm4, %v1457_v46, %v984_v20  ;;  %v1497_v35 = vsel %vm1484_vm4, %v1456_v28, %v982_v4  ;;  %v1335_v20 = vsel %vm85_vm0, %v6645_v39, %v10904_v62  ;;  %v10905_v4 = vld [vmem:[#allocation92_spill] sm:$0xff]  ;;  %v6001_v39 = vld [vmem:[#allocation2 + $0x110] sm:$0xff]  ;;  %v6002_v28 = vld [vmem:[#allocation2 + $0xb9] sm:$0xff] }
 0x20b   :  { %1133 = vrot.lane.b32.xlu1 %v10893_v1, %s6174_s29  ;;  %1131 = vrot.lane.b32.xlu0 %v10894_v2, %s6174_s29  ;;  %v1377_v1 = vsel %vm1361_vm1, %v1336_v26, %v10905_v4  ;;  %v10906_v2 = vld [vmem:[#allocation93_spill] sm:$0xff] }
 0x20c   :  { %v1376_v56 = vsel %vm1361_vm1, %v1335_v20, %v10906_v2  ;;  %v1418_v10 = vsel %vm1402_vm2, %v1377_v1, %v6942_v51  ;;  %v10914_v20 = vld [vmem:[#allocation121_spill] sm:$0xff]  ;;  %v6006_v2 = vld [vmem:[#allocation2 + $0x128] sm:$0xff] }
 0x20d   :  { %v1106_v8 = vpop.permute.xlu1 %1105  ;;  %v1104_v5 = vpop.permute.xlu0 %1103  ;;  %v1417_v23 = vsel %vm1402_vm2, %v1376_v56, %v6944_v52 }
 0x20e   :  { %v1539_v36 = vsel %vm1525_vm5, %v1498_v34, %v1106_v8  ;;  %v1538_v60 = vsel %vm1525_vm5, %v1497_v35, %v1104_v5 }
 0x20f   :  { %1255 = vrot.lane.b32.xlu1 %v5994_v30, %s6175_s30  ;;  %1253 = vrot.lane.b32.xlu0 %v5995_v45, %s6175_s30 }
 0x211   :  { %v1228_v44 = vpop.permute.xlu1 %1227  ;;  %v1226_v58 = vpop.permute.xlu0 %1225 }
 0x212   :  { %v7321_v11 = vsel %vm1566_vm6, %v1539_v36, %v1228_v44  ;;  %v7324_v21 = vsel %vm1566_vm6, %v1538_v60, %v1226_v58  ;;  %v7376_v60 = vld [vmem:[#allocation2 + $0x119] sm:$0xff]  ;;  %v7380_v44 = vld [vmem:[#allocation2 + $0x111] sm:$0xff] }
 0x213   :  { %10899 = vst [vmem:[#allocation14_spill] sm:$0xff] %v7321_v11  ;;  %10900 = vst [vmem:[#allocation17_spill] sm:$0xff] %v7324_v21  ;;  %v1619_v22 = vpack.c.bf16 %v7321_v11, %v7324_v21  ;;  %893 = vrot.lane.b32.xlu1 %v5994_v30, %s6165_s1  ;;  %891 = vrot.lane.b32.xlu0 %v5995_v45, %s6165_s1  ;;  %v6003_v30 = vld [vmem:[#allocation2 + $0xb1] sm:$0xff] }
 0x214   :  { %v1624_v45 = vpack.c.bf16 %v6002_v28, %v6003_v30  ;;  %v10917_v30 = vld [vmem:[#allocation97_spill] sm:$0xff] }
 0x215   :  { %v866_v6 = vpop.permute.xlu1 %865  ;;  %v864_v57 = vpop.permute.xlu0 %863  ;;  %1860 = vmatmul.mubr.bf16.gmra.mxu0 %v1619_v22  ;;  %v10911_v22 = vld [vmem:[#allocation40_spill] sm:$0xff] }
 0x216   :  { %5198 = vmatprep.mubr.msk.bf16.mxu0 %vm85_vm0, %v1622_v48  ;;  %v1459_v40 = vsel %vm1443_vm3, %v1418_v10, %v866_v6  ;;  %v1458_v24 = vsel %vm1443_vm3, %v1417_v23, %v864_v57  ;;  %v10910_v48 = vld [vmem:[#allocation95_spill] sm:$0xff]  ;;  %v1338_v6 = vsel %vm85_vm0, %v6655_v42, %v10911_v22  ;;  %v10912_v57 = vld [vmem:[#allocation41_spill] sm:$0xff] }
 0x217   :  { %1015 = vrot.lane.b32.xlu1 %v7331_v19, %s6173_s28  ;;  %1013 = vrot.lane.b32.xlu0 %v7335_v49, %s6173_s28 }
 0x219   :  { %v988_v53 = vpop.permute.xlu1 %987  ;;  %v986_v63 = vpop.permute.xlu0 %985 }
 0x21a   :  { %v1500_v7 = vsel %vm1484_vm4, %v1459_v40, %v988_v53  ;;  %v1499_v8 = vsel %vm1484_vm4, %v1458_v24, %v986_v63  ;;  %v1337_v53 = vsel %vm85_vm0, %v6657_v41, %v10912_v57  ;;  %v1379_v63 = vsel %vm1361_vm1, %v1338_v6, %v6782_v37  ;;  %v6007_v41 = vld [vmem:[#allocation2 + $0x120] sm:$0xff]  ;;  %v6008_v24 = vld [vmem:[#allocation2 + $0xc9] sm:$0xff] }
 0x21b   :  { %1137 = vrot.lane.b32.xlu1 %v10901_v54, %s6174_s29  ;;  %1135 = vrot.lane.b32.xlu0 %v10902_v25, %s6174_s29  ;;  %v10913_v54 = vld [vmem:[#allocation96_spill] sm:$0xff]  ;;  %v1420_v62 = vsel %vm1402_vm2, %v1379_v63, %v6950_v27 }
 0x21c   :  { %v1378_v25 = vsel %vm1361_vm1, %v1337_v53, %v10913_v54  ;;  %v10922_v6 = vld [vmem:[#allocation100_spill] sm:$0xff]  ;;  %v10923_v54 = vld [vmem:[#allocation122_spill] sm:$0xff] }
 0x21d   :  { %v1110_v47 = vpop.permute.xlu1 %1109  ;;  %v1108_v9 = vpop.permute.xlu0 %1107  ;;  %v1419_v4 = vsel %vm1402_vm2, %v1378_v25, %v10914_v20  ;;  %v6014_v20 = vld [vmem:[#allocation2 + $0x138] sm:$0xff] }
 0x21e   :  { %v1541_v5 = vsel %vm1525_vm5, %v1500_v7, %v1110_v47  ;;  %v1540_v51 = vsel %vm1525_vm5, %v1499_v8, %v1108_v9 }
 0x21f   :  { %1259 = vrot.lane.b32.xlu1 %v6000_v3, %s6175_s30  ;;  %1257 = vrot.lane.b32.xlu0 %v6001_v39, %s6175_s30 }
 0x221   :  { %v1232_v32 = vpop.permute.xlu1 %1231  ;;  %v1230_v52 = vpop.permute.xlu0 %1229 }
 0x222   :  { %v7366_v33 = vsel %vm1566_vm6, %v1541_v5, %v1232_v32  ;;  %v7369_v46 = vsel %vm1566_vm6, %v1540_v51, %v1230_v52  ;;  %v7421_v51 = vld [vmem:[#allocation2 + $0x129] sm:$0xff]  ;;  %v7425_v32 = vld [vmem:[#allocation2 + $0x121] sm:$0xff] }
 0x223   :  { %10907 = vst [vmem:[#allocation18_spill] sm:$0xff] %v7366_v33  ;;  %10908 = vst [vmem:[#allocation70_spill] sm:$0xff] %v7369_v46  ;;  %v1621_v34 = vpack.c.bf16 %v7366_v33, %v7369_v46  ;;  %897 = vrot.lane.b32.xlu1 %v6000_v3, %s6165_s1  ;;  %895 = vrot.lane.b32.xlu0 %v6001_v39, %s6165_s1  ;;  %v6009_v3 = vld [vmem:[#allocation2 + $0xc1] sm:$0xff] }
 0x224   :  { %v1626_v39 = vpack.c.bf16 %v6008_v24, %v6009_v3 }
 0x225   :  { %v870_v35 = vpop.permute.xlu1 %869  ;;  %v868_v36 = vpop.permute.xlu0 %867  ;;  %1868 = vmatmul.mubr.bf16.gmra.mxu0 %v1621_v34  ;;  %v6012_v34 = vld [vmem:[#allocation2 + $0xa7] sm:$0xff] }
 0x226   :  { %5199 = vmatprep.mubr.msk.bf16.mxu0 %vm85_vm0, %v1624_v45  ;;  %v1461_v42 = vsel %vm1443_vm3, %v1420_v62, %v870_v35  ;;  %v1460_v1 = vsel %vm1443_vm3, %v1419_v4, %v868_v36  ;;  %v10918_v45 = vld [vmem:[#allocation98_spill] sm:$0xff]  ;;  %v6015_v4 = vld [vmem:[#allocation2 + $0x130] sm:$0xff] }
 0x227   :  { %1019 = vrot.lane.b32.xlu1 %v7376_v60, %s6173_s28  ;;  %1017 = vrot.lane.b32.xlu0 %v7380_v44, %s6173_s28  ;;  %v10919_v35 = vld [vmem:[#allocation42_spill] sm:$0xff] }
 0x228   :  { %v1340_v36 = vsel %vm85_vm0, %v6012_v34, %v10919_v35  ;;  %v10926_v34 = vld [vmem:[#allocation44_spill] sm:$0xff] }
 0x229   :  { %v992_v58 = vpop.permute.xlu1 %991  ;;  %v990_v43 = vpop.permute.xlu0 %989 }
 0x22a   :  { %v1502_v37 = vsel %vm1484_vm4, %v1461_v42, %v992_v58  ;;  %v1501_v56 = vsel %vm1484_vm4, %v1460_v1, %v990_v43  ;;  %v6013_v58 = vld [vmem:[#allocation2 + $0x9f] sm:$0xff] }
 0x22b   :  { %1141 = vrot.lane.b32.xlu1 %v10909_v12, %s6174_s29  ;;  %1139 = vrot.lane.b32.xlu0 %v10910_v48, %s6174_s29  ;;  %v10920_v43 = vld [vmem:[#allocation43_spill] sm:$0xff] }
 0x22c   :  { %v1339_v12 = vsel %vm85_vm0, %v6013_v58, %v10920_v43  ;;  %v10921_v48 = vld [vmem:[#allocation99_spill] sm:$0xff]  ;;  %v10927_v58 = vld [vmem:[#allocation45_spill] sm:$0xff] }
 0x22d   :  { %v1114_v17 = vpop.permute.xlu1 %1113  ;;  %v1112_v26 = vpop.permute.xlu0 %1111  ;;  %v1381_v22 = vsel %vm1361_vm1, %v1340_v36, %v10921_v48  ;;  %v1380_v57 = vsel %vm1361_vm1, %v1339_v12, %v10922_v6  ;;  %v6021_v36 = vld [vmem:[#allocation2 + $0xaf] sm:$0xff] }
 0x22e   :  { %v1543_v47 = vsel %vm1525_vm5, %v1502_v37, %v1114_v17  ;;  %v1542_v27 = vsel %vm1525_vm5, %v1501_v56, %v1112_v26  ;;  %v1422_v25 = vsel %vm1402_vm2, %v1381_v22, %v10923_v54  ;;  %v1421_v17 = vsel %vm1402_vm2, %v1380_v57, %v6960_v15  ;;  %v10928_v12 = vld [vmem:[#allocation101_spill] sm:$0xff]  ;;  %v10929_v22 = vld [vmem:[#allocation102_spill] sm:$0xff] }
 0x22f   :  { %1263 = vrot.lane.b32.xlu1 %v6006_v2, %s6175_s30  ;;  %1261 = vrot.lane.b32.xlu0 %v6007_v41, %s6175_s30  ;;  %v1341_v43 = vsel %vm85_vm0, %v6021_v36, %v10927_v58  ;;  %v7519_v36 = vld [vmem:[#allocation2 + $0x141] sm:$0xff] }
 0x230   :  { %v1382_v6 = vsel %vm1361_vm1, %v1341_v43, %v10929_v22  ;;  %v6028_v58 = vld [vmem:[#allocation2 + $0xc7] sm:$0xff]  ;;  %v10934_v43 = vld [vmem:[#allocation46_spill] sm:$0xff] }
 0x231   :  { %v1236_v9 = vpop.permute.xlu1 %1235  ;;  %v1234_v10 = vpop.permute.xlu0 %1233  ;;  %v10935_v22 = vld [vmem:[#allocation47_spill] sm:$0xff] }
 0x232   :  { %v7411_v23 = vsel %vm1566_vm6, %v1543_v47, %v1236_v9  ;;  %v7414_v40 = vsel %vm1566_vm6, %v1542_v27, %v1234_v10  ;;  %v6016_v27 = vld [vmem:[#allocation2 + $0xd9] sm:$0xff]  ;;  %v6017_v9 = vld [vmem:[#allocation2 + $0xd1] sm:$0xff] }
 0x233   :  { %10915 = vst [vmem:[#allocation71_spill] sm:$0xff] %v7411_v23  ;;  %10916 = vst [vmem:[#allocation22_spill] sm:$0xff] %v7414_v40  ;;  %v1623_v7 = vpack.c.bf16 %v7411_v23, %v7414_v40  ;;  %901 = vrot.lane.b32.xlu1 %v6006_v2, %s6165_s1  ;;  %899 = vrot.lane.b32.xlu0 %v6007_v41, %s6165_s1  ;;  %v1628_v10 = vpack.c.bf16 %v6016_v27, %v6017_v9 }
 0x235   :  { %v874_v8 = vpop.permute.xlu1 %873  ;;  %v872_v5 = vpop.permute.xlu0 %871  ;;  %1876 = vmatmul.mubr.bf16.gmra.mxu0 %v1623_v7  ;;  %v7464_v7 = vld [vmem:[#allocation2 + $0x139] sm:$0xff] }
 0x236   :  { %5200 = vmatprep.mubr.msk.bf16.mxu0 %vm85_vm0, %v1626_v39  ;;  %v1463_v26 = vsel %vm1443_vm3, %v1422_v25, %v874_v8  ;;  %v1462_v62 = vsel %vm1443_vm3, %v1421_v17, %v872_v5  ;;  %v7468_v8 = vld [vmem:[#allocation2 + $0x131] sm:$0xff]  ;;  %v10931_v25 = vld [vmem:[#allocation124_spill] sm:$0xff] }
 0x237   :  { %1023 = vrot.lane.b32.xlu1 %v7421_v51, %s6173_s28  ;;  %1021 = vrot.lane.b32.xlu0 %v7425_v32, %s6173_s28  ;;  %v1423_v17 = vsel %vm1402_vm2, %v1382_v6, %v10931_v25  ;;  %v10937_v25 = vld [vmem:[#allocation104_spill] sm:$0xff] }
 0x239   :  { %v996_v52 = vpop.permute.xlu1 %995  ;;  %v994_v28 = vpop.permute.xlu0 %993 }
 0x23a   :  { %v1504_v42 = vsel %vm1484_vm4, %v1463_v26, %v996_v52  ;;  %v1503_v1 = vsel %vm1484_vm4, %v1462_v62, %v994_v28  ;;  %v7472_v28 = vld [vmem:[#allocation2 + $0x147] sm:$0xff] }
 0x23b   :  { %1145 = vrot.lane.b32.xlu1 %v10917_v30, %s6174_s29  ;;  %1143 = vrot.lane.b32.xlu0 %v10918_v45, %s6174_s29  ;;  %v7474_v30 = vld [vmem:[#allocation2 + $0x13f] sm:$0xff]  ;;  %v6020_v45 = vld [vmem:[#allocation2 + $0xb7] sm:$0xff] }
 0x23c   :  { %v1342_v35 = vsel %vm85_vm0, %v6020_v45, %v10926_v34 }
 0x23d   :  { %v1118_v53 = vpop.permute.xlu1 %1117  ;;  %v1116_v63 = vpop.permute.xlu0 %1115  ;;  %v1383_v48 = vsel %vm1361_vm1, %v1342_v35, %v10928_v12  ;;  %v7515_v35 = vld [vmem:[#allocation2 + $0x149] sm:$0xff]  ;;  %v1344_v12 = vsel %vm85_vm0, %v6028_v58, %v10934_v43 }
 0x23e   :  { %v1545_v2 = vsel %vm1525_vm5, %v1504_v42, %v1118_v53  ;;  %v1544_v41 = vsel %vm1525_vm5, %v1503_v1, %v1116_v63  ;;  %v10930_v63 = vld [vmem:[#allocation123_spill] sm:$0xff] }
 0x23f   :  { %1267 = vrot.lane.b32.xlu1 %v6014_v20, %s6175_s30  ;;  %1265 = vrot.lane.b32.xlu0 %v6015_v4, %s6175_s30  ;;  %v1424_v54 = vsel %vm1402_vm2, %v1383_v48, %v10930_v63  ;;  %v6029_v48 = vld [vmem:[#allocation2 + $0xbf] sm:$0xff] }
 0x240   :  { %v1343_v6 = vsel %vm85_vm0, %v6029_v48, %v10935_v22  ;;  %v10936_v63 = vld [vmem:[#allocation103_spill] sm:$0xff]  ;;  %v6031_v48 = vld [vmem:[#allocation2 + $0xf1] sm:$0xff] }
 0x241   :  { %v1240_v37 = vpop.permute.xlu1 %1239  ;;  %v1238_v15 = vpop.permute.xlu0 %1237 }
 0x242   :  { %v7454_v56 = vsel %vm1566_vm6, %v1545_v2, %v1240_v37  ;;  %v7457_v47 = vsel %vm1566_vm6, %v1544_v41, %v1238_v15 }
 0x243   :  { %10924 = vst [vmem:[#allocation23_spill] sm:$0xff] %v7454_v56  ;;  %10925 = vst [vmem:[#allocation72_spill] sm:$0xff] %v7457_v47  ;;  %v1625_v24 = vpack.c.bf16 %v7454_v56, %v7457_v47  ;;  %905 = vrot.lane.b32.xlu1 %v6014_v20, %s6165_s1  ;;  %903 = vrot.lane.b32.xlu0 %v6015_v4, %s6165_s1  ;;  %v6022_v20 = vld [vmem:[#allocation2 + $0x148] sm:$0xff]  ;;  %v6023_v4 = vld [vmem:[#allocation2 + $0x140] sm:$0xff] }
 0x245   :  { %v878_v3 = vpop.permute.xlu1 %877  ;;  %v876_v39 = vpop.permute.xlu0 %875  ;;  %1884 = vmatmul.mubr.bf16.gmra.mxu0 %v1625_v24  ;;  %v6025_v24 = vld [vmem:[#allocation2 + $0xe1] sm:$0xff] }
 0x246   :  { %5201 = vmatprep.mubr.msk.bf16.mxu0 %vm85_vm0, %v1628_v10  ;;  %v1465_v26 = vsel %vm1443_vm3, %v1424_v54, %v878_v3  ;;  %v1464_v62 = vsel %vm1443_vm3, %v1423_v17, %v876_v39  ;;  %v6024_v10 = vld [vmem:[#allocation2 + $0xe9] sm:$0xff]  ;;  %v1385_v54 = vsel %vm1361_vm1, %v1344_v12, %v10936_v63  ;;  %v1384_v17 = vsel %vm1361_vm1, %v1343_v6, %v10937_v25  ;;  %v6030_v12 = vld [vmem:[#allocation2 + $0xf9] sm:$0xff] }
 0x247   :  { %1027 = vrot.lane.b32.xlu1 %v7464_v7, %s6173_s28  ;;  %1025 = vrot.lane.b32.xlu0 %v7468_v8, %s6173_s28  ;;  %v1630_v3 = vpack.c.bf16 %v6024_v10, %v6025_v24  ;;  %v344_v10 = vld [vmem:[#allocation2 + $0x158] sm:$0xff]  ;;  %v343_v24 = vld [vmem:[#allocation2 + $0x150] sm:$0xff]  ;;  %v1632_v22 = vpack.c.bf16 %v6030_v12, %v6031_v48 }
 0x248   :  { %v6032_v25 = vld [vmem:[#allocation2 + $0xd7] sm:$0xff] }
 0x249   :  { %v1000_v5 = vpop.permute.xlu1 %999  ;;  %v998_v52 = vpop.permute.xlu0 %997 }
 0x24a   :  { %v1506_v42 = vsel %vm1484_vm4, %v1465_v26, %v1000_v5  ;;  %v1505_v1 = vsel %vm1484_vm4, %v1464_v62, %v998_v52 }
 0x24b   :  { %1149 = vrot.lane.b32.xlu1 %v7472_v28, %s6174_s29  ;;  %1147 = vrot.lane.b32.xlu0 %v7474_v30, %s6174_s29 }
 0x24d   :  { %v1122_v57 = vpop.permute.xlu1 %1121  ;;  %v1120_v53 = vpop.permute.xlu0 %1119 }
 0x24e   :  { %v1547_v2 = vsel %vm1525_vm5, %v1506_v42, %v1122_v57  ;;  %v1546_v41 = vsel %vm1525_vm5, %v1505_v1, %v1120_v53  ;;  %v342_v57 = vld [vmem:[#allocation2 + $0x157] sm:$0xff]  ;;  %v341_v53 = vld [vmem:[#allocation2 + $0x14f] sm:$0xff] }
 0x24f   :  { %1271 = vrot.lane.b32.xlu1 %v6022_v20, %s6175_s30  ;;  %1269 = vrot.lane.b32.xlu0 %v6023_v4, %s6175_s30  ;;  %v10939_v42 = vld [vmem:[#allocation126_spill] sm:$0xff] }
 0x250   :  { %v1425_v1 = vsel %vm1402_vm2, %v1384_v17, %v10939_v42  ;;  %v10942_v17 = vld [vmem:[#allocation50_spill] sm:$0xff] }
 0x251   :  { %v1244_v37 = vpop.permute.xlu1 %1243  ;;  %v1242_v15 = vpop.permute.xlu0 %1241  ;;  %v7562_v42 = vld [vmem:[#allocation2 + $0x159] sm:$0xff] }
 0x252   :  { %v7501_v27 = vsel %vm1566_vm6, %v1547_v2, %v1244_v37  ;;  %v7504_v9 = vsel %vm1566_vm6, %v1546_v41, %v1242_v15 }
 0x253   :  { %10932 = vst [vmem:[#allocation73_spill] sm:$0xff] %v7501_v27  ;;  %10933 = vst [vmem:[#allocation20_spill] sm:$0xff] %v7504_v9  ;;  %v1627_v39 = vpack.c.bf16 %v7501_v27, %v7504_v9  ;;  %787 = vrot.lane.b32.xlu1 %v7472_v28, %s6171_s27  ;;  %785 = vrot.lane.b32.xlu0 %v7474_v30, %s6171_s27 }
 0x255   :  { %v882_v5 = vpop.permute.xlu1 %881  ;;  %v880_v52 = vpop.permute.xlu0 %879  ;;  %1892 = vmatmul.mubr.bf16.gmra.mxu0 %v1627_v39 }
 0x256   :  { %5202 = vmatprep.mubr.msk.bf16.mxu0 %vm85_vm0, %v1630_v3  ;;  %v1466_v41 = vsel %vm1443_vm3, %v1425_v1, %v880_v52  ;;  %v7564_v1 = vld [vmem:[#allocation2 + $0x151] sm:$0xff] }
 0x257   :  { %909 = vrot.lane.b32.xlu1 %v6022_v20, %s6165_s1  ;;  %907 = vrot.lane.b32.xlu0 %v6023_v4, %s6165_s1  ;;  %v10938_v20 = vld [vmem:[#allocation125_spill] sm:$0xff] }
 0x258   :  { %v1426_v4 = vsel %vm1402_vm2, %v1385_v54, %v10938_v20  ;;  %v10943_v20 = vld [vmem:[#allocation51_spill] sm:$0xff] }
 0x259   :  { %v1004_v45 = vpop.permute.xlu1 %1003  ;;  %v1002_v34 = vpop.permute.xlu0 %1001  ;;  %v1467_v2 = vsel %vm1443_vm3, %v1426_v4, %v882_v5 }
 0x25a   :  { %v1508_v37 = vsel %vm1484_vm4, %v1467_v2, %v1004_v45  ;;  %v1507_v15 = vsel %vm1484_vm4, %v1466_v41, %v1002_v34  ;;  %v10945_v2 = vld [vmem:[#allocation106_spill] sm:$0xff] }
 0x25b   :  { %1031 = vrot.lane.b32.xlu1 %v7515_v35, %s6173_s28  ;;  %1029 = vrot.lane.b32.xlu0 %v7519_v36, %s6173_s28 }
 0x25d   :  { %v1126_v26 = vpop.permute.xlu1 %1125  ;;  %v1124_v62 = vpop.permute.xlu0 %1123 }
 0x25e   :  { %v1549_v3 = vsel %vm1525_vm5, %v1508_v37, %v1126_v26  ;;  %v1548_v39 = vsel %vm1525_vm5, %v1507_v15, %v1124_v62  ;;  %v1346_v26 = vsel %vm85_vm0, %v6032_v25, %v10942_v17  ;;  %v6033_v62 = vld [vmem:[#allocation2 + $0xcf] sm:$0xff] }
 0x25f   :  { %1153 = vrot.lane.b32.xlu1 %v342_v57, %s6174_s29  ;;  %1151 = vrot.lane.b32.xlu0 %v341_v53, %s6174_s29  ;;  %v1345_v4 = vsel %vm85_vm0, %v6033_v62, %v10943_v20  ;;  %v1634_v20 = vpack.c.bf16 %v7331_v19, %v7335_v49  ;;  %v182_v49 = vld [vmem:[#allocation5 + $0x8] sm:$0xff] }
 0x260   :  { %v1386_v41 = vsel %vm1361_vm1, %v1345_v4, %v10945_v2  ;;  %v349_v4 = vld [vmem:[#allocation2 + $0x160] sm:$0xff] }
 0x261   :  { %v1248_v58 = vpop.permute.xlu1 %1247  ;;  %v1246_v43 = vpop.permute.xlu0 %1245 }
 0x262   :  { %v7544_v5 = vsel %vm1566_vm6, %v1549_v3, %v1248_v58  ;;  %v7547_v52 = vsel %vm1566_vm6, %v1548_v39, %v1246_v43  ;;  %v10947_v3 = vld [vmem:[#allocation128_spill] sm:$0xff] }
 0x263   :  { %10940 = vst [vmem:[#allocation21_spill] sm:$0xff] %v7544_v5  ;;  %10941 = vst [vmem:[#allocation74_spill] sm:$0xff] %v7547_v52  ;;  %v1629_v45 = vpack.c.bf16 %v7544_v5, %v7547_v52  ;;  %1275 = vrot.lane.b32.xlu1 %v344_v10, %s6175_s30  ;;  %1273 = vrot.lane.b32.xlu0 %v343_v24, %s6175_s30  ;;  %v1427_v39 = vsel %vm1402_vm2, %v1386_v41, %v10947_v3  ;;  %v181_v41 = vld [vmem:[#allocation5] sm:$0xff]  ;;  %v10950_v3 = vld [vmem:[#allocation52_spill] sm:$0xff] }
 0x265   :  { %v886_v34 = vpop.permute.xlu1 %885  ;;  %v884_v6 = vpop.permute.xlu0 %883  ;;  %1900 = vmatmul.mubr.bf16.gmra.mxu0 %v1629_v45  ;;  %v347_v45 = vld [vmem:[#allocation2 + $0x15f] sm:$0xff] }
 0x266   :  { %5203 = vmatprep.mubr.msk.bf16.mxu0 %vm85_vm0, %v1632_v22  ;;  %v1468_v43 = vsel %vm1443_vm3, %v1427_v39, %v884_v6  ;;  %v348_v22 = vld [vmem:[#allocation2 + $0x167] sm:$0xff] }
 0x267   :  { %791 = vrot.lane.b32.xlu1 %v342_v57, %s6171_s27  ;;  %789 = vrot.lane.b32.xlu0 %v341_v53, %s6171_s27  ;;  %v10944_v57 = vld [vmem:[#allocation105_spill] sm:$0xff] }
 0x268   :  { %v1387_v53 = vsel %vm1361_vm1, %v1346_v26, %v10944_v57 }
 0x269   :  { %v1008_v63 = vpop.permute.xlu1 %1007  ;;  %v1006_v54 = vpop.permute.xlu0 %1005 }
 0x26a   :  { %v1509_v48 = vsel %vm1484_vm4, %v1468_v43, %v1006_v54  ;;  %v350_v54 = vld [vmem:[#allocation2 + $0x168] sm:$0xff]  ;;  %v10951_v43 = vld [vmem:[#allocation53_spill] sm:$0xff] }
 0x26b   :  { %913 = vrot.lane.b32.xlu1 %v344_v10, %s6165_s1  ;;  %911 = vrot.lane.b32.xlu0 %v343_v24, %s6165_s1  ;;  %v10946_v10 = vld [vmem:[#allocation127_spill] sm:$0xff] }
 0x26c   :  { %v1428_v24 = vsel %vm1402_vm2, %v1387_v53, %v10946_v10 }
 0x26d   :  { %v1130_v37 = vpop.permute.xlu1 %1129  ;;  %v1128_v15 = vpop.permute.xlu0 %1127  ;;  %v1469_v58 = vsel %vm1443_vm3, %v1428_v24, %v886_v34  ;;  %v6034_v24 = vld [vmem:[#allocation2 + $0xe7] sm:$0xff] }
 0x26e   :  { %v1510_v12 = vsel %vm1484_vm4, %v1469_v58, %v1008_v63  ;;  %v1550_v17 = vsel %vm1525_vm5, %v1509_v48, %v1128_v15  ;;  %v1348_v39 = vsel %vm85_vm0, %v6034_v24, %v10950_v3  ;;  %v6035_v58 = vld [vmem:[#allocation2 + $0xdf] sm:$0xff] }
 0x26f   :  { %1035 = vrot.lane.b32.xlu1 %v7562_v42, %s6173_s28  ;;  %1033 = vrot.lane.b32.xlu0 %v7564_v1, %s6173_s28  ;;  %v1551_v25 = vsel %vm1525_vm5, %v1510_v12, %v1130_v37  ;;  %v1347_v12 = vsel %vm85_vm0, %v6035_v58, %v10951_v43  ;;  %v185_v58 = vld [vmem:[#allocation5 + $0x20] sm:$0xff]  ;;  %v186_v43 = vld [vmem:[#allocation5 + $0x28] sm:$0xff] }
 0x271   :  { %v1252_v26 = vpop.permute.xlu1 %1251  ;;  %v1250_v34 = vpop.permute.xlu0 %1249 }
 0x272   :  { %v7585_v6 = vsel %vm1566_vm6, %v1551_v25, %v1252_v26  ;;  %v7588_v62 = vsel %vm1566_vm6, %v1550_v17, %v1250_v34  ;;  %v10952_v25 = vld [vmem:[#allocation107_spill] sm:$0xff]  ;;  %v10953_v26 = vld [vmem:[#allocation108_spill] sm:$0xff] }
 0x273   :  { %10948 = vst [vmem:[#allocation75_spill] sm:$0xff] %v7585_v6  ;;  %10949 = vst [vmem:[#allocation26_spill] sm:$0xff] %v7588_v62  ;;  %v1631_v63 = vpack.c.bf16 %v7585_v6, %v7588_v62  ;;  %1157 = vrot.lane.b32.xlu1 %v348_v22, %s6174_s29  ;;  %1155 = vrot.lane.b32.xlu0 %v347_v45, %s6174_s29  ;;  %v183_v22 = vld [vmem:[#allocation5 + $0x10] sm:$0xff]  ;;  %v184_v45 = vld [vmem:[#allocation5 + $0x18] sm:$0xff]  ;;  %v1389_v17 = vsel %vm1361_vm1, %v1348_v39, %v10952_v25 }
 0x274   :  { %v1388_v34 = vsel %vm1361_vm1, %v1347_v12, %v10953_v26 }
 0x275   :  { %v890_v57 = vpop.permute.xlu1 %889  ;;  %v888_v53 = vpop.permute.xlu0 %887  ;;  %1908 = vmatmul.mubr.bf16.gmra.mxu0 %v1631_v63 }
 0x276   :  { %v7596_v2 = vpop.f32.mrf.mxu0  ;;  %5204 = vmatprep.mubr.msk.bf16.mxu0 %vm85_vm0, %v1634_v20 }
 0x277   :  { %1279 = vrot.lane.b32.xlu1 %v350_v54, %s6175_s30  ;;  %1277 = vrot.lane.b32.xlu0 %v349_v4, %s6175_s30  ;;  %v10954_v54 = vld [vmem:[#allocation129_spill] sm:$0xff] }
 0x278   :  { %v1815_v19 = vpop.f32.mrf.mxu0  ;;  %v1430_v4 = vsel %vm1402_vm2, %v1389_v17, %v10954_v54  ;;  %v189_v54 = vld [vmem:[#allocation5 + $0x40] sm:$0xff] }
 0x279   :  { %v1012_v37 = vpop.permute.xlu1 %1011  ;;  %v1010_v15 = vpop.permute.xlu0 %1009  ;;  %v10955_v19 = vld [vmem:[#allocation130_spill] sm:$0xff] }
 0x27a   :  { %v7601_v10 = vpop.f32.mrf.mxu0 }
 0x27b   :  { %1981 = vperm.xlu1 %5259, %v182_v49   ;;  %1976 = vperm.xlu0 %5258, %v181_v41   ;;  %v1429_v49 = vsel %vm1402_vm2, %v1388_v34, %v10955_v19  ;;  %v1471_v41 = vsel %vm1443_vm3, %v1430_v4, %v890_v57  ;;  %v190_v4 = vld [vmem:[#allocation5 + $0x48] sm:$0xff] }
 0x27c   :  { %v1818_v48 = vpop.f32.mrf.mxu0  ;;  %v1470_v24 = vsel %vm1443_vm3, %v1429_v49, %v888_v53  ;;  %v1512_v3 = vsel %vm1484_vm4, %v1471_v41, %v1012_v37  ;;  %v1636_v53 = vpack.c.bf16 %v7376_v60, %v7380_v44  ;;  %v6036_v49 = vld [vmem:[#allocation2 + $0xf7] sm:$0xff] }
 0x27d   :  { %v1134_v20 = vpop.permute.xlu1 %1133  ;;  %v1132_v63 = vpop.permute.xlu0 %1131  ;;  %v1511_v39 = vsel %vm1484_vm4, %v1470_v24, %v1010_v15  ;;  %v187_v15 = vld [vmem:[#allocation5 + $0x30] sm:$0xff]  ;;  %v10958_v41 = vld [vmem:[#allocation54_spill] sm:$0xff] }
 0x27e   :  { %v1553_v12 = vsel %vm1525_vm5, %v1512_v3, %v1134_v20  ;;  %v1552_v48 = vsel %vm1525_vm5, %v1511_v39, %v1132_v63  ;;  %v1350_v24 = vsel %vm85_vm0, %v6036_v49, %v10958_v41  ;;  %v6037_v3 = vld [vmem:[#allocation2 + $0xef] sm:$0xff]  ;;  %v10959_v39 = vld [vmem:[#allocation55_spill] sm:$0xff] }
 0x27f   :  { %1986 = vperm.xlu1 %5259, %v183_v22   ;;  %1991 = vperm.xlu0 %5258, %v184_v45   ;;  %v188_v22 = vld [vmem:[#allocation5 + $0x38] sm:$0xff] }
 0x281   :  { %v1256_v25 = vpop.permute.xlu1 %1255  ;;  %v1254_v17 = vpop.permute.xlu0 %1253 }
 0x282   :  { %v7622_v26 = vsel %vm1566_vm6, %v1553_v12, %v1256_v25  ;;  %v7625_v57 = vsel %vm1566_vm6, %v1552_v48, %v1254_v17  ;;  %v191_v12 = vld [vmem:[#allocation5 + $0x50] sm:$0xff]  ;;  %v192_v48 = vld [vmem:[#allocation5 + $0x58] sm:$0xff] }
 0x283   :  { %10956 = vst [vmem:[#allocation27_spill] sm:$0xff] %v7622_v26  ;;  %10957 = vst [vmem:[#allocation76_spill] sm:$0xff] %v7625_v57  ;;  %v1633_v37 = vpack.c.bf16 %v7622_v26, %v7625_v57  ;;  %1996 = vperm.xlu1 %5259, %v185_v58   ;;  %2001 = vperm.xlu0 %5258, %v186_v43   ;;  %v1349_v58 = vsel %vm85_vm0, %v6037_v3, %v10959_v39  ;;  %v10960_v25 = vld [vmem:[#allocation109_spill] sm:$0xff]  ;;  %v10971_v26 = vld [vmem:[#allocation134_spill] sm:$0xff] }
 0x284   :  { %v1391_v17 = vsel %vm1361_vm1, %v1350_v24, %v10960_v25 }
 0x285   :  { %v894_v45 = vpop.permute.xlu1 %893  ;;  %v892_v34 = vpop.permute.xlu0 %891  ;;  %1916 = vmatmul.mubr.bf16.gmra.mxu0 %v1633_v37 }
 0x286   :  { %v7631_v20 = vpop.f32.mrf.mxu0  ;;  %5205 = vmatprep.mubr.msk.bf16.mxu0 %vm85_vm0, %v1636_v53  ;;  %v10961_v53 = vld [vmem:[#allocation110_spill] sm:$0xff] }
 0x287   :  { %2006 = vperm.xlu1 %5259, %v187_v15   ;;  %2011 = vperm.xlu0 %5258, %v188_v22   ;;  %v1390_v37 = vsel %vm1361_vm1, %v1349_v58, %v10961_v53  ;;  %v194_v58 = vld [vmem:[#allocation5 + $0x68] sm:$0xff] }
 0x288   :  { %v1823_v63 = vpop.f32.mrf.mxu0 }
 0x289   :  { %v1016_v60 = vpop.permute.xlu1 %1015  ;;  %v1014_v44 = vpop.permute.xlu0 %1013  ;;  %v10962_v63 = vld [vmem:[#allocation131_spill] sm:$0xff] }
 0x28a   :  { %v7634_v19 = vpop.f32.mrf.mxu0 }
 0x28b   :  { %2016 = vperm.xlu1 %5259, %v189_v54   ;;  %2021 = vperm.xlu0 %5258, %v190_v4   ;;  %v1432_v54 = vsel %vm1402_vm2, %v1391_v17, %v10962_v63  ;;  %v10963_v4 = vld [vmem:[#allocation132_spill] sm:$0xff] }
 0x28c   :  { %v1826_v43 = vpop.f32.mrf.mxu0  ;;  %v1431_v49 = vsel %vm1402_vm2, %v1390_v37, %v10963_v4  ;;  %v1473_v41 = vsel %vm1443_vm3, %v1432_v54, %v894_v45  ;;  %v197_v4 = vld [vmem:[#allocation5 + $0x80] sm:$0xff] }
 0x28d   :  { %v1138_v15 = vpop.permute.xlu1 %1137  ;;  %v1136_v22 = vpop.permute.xlu0 %1135  ;;  %v1472_v3 = vsel %vm1443_vm3, %v1431_v49, %v892_v34  ;;  %v1514_v39 = vsel %vm1484_vm4, %v1473_v41, %v1016_v60  ;;  %v193_v43 = vld [vmem:[#allocation5 + $0x60] sm:$0xff]  ;;  %v1638_v34 = vpack.c.bf16 %v7421_v51, %v7425_v32  ;;  %v198_v49 = vld [vmem:[#allocation5 + $0x88] sm:$0xff] }
 0x28e   :  { %v1513_v24 = vsel %vm1484_vm4, %v1472_v3, %v1014_v44  ;;  %v1555_v25 = vsel %vm1525_vm5, %v1514_v39, %v1138_v15  ;;  %v195_v44 = vld [vmem:[#allocation5 + $0x70] sm:$0xff]  ;;  %v6038_v3 = vld [vmem:[#allocation2 + $0x107] sm:$0xff] }
 0x28f   :  { %2026 = vperm.xlu1 %5259, %v191_v12   ;;  %2031 = vperm.xlu0 %5258, %v192_v48   ;;  %v1554_v53 = vsel %vm1525_vm5, %v1513_v24, %v1136_v22  ;;  %v196_v12 = vld [vmem:[#allocation5 + $0x78] sm:$0xff]  ;;  %v10966_v39 = vld [vmem:[#allocation56_spill] sm:$0xff] }
 0x290   :  { %v1352_v24 = vsel %vm85_vm0, %v6038_v3, %v10966_v39 }
 0x291   :  { %v1260_v17 = vpop.permute.xlu1 %1259  ;;  %v1258_v63 = vpop.permute.xlu0 %1257 }
 0x292   :  { %v7655_v37 = vsel %vm1566_vm6, %v1555_v25, %v1260_v17  ;;  %v7658_v45 = vsel %vm1566_vm6, %v1554_v53, %v1258_v63  ;;  %v199_v17 = vld [vmem:[#allocation5 + $0x90] sm:$0xff]  ;;  %v200_v63 = vld [vmem:[#allocation5 + $0x98] sm:$0xff] }
 0x293   :  { %10964 = vst [vmem:[#allocation77_spill] sm:$0xff] %v7655_v37  ;;  %10965 = vst [vmem:[#allocation24_spill] sm:$0xff] %v7658_v45  ;;  %v1635_v60 = vpack.c.bf16 %v7655_v37, %v7658_v45  ;;  %2036 = vperm.xlu1 %5259, %v193_v43   ;;  %2041 = vperm.xlu0 %5258, %v194_v58   ;;  %v6039_v43 = vld [vmem:[#allocation2 + $0xff] sm:$0xff]  ;;  %v10967_v58 = vld [vmem:[#allocation57_spill] sm:$0xff] }
 0x294   :  { %v1351_v25 = vsel %vm85_vm0, %v6039_v43, %v10967_v58 }
 0x295   :  { %v898_v48 = vpop.permute.xlu1 %897  ;;  %v896_v15 = vpop.permute.xlu0 %895  ;;  %1924 = vmatmul.mubr.bf16.gmra.mxu0 %v1635_v60 }
 0x296   :  { %v7664_v22 = vpop.f32.mrf.mxu0  ;;  %5206 = vmatprep.mubr.msk.bf16.mxu0 %vm85_vm0, %v1638_v34  ;;  %v10968_v34 = vld [vmem:[#allocation111_spill] sm:$0xff] }
 0x297   :  { %2046 = vperm.xlu1 %5259, %v195_v44   ;;  %2051 = vperm.xlu0 %5258, %v196_v12   ;;  %v1393_v60 = vsel %vm1361_vm1, %v1352_v24, %v10968_v34  ;;  %v10969_v44 = vld [vmem:[#allocation112_spill] sm:$0xff] }
 0x298   :  { %v1831_v54 = vpop.f32.mrf.mxu0  ;;  %v1392_v12 = vsel %vm1361_vm1, %v1351_v25, %v10969_v44  ;;  %v202_v25 = vld [vmem:[#allocation5 + $0xa8] sm:$0xff] }
 0x299   :  { %v1020_v51 = vpop.permute.xlu1 %1019  ;;  %v1018_v32 = vpop.permute.xlu0 %1017  ;;  %v1433_v3 = vsel %vm1402_vm2, %v1392_v12, %v10971_v26 }
 0x29a   :  { %v7667_v41 = vpop.f32.mrf.mxu0  ;;  %v1474_v43 = vsel %vm1443_vm3, %v1433_v3, %v896_v15  ;;  %v206_v3 = vld [vmem:[#allocation5 + $0xc8] sm:$0xff] }
 0x29b   :  { %2056 = vperm.xlu1 %5259, %v197_v4   ;;  %2061 = vperm.xlu0 %5258, %v198_v49   ;;  %v10970_v49 = vld [vmem:[#allocation133_spill] sm:$0xff]  ;;  %v1515_v24 = vsel %vm1484_vm4, %v1474_v43, %v1018_v32  ;;  %v204_v32 = vld [vmem:[#allocation5 + $0xb8] sm:$0xff] }
 0x29c   :  { %v1834_v53 = vpop.f32.mrf.mxu0  ;;  %v1434_v37 = vsel %vm1402_vm2, %v1393_v60, %v10970_v49  ;;  %v6040_v43 = vld [vmem:[#allocation2 + $0x117] sm:$0xff] }
 0x29d   :  { %v1142_v54 = vpop.permute.xlu1 %1141  ;;  %v1140_v4 = vpop.permute.xlu0 %1139  ;;  %v1475_v39 = vsel %vm1443_vm3, %v1434_v37, %v898_v48  ;;  %v201_v53 = vld [vmem:[#allocation5 + $0xa0] sm:$0xff]  ;;  %v1640_v48 = vpack.c.bf16 %v7464_v7, %v7468_v8 }
 0x29e   :  { %v1516_v58 = vsel %vm1484_vm4, %v1475_v39, %v1020_v51  ;;  %v1556_v44 = vsel %vm1525_vm5, %v1515_v24, %v1140_v4  ;;  %v203_v51 = vld [vmem:[#allocation5 + $0xb0] sm:$0xff]  ;;  %v205_v4 = vld [vmem:[#allocation5 + $0xc0] sm:$0xff] }
 0x29f   :  { %2066 = vperm.xlu1 %5259, %v199_v17   ;;  %2071 = vperm.xlu0 %5258, %v200_v63   ;;  %v1557_v34 = vsel %vm1525_vm5, %v1516_v58, %v1142_v54  ;;  %v10974_v58 = vld [vmem:[#allocation58_spill] sm:$0xff] }
 0x2a0   :  { %v1354_v24 = vsel %vm85_vm0, %v6040_v43, %v10974_v58 }
 0x2a1   :  { %v1264_v60 = vpop.permute.xlu1 %1263  ;;  %v1262_v49 = vpop.permute.xlu0 %1261 }
 0x2a2   :  { %v7688_v26 = vsel %vm1566_vm6, %v1557_v34, %v1264_v60  ;;  %v7691_v37 = vsel %vm1566_vm6, %v1556_v44, %v1262_v49  ;;  %v207_v60 = vld [vmem:[#allocation5 + $0xd0] sm:$0xff]  ;;  %v208_v49 = vld [vmem:[#allocation5 + $0xd8] sm:$0xff] }
 0x2a3   :  { %10972 = vst [vmem:[#allocation25_spill] sm:$0xff] %v7688_v26  ;;  %10973 = vst [vmem:[#allocation78_spill] sm:$0xff] %v7691_v37  ;;  %v1637_v15 = vpack.c.bf16 %v7688_v26, %v7691_v37  ;;  %2076 = vperm.xlu1 %5259, %v201_v53   ;;  %2081 = vperm.xlu0 %5258, %v202_v25   ;;  %v6041_v53 = vld [vmem:[#allocation2 + $0x10f] sm:$0xff]  ;;  %v10975_v25 = vld [vmem:[#allocation59_spill] sm:$0xff] }
 0x2a4   :  { %v1353_v34 = vsel %vm85_vm0, %v6041_v53, %v10975_v25  ;;  %v10979_v37 = vld [vmem:[#allocation136_spill] sm:$0xff] }
 0x2a5   :  { %v902_v17 = vpop.permute.xlu1 %901  ;;  %v900_v63 = vpop.permute.xlu0 %899  ;;  %1932 = vmatmul.mubr.bf16.gmra.mxu0 %v1637_v15 }
 0x2a6   :  { %v7697_v12 = vpop.f32.mrf.mxu0  ;;  %5207 = vmatprep.mubr.msk.bf16.mxu0 %vm85_vm0, %v1640_v48  ;;  %v10976_v48 = vld [vmem:[#allocation113_spill] sm:$0xff] }
 0x2a7   :  { %2086 = vperm.xlu1 %5259, %v203_v51   ;;  %2091 = vperm.xlu0 %5258, %v204_v32   ;;  %v1395_v15 = vsel %vm1361_vm1, %v1354_v24, %v10976_v48  ;;  %v10977_v51 = vld [vmem:[#allocation114_spill] sm:$0xff] }
 0x2a8   :  { %v1839_v54 = vpop.f32.mrf.mxu0  ;;  %v1394_v32 = vsel %vm1361_vm1, %v1353_v34, %v10977_v51  ;;  %v210_v34 = vld [vmem:[#allocation5 + $0xe8] sm:$0xff] }
 0x2a9   :  { %v1024_v7 = vpop.permute.xlu1 %1023  ;;  %v1022_v8 = vpop.permute.xlu0 %1021  ;;  %v1435_v43 = vsel %vm1402_vm2, %v1394_v32, %v10979_v37 }
 0x2aa   :  { %v7700_v39 = vpop.f32.mrf.mxu0  ;;  %v1476_v53 = vsel %vm1443_vm3, %v1435_v43, %v900_v63  ;;  %v214_v43 = vld [vmem:[#allocation5 + $0x108] sm:$0xff] }
 0x2ab   :  { %2096 = vperm.xlu1 %5259, %v205_v4   ;;  %2101 = vperm.xlu0 %5258, %v206_v3   ;;  %v10978_v3 = vld [vmem:[#allocation135_spill] sm:$0xff]  ;;  %v1517_v24 = vsel %vm1484_vm4, %v1476_v53, %v1022_v8  ;;  %v212_v8 = vld [vmem:[#allocation5 + $0xf8] sm:$0xff] }
 0x2ac   :  { %v1842_v44 = vpop.f32.mrf.mxu0  ;;  %v1436_v26 = vsel %vm1402_vm2, %v1395_v15, %v10978_v3  ;;  %v6042_v53 = vld [vmem:[#allocation2 + $0x127] sm:$0xff] }
 0x2ad   :  { %v1146_v54 = vpop.permute.xlu1 %1145  ;;  %v1144_v4 = vpop.permute.xlu0 %1143  ;;  %v1477_v58 = vsel %vm1443_vm3, %v1436_v26, %v902_v17  ;;  %v209_v44 = vld [vmem:[#allocation5 + $0xe0] sm:$0xff]  ;;  %v1642_v17 = vpack.c.bf16 %v7515_v35, %v7519_v36 }
 0x2ae   :  { %v1518_v25 = vsel %vm1484_vm4, %v1477_v58, %v1024_v7  ;;  %v1558_v51 = vsel %vm1525_vm5, %v1517_v24, %v1144_v4  ;;  %v211_v7 = vld [vmem:[#allocation5 + $0xf0] sm:$0xff]  ;;  %v213_v4 = vld [vmem:[#allocation5 + $0x100] sm:$0xff] }
 0x2af   :  { %2106 = vperm.xlu1 %5259, %v207_v60   ;;  %2111 = vperm.xlu0 %5258, %v208_v49   ;;  %v1559_v48 = vsel %vm1525_vm5, %v1518_v25, %v1146_v54  ;;  %v10982_v25 = vld [vmem:[#allocation60_spill] sm:$0xff] }
 0x2b0   :  { %v1356_v24 = vsel %vm85_vm0, %v6042_v53, %v10982_v25 }
 0x2b1   :  { %v1268_v15 = vpop.permute.xlu1 %1267  ;;  %v1266_v3 = vpop.permute.xlu0 %1265 }
 0x2b2   :  { %v7721_v37 = vsel %vm1566_vm6, %v1559_v48, %v1268_v15  ;;  %v7724_v26 = vsel %vm1566_vm6, %v1558_v51, %v1266_v3  ;;  %v215_v15 = vld [vmem:[#allocation5 + $0x110] sm:$0xff]  ;;  %v216_v3 = vld [vmem:[#allocation5 + $0x118] sm:$0xff] }
 0x2b3   :  { %10980 = vst [vmem:[#allocation79_spill] sm:$0xff] %v7721_v37  ;;  %10981 = vst [vmem:[#allocation30_spill] sm:$0xff] %v7724_v26  ;;  %v1639_v63 = vpack.c.bf16 %v7721_v37, %v7724_v26  ;;  %2116 = vperm.xlu1 %5259, %v209_v44   ;;  %2121 = vperm.xlu0 %5258, %v210_v34   ;;  %v6043_v44 = vld [vmem:[#allocation2 + $0x11f] sm:$0xff]  ;;  %v10983_v34 = vld [vmem:[#allocation61_spill] sm:$0xff] }
 0x2b4   :  { %v1355_v48 = vsel %vm85_vm0, %v6043_v44, %v10983_v34  ;;  %v10987_v26 = vld [vmem:[#allocation138_spill] sm:$0xff] }
 0x2b5   :  { %v906_v60 = vpop.permute.xlu1 %905  ;;  %v904_v49 = vpop.permute.xlu0 %903  ;;  %1940 = vmatmul.mubr.bf16.gmra.mxu0 %v1639_v63 }
 0x2b6   :  { %v7730_v32 = vpop.f32.mrf.mxu0  ;;  %5208 = vmatprep.mubr.msk.bf16.mxu0 %vm85_vm0, %v1642_v17  ;;  %v10984_v17 = vld [vmem:[#allocation115_spill] sm:$0xff] }
 0x2b7   :  { %2126 = vperm.xlu1 %5259, %v211_v7   ;;  %2131 = vperm.xlu0 %5258, %v212_v8   ;;  %v1397_v63 = vsel %vm1361_vm1, %v1356_v24, %v10984_v17  ;;  %v10985_v7 = vld [vmem:[#allocation116_spill] sm:$0xff] }
 0x2b8   :  { %v1847_v54 = vpop.f32.mrf.mxu0  ;;  %v1396_v8 = vsel %vm1361_vm1, %v1355_v48, %v10985_v7  ;;  %v218_v48 = vld [vmem:[#allocation5 + $0x128] sm:$0xff] }
 0x2b9   :  { %v1028_v35 = vpop.permute.xlu1 %1027  ;;  %v1026_v36 = vpop.permute.xlu0 %1025  ;;  %v1437_v53 = vsel %vm1402_vm2, %v1396_v8, %v10987_v26 }
 0x2ba   :  { %v7733_v58 = vpop.f32.mrf.mxu0  ;;  %v1478_v44 = vsel %vm1443_vm3, %v1437_v53, %v904_v49 }
 0x2bb   :  { %2136 = vperm.xlu1 %5259, %v213_v4   ;;  %2141 = vperm.xlu0 %5258, %v214_v43   ;;  %v10986_v43 = vld [vmem:[#allocation137_spill] sm:$0xff]  ;;  %v1519_v24 = vsel %vm1484_vm4, %v1478_v44, %v1026_v36  ;;  %v220_v36 = vld [vmem:[#allocation5 + $0x138] sm:$0xff] }
 0x2bc   :  { %v1850_v51 = vpop.f32.mrf.mxu0  ;;  %v1438_v37 = vsel %vm1402_vm2, %v1397_v63, %v10986_v43 }
 0x2bd   :  { %v1150_v54 = vpop.permute.xlu1 %1149  ;;  %v1148_v4 = vpop.permute.xlu0 %1147  ;;  %v1479_v25 = vsel %vm1443_vm3, %v1438_v37, %v906_v60  ;;  %v217_v51 = vld [vmem:[#allocation5 + $0x120] sm:$0xff]  ;;  %v1644_v60 = vpack.c.bf16 %v7562_v42, %v7564_v1 }
 0x2be   :  { %v1520_v34 = vsel %vm1484_vm4, %v1479_v25, %v1028_v35  ;;  %v1560_v7 = vsel %vm1525_vm5, %v1519_v24, %v1148_v4  ;;  %v219_v35 = vld [vmem:[#allocation5 + $0x130] sm:$0xff]  ;;  %v10990_v24 = vld [vmem:[#allocation62_spill] sm:$0xff] }
 0x2bf   :  { %2146 = vperm.xlu1 %5259, %v215_v15   ;;  %2151 = vperm.xlu0 %5258, %v216_v3   ;;  %v1561_v17 = vsel %vm1525_vm5, %v1520_v34, %v1150_v54  ;;  %v6044_v34 = vld [vmem:[#allocation2 + $0x137] sm:$0xff] }
 0x2c1   :  { %v1272_v63 = vpop.permute.xlu1 %1271  ;;  %v1270_v43 = vpop.permute.xlu0 %1269 }
 0x2c2   :  { %v7754_v26 = vsel %vm1566_vm6, %v1561_v17, %v1272_v63  ;;  %v7757_v37 = vsel %vm1566_vm6, %v1560_v7, %v1270_v43  ;;  %v10991_v17 = vld [vmem:[#allocation63_spill] sm:$0xff]  ;;  %v10992_v63 = vld [vmem:[#allocation117_spill] sm:$0xff] }
 0x2c3   :  { %10988 = vst [vmem:[#allocation31_spill] sm:$0xff] %v7754_v26  ;;  %10989 = vst [vmem:[#allocation80_spill] sm:$0xff] %v7757_v37  ;;  %v1641_v49 = vpack.c.bf16 %v7754_v26, %v7757_v37  ;;  %2156 = vperm.xlu1 %5259, %v217_v51   ;;  %2161 = vperm.xlu0 %5258, %v218_v48   ;;  %v1358_v51 = vsel %vm85_vm0, %v6044_v34, %v10990_v24  ;;  %v6045_v48 = vld [vmem:[#allocation2 + $0x12f] sm:$0xff]  ;;  %v351_v24 = vld [vmem:[#allocation2 + $0x161] sm:$0xff] }
 0x2c4   :  { %v1357_v7 = vsel %vm85_vm0, %v6045_v48, %v10991_v17  ;;  %v1399_v43 = vsel %vm1361_vm1, %v1358_v51, %v10992_v63  ;;  %v352_v37 = vld [vmem:[#allocation2 + $0x169] sm:$0xff] }
 0x2c5   :  { %v788_v15 = vpop.permute.xlu1 %787  ;;  %v786_v3 = vpop.permute.xlu0 %785  ;;  %1948 = vmatmul.mubr.bf16.gmra.mxu0 %v1641_v49 }
 0x2c6   :  { %v7763_v8 = vpop.f32.mrf.mxu0  ;;  %5209 = vmatprep.mubr.msk.bf16.mxu0 %vm85_vm0, %v1644_v60  ;;  %v10993_v60 = vld [vmem:[#allocation118_spill] sm:$0xff] }
 0x2c7   :  { %2166 = vperm.xlu1 %5259, %v219_v35   ;;  %2171 = vperm.xlu0 %5258, %v220_v36   ;;  %v1398_v49 = vsel %vm1361_vm1, %v1357_v7, %v10993_v60 }
 0x2c8   :  { %v1855_v54 = vpop.f32.mrf.mxu0 }
 0x2c9   :  { %v910_v4 = vpop.permute.xlu1 %909  ;;  %v908_v53 = vpop.permute.xlu0 %907  ;;  %v1440_v54 = vsel %vm1402_vm2, %v1399_v43, %v788_v15 }
 0x2ca   :  { %v7766_v42 = vpop.f32.mrf.mxu0  ;;  %v1481_v26 = vsel %vm1443_vm3, %v1440_v54, %v910_v4 }
 0x2cc   :  { %v1858_v1 = vpop.f32.mrf.mxu0 }
 0x2cd   :  { %v1032_v25 = vpop.permute.xlu1 %1031  ;;  %v1030_v44 = vpop.permute.xlu0 %1029  ;;  %v1439_v1 = vsel %vm1402_vm2, %v1398_v49, %v786_v3 }
 0x2ce   :  { %v1480_v34 = vsel %vm1443_vm3, %v1439_v1, %v908_v53  ;;  %v1522_v48 = vsel %vm1484_vm4, %v1481_v26, %v1032_v25  ;;  %v1646_v53 = vpack.c.bf16 %v352_v37, %v351_v24  ;;  %v10997_v24 = vld [vmem:[#allocation65_spill] sm:$0xff] }
 0x2cf   :  { %v1521_v17 = vsel %vm1484_vm4, %v1480_v34, %v1030_v44 }
 0x2d1   :  { %v1154_v35 = vpop.permute.xlu1 %1153  ;;  %v1152_v36 = vpop.permute.xlu0 %1151 }
 0x2d2   :  { %v1563_v51 = vsel %vm1525_vm5, %v1522_v48, %v1154_v35  ;;  %v1562_v7 = vsel %vm1525_vm5, %v1521_v17, %v1152_v36  ;;  %v10996_v48 = vld [vmem:[#allocation64_spill] sm:$0xff]  ;;  %v1359_v17 = vsel %vm85_vm0, %v7474_v30, %v10997_v24 }
 0x2d3   :  { %v1360_v37 = vsel %vm85_vm0, %v7472_v28, %v10996_v48 }
 0x2d5   :  { %v1276_v63 = vpop.permute.xlu1 %1275  ;;  %v1274_v60 = vpop.permute.xlu0 %1273 }
 0x2d6   :  { %v7785_v15 = vsel %vm1566_vm6, %v1563_v51, %v1276_v63  ;;  %v7788_v3 = vsel %vm1566_vm6, %v1562_v7, %v1274_v60  ;;  %v7790_v4 = vpop.f32.mrf.mxu0  ;;  %v10998_v51 = vld [vmem:[#allocation119_spill] sm:$0xff]  ;;  %v10999_v63 = vld [vmem:[#allocation120_spill] sm:$0xff] }
 0x2d7   :  { %10994 = vst [vmem:[#allocation81_spill] sm:$0xff] %v7785_v15  ;;  %10995 = vst [vmem:[#allocation28_spill] sm:$0xff] %v7788_v3  ;;  %v1643_v26 = vpack.c.bf16 %v7785_v15, %v7788_v3  ;;  %v1401_v7 = vsel %vm1361_vm1, %v1360_v37, %v10998_v51  ;;  %v1400_v60 = vsel %vm1361_vm1, %v1359_v17, %v10999_v63 }
 0x2d8   :  { %v1863_v25 = vpop.f32.mrf.mxu0 }
 0x2d9   :  { %v792_v44 = vpop.permute.xlu1 %791  ;;  %v790_v43 = vpop.permute.xlu0 %789  ;;  %1956 = vmatmul.mubr.bf16.gmra.mxu0 %v1643_v26 }
 0x2da   :  { %v7794_v49 = vpop.f32.mrf.mxu0  ;;  %5210 = vmatprep.mubr.msk.bf16.mxu0 %vm85_vm0, %v1646_v53  ;;  %v1442_v25 = vsel %vm1402_vm2, %v1401_v7, %v792_v44 }
 0x2dc   :  { %v1866_v35 = vpop.f32.mrf.mxu0 }
 0x2dd   :  { %v914_v36 = vpop.permute.xlu1 %913  ;;  %v912_v54 = vpop.permute.xlu0 %911  ;;  %v1441_v35 = vsel %vm1402_vm2, %v1400_v60, %v790_v43 }
 0x2de   :  { %v1483_v28 = vsel %vm1443_vm3, %v1442_v25, %v914_v36  ;;  %v1482_v48 = vsel %vm1443_vm3, %v1441_v35, %v912_v54 }
 0x2e1   :  { %v1036_v1 = vpop.permute.xlu1 %1035  ;;  %v1034_v34 = vpop.permute.xlu0 %1033 }
 0x2e2   :  { %v1524_v30 = vsel %vm1484_vm4, %v1483_v28, %v1036_v1  ;;  %v1523_v24 = vsel %vm1484_vm4, %v1482_v48, %v1034_v34 }
 0x2e5   :  { %v1158_v53 = vpop.permute.xlu1 %1157  ;;  %v1156_v26 = vpop.permute.xlu0 %1155 }
 0x2e6   :  { %v7809_v15 = vpop.f32.mrf.mxu0  ;;  %v1565_v51 = vsel %vm1525_vm5, %v1524_v30, %v1158_v53  ;;  %v1564_v17 = vsel %vm1525_vm5, %v1523_v24, %v1156_v26 }
 0x2e8   :  { %v1871_v37 = vpop.f32.mrf.mxu0 }
 0x2e9   :  { %v1280_v63 = vpop.permute.xlu1 %1279  ;;  %v1278_v3 = vpop.permute.xlu0 %1277 }
 0x2ea   :  { %v7818_v44 = vsel %vm1566_vm6, %v1565_v51, %v1280_v63  ;;  %v7821_v43 = vsel %vm1566_vm6, %v1564_v17, %v1278_v3  ;;  %v7823_v36 = vpop.f32.mrf.mxu0 }
 0x2eb   :  { %11000 = vst [vmem:[#allocation29_spill] sm:$0xff] %v7818_v44  ;;  %11001 = vst [vmem:[#allocation82_spill] sm:$0xff] %v7821_v43  ;;  %v1645_v54 = vpack.c.bf16 %v7818_v44, %v7821_v43 }
 0x2ec   :  { %v1874_v1 = vpop.f32.mrf.mxu0 }
 0x2ed   :  { %1964 = vmatmul.mubr.bf16.gmra.mxu0 %v1645_v54 }
 0x2f5   :  { %v7827_v34 = vpop.f32.mrf.mxu0 }
 0x2f6   :  { %v7843_v54 = vpop.permute.xlu1 %1981 }
 0x2f7   :  { %v1879_v7 = vpop.f32.mrf.mxu0  ;;  %11008 = vst [vmem:[#allocation33_spill] sm:$0xff] %v7843_v54 }
 0x2f9   :  { %v7829_v60 = vpop.f32.mrf.mxu0 }
 0x2fa   :  { %11002 = vst [vmem:[#allocation83_spill] sm:$0xff] %v7829_v60 }
 0x2fb   :  { %v1882_v53 = vpop.f32.mrf.mxu0 }
 0x2fc   :  { %v7847_v53 = vpop.permute.xlu0 %1976 }
 0x2fd   :  { %11009 = vst [vmem:[#allocation86_spill] sm:$0xff] %v7847_v53 }
 0x300   :  { %v7861_v43 = vpop.permute.xlu0 %1991 }
 0x301   :  { %11011 = vst [vmem:[#allocation36_spill] sm:$0xff] %v7861_v43 }
 0x304   :  { %v7873_v56 = vpop.permute.xlu0 %2001 }
 0x305   :  { %v7831_v26 = vpop.f32.mrf.mxu0  ;;  %11013 = vst [vmem:[#allocation88_spill] sm:$0xff] %v7873_v56 }
 0x306   :  { %11003 = vst [vmem:[#allocation34_spill] sm:$0xff] %v7831_v26 }
 0x307   :  { %v1887_v25 = vpop.f32.mrf.mxu0 }
 0x309   :  { %v7833_v35 = vpop.f32.mrf.mxu0 }
 0x30a   :  { %11004 = vst [vmem:[#allocation35_spill] sm:$0xff] %v7833_v35 }
 0x30b   :  { %v1890_v3 = vpop.f32.mrf.mxu0 }
 0x30c   :  { %v7851_v3 = vpop.permute.xlu1 %1986 }
 0x30d   :  { %11010 = vst [vmem:[#allocation87_spill] sm:$0xff] %v7851_v3 }
 0x310   :  { %v7864_v57 = vpop.permute.xlu1 %1996 }
 0x311   :  { %11012 = vst [vmem:[#allocation37_spill] sm:$0xff] %v7864_v57  ;;  %v2178_v27 = vmul.f32 %v7864_v57, %v7664_v22 }
 0x315   :  { %v7835_v28 = vpop.f32.mrf.mxu0 }
 0x316   :  { %11005 = vst [vmem:[#allocation84_spill] sm:$0xff] %v7835_v28 }
 0x317   :  { %v1895_v48 = vpop.f32.mrf.mxu0 }
 0x319   :  { %v7837_v30 = vpop.f32.mrf.mxu0 }
 0x31b   :  { %v1898_v24 = vpop.f32.mrf.mxu0 }
 0x31c   :  { %v2175_v24 = vmul.f32 %v7843_v54, %v7601_v10 }
 0x31e   :  { %v2215_v44 = vsel %vm85_vm0, %v2175_v24, 0.0 }
 0x325   :  { %v7839_v37 = vpop.f32.mrf.mxu0 }
 0x326   :  { %11006 = vst [vmem:[#allocation85_spill] sm:$0xff] %v7839_v37 }
 0x327   :  { %v1903_v51 = vpop.f32.mrf.mxu0 }
 0x328   :  { %v2174_v51 = vmul.f32 %v7847_v53, %v7596_v2 }
 0x329   :  { %v7841_v17 = vpop.f32.mrf.mxu0 }
 0x32a   :  { %11007 = vst [vmem:[#allocation32_spill] sm:$0xff] %v7841_v17 }
 0x32b   :  { %v1906_v63 = vpop.f32.mrf.mxu0 }
 0x32c   :  { %v2176_v63 = vmul.f32 %v7851_v3, %v7631_v20 }
 0x32e   :  { %v2217_v45 = vsel %vm85_vm0, %v2176_v63, 0.0  ;;  %v7878_v63 = vpop.permute.xlu1 %2006 }
 0x32f   :  { %11014 = vst [vmem:[#allocation89_spill] sm:$0xff] %v7878_v63  ;;  %v2180_v23 = vmul.f32 %v7878_v63, %v7697_v12 }
 0x332   :  { %v7888_v47 = vpop.permute.xlu1 %2016 }
 0x333   :  { %11016 = vst [vmem:[#allocation91_spill] sm:$0xff] %v7888_v47 }
 0x335   :  { %v7845_v1 = vpop.f32.mrf.mxu0 }
 0x336   :  { %v7902_v11 = vpop.permute.xlu1 %2026 }
 0x337   :  { %v1911_v7 = vpop.f32.mrf.mxu0  ;;  %11018 = vst [vmem:[#allocation39_spill] sm:$0xff] %v7902_v11  ;;  %v2184_v18 = vmul.f32 %v7902_v11, %v7763_v8 }
 0x338   :  { %v2214_v7 = vsel %vm85_vm0, %v2174_v51, 0.0 }
 0x339   :  { %v7849_v25 = vpop.f32.mrf.mxu0  ;;  %v2216_v6 = vadd.f32 %v2215_v44, %v2214_v7  ;;  %v2221_v44 = vsel %vm85_vm0, %v2178_v27, 0.0 }
 0x33a   :  { %v7912_v21 = vpop.permute.xlu1 %2036 }
 0x33b   :  { %v1914_v48 = vpop.f32.mrf.mxu0  ;;  %v2218_v5 = vadd.f32 %v2217_v45, %v2216_v6  ;;  %v2179_v6 = vmul.f32 %v7873_v56, %v7667_v41  ;;  %11020 = vst [vmem:[#allocation93_spill] sm:$0xff] %v7912_v21 }
 0x33c   :  { %v2177_v48 = vmul.f32 %v7861_v43, %v7634_v19 }
 0x33e   :  { %v2219_v24 = vsel %vm85_vm0, %v2177_v48, 0.0  ;;  %v7926_v59 = vpop.permute.xlu1 %2046 }
 0x33f   :  { %v2220_v51 = vadd.f32 %v2219_v24, %v2218_v5  ;;  %v7885_v5 = vpop.permute.xlu0 %2011  ;;  %v2225_v24 = vsel %vm85_vm0, %v2180_v23, 0.0  ;;  %11022 = vst [vmem:[#allocation95_spill] sm:$0xff] %v7926_v59  ;;  %v2188_v16 = vmul.f32 %v7926_v59, %v7809_v15 }
 0x340   :  { %11015 = vst [vmem:[#allocation90_spill] sm:$0xff] %v7885_v5  ;;  %v2181_v27 = vmul.f32 %v7885_v5, %v7700_v39 }
 0x341   :  { %v2222_v45 = vadd.f32 %v2221_v44, %v2220_v51  ;;  %v2182_v51 = vmul.f32 %v7888_v47, %v7730_v32 }
 0x342   :  { %v2227_v40 = vsel %vm85_vm0, %v2181_v27, 0.0  ;;  %v7936_v55 = vpop.permute.xlu1 %2056 }
 0x343   :  { %v2229_v23 = vsel %vm85_vm0, %v2182_v51, 0.0  ;;  %11024 = vst [vmem:[#allocation41_spill] sm:$0xff] %v7936_v55 }
 0x345   :  { %v7868_v62 = vpop.f32.mrf.mxu0 }
 0x347   :  { %v1919_v52 = vpop.f32.mrf.mxu0 }
 0x348   :  { %v2223_v52 = vsel %vm85_vm0, %v2179_v6, 0.0 }
 0x349   :  { %v7875_v9 = vpop.f32.mrf.mxu0  ;;  %v2224_v48 = vadd.f32 %v2223_v52, %v2222_v45  ;;  %v7897_v45 = vpop.permute.xlu0 %2021 }
 0x34a   :  { %11017 = vst [vmem:[#allocation38_spill] sm:$0xff] %v7897_v45 }
 0x34b   :  { %v1922_v7 = vpop.f32.mrf.mxu0 }
 0x34c   :  { %v2226_v7 = vadd.f32 %v2225_v24, %v2224_v48  ;;  %v2183_v48 = vmul.f32 %v7897_v45, %v7733_v58 }
 0x34e   :  { %v2228_v6 = vadd.f32 %v2227_v40, %v2226_v7  ;;  %v7909_v40 = vpop.permute.xlu0 %2031  ;;  %v2233_v7 = vsel %vm85_vm0, %v2184_v18, 0.0 }
 0x34f   :  { %11019 = vst [vmem:[#allocation92_spill] sm:$0xff] %v7909_v40  ;;  %v2185_v51 = vmul.f32 %v7909_v40, %v7766_v42 }
 0x350   :  { %v2230_v24 = vadd.f32 %v2229_v23, %v2228_v6  ;;  %v2186_v6 = vmul.f32 %v7912_v21, %v7790_v4 }
 0x351   :  { %v2235_v50 = vsel %vm85_vm0, %v2185_v51, 0.0 }
 0x352   :  { %v2237_v18 = vsel %vm85_vm0, %v2186_v6, 0.0 }
 0x355   :  { %v7892_v33 = vpop.f32.mrf.mxu0 }
 0x357   :  { %v1927_v44 = vpop.f32.mrf.mxu0 }
 0x358   :  { %v2231_v44 = vsel %vm85_vm0, %v2183_v48, 0.0 }
 0x359   :  { %v7899_v52 = vpop.f32.mrf.mxu0  ;;  %v2232_v27 = vadd.f32 %v2231_v44, %v2230_v24  ;;  %v7921_v24 = vpop.permute.xlu0 %2041 }
 0x35a   :  { %11021 = vst [vmem:[#allocation94_spill] sm:$0xff] %v7921_v24 }
 0x35b   :  { %v1930_v46 = vpop.f32.mrf.mxu0 }
 0x35c   :  { %v2234_v46 = vadd.f32 %v2233_v7, %v2232_v27  ;;  %v2187_v27 = vmul.f32 %v7921_v24, %v7794_v49 }
 0x35e   :  { %v2236_v48 = vadd.f32 %v2235_v50, %v2234_v46  ;;  %v2239_v50 = vsel %vm85_vm0, %v2187_v27, 0.0  ;;  %v2241_v46 = vsel %vm85_vm0, %v2188_v16, 0.0 }
 0x360   :  { %v2238_v7 = vadd.f32 %v2237_v18, %v2236_v48  ;;  %v2190_v48 = vmul.f32 %v7936_v55, %v7827_v34 }
 0x362   :  { %v2240_v51 = vadd.f32 %v2239_v50, %v2238_v7  ;;  %v7947_v7 = vpop.permute.xlu1 %2066  ;;  %v2245_v50 = vsel %vm85_vm0, %v2190_v48, 0.0 }
 0x363   :  { %11026 = vst [vmem:[#allocation121_spill] sm:$0xff] %v7947_v7  ;;  %v2192_v55 = vmul.f32 %v7947_v7, %v7831_v26 }
 0x365   :  { %v7916_v0 = vpop.f32.mrf.mxu0 }
 0x367   :  { %v1935_v23 = vpop.f32.mrf.mxu0 }
 0x368   :  { %v7932_v23 = vpop.permute.xlu0 %2051 }
 0x369   :  { %v7923_v44 = vpop.f32.mrf.mxu0  ;;  %11023 = vst [vmem:[#allocation40_spill] sm:$0xff] %v7932_v23  ;;  %v2189_v6 = vmul.f32 %v7932_v23, %v7823_v36  ;;  %v2249_v23 = vsel %vm85_vm0, %v2192_v55, 0.0 }
 0x36b   :  { %v1938_v61 = vpop.f32.mrf.mxu0  ;;  %v2243_v38 = vsel %vm85_vm0, %v2189_v6, 0.0 }
 0x36c   :  { %v2242_v61 = vadd.f32 %v2241_v46, %v2240_v51  ;;  %v7940_v14 = vpop.permute.xlu0 %2061 }
 0x36d   :  { %11025 = vst [vmem:[#allocation96_spill] sm:$0xff] %v7940_v14  ;;  %v2191_v46 = vmul.f32 %v7940_v14, %v7829_v60 }
 0x36e   :  { %v2244_v27 = vadd.f32 %v2243_v38, %v2242_v61 }
 0x36f   :  { %v2247_v38 = vsel %vm85_vm0, %v2191_v46, 0.0 }
 0x370   :  { %v7952_v29 = vpop.permute.xlu0 %2071  ;;  %v2246_v31 = vadd.f32 %v2245_v50, %v2244_v27 }
 0x371   :  { %11028 = vst [vmem:[#allocation98_spill] sm:$0xff] %v7952_v29 }
 0x372   :  { %v2248_v61 = vadd.f32 %v2247_v38, %v2246_v31 }
 0x374   :  { %v7961_v6 = vpop.permute.xlu0 %2081  ;;  %v2250_v59 = vadd.f32 %v2249_v23, %v2248_v61 }
 0x375   :  { %v7942_v13 = vpop.f32.mrf.mxu0  ;;  %11030 = vst [vmem:[#allocation43_spill] sm:$0xff] %v7961_v6 }
 0x377   :  { %v1943_v18 = vpop.f32.mrf.mxu0 }
 0x378   :  { %v7958_v18 = vpop.permute.xlu1 %2076  ;;  %v7968_v14 = vpop.permute.xlu0 %2091 }
 0x379   :  { %v7949_v16 = vpop.f32.mrf.mxu0  ;;  %11029 = vst [vmem:[#allocation42_spill] sm:$0xff] %v7958_v18  ;;  %11032 = vst [vmem:[#allocation100_spill] sm:$0xff] %v7968_v14  ;;  %v2194_v50 = vmul.f32 %v7958_v18, %v7835_v28 }
 0x37a   :  { %11027 = vst [vmem:[#allocation97_spill] sm:$0xff] %v7949_v16 }
 0x37b   :  { %v1946_v51 = vpop.f32.mrf.mxu0 }
 0x37c   :  { %v7964_v48 = vpop.permute.xlu1 %2086  ;;  %v2193_v51 = vmul.f32 %v7952_v29, %v7833_v35  ;;  %v7977_v55 = vpop.permute.xlu0 %2101  ;;  %v2253_v29 = vsel %vm85_vm0, %v2194_v50, 0.0  ;;  %v2195_v35 = vmul.f32 %v7961_v6, %v7837_v30 }
 0x37d   :  { %11031 = vst [vmem:[#allocation99_spill] sm:$0xff] %v7964_v48  ;;  %11035 = vst [vmem:[#allocation45_spill] sm:$0xff] %v7977_v55  ;;  %v2196_v18 = vmul.f32 %v7964_v48, %v7839_v37 }
 0x37e   :  { %v2251_v31 = vsel %vm85_vm0, %v2193_v51, 0.0 }
 0x37f   :  { %v2252_v38 = vadd.f32 %v2251_v31, %v2250_v59  ;;  %v2197_v59 = vmul.f32 %v7968_v14, %v7841_v17  ;;  %v2255_v31 = vsel %vm85_vm0, %v2195_v35, 0.0  ;;  %v2257_v50 = vsel %vm85_vm0, %v2196_v18, 0.0 }
 0x380   :  { %v7974_v7 = vpop.permute.xlu1 %2096 }
 0x381   :  { %11034 = vst [vmem:[#allocation44_spill] sm:$0xff] %v7974_v7  ;;  %v2254_v28 = vadd.f32 %v2253_v29, %v2252_v38  ;;  %v2259_v48 = vsel %vm85_vm0, %v2197_v59, 0.0  ;;  %v2199_v29 = vmul.f32 %v7977_v55, %v7849_v25 }
 0x383   :  { %v2256_v60 = vadd.f32 %v2255_v31, %v2254_v28  ;;  %v2263_v18 = vsel %vm85_vm0, %v2199_v29, 0.0 }
 0x384   :  { %v7982_v23 = vpop.permute.xlu1 %2106 }
 0x385   :  { %v7970_v27 = vpop.f32.mrf.mxu0  ;;  %11037 = vst [vmem:[#allocation102_spill] sm:$0xff] %v7982_v23  ;;  %v2258_v38 = vadd.f32 %v2257_v50, %v2256_v60  ;;  %v2200_v17 = vmul.f32 %v7982_v23, %v7868_v62 }
 0x386   :  { %11033 = vst [vmem:[#allocation122_spill] sm:$0xff] %v7970_v27 }
 0x387   :  { %v1951_v46 = vpop.f32.mrf.mxu0  ;;  %v2260_v35 = vadd.f32 %v2259_v48, %v2258_v38  ;;  %v2265_v59 = vsel %vm85_vm0, %v2200_v17, 0.0 }
 0x388   :  { %v7988_v46 = vpop.permute.xlu0 %2111  ;;  %v7992_v51 = vpop.permute.xlu1 %2116 }
 0x389   :  { %v7979_v26 = vpop.f32.mrf.mxu0  ;;  %11038 = vst [vmem:[#allocation123_spill] sm:$0xff] %v7988_v46  ;;  %11039 = vst [vmem:[#allocation124_spill] sm:$0xff] %v7992_v51  ;;  %v2201_v28 = vmul.f32 %v7988_v46, %v7875_v9  ;;  %v2202_v60 = vmul.f32 %v7992_v51, %v7892_v33 }
 0x38a   :  { %11036 = vst [vmem:[#allocation101_spill] sm:$0xff] %v7979_v26 }
 0x38b   :  { %v1954_v61 = vpop.f32.mrf.mxu0  ;;  %v2267_v23 = vsel %vm85_vm0, %v2201_v28, 0.0 }
 0x38c   :  { %v2198_v61 = vmul.f32 %v7974_v7, %v7845_v1  ;;  %v7998_v6 = vpop.permute.xlu0 %2121  ;;  %v8006_v37 = vpop.permute.xlu1 %2126 }
 0x38d   :  { %11040 = vst [vmem:[#allocation46_spill] sm:$0xff] %v7998_v6  ;;  %11041 = vst [vmem:[#allocation47_spill] sm:$0xff] %v8006_v37  ;;  %v2203_v48 = vmul.f32 %v7998_v6, %v7899_v52 }
 0x38e   :  { %v2261_v14 = vsel %vm85_vm0, %v2198_v61, 0.0 }
 0x38f   :  { %v2262_v31 = vadd.f32 %v2261_v14, %v2260_v35  ;;  %v2269_v14 = vsel %vm85_vm0, %v2202_v60, 0.0  ;;  %v2204_v35 = vmul.f32 %v8006_v37, %v7916_v0 }
 0x390   :  { %v8011_v7 = vpop.permute.xlu0 %2131  ;;  %v8019_v29 = vpop.permute.xlu1 %2136 }
 0x391   :  { %11042 = vst [vmem:[#allocation103_spill] sm:$0xff] %v8011_v7  ;;  %v2264_v50 = vadd.f32 %v2263_v18, %v2262_v31  ;;  %11043 = vst [vmem:[#allocation104_spill] sm:$0xff] %v8019_v29  ;;  %v2271_v18 = vsel %vm85_vm0, %v2203_v48, 0.0  ;;  %v2205_v28 = vmul.f32 %v8011_v7, %v7923_v44 }
 0x393   :  { %v2266_v38 = vadd.f32 %v2265_v59, %v2264_v50  ;;  %v2273_v59 = vsel %vm85_vm0, %v2204_v35, 0.0 }
 0x394   :  { %v8024_v46 = vpop.permute.xlu0 %2141  ;;  %v8032_v50 = vpop.permute.xlu1 %2146 }
 0x395   :  { %v2268_v17 = vadd.f32 %v2267_v23, %v2266_v38  ;;  %11044 = vst [vmem:[#allocation125_spill] sm:$0xff] %v8024_v46  ;;  %11045 = vst [vmem:[#allocation126_spill] sm:$0xff] %v8032_v50  ;;  %v2275_v23 = vsel %vm85_vm0, %v2205_v28, 0.0  ;;  %v2207_v38 = vmul.f32 %v8024_v46, %v7949_v16 }
 0x397   :  { %v2270_v31 = vadd.f32 %v2269_v14, %v2268_v17  ;;  %v2279_v35 = vsel %vm85_vm0, %v2207_v38, 0.0 }
 0x398   :  { %v8037_v37 = vpop.permute.xlu0 %2151 }
 0x399   :  { %v1957_v61 = vpop.f32.mrf.mxu0  ;;  %v2272_v60 = vadd.f32 %v2271_v18, %v2270_v31  ;;  %11046 = vst [vmem:[#allocation50_spill] sm:$0xff] %v8037_v37  ;;  %v2209_v17 = vmul.f32 %v8037_v37, %v7979_v26  ;;  %v8045_v18 = vpop.permute.xlu1 %2156 }
 0x39a   :  { %11047 = vst [vmem:[#allocation51_spill] sm:$0xff] %v8045_v18  ;;  %v2210_v46 = vmul.f32 %v8045_v18, %v1957_v61 }
 0x39b   :  { %v1959_v55 = vpop.f32.mrf.mxu0  ;;  %v2274_v48 = vadd.f32 %v2273_v59, %v2272_v60 }
 0x39c   :  { %v2206_v55 = vmul.f32 %v8019_v29, %v7942_v13  ;;  %v8049_v29 = vpop.permute.xlu0 %2161  ;;  %v2285_v38 = vsel %vm85_vm0, %v2210_v46, 0.0 }
 0x39d   :  { %v1960_v51 = vpop.f32.mrf.mxu0  ;;  %v2276_v14 = vadd.f32 %v2275_v23, %v2274_v48  ;;  %11048 = vst [vmem:[#allocation105_spill] sm:$0xff] %v8049_v29  ;;  %v8054_v48 = vpop.permute.xlu1 %2166 }
 0x39e   :  { %v2277_v7 = vsel %vm85_vm0, %v2206_v55, 0.0  ;;  %v2283_v55 = vsel %vm85_vm0, %v2209_v17, 0.0  ;;  %v2211_v60 = vmul.f32 %v8049_v29, %v1960_v51  ;;  %11049 = vst [vmem:[#allocation106_spill] sm:$0xff] %v8054_v48 }
 0x39f   :  { %v1962_v6 = vpop.f32.mrf.mxu0  ;;  %v2278_v28 = vadd.f32 %v2277_v7, %v2276_v14 }
 0x3a0   :  { %v2208_v6 = vmul.f32 %v8032_v50, %v7970_v27  ;;  %v2287_v7 = vsel %vm85_vm0, %v2211_v60, 0.0 }
 0x3a1   :  { %v2280_v59 = vadd.f32 %v2279_v35, %v2278_v28  ;;  %v8059_v35 = vpop.permute.xlu0 %2171 }
 0x3a2   :  { %v2281_v31 = vsel %vm85_vm0, %v2208_v6, 0.0  ;;  %11050 = vst [vmem:[#allocation127_spill] sm:$0xff] %v8059_v35 }
 0x3a3   :  { %v2282_v23 = vadd.f32 %v2281_v31, %v2280_v59 }
 0x3a5   :  { %v2284_v37 = vadd.f32 %v2283_v55, %v2282_v23 }
 0x3a7   :  { %v2286_v14 = vadd.f32 %v2285_v38, %v2284_v37 }
 0x3a9   :  { %v2288_v17 = vadd.f32 %v2287_v7, %v2286_v14 }
 0x3ad   :  { %v1965_v50 = vpop.f32.mrf.mxu0 }
 0x3ae   :  { %v2212_v6 = vmul.f32 %v8054_v48, %v1965_v50 }
 0x3af   :  { %v1967_v18 = vpop.f32.mrf.mxu0 }
 0x3b0   :  { %v2289_v26 = vsel %vm85_vm0, %v2212_v6, 0.0 }
 0x3b1   :  { %v1968_v28 = vpop.f32.mrf.mxu0  ;;  %v2290_v59 = vadd.f32 %v2289_v26, %v2288_v17 }
 0x3b2   :  { %v2213_v31 = vmul.f32 %v8059_v35, %v1968_v28 }
 0x3b3   :  { %v1970_v46 = vpop.f32.mrf.mxu0 }
 0x3b4   :  { %v2291_v29 = vsel %vm85_vm0, %v2213_v31, 0.0 }
 0x3b5   :  { %v2292_v55 = vadd.f32 %v2291_v29, %v2290_v59 }
 0x3b7   :  { %v2293_v23 = vrot.slane %v2292_v55, 4 }
 0x3b9   :  { %v2294_v27 = vadd.f32 %v2293_v23, %v2292_v55 }
 0x3bb   :  { %v2295_v60 = vrot.slane %v2294_v27, 2 }
 0x3bd   :  { %v2296_v16 = vadd.f32 %v2295_v60, %v2294_v27 }
 0x3bf   :  { %v2297_v48 = vrot.slane %v2296_v16, 1 }
 0x3c1   :  { %v2298_v37 = vadd.f32 %v2297_v48, %v2296_v16 }
 0x3c3   :  { %v8063_v18 = vmul.f32 0.0078125, %v2298_v37 }
 0x3c5   :  { %v8066_v38 = vsub.f32 %v1957_v61, %v8063_v18  ;;  %v8069_v7 = vsub.f32 %v1960_v51, %v8063_v18  ;;  %v8072_v26 = vsub.f32 %v1965_v50, %v8063_v18  ;;  %v8075_v6 = vsub.f32 %v1968_v28, %v8063_v18 }
 0x3c6   :  { %v8079_v29 = vsub.f32 %v7596_v2, %v8063_v18  ;;  %v8083_v16 = vsub.f32 %v7601_v10, %v8063_v18  ;;  %v8087_v27 = vsub.f32 %v7631_v20, %v8063_v18  ;;  %v8091_v51 = vsub.f32 %v7634_v19, %v8063_v18 }
 0x3c7   :  { %v8099_v2 = vsub.f32 %v7664_v22, %v8063_v18  ;;  %v8105_v20 = vsub.f32 %v7667_v41, %v8063_v18  ;;  %v8111_v17 = vsub.f32 %v7697_v12, %v8063_v18  ;;  %v8117_v31 = vsub.f32 %v7700_v39, %v8063_v18 }
 0x3c8   :  { %v2340_v61 = vmul.f32 %v8079_v29, %v7847_v53  ;;  %v2341_v50 = vmul.f32 %v8083_v16, %v7843_v54  ;;  %v2342_v10 = vmul.f32 %v8087_v27, %v7851_v3  ;;  %v2343_v19 = vmul.f32 %v8091_v51, %v7861_v43 }
 0x3c9   :  { %v2344_v22 = vmul.f32 %v8099_v2, %v7864_v57  ;;  %v2345_v41 = vmul.f32 %v8105_v20, %v7873_v56  ;;  %v8125_v12 = vsub.f32 %v7730_v32, %v8063_v18  ;;  %v2346_v60 = vmul.f32 %v8111_v17, %v7878_v63  ;;  %v11082_v57 = vld [vmem:[#allocation51_spill] sm:$0xff] }
 0x3ca   :  { %v2380_v48 = vmul.f32 %v2340_v61, %v2340_v61  ;;  %v2381_v14 = vmul.f32 %v2341_v50, %v2341_v50  ;;  %v2382_v28 = vmul.f32 %v2342_v10, %v2342_v10  ;;  %v2383_v59 = vmul.f32 %v2343_v19, %v2343_v19 }
 0x3cb   :  { %v2384_v37 = vmul.f32 %v2344_v22, %v2344_v22  ;;  %v8132_v50 = vsub.f32 %v7733_v58, %v8063_v18  ;;  %v2347_v10 = vmul.f32 %v8117_v31, %v7885_v5  ;;  %v2385_v19 = vmul.f32 %v2345_v41, %v2345_v41 }
 0x3cc   :  { %v2420_v46 = vsel %vm85_vm0, %v2380_v48, 0.0  ;;  %v2421_v55 = vsel %vm85_vm0, %v2381_v14, 0.0  ;;  %v2423_v39 = vsel %vm85_vm0, %v2382_v28, 0.0  ;;  %v2425_v48 = vsel %vm85_vm0, %v2383_v59, 0.0 }
 0x3cd   :  { %v2422_v23 = vadd.f32 %v2421_v55, %v2420_v46  ;;  %v8139_v32 = vsub.f32 %v7763_v8, %v8063_v18  ;;  %v2348_v22 = vmul.f32 %v8125_v12, %v7888_v47  ;;  %v2386_v28 = vmul.f32 %v2346_v60, %v2346_v60  ;;  %v2762_v8 = vld [vmem:[#allocation2 + $0x18] sm:$0xff] }
 0x3ce   :  { %v2427_v46 = vsel %vm85_vm0, %v2384_v37, 0.0  ;;  %v8146_v58 = vsub.f32 %v7766_v42, %v8063_v18  ;;  %v2349_v41 = vmul.f32 %v8132_v50, %v7897_v45  ;;  %v2387_v59 = vmul.f32 %v2347_v10, %v2347_v10 }
 0x3cf   :  { %v2424_v61 = vadd.f32 %v2423_v39, %v2422_v23  ;;  %v2429_v23 = vsel %vm85_vm0, %v2385_v19, 0.0  ;;  %v2761_v39 = vld [vmem:[#allocation2 + $0x10] sm:$0xff]  ;;  %v2350_v60 = vmul.f32 %v8139_v32, %v7902_v11  ;;  %v2388_v37 = vmul.f32 %v2348_v22, %v2348_v22 }
 0x3d0   :  { %v2431_v42 = vsel %vm85_vm0, %v2386_v28, 0.0  ;;  %v8160_v10 = vsub.f32 %v7794_v49, %v8063_v18  ;;  %v2351_v19 = vmul.f32 %v8146_v58, %v7909_v40  ;;  %v8168_v22 = vsub.f32 %v7809_v15, %v8063_v18 }
 0x3d1   :  { %v2426_v14 = vadd.f32 %v2425_v48, %v2424_v61  ;;  %v8153_v48 = vsub.f32 %v7790_v4, %v8063_v18  ;;  %v2435_v49 = vsel %vm85_vm0, %v2388_v37, 0.0  ;;  %v8182_v15 = vsub.f32 %v7827_v34, %v8063_v18  ;;  %v11054_v34 = vld [vmem:[#allocation34_spill] sm:$0xff] }
 0x3d3   :  { %v2428_v55 = vadd.f32 %v2427_v46, %v2426_v14  ;;  %v5260_v46 = vpack.i.bf16 %v2762_v8, %v2761_v39  ;;  %v2352_v28 = vmul.f32 %v8153_v48, %v7912_v21  ;;  %v2390_v39 = vmul.f32 %v2350_v60, %v2350_v60 }
 0x3d4   :  { %v8196_v21 = vsub.f32 %v11054_v34, %v8063_v18  ;;  %v11058_v34 = vld [vmem:[#allocation84_spill] sm:$0xff] }
 0x3d5   :  { %v2430_v61 = vadd.f32 %v2429_v23, %v2428_v55  ;;  %v2389_v55 = vmul.f32 %v2349_v41, %v2349_v41  ;;  %v2433_v23 = vsel %vm85_vm0, %v2387_v59, 0.0  ;;  %5261 = vrot.lane.b32.xlu1 %v5260_v46, %s6169_s2  ;;  %v2353_v41 = vmul.f32 %v8160_v10, %v7921_v24  ;;  %v11051_v46 = vld [vmem:[#allocation95_spill] sm:$0xff]  ;;  %v11053_v24 = vld [vmem:[#allocation40_spill] sm:$0xff] }
 0x3d6   :  { %v2391_v59 = vmul.f32 %v2351_v19, %v2351_v19  ;;  %v2354_v60 = vmul.f32 %v8168_v22, %v11051_v46  ;;  %v2392_v37 = vmul.f32 %v2352_v28, %v2352_v28  ;;  %v11055_v46 = vld [vmem:[#allocation41_spill] sm:$0xff]  ;;  %v8210_v11 = vsub.f32 %v11058_v34, %v8063_v18 }
 0x3d7   :  { %v2432_v14 = vadd.f32 %v2431_v42, %v2430_v61  ;;  %v8175_v61 = vsub.f32 %v7823_v36, %v8063_v18  ;;  %v2437_v42 = vsel %vm85_vm0, %v2389_v55, 0.0  ;;  %v11052_v36 = vld [vmem:[#allocation83_spill] sm:$0xff]  ;;  %v2393_v55 = vmul.f32 %v2353_v41, %v2353_v41  ;;  %v11061_v34 = vld [vmem:[#allocation85_spill] sm:$0xff] }
 0x3d8   :  { %v2356_v28 = vmul.f32 %v8182_v15, %v11055_v46  ;;  %v11059_v46 = vld [vmem:[#allocation121_spill] sm:$0xff]  ;;  %v8224_v45 = vsub.f32 %v11061_v34, %v8063_v18  ;;  %v8238_v34 = vsub.f32 %v7845_v1, %v8063_v18  ;;  %v8252_v1 = vsub.f32 %v7868_v62, %v8063_v18 }
 0x3d9   :  { %v2434_v4 = vadd.f32 %v2433_v23, %v2432_v14  ;;  %v2439_v23 = vsel %vm85_vm0, %v2390_v39, 0.0  ;;  %v2355_v19 = vmul.f32 %v8175_v61, %v11053_v24  ;;  %v2394_v39 = vmul.f32 %v2354_v60, %v2354_v60  ;;  %v11057_v24 = vld [vmem:[#allocation96_spill] sm:$0xff] }
 0x3da   :  { %v2358_v60 = vmul.f32 %v8196_v21, %v11059_v46  ;;  %v11062_v46 = vld [vmem:[#allocation42_spill] sm:$0xff]  ;;  %v8266_v62 = vsub.f32 %v7892_v33, %v8063_v18  ;;  %v8280_v33 = vsub.f32 %v7916_v0, %v8063_v18  ;;  %v8294_v0 = vsub.f32 %v7942_v13, %v8063_v18 }
 0x3db   :  { %v2436_v8 = vadd.f32 %v2435_v49, %v2434_v4  ;;  %v8189_v49 = vsub.f32 %v11052_v36, %v8063_v18  ;;  %v11056_v36 = vld [vmem:[#allocation35_spill] sm:$0xff]  ;;  %v11076_v13 = vld [vmem:[#allocation122_spill] sm:$0xff] }
 0x3dc   :  { %v8203_v40 = vsub.f32 %v11056_v36, %v8063_v18  ;;  %v8217_v36 = vsub.f32 %v7837_v30, %v8063_v18  ;;  %v11063_v30 = vld [vmem:[#allocation32_spill] sm:$0xff]  ;;  %v8308_v63 = vsub.f32 %v11076_v13, %v8063_v18  ;;  %v11080_v13 = vld [vmem:[#allocation126_spill] sm:$0xff] }
 0x3dd   :  { %v2438_v14 = vadd.f32 %v2437_v42, %v2436_v8  ;;  %v2441_v8 = vsel %vm85_vm0, %v2391_v59, 0.0  ;;  %v2357_v41 = vmul.f32 %v8189_v49, %v11057_v24  ;;  %v2395_v59 = vmul.f32 %v2355_v19, %v2355_v19  ;;  %v11060_v24 = vld [vmem:[#allocation98_spill] sm:$0xff] }
 0x3de   :  { %v2359_v19 = vmul.f32 %v8203_v40, %v11060_v24  ;;  %v8231_v47 = vsub.f32 %v11063_v30, %v8063_v18  ;;  %v11064_v24 = vld [vmem:[#allocation43_spill] sm:$0xff]  ;;  %v8245_v30 = vsub.f32 %v7849_v25, %v8063_v18  ;;  %v8259_v25 = vsub.f32 %v7875_v9, %v8063_v18 }
 0x3df   :  { %v2440_v4 = vadd.f32 %v2439_v23, %v2438_v14  ;;  %v2443_v14 = vsel %vm85_vm0, %v2392_v37, 0.0  ;;  %v2396_v37 = vmul.f32 %v2356_v28, %v2356_v28  ;;  %v2360_v28 = vmul.f32 %v8210_v11, %v11062_v46  ;;  %v11065_v46 = vld [vmem:[#allocation99_spill] sm:$0xff] }
 0x3e0   :  { %v8273_v9 = vsub.f32 %v7899_v52, %v8063_v18  ;;  %v8287_v52 = vsub.f32 %v7923_v44, %v8063_v18  ;;  %v11074_v44 = vld [vmem:[#allocation97_spill] sm:$0xff]  ;;  %v2374_v54 = vmul.f32 %v8308_v63, %v11080_v13 }
 0x3e1   :  { %v2442_v42 = vadd.f32 %v2441_v8, %v2440_v4  ;;  %v2445_v4 = vsel %vm85_vm0, %v2393_v55, 0.0  ;;  %v2397_v55 = vmul.f32 %v2357_v41, %v2357_v41  ;;  %v2361_v41 = vmul.f32 %v8217_v36, %v11064_v24  ;;  %v11066_v24 = vld [vmem:[#allocation100_spill] sm:$0xff] }
 0x3e2   :  { %v8301_v5 = vsub.f32 %v11074_v44, %v8063_v18  ;;  %v11078_v44 = vld [vmem:[#allocation101_spill] sm:$0xff] }
 0x3e3   :  { %v2444_v23 = vadd.f32 %v2443_v14, %v2442_v42  ;;  %v2447_v42 = vsel %vm85_vm0, %v2394_v39, 0.0  ;;  %v2398_v39 = vmul.f32 %v2358_v60, %v2358_v60  ;;  %v2362_v60 = vmul.f32 %v8224_v45, %v11065_v46  ;;  %v11067_v46 = vld [vmem:[#allocation44_spill] sm:$0xff] }
 0x3e4   :  { %v8315_v56 = vsub.f32 %v11078_v44, %v8063_v18 }
 0x3e5   :  { %v2446_v8 = vadd.f32 %v2445_v4, %v2444_v23  ;;  %v2449_v23 = vsel %vm85_vm0, %v2395_v59, 0.0  ;;  %v2399_v59 = vmul.f32 %v2359_v19, %v2359_v19  ;;  %v2363_v19 = vmul.f32 %v8231_v47, %v11066_v24  ;;  %v11068_v24 = vld [vmem:[#allocation45_spill] sm:$0xff] }
 0x3e7   :  { %v2448_v14 = vadd.f32 %v2447_v42, %v2446_v8  ;;  %v2451_v8 = vsel %vm85_vm0, %v2396_v37, 0.0  ;;  %v2400_v37 = vmul.f32 %v2360_v28, %v2360_v28  ;;  %v2364_v28 = vmul.f32 %v8238_v34, %v11067_v46  ;;  %v11069_v46 = vld [vmem:[#allocation102_spill] sm:$0xff] }
 0x3e9   :  { %v2450_v4 = vadd.f32 %v2449_v23, %v2448_v14  ;;  %v2453_v14 = vsel %vm85_vm0, %v2397_v55, 0.0  ;;  %v2401_v55 = vmul.f32 %v2361_v41, %v2361_v41  ;;  %v2365_v41 = vmul.f32 %v8245_v30, %v11068_v24  ;;  %v11070_v24 = vld [vmem:[#allocation123_spill] sm:$0xff] }
 0x3eb   :  { %v2452_v42 = vadd.f32 %v2451_v8, %v2450_v4  ;;  %v2455_v4 = vsel %vm85_vm0, %v2398_v39, 0.0  ;;  %v2402_v39 = vmul.f32 %v2362_v60, %v2362_v60  ;;  %v2366_v60 = vmul.f32 %v8252_v1, %v11069_v46  ;;  %v11071_v46 = vld [vmem:[#allocation124_spill] sm:$0xff] }
 0x3ed   :  { %v2454_v23 = vadd.f32 %v2453_v14, %v2452_v42  ;;  %v2457_v42 = vsel %vm85_vm0, %v2399_v59, 0.0  ;;  %v2403_v59 = vmul.f32 %v2363_v19, %v2363_v19  ;;  %v2367_v19 = vmul.f32 %v8259_v25, %v11070_v24  ;;  %v11072_v24 = vld [vmem:[#allocation46_spill] sm:$0xff] }
 0x3ef   :  { %v2456_v8 = vadd.f32 %v2455_v4, %v2454_v23  ;;  %v2459_v23 = vsel %vm85_vm0, %v2400_v37, 0.0  ;;  %v2404_v37 = vmul.f32 %v2364_v28, %v2364_v28  ;;  %v2368_v28 = vmul.f32 %v8266_v62, %v11071_v46  ;;  %v11073_v46 = vld [vmem:[#allocation47_spill] sm:$0xff] }
 0x3f1   :  { %v2458_v14 = vadd.f32 %v2457_v42, %v2456_v8  ;;  %v2461_v8 = vsel %vm85_vm0, %v2401_v55, 0.0  ;;  %v2405_v55 = vmul.f32 %v2365_v41, %v2365_v41  ;;  %v2369_v41 = vmul.f32 %v8273_v9, %v11072_v24  ;;  %v11075_v24 = vld [vmem:[#allocation103_spill] sm:$0xff] }
 0x3f3   :  { %v2460_v4 = vadd.f32 %v2459_v23, %v2458_v14  ;;  %v2463_v14 = vsel %vm85_vm0, %v2402_v39, 0.0  ;;  %v2406_v39 = vmul.f32 %v2366_v60, %v2366_v60  ;;  %v2370_v60 = vmul.f32 %v8280_v33, %v11073_v46  ;;  %v11077_v46 = vld [vmem:[#allocation104_spill] sm:$0xff] }
 0x3f5   :  { %v2462_v42 = vadd.f32 %v2461_v8, %v2460_v4  ;;  %v2465_v4 = vsel %vm85_vm0, %v2403_v59, 0.0  ;;  %v2407_v59 = vmul.f32 %v2367_v19, %v2367_v19  ;;  %v2371_v19 = vmul.f32 %v8287_v52, %v11075_v24  ;;  %v11079_v24 = vld [vmem:[#allocation125_spill] sm:$0xff] }
 0x3f7   :  { %v2464_v23 = vadd.f32 %v2463_v14, %v2462_v42  ;;  %v2467_v42 = vsel %vm85_vm0, %v2404_v37, 0.0  ;;  %v2408_v37 = vmul.f32 %v2368_v28, %v2368_v28  ;;  %v2372_v28 = vmul.f32 %v8294_v0, %v11077_v46 }
 0x3f9   :  { %v2466_v8 = vadd.f32 %v2465_v4, %v2464_v23  ;;  %v2469_v23 = vsel %vm85_vm0, %v2405_v55, 0.0  ;;  %v2409_v55 = vmul.f32 %v2369_v41, %v2369_v41  ;;  %v2373_v41 = vmul.f32 %v8301_v5, %v11079_v24 }
 0x3fa   :  { %v2412_v53 = vmul.f32 %v2372_v28, %v2372_v28  ;;  %v2414_v24 = vmul.f32 %v2374_v54, %v2374_v54  ;;  %v2379_v54 = vmul.f32 %v8075_v6, %v8059_v35 }
 0x3fb   :  { %v2468_v14 = vadd.f32 %v2467_v42, %v2466_v8  ;;  %v2471_v8 = vsel %vm85_vm0, %v2406_v39, 0.0  ;;  %v2410_v39 = vmul.f32 %v2370_v60, %v2370_v60 }
 0x3fd   :  { %v2470_v4 = vadd.f32 %v2469_v23, %v2468_v14  ;;  %v2473_v14 = vsel %vm85_vm0, %v2407_v59, 0.0  ;;  %v2411_v59 = vmul.f32 %v2371_v19, %v2371_v19  ;;  %v2479_v60 = vsel %vm85_vm0, %v2410_v39, 0.0 }
 0x3fe   :  { %v2376_v19 = vmul.f32 %v8066_v38, %v11082_v57 }
 0x3ff   :  { %v2472_v42 = vadd.f32 %v2471_v8, %v2470_v4  ;;  %v2475_v4 = vsel %vm85_vm0, %v2408_v37, 0.0  ;;  %v11081_v37 = vld [vmem:[#allocation50_spill] sm:$0xff]  ;;  %v2481_v18 = vsel %vm85_vm0, %v2411_v59, 0.0 }
 0x401   :  { %v2474_v23 = vadd.f32 %v2473_v14, %v2472_v42  ;;  %v2477_v42 = vsel %vm85_vm0, %v2409_v55, 0.0  ;;  %v2483_v55 = vsel %vm85_vm0, %v2412_v53, 0.0 }
 0x403   :  { %v2476_v8 = vadd.f32 %v2475_v4, %v2474_v23  ;;  %v2375_v23 = vmul.f32 %v8315_v56, %v11081_v37  ;;  %v2413_v4 = vmul.f32 %v2373_v41, %v2373_v41  ;;  %v2416_v37 = vmul.f32 %v2376_v19, %v2376_v19 }
 0x405   :  { %v2478_v14 = vadd.f32 %v2477_v42, %v2476_v8  ;;  %v11083_v42 = vld [vmem:[#allocation105_spill] sm:$0xff]  ;;  %v2415_v13 = vmul.f32 %v2375_v23, %v2375_v23  ;;  %v2485_v39 = vsel %vm85_vm0, %v2413_v4, 0.0  ;;  %v2491_v23 = vsel %vm85_vm0, %v2416_v37, 0.0 }
 0x406   :  { %v2377_v28 = vmul.f32 %v8069_v7, %v11083_v42  ;;  %v2419_v4 = vmul.f32 %v2379_v54, %v2379_v54  ;;  %v2510_v37 = vlaneseq }
 0x407   :  { %v2480_v46 = vadd.f32 %v2479_v60, %v2478_v14  ;;  %v11084_v60 = vld [vmem:[#allocation106_spill] sm:$0xff]  ;;  %v2489_v53 = vsel %vm85_vm0, %v2415_v13, 0.0 }
 0x408   :  { %v2378_v41 = vmul.f32 %v8072_v26, %v11084_v60  ;;  %v8342_v54 = vshrl.u32 %v2510_v37, 7 }
 0x409   :  { %v2482_v44 = vadd.f32 %v2481_v18, %v2480_v46  ;;  %v2487_v46 = vsel %vm85_vm0, %v2414_v24, 0.0  ;;  %v2417_v18 = vmul.f32 %v2377_v28, %v2377_v28  ;;  %v2497_v24 = vsel %vm85_vm0, %v2419_v4, 0.0 }
 0x40a   :  { %11085 = vst [vmem:[#allocation128_spill] sm:$0xff] %v8342_v54 }
 0x40b   :  { %v2484_v8 = vadd.f32 %v2483_v55, %v2482_v44  ;;  %v2418_v55 = vmul.f32 %v2378_v41, %v2378_v41 }
 0x40d   :  { %v2486_v14 = vadd.f32 %v2485_v39, %v2484_v8  ;;  %v2493_v8 = vsel %vm85_vm0, %v2417_v18, 0.0  ;;  %v2495_v19 = vsel %vm85_vm0, %v2418_v55, 0.0  ;;  %v10642_v18 = vsub.s32 0, %v8342_v54 }
 0x40f   :  { %v2488_v59 = vadd.f32 %v2487_v46, %v2486_v14 }
 0x411   :  { %v2490_v44 = vadd.f32 %v2489_v53, %v2488_v59 }
 0x413   :  { %v2492_v42 = vadd.f32 %v2491_v23, %v2490_v44 }
 0x415   :  { %v2494_v39 = vadd.f32 %v2493_v8, %v2492_v42  ;;  %v1972_v42 = vld [vmem:[%s10476_s3] sm:$0x1] }
 0x417   :  { %v2496_v60 = vadd.f32 %v2495_v19, %v2494_v39 }
 0x419   :  { %v2498_v14 = vadd.f32 %v2497_v24, %v2496_v60 }
 0x41b   :  { %v2499_v46 = vrot.slane %v2498_v14, 4 }
 0x41d   :  { %v2500_v57 = vadd.f32 %v2499_v46, %v2498_v14 }
 0x41f   :  { %v2501_v28 = vrot.slane %v2500_v57, 2 }
 0x421   :  { %v2502_v43 = vadd.f32 %v2501_v28, %v2500_v57  ;;  %v8353_v57 = vld [vmem:[%s10477_s4] ss:$0 sm:$0xff] }
 0x423   :  { %v2503_v13 = vrot.slane %v2502_v43, 1 }
 0x425   :  { %v2504_v59 = vadd.f32 %v2503_v13, %v2502_v43 }
 0x427   :  { %v2505_v41 = vmul.f32 0.0078125, %v2504_v59 }
 0x429   :  { %v2506_v53 = vadd.f32 1e-05, %v2505_v41 }
 0x42b   :  { %5978 = vrsqrt.f32 %v2506_v53 }
 0x438   :  { %v5979_v44 = vpop.eup %5978 }
 0x439   :  { %v2508_v60 = vmul.f32 %v5979_v44, %v1972_v42 }
 0x43b   :  { %v2513_v55 = vrot.slane %v2508_v60, %v10642_v18  ;;  %v11096_v18 = vld [vmem:[#allocation92_spill] sm:$0xff] }
 0x43d   :  { %v2554_v43 = vmul.f32 %v2513_v55, %v8075_v6  ;;  %v2515_v23 = vmul.f32 %v2513_v55, %v8079_v29  ;;  %v2516_v4 = vmul.f32 %v2513_v55, %v8083_v16  ;;  %v2517_v8 = vmul.f32 %v2513_v55, %v8087_v27 }
 0x43e   :  { %v2518_v39 = vmul.f32 %v2513_v55, %v8091_v51  ;;  %v2519_v19 = vmul.f32 %v2513_v55, %v8099_v2  ;;  %v2520_v24 = vmul.f32 %v2513_v55, %v8105_v20  ;;  %v2521_v14 = vmul.f32 %v2513_v55, %v8111_v17 }
 0x43f   :  { %v2600_v46 = vadd.f32 %v8353_v57, %v2554_v43  ;;  %v2522_v28 = vmul.f32 %v2513_v55, %v8117_v31  ;;  %v2523_v6 = vmul.f32 %v2513_v55, %v8125_v12  ;;  %v2524_v29 = vmul.f32 %v2513_v55, %v8132_v50 }
 0x440   :  { %v2525_v16 = vmul.f32 %v2513_v55, %v8139_v32  ;;  %v2526_v27 = vmul.f32 %v2513_v55, %v8146_v58  ;;  %v2527_v51 = vmul.f32 %v2513_v55, %v8153_v48  ;;  %v2528_v2 = vmul.f32 %v2513_v55, %v8160_v10 }
 0x441   :  { %v2640_v13 = vmax.f32 %v2600_v46, 0.0  ;;  %v2529_v20 = vmul.f32 %v2513_v55, %v8168_v22  ;;  %v2530_v17 = vmul.f32 %v2513_v55, %v8175_v61  ;;  %v2531_v59 = vmul.f32 %v2513_v55, %v8182_v15 }
 0x442   :  { %v2532_v31 = vmul.f32 %v2513_v55, %v8189_v49  ;;  %v2533_v12 = vmul.f32 %v2513_v55, %v8196_v21  ;;  %v2534_v50 = vmul.f32 %v2513_v55, %v8203_v40  ;;  %v2535_v32 = vmul.f32 %v2513_v55, %v8210_v11 }
 0x443   :  { %v2680_v58 = vmul.f32 %v2640_v13, %v8059_v35  ;;  %v2536_v48 = vmul.f32 %v2513_v55, %v8217_v36  ;;  %v2537_v10 = vmul.f32 %v2513_v55, %v8224_v45  ;;  %v2538_v22 = vmul.f32 %v2513_v55, %v8231_v47 }
 0x444   :  { %v2539_v61 = vmul.f32 %v2513_v55, %v8238_v34  ;;  %v2540_v15 = vmul.f32 %v2513_v55, %v8245_v30  ;;  %v2541_v49 = vmul.f32 %v2513_v55, %v8252_v1  ;;  %v2542_v21 = vmul.f32 %v2513_v55, %v8259_v25 }
 0x445   :  { %v2543_v40 = vmul.f32 %v2513_v55, %v8266_v62  ;;  %v2544_v11 = vmul.f32 %v2513_v55, %v8273_v9  ;;  %v2545_v41 = vmul.f32 %v2513_v55, %v8280_v33  ;;  %v2546_v36 = vmul.f32 %v2513_v55, %v8287_v52  ;;  %2720 = vst.msk [vmem:[#allocation2 + $0x158] sm:$0xff] %vm85_vm0, %v2680_v58 }
 0x446   :  { %v2547_v47 = vmul.f32 %v2513_v55, %v8294_v0  ;;  %v2548_v45 = vmul.f32 %v2513_v55, %v8301_v5  ;;  %v2549_v34 = vmul.f32 %v2513_v55, %v8308_v63  ;;  %v2550_v30 = vmul.f32 %v2513_v55, %v8315_v56 }
 0x447   :  { %v2551_v1 = vmul.f32 %v2513_v55, %v8066_v38  ;;  %v2552_v25 = vmul.f32 %v2513_v55, %v8069_v7  ;;  %v2553_v62 = vmul.f32 %v2513_v55, %v8072_v26  ;;  %v8399_v9 = vadd.f32 %v8353_v57, %v2515_v23 }
 0x448   :  { %v8402_v33 = vadd.f32 %v8353_v57, %v2516_v4  ;;  %v8405_v52 = vadd.f32 %v8353_v57, %v2517_v8  ;;  %v8408_v5 = vadd.f32 %v8353_v57, %v2518_v39  ;;  %v8411_v56 = vadd.f32 %v8353_v57, %v2519_v19 }
 0x449   :  { %v8414_v63 = vadd.f32 %v8353_v57, %v2520_v24  ;;  %v8417_v38 = vadd.f32 %v8353_v57, %v2521_v14  ;;  %v8420_v7 = vadd.f32 %v8353_v57, %v2522_v28  ;;  %v8423_v26 = vadd.f32 %v8353_v57, %v2523_v6 }
 0x44a   :  { %v8426_v0 = vadd.f32 %v8353_v57, %v2524_v29  ;;  %v8429_v53 = vadd.f32 %v8353_v57, %v2525_v16  ;;  %v8432_v37 = vadd.f32 %v8353_v57, %v2526_v27  ;;  %v8435_v42 = vadd.f32 %v8353_v57, %v2527_v51 }
 0x44b   :  { %v8438_v44 = vadd.f32 %v8353_v57, %v2528_v2  ;;  %v8441_v60 = vadd.f32 %v8353_v57, %v2529_v20  ;;  %v8444_v55 = vadd.f32 %v8353_v57, %v2530_v17  ;;  %v8447_v43 = vadd.f32 %v8353_v57, %v2531_v59 }
 0x44c   :  { %v8450_v23 = vadd.f32 %v8353_v57, %v2532_v31  ;;  %v8453_v4 = vadd.f32 %v8353_v57, %v2533_v12  ;;  %v8456_v8 = vadd.f32 %v8353_v57, %v2534_v50  ;;  %v8459_v39 = vadd.f32 %v8353_v57, %v2535_v32 }
 0x44d   :  { %v8462_v19 = vadd.f32 %v8353_v57, %v2536_v48  ;;  %v8465_v24 = vadd.f32 %v8353_v57, %v2537_v10  ;;  %v8468_v14 = vadd.f32 %v8353_v57, %v2538_v22  ;;  %v8471_v46 = vadd.f32 %v8353_v57, %v2539_v61 }
 0x44e   :  { %v8474_v28 = vadd.f32 %v8353_v57, %v2540_v15  ;;  %v8477_v6 = vadd.f32 %v8353_v57, %v2541_v49  ;;  %v8480_v29 = vadd.f32 %v8353_v57, %v2542_v21  ;;  %v8483_v16 = vadd.f32 %v8353_v57, %v2543_v40 }
 0x44f   :  { %v8486_v27 = vadd.f32 %v8353_v57, %v2544_v11  ;;  %v8489_v51 = vadd.f32 %v8353_v57, %v2545_v41  ;;  %v8492_v2 = vadd.f32 %v8353_v57, %v2546_v36  ;;  %v8495_v13 = vadd.f32 %v8353_v57, %v2547_v47 }
 0x450   :  { %v8498_v20 = vadd.f32 %v8353_v57, %v2548_v45  ;;  %v8501_v17 = vadd.f32 %v8353_v57, %v2549_v34  ;;  %v8504_v59 = vadd.f32 %v8353_v57, %v2550_v30  ;;  %v8507_v31 = vadd.f32 %v8353_v57, %v2551_v1 }
 0x451   :  { %v8510_v12 = vadd.f32 %v8353_v57, %v2552_v25  ;;  %v8513_v50 = vadd.f32 %v8353_v57, %v2553_v62  ;;  %v2601_v32 = vmax.f32 %v8399_v9, 0.0  ;;  %v2602_v58 = vmax.f32 %v8402_v33, 0.0 }
 0x452   :  { %v2603_v48 = vmax.f32 %v8405_v52, 0.0  ;;  %v2604_v10 = vmax.f32 %v8408_v5, 0.0  ;;  %v2605_v22 = vmax.f32 %v8411_v56, 0.0  ;;  %v2606_v61 = vmax.f32 %v8414_v63, 0.0 }
 0x453   :  { %v2607_v15 = vmax.f32 %v8417_v38, 0.0  ;;  %v2608_v49 = vmax.f32 %v8420_v7, 0.0  ;;  %v2609_v21 = vmax.f32 %v8423_v26, 0.0  ;;  %v2610_v57 = vmax.f32 %v8426_v0, 0.0 }
 0x454   :  { %v2611_v40 = vmax.f32 %v8429_v53, 0.0  ;;  %v2612_v11 = vmax.f32 %v8432_v37, 0.0  ;;  %v2613_v41 = vmax.f32 %v8435_v42, 0.0  ;;  %v2614_v36 = vmax.f32 %v8438_v44, 0.0 }
 0x455   :  { %v2615_v47 = vmax.f32 %v8441_v60, 0.0  ;;  %v2616_v45 = vmax.f32 %v8444_v55, 0.0  ;;  %v2617_v34 = vmax.f32 %v8447_v43, 0.0  ;;  %v2618_v30 = vmax.f32 %v8450_v23, 0.0  ;;  %v11097_v23 = vld [vmem:[#allocation93_spill] sm:$0xff]  ;;  %v11098_v43 = vld [vmem:[#allocation94_spill] sm:$0xff] }
 0x456   :  { %v2619_v1 = vmax.f32 %v8453_v4, 0.0  ;;  %v2620_v25 = vmax.f32 %v8456_v8, 0.0  ;;  %v2621_v62 = vmax.f32 %v8459_v39, 0.0  ;;  %v2622_v9 = vmax.f32 %v8462_v19, 0.0  ;;  %v11086_v8 = vld [vmem:[#allocation36_spill] sm:$0xff]  ;;  %v11087_v19 = vld [vmem:[#allocation37_spill] sm:$0xff] }
 0x457   :  { %v2623_v33 = vmax.f32 %v8465_v24, 0.0  ;;  %v2624_v52 = vmax.f32 %v8468_v14, 0.0  ;;  %v2625_v5 = vmax.f32 %v8471_v46, 0.0  ;;  %v2626_v56 = vmax.f32 %v8474_v28, 0.0  ;;  %v11088_v14 = vld [vmem:[#allocation86_spill] sm:$0xff]  ;;  %v11089_v28 = vld [vmem:[#allocation33_spill] sm:$0xff] }
 0x458   :  { %v2627_v63 = vmax.f32 %v8477_v6, 0.0  ;;  %v2628_v38 = vmax.f32 %v8480_v29, 0.0  ;;  %v2629_v7 = vmax.f32 %v8483_v16, 0.0  ;;  %v2630_v26 = vmax.f32 %v8486_v27, 0.0  ;;  %v11090_v29 = vld [vmem:[#allocation88_spill] sm:$0xff]  ;;  %v11091_v27 = vld [vmem:[#allocation89_spill] sm:$0xff] }
 0x459   :  { %v2631_v0 = vmax.f32 %v8489_v51, 0.0  ;;  %v2632_v53 = vmax.f32 %v8492_v2, 0.0  ;;  %v2633_v37 = vmax.f32 %v8495_v13, 0.0  ;;  %v2634_v42 = vmax.f32 %v8498_v20, 0.0  ;;  %v11092_v2 = vld [vmem:[#allocation90_spill] sm:$0xff]  ;;  %v11093_v20 = vld [vmem:[#allocation91_spill] sm:$0xff] }
 0x45a   :  { %v2635_v44 = vmax.f32 %v8501_v17, 0.0  ;;  %v2636_v60 = vmax.f32 %v8504_v59, 0.0  ;;  %v2643_v4 = vmul.f32 %v2603_v48, %v7851_v3  ;;  %v2644_v39 = vmul.f32 %v2604_v10, %v11086_v8  ;;  %v11094_v48 = vld [vmem:[#allocation38_spill] sm:$0xff]  ;;  %v11099_v55 = vld [vmem:[#allocation95_spill] sm:$0xff] }
 0x45b   :  { %v2645_v24 = vmul.f32 %v2605_v22, %v11087_v19  ;;  %v2641_v46 = vmul.f32 %v2601_v32, %v11088_v14  ;;  %v2642_v6 = vmul.f32 %v2602_v58, %v11089_v28  ;;  %v2646_v16 = vmul.f32 %v2606_v61, %v11090_v29  ;;  %v11095_v22 = vld [vmem:[#allocation39_spill] sm:$0xff] }
 0x45c   :  { %v2647_v51 = vmul.f32 %v2607_v15, %v11091_v27  ;;  %2683 = vst.msk [vmem:[#allocation2 + $0x30] sm:$0xff] %vm85_vm0, %v2643_v4  ;;  %2684 = vst.msk [vmem:[#allocation2 + $0x38] sm:$0xff] %vm85_vm0, %v2644_v39  ;;  %v2648_v13 = vmul.f32 %v2608_v49, %v11092_v2  ;;  %v2649_v17 = vmul.f32 %v2609_v21, %v11093_v20  ;;  %v11100_v49 = vld [vmem:[#allocation40_spill] sm:$0xff] }
 0x45d   :  { %2685 = vst.msk [vmem:[#allocation2 + $0x40] sm:$0xff] %vm85_vm0, %v2645_v24  ;;  %v2650_v10 = vmul.f32 %v2610_v57, %v11094_v48  ;;  %v2651_v32 = vmul.f32 %v2611_v40, %v11095_v22  ;;  %v2652_v58 = vmul.f32 %v2612_v11, %v11096_v18  ;;  %v2653_v61 = vmul.f32 %v2613_v41, %v11097_v23  ;;  %v11101_v57 = vld [vmem:[#allocation41_spill] sm:$0xff]  ;;  %v11102_v39 = vld [vmem:[#allocation96_spill] sm:$0xff]  ;;  %v5973_v22 = vld [vmem:[#allocation8 + $0x18] sm:$0xff]  }
 0x45e   :  { %v2654_v15 = vmul.f32 %v2614_v36, %v11098_v43  ;;  %v2655_v4 = vmul.f32 %v2615_v47, %v11099_v55  ;;  %2681 = vst.msk [vmem:[#allocation2 + $0x20] sm:$0xff] %vm85_vm0, %v2641_v46  ;;  %2682 = vst.msk [vmem:[#allocation2 + $0x28] sm:$0xff] %vm85_vm0, %v2642_v6  ;;  %v2656_v21 = vmul.f32 %v2616_v45, %v11100_v49  ;;  %v11103_v24 = vld [vmem:[#allocation121_spill] sm:$0xff]  ;;  %v11104_v36 = vld [vmem:[#allocation98_spill] sm:$0xff] }
 0x45f   :  { %2686 = vst.msk [vmem:[#allocation2 + $0x48] sm:$0xff] %vm85_vm0, %v2646_v16  ;;  %2687 = vst.msk [vmem:[#allocation2 + $0x50] sm:$0xff] %vm85_vm0, %v2647_v51  ;;  %v2657_v40 = vmul.f32 %v2617_v34, %v11101_v57  ;;  %v2658_v11 = vmul.f32 %v2618_v30, %v11102_v39  ;;  %v2659_v41 = vmul.f32 %v2619_v1, %v11103_v24  ;;  %v11105_v46 = vld [vmem:[#allocation42_spill] sm:$0xff]  ;;  %v11106_v16 = vld [vmem:[#allocation43_spill] sm:$0xff] }
 0x460   :  { %2688 = vst.msk [vmem:[#allocation2 + $0x58] sm:$0xff] %vm85_vm0, %v2648_v13  ;;  %2689 = vst.msk [vmem:[#allocation2 + $0x60] sm:$0xff] %vm85_vm0, %v2649_v17  ;;  %v2660_v47 = vmul.f32 %v2620_v25, %v11104_v36  ;;  %v2661_v6 = vmul.f32 %v2621_v62, %v11105_v46  ;;  %v2662_v45 = vmul.f32 %v2622_v9, %v11106_v16  ;;  %v11107_v51 = vld [vmem:[#allocation99_spill] sm:$0xff]  ;;  %v11108_v30 = vld [vmem:[#allocation100_spill] sm:$0xff] }
 0x461   :  { %2690 = vst.msk [vmem:[#allocation2 + $0x68] sm:$0xff] %vm85_vm0, %v2650_v10  ;;  %2691 = vst.msk [vmem:[#allocation2 + $0x70] sm:$0xff] %vm85_vm0, %v2651_v32  ;;  %v2663_v34 = vmul.f32 %v2623_v33, %v11107_v51  ;;  %v2664_v1 = vmul.f32 %v2624_v52, %v11108_v30  ;;  %v11109_v13 = vld [vmem:[#allocation44_spill] sm:$0xff]  ;;  %v11110_v10 = vld [vmem:[#allocation45_spill] sm:$0xff] }
 0x462   :  { %2692 = vst.msk [vmem:[#allocation2 + $0x78] sm:$0xff] %vm85_vm0, %v2652_v58  ;;  %2693 = vst.msk [vmem:[#allocation2 + $0x80] sm:$0xff] %vm85_vm0, %v2653_v61  ;;  %v2665_v17 = vmul.f32 %v2625_v5, %v11109_v13  ;;  %v2666_v25 = vmul.f32 %v2626_v56, %v11110_v10  ;;  %v11111_v32 = vld [vmem:[#allocation102_spill] sm:$0xff]  ;;  %v11112_v9 = vld [vmem:[#allocation123_spill] sm:$0xff] }
 0x463   :  { %2694 = vst.msk [vmem:[#allocation2 + $0x88] sm:$0xff] %vm85_vm0, %v2654_v15  ;;  %2695 = vst.msk [vmem:[#allocation2 + $0x90] sm:$0xff] %vm85_vm0, %v2655_v4  ;;  %v2667_v62 = vmul.f32 %v2627_v63, %v11111_v32  ;;  %v2668_v33 = vmul.f32 %v2628_v38, %v11112_v9  ;;  %v11113_v58 = vld [vmem:[#allocation124_spill] sm:$0xff]  ;;  %v11114_v15 = vld [vmem:[#allocation46_spill] sm:$0xff] }
 0x464   :  { %2696 = vst.msk [vmem:[#allocation2 + $0x98] sm:$0xff] %vm85_vm0, %v2656_v21  ;;  %2697 = vst.msk [vmem:[#allocation2 + $0xa0] sm:$0xff] %vm85_vm0, %v2657_v40  ;;  %v2669_v61 = vmul.f32 %v2629_v7, %v11113_v58  ;;  %v2670_v52 = vmul.f32 %v2630_v26, %v11114_v15  ;;  %v11115_v4 = vld [vmem:[#allocation47_spill] sm:$0xff]  ;;  %v11117_v21 = vld [vmem:[#allocation104_spill] sm:$0xff] }
 0x465   :  { %2698 = vst.msk [vmem:[#allocation2 + $0xa8] sm:$0xff] %vm85_vm0, %v2658_v11  ;;  %2699 = vst.msk [vmem:[#allocation2 + $0xb0] sm:$0xff] %vm85_vm0, %v2659_v41  ;;  %v2671_v5 = vmul.f32 %v2631_v0, %v11115_v4  ;;  %v11116_v56 = vld [vmem:[#allocation103_spill] sm:$0xff]  ;;  %v2673_v40 = vmul.f32 %v2633_v37, %v11117_v21  ;;  %v11118_v11 = vld [vmem:[#allocation125_spill] sm:$0xff] }
 0x466   :  { %2700 = vst.msk [vmem:[#allocation2 + $0xb8] sm:$0xff] %vm85_vm0, %v2660_v47  ;;  %2701 = vst.msk [vmem:[#allocation2 + $0xc0] sm:$0xff] %vm85_vm0, %v2661_v6  ;;  %v2672_v63 = vmul.f32 %v2632_v53, %v11116_v56  ;;  %v2674_v38 = vmul.f32 %v2634_v42, %v11118_v11  ;;  %v11119_v41 = vld [vmem:[#allocation126_spill] sm:$0xff]  ;;  %v11121_v37 = vld [vmem:[#allocation51_spill] sm:$0xff]  ;;  %v11122_v42 = vmax.f32 %v8507_v31, 0.0 }
 0x467   :  { %2702 = vst.msk [vmem:[#allocation2 + $0xc8] sm:$0xff] %vm85_vm0, %v2662_v45  ;;  %2703 = vst.msk [vmem:[#allocation2 + $0xd0] sm:$0xff] %vm85_vm0, %v2663_v34  ;;  %v2675_v7 = vmul.f32 %v2635_v44, %v11119_v41  ;;  %v8616_v26 = vld [vmem:[#allocation2 + $0x31] sm:$0xff]  ;;  %v8618_v0 = vld [vmem:[#allocation2 + $0x39] sm:$0xff]  ;;  %v11124_v45 = vmax.f32 %v8510_v12, 0.0 }
 0x468   :  { %2704 = vst.msk [vmem:[#allocation2 + $0xd8] sm:$0xff] %vm85_vm0, %v2664_v1  ;;  %2705 = vst.msk [vmem:[#allocation2 + $0xe0] sm:$0xff] %vm85_vm0, %v2665_v17  ;;  %v11120_v47 = vld [vmem:[#allocation50_spill] sm:$0xff]  ;;  %v2677_v44 = vmul.f32 %v11122_v42, %v11121_v37  ;;  %v11123_v6 = vld [vmem:[#allocation105_spill] sm:$0xff]  ;;  %v11126_v17 = vmax.f32 %v8513_v50, 0.0  ;;  %v4102_v59 = vpack.c.bf16 %v8618_v0, %v8616_v26 }
 0x469   :  { %2706 = vst.msk [vmem:[#allocation2 + $0xe8] sm:$0xff] %vm85_vm0, %v2666_v25  ;;  %2707 = vst.msk [vmem:[#allocation2 + $0xf0] sm:$0xff] %vm85_vm0, %v2667_v62  ;;  %v2676_v53 = vmul.f32 %v2636_v60, %v11120_v47  ;;  %v2678_v34 = vmul.f32 %v11124_v45, %v11123_v6  ;;  %v11125_v1 = vld [vmem:[#allocation106_spill] sm:$0xff]  ;;  %v2765_v62 = vld [vmem:[#allocation2 + $0x30] sm:$0xff] }
 0x46a   :  { %v2679_v25 = vmul.f32 %v11126_v17, %v11125_v1  ;;  %2708 = vst.msk [vmem:[#allocation2 + $0xf8] sm:$0xff] %vm85_vm0, %v2668_v33  ;;  %2709 = vst.msk [vmem:[#allocation2 + $0x100] sm:$0xff] %vm85_vm0, %v2669_v61  ;;  %v2766_v31 = vld [vmem:[#allocation2 + $0x38] sm:$0xff]  ;;  %v2763_v12 = vld [vmem:[#allocation2 + $0x20] sm:$0xff]  ;;  %5221 = vmatprep.mubr.msk.bf16.mxu1 %vm85_vm0, %v4102_v59 }
 0x46b   :  { %2710 = vst.msk [vmem:[#allocation2 + $0x108] sm:$0xff] %vm85_vm0, %v2670_v52  ;;  %2711 = vst.msk [vmem:[#allocation2 + $0x110] sm:$0xff] %vm85_vm0, %v2671_v5  ;;  %v2764_v50 = vld [vmem:[#allocation2 + $0x28] sm:$0xff]  ;;  %v8642_v60 = vpack.i.bf16 %v2766_v31, %v2765_v62  ;;  %v2769_v61 = vld [vmem:[#allocation2 + $0x50] sm:$0xff] }
 0x46c   :  { %2712 = vst.msk [vmem:[#allocation2 + $0x118] sm:$0xff] %vm85_vm0, %v2672_v63  ;;  %2713 = vst.msk [vmem:[#allocation2 + $0x120] sm:$0xff] %vm85_vm0, %v2673_v40  ;;  %v8648_v33 = vpack.i.bf16 %v2764_v50, %v2763_v12  ;;  %v2770_v52 = vld [vmem:[#allocation2 + $0x58] sm:$0xff]  ;;  %v2767_v5 = vld [vmem:[#allocation2 + $0x40] sm:$0xff] }
 0x46d   :  { %2714 = vst.msk [vmem:[#allocation2 + $0x128] sm:$0xff] %vm85_vm0, %v2674_v38  ;;  %2715 = vst.msk [vmem:[#allocation2 + $0x130] sm:$0xff] %vm85_vm0, %v2675_v7  ;;  %v2768_v63 = vld [vmem:[#allocation2 + $0x48] sm:$0xff]  ;;  %v2773_v40 = vld [vmem:[#allocation2 + $0x70] sm:$0xff]  ;;  %v8651_v7 = vpack.i.bf16 %v2770_v52, %v2769_v61  ;;  %5271 = vrot.lane.b32.xlu1 %v8642_v60, %s6169_s2 }
 0x46e   :  { %2716 = vst.msk [vmem:[#allocation2 + $0x138] sm:$0xff] %vm85_vm0, %v2676_v53  ;;  %2717 = vst.msk [vmem:[#allocation2 + $0x140] sm:$0xff] %vm85_vm0, %v2677_v44  ;;  %v2774_v38 = vld [vmem:[#allocation2 + $0x78] sm:$0xff]  ;;  %5266 = vrot.lane.b32.xlu0 %v8648_v33, %s6169_s2  ;;  %v2771_v53 = vld [vmem:[#allocation2 + $0x60] sm:$0xff]  ;;  %v8659_v17 = vpack.i.bf16 %v2768_v63, %v2767_v5 }
 0x46f   :  { %2718 = vst.msk [vmem:[#allocation2 + $0x148] sm:$0xff] %vm85_vm0, %v2678_v34  ;;  %2719 = vst.msk [vmem:[#allocation2 + $0x150] sm:$0xff] %vm85_vm0, %v2679_v25  ;;  %v2772_v42 = vld [vmem:[#allocation2 + $0x68] sm:$0xff]  ;;  %v2775_v44 = vld [vmem:[#allocation2 + $0x80] sm:$0xff]  ;;  %v8661_v31 = vpack.i.bf16 %v2774_v38, %v2773_v40 }
 0x470   :  { %v2776_v45 = vld [vmem:[#allocation2 + $0x88] sm:$0xff]  ;;  %v8657_v34 = vpack.i.bf16 %v2772_v42, %v2771_v53  ;;  %v2777_v25 = vld [vmem:[#allocation2 + $0x90] sm:$0xff]  ;;  %v2778_v62 = vld [vmem:[#allocation2 + $0x98] sm:$0xff] }
 0x471   :  { %v2779_v59 = vld [vmem:[#allocation2 + $0xa0] sm:$0xff]  ;;  %v2781_v12 = vld [vmem:[#allocation2 + $0xb0] sm:$0xff]  ;;  %v2782_v50 = vld [vmem:[#allocation2 + $0xb8] sm:$0xff]  ;;  %v8663_v52 = vpack.i.bf16 %v2776_v45, %v2775_v44  ;;  %5281 = vrot.lane.b32.xlu1 %v8651_v7, %s6169_s2  ;;  %v8669_v54 = vpack.i.bf16 %v2778_v62, %v2777_v25 }
 0x472   :  { %v2780_v61 = vld [vmem:[#allocation2 + $0xa8] sm:$0xff]  ;;  %5276 = vrot.lane.b32.xlu0 %v8659_v17, %s6169_s2  ;;  %v2783_v53 = vld [vmem:[#allocation2 + $0xc0] sm:$0xff]  ;;  %v2785_v5 = vld [vmem:[#allocation2 + $0xd0] sm:$0xff]  ;;  %v8673_v1 = vpack.i.bf16 %v2782_v50, %v2781_v12 }
 0x473   :  { %v2784_v42 = vld [vmem:[#allocation2 + $0xc8] sm:$0xff]  ;;  %v2786_v63 = vld [vmem:[#allocation2 + $0xd8] sm:$0xff]  ;;  %v8671_v35 = vpack.i.bf16 %v2780_v61, %v2779_v59  ;;  %v2787_v40 = vld [vmem:[#allocation2 + $0xe0] sm:$0xff] }
 0x474   :  { %v2788_v38 = vld [vmem:[#allocation2 + $0xe8] sm:$0xff]  ;;  %v2789_v44 = vld [vmem:[#allocation2 + $0xf0] sm:$0xff]  ;;  %v2790_v45 = vld [vmem:[#allocation2 + $0xf8] sm:$0xff]  ;;  %v8675_v6 = vpack.i.bf16 %v2784_v42, %v2783_v53  ;;  %v8681_v25 = vpack.i.bf16 %v2786_v63, %v2785_v5 }
 0x475   :  { %5291 = vrot.lane.b32.xlu1 %v8661_v31, %s6169_s2  ;;  %v2791_v37 = vld [vmem:[#allocation2 + $0x100] sm:$0xff]  ;;  %v2792_v47 = vld [vmem:[#allocation2 + $0x108] sm:$0xff]  ;;  %v8683_v62 = vpack.i.bf16 %v2788_v38, %v2787_v40  ;;  %v8685_v59 = vpack.i.bf16 %v2790_v45, %v2789_v44  ;;  %v2793_v12 = vld [vmem:[#allocation2 + $0x110] sm:$0xff] }
 0x476   :  { %5286 = vrot.lane.b32.xlu0 %v8657_v34, %s6169_s2  ;;  %v2794_v50 = vld [vmem:[#allocation2 + $0x118] sm:$0xff]  ;;  %v8687_v61 = vpack.i.bf16 %v2792_v47, %v2791_v37  ;;  %v8693_v53 = vld [vmem:[#allocation2 + $0x41] sm:$0xff]  ;;  %v8695_v42 = vld [vmem:[#allocation2 + $0x49] sm:$0xff] }
 0x477   :  { %v8697_v5 = vld [vmem:[#allocation2 + $0x51] sm:$0xff]  ;;  %v8699_v63 = vld [vmem:[#allocation2 + $0x59] sm:$0xff]  ;;  %v8703_v38 = vpack.i.bf16 %v2794_v50, %v2793_v12  ;;  %v8705_v47 = vld [vmem:[#allocation2 + $0x61] sm:$0xff] }
 0x478   :  { %11127 = vst [vmem:[#allocation52_spill] sm:$0xff] %v8687_v61  ;;  %v8711_v37 = vld [vmem:[#allocation2 + $0x69] sm:$0xff]  ;;  %v8715_v45 = vld [vmem:[#allocation2 + $0x71] sm:$0xff]  ;;  %v8717_v41 = vld [vmem:[#allocation2 + $0x79] sm:$0xff] }
 0x479   :  { %5301 = vrot.lane.b32.xlu1 %v8669_v54, %s6169_s2  ;;  %11128 = vst [vmem:[#allocation53_spill] sm:$0xff] %v8703_v38  ;;  %v8719_v40 = vld [vmem:[#allocation2 + $0x81] sm:$0xff]  ;;  %v8721_v12 = vld [vmem:[#allocation2 + $0x89] sm:$0xff]  ;;  %v8731_v44 = vld [vmem:[#allocation2 + $0x91] sm:$0xff] }
 0x47a   :  { %5296 = vrot.lane.b32.xlu0 %v8663_v52, %s6169_s2  ;;  %v2795_v21 = vld [vmem:[#allocation2 + $0x120] sm:$0xff]  ;;  %v2796_v56 = vld [vmem:[#allocation2 + $0x128] sm:$0xff]  ;;  %11129 = vst [vmem:[#allocation107_spill] sm:$0xff] %v8731_v44  ;;  %v2797_v58 = vld [vmem:[#allocation2 + $0x130] sm:$0xff] }
 0x47b   :  { %v8733_v4 = vld [vmem:[#allocation2 + $0x99] sm:$0xff]  ;;  %v8737_v32 = vpack.i.bf16 %v2796_v56, %v2795_v21  ;;  %v2800_v30 = vld [vmem:[#allocation2 + $0x148] sm:$0xff]  ;;  %v11134_v56 = vmov 0   ;;  %v5971_v21 = vld [vmem:[#allocation8 + $0x28] sm:$0xff]  }
 0x47c   :  { %v2798_v50 = vld [vmem:[#allocation2 + $0x138] sm:$0xff]  ;;  %v5969_v9 = vld [vmem:[#allocation8 + $0x38] sm:$0xff]   ;;  %v8747_v15 = vld [vmem:[#allocation2 + $0xa9] sm:$0xff] }
 0x47d   :  { %5311 = vrot.lane.b32.xlu1 %v8673_v1, %s6169_s2  ;;  %11130 = vst [vmem:[#allocation108_spill] sm:$0xff] %v8737_v32  ;;  %v2799_v11 = vld [vmem:[#allocation2 + $0x140] sm:$0xff]  ;;  %4274 = vmatpush1.bf16.msra.mxu1 %v5969_v9  ;;  %v5970_v10 = vld [vmem:[#allocation8 + $0x30] sm:$0xff]   ;;  %11132 = vst [vmem:[#allocation130_spill] sm:$0xff] %v8747_v15  ;;  %v8749_v16 = vpack.i.bf16 %v2798_v50, %v2797_v58 }
 0x47e   :  { %5306 = vrot.lane.b32.xlu0 %v8671_v35, %s6169_s2  ;;  %v8745_v51 = vld [vmem:[#allocation2 + $0xa1] sm:$0xff]  ;;  %4275 = vmatprep.subr.bf16.mxu1 %v11134_v56  ;;  %v8754_v13 = vpack.i.bf16 %v2800_v30, %v2799_v11  ;;  %v2801_v46 = vld [vmem:[#allocation2 + $0x11] sm:$0xff]  ;;  %v8763_v50 = vld [vmem:[#allocation2 + $0xb9] sm:$0xff] }
 0x47f   :  { %11131 = vst [vmem:[#allocation129_spill] sm:$0xff] %v8745_v51  ;;  %11133 = vst [vmem:[#allocation54_spill] sm:$0xff] %v8749_v16  ;;  %v8761_v58 = vld [vmem:[#allocation2 + $0xb1] sm:$0xff]  ;;  %v2802_v36 = vld [vmem:[#allocation2 + $0x19] sm:$0xff] }
 0x480   :  { %11135 = vst [vmem:[#allocation55_spill] sm:$0xff] %v8754_v13  ;;  %11136 = vst [vmem:[#allocation109_spill] sm:$0xff] %v8761_v58  ;;  %v5972_v24 = vld [vmem:[#allocation8 + $0x20] sm:$0xff]   ;;  %v8771_v11 = vld [vmem:[#allocation2 + $0xd1] sm:$0xff]  ;;  %v5360_v23 = vpack.i.bf16 %v2802_v36, %v2801_v46 }
 0x481   :  { %5321 = vrot.lane.b32.xlu1 %v8681_v25, %s6169_s2  ;;  %4276 = vmatpush1.bf16.msra.mxu1 %v5970_v10  ;;  %11137 = vst [vmem:[#allocation110_spill] sm:$0xff] %v8763_v50  ;;  %v8765_v9 = vld [vmem:[#allocation2 + $0xc1] sm:$0xff]  ;;  %v8769_v10 = vld [vmem:[#allocation2 + $0xc9] sm:$0xff]  ;;  %v8773_v39 = vld [vmem:[#allocation2 + $0xd9] sm:$0xff] }
 0x482   :  { %5316 = vrot.lane.b32.xlu0 %v8675_v6, %s6169_s2  ;;  %4277 = vmatprep.subr.bf16.mxu1 %v11134_v56  ;;  %11138 = vst [vmem:[#allocation131_spill] sm:$0xff] %v8765_v9  ;;  %v8779_v57 = vld [vmem:[#allocation2 + $0xe1] sm:$0xff]  ;;  %v8781_v49 = vld [vmem:[#allocation2 + $0xe9] sm:$0xff]  ;;  %v8788_v30 = vld [vmem:[#allocation2 + $0xf9] sm:$0xff] }
 0x483   :  { %v8783_v55 = vld [vmem:[#allocation2 + $0x1f] sm:$0xff]  ;;  %11140 = vst [vmem:[#allocation56_spill] sm:$0xff] %v8788_v30  ;;  %v8792_v18 = vld [vmem:[#allocation2 + $0x27] sm:$0xff]  ;;  %v8802_v29 = vld [vmem:[#allocation2 + $0x111] sm:$0xff] }
 0x484   :  { %v8794_v48 = vld [vmem:[#allocation2 + $0x101] sm:$0xff]  ;;  %v8800_v27 = vld [vmem:[#allocation2 + $0x109] sm:$0xff]  ;;  %v8804_v19 = vld [vmem:[#allocation2 + $0x119] sm:$0xff] }
 0x485   :  { %5331 = vrot.lane.b32.xlu1 %v8685_v59, %s6169_s2  ;;  %4278 = vmatpush1.bf16.msra.mxu1 %v5971_v21  ;;  %v8786_v21 = vld [vmem:[#allocation2 + $0xf1] sm:$0xff]  ;;  %v8806_v43 = vld [vmem:[#allocation2 + $0x159] sm:$0xff]  ;;  %v8811_v36 = vld [vmem:[#allocation2 + $0x121] sm:$0xff] }
 0x486   :  { %5326 = vrot.lane.b32.xlu0 %v8683_v62, %s6169_s2  ;;  %4279 = vmatprep.subr.bf16.mxu1 %v11134_v56  ;;  %11139 = vst [vmem:[#allocation132_spill] sm:$0xff] %v8786_v21  ;;  %11141 = vst [vmem:[#allocation57_spill] sm:$0xff] %v8806_v43  ;;  %v8813_v46 = vld [vmem:[#allocation2 + $0x129] sm:$0xff]  ;;  %v8815_v20 = vld [vmem:[#allocation2 + $0x131] sm:$0xff] }
 0x487   :  { %11142 = vst [vmem:[#allocation111_spill] sm:$0xff] %v8811_v36  ;;  %11143 = vst [vmem:[#allocation112_spill] sm:$0xff] %v8813_v46  ;;  %v8820_v2 = vld [vmem:[#allocation2 + $0x139] sm:$0xff]  ;;  %v8822_v8 = vld [vmem:[#allocation2 + $0x141] sm:$0xff] }
 0x488   :  { %11144 = vst [vmem:[#allocation133_spill] sm:$0xff] %v8815_v20  ;;  %11145 = vst [vmem:[#allocation134_spill] sm:$0xff] %v8820_v2  ;;  %v8824_v3 = vld [vmem:[#allocation2 + $0x149] sm:$0xff]  ;;  %v8830_v28 = vld [vmem:[#allocation2 + $0x37] sm:$0xff]  ;;  %v5585_v2 = vpack.i.bf16 %v8733_v4, %v8731_v44 }
 0x489   :  { %5341 = vrot.lane.b32.xlu1 %v8703_v38, %s6169_s2  ;;  %4280 = vmatpush1.bf16.msra.mxu1 %v5972_v24  ;;  %11146 = vst [vmem:[#allocation58_spill] sm:$0xff] %v8822_v8  ;;  %11147 = vst [vmem:[#allocation59_spill] sm:$0xff] %v8824_v3  ;;  %v8828_v14 = vld [vmem:[#allocation2 + $0x2f] sm:$0xff]  ;;  %v5555_v24 = vpack.i.bf16 %v8721_v12, %v8719_v40  ;;  %v8970_v43 = vld [vmem:[#allocation2 + $0x9f] sm:$0xff] }
 0x48a   :  { %5336 = vrot.lane.b32.xlu0 %v8687_v61, %s6169_s2  ;;  %4281 = vmatprep.subr.bf16.mxu1 %v11134_v56  ;;  %v2804_v38 = vld [vmem:[#allocation2 + $0x29] sm:$0xff]  ;;  %v5974_v61 = vld [vmem:[#allocation8 + $0x10] sm:$0xff]   ;;  %11153 = vst [vmem:[#allocation61_spill] sm:$0xff] %v8970_v43 }
 0x48b   :  { %v5975_v46 = vld [vmem:[#allocation8 + $0x8] sm:$0xff]   ;;  %v8972_v8 = vld [vmem:[#allocation2 + $0xa7] sm:$0xff] }
 0x48c   :  { %11154 = vst [vmem:[#allocation115_spill] sm:$0xff] %v8972_v8 }
 0x48d   :  { %5351 = vrot.lane.b32.xlu1 %v8749_v16, %s6169_s2  ;;  %4282 = vmatpush1.bf16.msra.mxu1 %v5973_v22  ;;  %v5380_v22 = vpack.i.bf16 %v8830_v28, %v8828_v14 }
 0x48e   :  { %5346 = vrot.lane.b32.xlu0 %v8737_v32, %s6169_s2  ;;  %v2803_v32 = vld [vmem:[#allocation2 + $0x21] sm:$0xff]  ;;  %4283 = vmatprep.subr.bf16.mxu1 %v11134_v56 }
 0x48f   :  { %v5375_v30 = vpack.i.bf16 %v2804_v38, %v2803_v32  ;;  %v8861_v32 = vld [vmem:[#allocation2 + $0x47] sm:$0xff]  ;;  %v5405_v38 = vpack.i.bf16 %v8618_v0, %v8616_v26  ;;  %v5435_v0 = vpack.i.bf16 %v8695_v42, %v8693_v53 }
 0x491   :  { %5361 = vrot.lane.b32.xlu1 %v5360_v23, %s6170_s5  ;;  %v5365_v23 = vpack.i.bf16 %v8792_v18, %v8783_v55  ;;  %4284 = vmatpush1.bf16.msra.mxu1 %v5974_v61  ;;  %v5977_v61 = vld [vmem:[#allocation8 + $0x40] sm:$0xff]  }
 0x492   :  { %5356 = vrot.lane.b32.xlu0 %v8754_v13, %s6169_s2  ;;  %v8832_v13 = vld [vmem:[#allocation2 + $0x151] sm:$0xff]  ;;  %4285 = vmatprep.subr.bf16.mxu1 %v11134_v56 }
 0x493   :  { %11148 = vst [vmem:[#allocation113_spill] sm:$0xff] %v8832_v13 }
 0x495   :  { %5371 = vrot.lane.b32.xlu1 %v8648_v33, %s6165_s1  ;;  %4286 = vmatpush1.bf16.msra.mxu1 %v5975_v46  ;;  %v5976_v33 = vld [vmem:[#allocation8] sm:$0xff]   ;;  %v8878_v46 = vld [vmem:[#allocation2 + $0x57] sm:$0xff] }
 0x496   :  { %5366 = vrot.lane.b32.xlu0 %v5365_v23, %s6171_s27  ;;  %4287 = vmatprep.subr.bf16.mxu1 %v11134_v56  ;;  %v8859_v23 = vld [vmem:[#allocation2 + $0x3f] sm:$0xff] }
 0x499   :  { %5381 = vrot.lane.b32.xlu1 %v5380_v22, %s6174_s29  ;;  %4288 = vmatpush1.bf16.msra.mxu1 %v5976_v33  ;;  %v5465_v33 = vpack.i.bf16 %v8699_v63, %v8697_v5 }
 0x49a   :  { %5376 = vrot.lane.b32.xlu0 %v5375_v30, %s6173_s28  ;;  %4303 = vmatprep.subr.bf16.mxu1 %v11134_v56  ;;  %v8892_v56 = vld [vmem:[#allocation2 + $0x5f] sm:$0xff] }
 0x49d   :  { %5391 = vrot.lane.b32.xlu1 %v5375_v30, %s6170_s5  ;;  %v5410_v30 = vpack.i.bf16 %v8861_v32, %v8859_v23  ;;  %4304 = vmatpush2.bf16.msra.mxu1 %v5977_v61  ;;  %v8908_v61 = vld [vmem:[#allocation2 + $0x6f] sm:$0xff] }
 0x49e   :  { %5386 = vrot.lane.b32.xlu0 %v8642_v60, %s6175_s30 }
 0x4a1   :  { %5401 = vrot.lane.b32.xlu1 %v8642_v60, %s6165_s1  ;;  %v8876_v60 = vld [vmem:[#allocation2 + $0x4f] sm:$0xff] }
 0x4a2   :  { %5396 = vrot.lane.b32.xlu0 %v5380_v22, %s6171_s27  ;;  %v5440_v26 = vpack.i.bf16 %v8878_v46, %v8876_v60 }
 0x4a5   :  { %5411 = vrot.lane.b32.xlu1 %v5410_v30, %s6174_s29 }
 0x4a6   :  { %5406 = vrot.lane.b32.xlu0 %v5405_v38, %s6173_s28 }
 0x4a9   :  { %5421 = vrot.lane.b32.xlu1 %v5405_v38, %s6170_s5 }
 0x4aa   :  { %5416 = vrot.lane.b32.xlu0 %v8659_v17, %s6175_s30 }
 0x4ad   :  { %5431 = vrot.lane.b32.xlu1 %v8659_v17, %s6165_s1  ;;  %v8894_v17 = vld [vmem:[#allocation2 + $0x67] sm:$0xff] }
 0x4ae   :  { %5426 = vrot.lane.b32.xlu0 %v5410_v30, %s6171_s27  ;;  %v5470_v22 = vpack.i.bf16 %v8894_v17, %v8892_v56  ;;  %v5495_v30 = vpack.i.bf16 %v8711_v37, %v8705_v47 }
 0x4b1   :  { %5441 = vrot.lane.b32.xlu1 %v5440_v26, %s6174_s29 }
 0x4b2   :  { %5436 = vrot.lane.b32.xlu0 %v5435_v0, %s6173_s28 }
 0x4b5   :  { %5451 = vrot.lane.b32.xlu1 %v5435_v0, %s6170_s5 }
 0x4b6   :  { %5446 = vrot.lane.b32.xlu0 %v8651_v7, %s6175_s30 }
 0x4b9   :  { %5461 = vrot.lane.b32.xlu1 %v8651_v7, %s6165_s1  ;;  %v8910_v7 = vld [vmem:[#allocation2 + $0x77] sm:$0xff] }
 0x4ba   :  { %5456 = vrot.lane.b32.xlu0 %v5440_v26, %s6171_s27  ;;  %v5500_v38 = vpack.i.bf16 %v8910_v7, %v8908_v61  ;;  %v8924_v26 = vld [vmem:[#allocation2 + $0x7f] sm:$0xff] }
 0x4bb   :  { %11149 = vst [vmem:[#allocation114_spill] sm:$0xff] %v8924_v26 }
 0x4bd   :  { %5471 = vrot.lane.b32.xlu1 %v5470_v22, %s6174_s29 }
 0x4be   :  { %5466 = vrot.lane.b32.xlu0 %v5465_v33, %s6173_s28 }
 0x4c1   :  { %5481 = vrot.lane.b32.xlu1 %v5465_v33, %s6170_s5  ;;  %v8940_v33 = vpop.permute.xlu1 %5261 }
 0x4c2   :  { %5476 = vrot.lane.b32.xlu0 %v8657_v34, %s6175_s30 }
 0x4c5   :  { %5491 = vrot.lane.b32.xlu1 %v8657_v34, %s6165_s1  ;;  %v8926_v34 = vld [vmem:[#allocation2 + $0x87] sm:$0xff] }
 0x4c6   :  { %5486 = vrot.lane.b32.xlu0 %v5470_v22, %s6171_s27  ;;  %11150 = vst [vmem:[#allocation135_spill] sm:$0xff] %v8926_v34  ;;  %v5530_v0 = vpack.i.bf16 %v8926_v34, %v8924_v26  ;;  %v5525_v22 = vpack.i.bf16 %v8717_v41, %v8715_v45 }
 0x4c9   :  { %5501 = vrot.lane.b32.xlu1 %v5500_v38, %s6174_s29 }
 0x4ca   :  { %5496 = vrot.lane.b32.xlu0 %v5495_v30, %s6173_s28 }
 0x4cd   :  { %5511 = vrot.lane.b32.xlu1 %v5495_v30, %s6170_s5 }
 0x4ce   :  { %5506 = vrot.lane.b32.xlu0 %v8661_v31, %s6175_s30 }
 0x4d1   :  { %5521 = vrot.lane.b32.xlu1 %v8661_v31, %s6165_s1  ;;  %v8942_v31 = vld [vmem:[#allocation2 + $0x8f] sm:$0xff] }
 0x4d2   :  { %5516 = vrot.lane.b32.xlu0 %v5500_v38, %s6171_s27  ;;  %11151 = vst [vmem:[#allocation136_spill] sm:$0xff] %v8942_v31  ;;  %v8944_v38 = vld [vmem:[#allocation2 + $0x97] sm:$0xff] }
 0x4d3   :  { %11152 = vst [vmem:[#allocation60_spill] sm:$0xff] %v8944_v38 }
 0x4d5   :  { %5531 = vrot.lane.b32.xlu1 %v5530_v0, %s6174_s29 }
 0x4d6   :  { %5526 = vrot.lane.b32.xlu0 %v5525_v22, %s6173_s28 }
 0x4d9   :  { %5541 = vrot.lane.b32.xlu1 %v5525_v22, %s6170_s5  ;;  %v5560_v22 = vpack.i.bf16 %v8944_v38, %v8942_v31 }
 0x4da   :  { %5536 = vrot.lane.b32.xlu0 %v8663_v52, %s6175_s30 }
 0x4dd   :  { %5551 = vrot.lane.b32.xlu1 %v8663_v52, %s6165_s1 }
 0x4de   :  { %5546 = vrot.lane.b32.xlu0 %v5530_v0, %s6171_s27 }
 0x4df   :  { %v8949_v30 = vpop.permute.xlu1 %5271 }
 0x4e0   :  { %v8951_v16 = vpop.permute.xlu0 %5266 }
 0x4e1   :  { %5561 = vrot.lane.b32.xlu1 %v5560_v22, %s6174_s29 }
 0x4e2   :  { %5556 = vrot.lane.b32.xlu0 %v5555_v24, %s6173_s28 }
 0x4e3   :  { %v8959_v21 = vpop.permute.xlu1 %5281 }
 0x4e4   :  { %v8961_v13 = vpop.permute.xlu0 %5276 }
 0x4e5   :  { %5571 = vrot.lane.b32.xlu1 %v5555_v24, %s6170_s5  ;;  %v5590_v24 = vpack.i.bf16 %v8972_v8, %v8970_v43  ;;  %v2741_v43 = vld [vmem:[#allocation2 + $0xaf] sm:$0xff]  ;;  %v2742_v8 = vld [vmem:[#allocation2 + $0xb7] sm:$0xff] }
 0x4e6   :  { %5566 = vrot.lane.b32.xlu0 %v8669_v54, %s6175_s30 }
 0x4e7   :  { %v8966_v52 = vpop.permute.xlu1 %5291 }
 0x4e8   :  { %v8968_v0 = vpop.permute.xlu0 %5286 }
 0x4e9   :  { %5581 = vrot.lane.b32.xlu1 %v8669_v54, %s6165_s1 }
 0x4ea   :  { %5576 = vrot.lane.b32.xlu0 %v5560_v22, %s6171_s27 }
 0x4eb   :  { %v8977_v3 = vpop.permute.xlu1 %5301 }
 0x4ec   :  { %11155 = vst [vmem:[#allocation116_spill] sm:$0xff] %v8977_v3  ;;  %v8979_v20 = vpop.permute.xlu0 %5296 }
 0x4ed   :  { %11156 = vst [vmem:[#allocation137_spill] sm:$0xff] %v8979_v20  ;;  %5591 = vrot.lane.b32.xlu1 %v5590_v24, %s6174_s29 }
 0x4ee   :  { %5586 = vrot.lane.b32.xlu0 %v5585_v2, %s6173_s28 }
 0x4ef   :  { %v8987_v31 = vpop.permute.xlu1 %5311 }
 0x4f0   :  { %11157 = vst [vmem:[#allocation138_spill] sm:$0xff] %v8987_v31  ;;  %v8989_v38 = vpop.permute.xlu0 %5306 }
 0x4f1   :  { %11158 = vst [vmem:[#allocation62_spill] sm:$0xff] %v8989_v38  ;;  %5601 = vrot.lane.b32.xlu1 %v5585_v2, %s6170_s5  ;;  %v5620_v38 = vpack.i.bf16 %v2742_v8, %v2741_v43  ;;  %v5615_v2 = vpack.i.bf16 %v8747_v15, %v8745_v51  ;;  %v2743_v43 = vld [vmem:[#allocation2 + $0xbf] sm:$0xff]  ;;  %v2744_v8 = vld [vmem:[#allocation2 + $0xc7] sm:$0xff]  ;;  %v2721_v51 = vld [vmem:[#allocation2 + $0xf] sm:$0xff] }
 0x4f2   :  { %5596 = vrot.lane.b32.xlu0 %v8671_v35, %s6175_s30 }
 0x4f3   :  { %v8994_v54 = vpop.permute.xlu1 %5321 }
 0x4f4   :  { %11159 = vst [vmem:[#allocation63_spill] sm:$0xff] %v8994_v54  ;;  %v8996_v22 = vpop.permute.xlu0 %5316 }
 0x4f5   :  { %11160 = vst [vmem:[#allocation117_spill] sm:$0xff] %v8996_v22  ;;  %5611 = vrot.lane.b32.xlu1 %v8671_v35, %s6165_s1 }
 0x4f6   :  { %5606 = vrot.lane.b32.xlu0 %v5590_v24, %s6171_s27 }
 0x4f7   :  { %v9001_v3 = vpop.permute.xlu1 %5331 }
 0x4f8   :  { %11161 = vst [vmem:[#allocation118_spill] sm:$0xff] %v9001_v3  ;;  %v9003_v31 = vpop.permute.xlu0 %5326 }
 0x4f9   :  { %11162 = vst [vmem:[#allocation64_spill] sm:$0xff] %v9003_v31  ;;  %5621 = vrot.lane.b32.xlu1 %v5620_v38, %s6174_s29  ;;  %v5264_v31 = vunpack.i.h.bf16 %v8940_v33 }
 0x4fa   :  { %5616 = vrot.lane.b32.xlu0 %v5615_v2, %s6173_s28 }
 0x4fb   :  { %v9009_v54 = vpop.permute.xlu1 %5341 }
 0x4fc   :  { %11163 = vst [vmem:[#allocation65_spill] sm:$0xff] %v9009_v54  ;;  %v9011_v22 = vpop.permute.xlu0 %5336 }
 0x4fd   :  { %11164 = vst [vmem:[#allocation119_spill] sm:$0xff] %v9011_v22  ;;  %5631 = vrot.lane.b32.xlu1 %v5615_v2, %s6170_s5  ;;  %v5650_v22 = vpack.i.bf16 %v2744_v8, %v2743_v43  ;;  %v5645_v2 = vpack.i.bf16 %v8763_v50, %v8761_v58 }
 0x4fe   :  { %5626 = vrot.lane.b32.xlu0 %v8673_v1, %s6175_s30 }
 0x4ff   :  { %v9016_v35 = vpop.permute.xlu1 %5351 }
 0x500   :  { %11165 = vst [vmem:[#allocation120_spill] sm:$0xff] %v9016_v35  ;;  %v9018_v24 = vpop.permute.xlu0 %5346  ;;  %v5263_v35 = vunpack.i.l.bf16 %v8940_v33 }
 0x501   :  { %11166 = vst [vmem:[#allocation83_spill] sm:$0xff] %v9018_v24  ;;  %5641 = vrot.lane.b32.xlu1 %v8673_v1, %s6165_s1  ;;  %v2722_v24 = vld [vmem:[#allocation2 + $0x17] sm:$0xff] }
 0x502   :  { %5636 = vrot.lane.b32.xlu0 %v5620_v38, %s6171_s27  ;;  %v3822_v43 = vsel %vm85_vm0, %v2722_v24, %v5264_v31  ;;  %v2745_v31 = vld [vmem:[#allocation2 + $0xcf] sm:$0xff]  ;;  %v2746_v24 = vld [vmem:[#allocation2 + $0xd7] sm:$0xff] }
 0x503   :  { %v5362_v3 = vpop.permute.xlu1 %5361 }
 0x504   :  { %v9023_v54 = vpop.permute.xlu0 %5356  ;;  %v5364_v15 = vunpack.i.h.bf16 %v5362_v3  ;;  %v5363_v26 = vunpack.i.l.bf16 %v5362_v3 }
 0x505   :  { %11167 = vst [vmem:[#allocation34_spill] sm:$0xff] %v9023_v54  ;;  %5651 = vrot.lane.b32.xlu1 %v5650_v22, %s6174_s29  ;;  %v3821_v54 = vsel %vm85_vm0, %v2721_v51, %v5263_v35 }
 0x506   :  { %5646 = vrot.lane.b32.xlu0 %v5645_v2, %s6173_s28  ;;  %v3862_v50 = vsel %vm1361_vm1, %v3822_v43, %v5364_v15  ;;  %v3861_v33 = vsel %vm1361_vm1, %v3821_v54, %v5363_v26 }
 0x507   :  { %v5372_v1 = vpop.permute.xlu1 %5371 }
 0x508   :  { %v5367_v38 = vpop.permute.xlu0 %5366  ;;  %v5374_v34 = vunpack.i.h.bf16 %v5372_v1  ;;  %v5373_v20 = vunpack.i.l.bf16 %v5372_v1 }
 0x509   :  { %v5369_v8 = vunpack.i.h.bf16 %v5367_v38  ;;  %v5368_v58 = vunpack.i.l.bf16 %v5367_v38  ;;  %5661 = vrot.lane.b32.xlu1 %v5645_v2, %s6170_s5 }
 0x50a   :  { %5656 = vrot.lane.b32.xlu0 %v8675_v6, %s6175_s30 }
 0x50b   :  { %v3902_v3 = vsel %vm1402_vm2, %v3862_v50, %v5369_v8  ;;  %v3901_v36 = vsel %vm1402_vm2, %v3861_v33, %v5368_v58  ;;  %v5382_v51 = vpop.permute.xlu1 %5381  ;;  %v5680_v8 = vpack.i.bf16 %v2746_v24, %v2745_v31  ;;  %v5675_v33 = vpack.i.bf16 %v8769_v10, %v8765_v9 }
 0x50c   :  { %v5377_v35 = vpop.permute.xlu0 %5376  ;;  %v5384_v15 = vunpack.i.h.bf16 %v5382_v51  ;;  %v5383_v43 = vunpack.i.l.bf16 %v5382_v51  ;;  %v3941_v26 = vsel %vm1443_vm3, %v3901_v36, %v5373_v20  ;;  %v3942_v54 = vsel %vm1443_vm3, %v3902_v3, %v5374_v34 }
 0x50d   :  { %v5379_v38 = vunpack.i.h.bf16 %v5377_v35  ;;  %v5378_v44 = vunpack.i.l.bf16 %v5377_v35  ;;  %5671 = vrot.lane.b32.xlu1 %v8675_v6, %s6165_s1  ;;  %v5269_v51 = vunpack.i.h.bf16 %v8951_v16  ;;  %v5268_v20 = vunpack.i.l.bf16 %v8951_v16 }
 0x50e   :  { %5666 = vrot.lane.b32.xlu0 %v5650_v22, %s6171_s27 }
 0x50f   :  { %v3981_v50 = vsel %vm1484_vm4, %v3941_v26, %v5378_v44  ;;  %v3982_v58 = vsel %vm1484_vm4, %v3942_v54, %v5379_v38  ;;  %v5392_v2 = vpop.permute.xlu1 %5391  ;;  %v3823_v16 = vsel %vm85_vm0, %v8783_v55, %v5268_v20  ;;  %v3824_v54 = vsel %vm85_vm0, %v8792_v18, %v5269_v51 }
 0x510   :  { %v5387_v1 = vpop.permute.xlu0 %5386  ;;  %v5394_v3 = vunpack.i.h.bf16 %v5392_v2  ;;  %v5393_v6 = vunpack.i.l.bf16 %v5392_v2  ;;  %v4021_v44 = vsel %vm1525_vm5, %v3981_v50, %v5383_v43  ;;  %v4022_v22 = vsel %vm1525_vm5, %v3982_v58, %v5384_v15 }
 0x511   :  { %v5389_v36 = vunpack.i.h.bf16 %v5387_v1  ;;  %v5388_v34 = vunpack.i.l.bf16 %v5387_v1  ;;  %5681 = vrot.lane.b32.xlu1 %v5680_v8, %s6174_s29  ;;  %v11168_v18 = vpack.c.bf16 %v8695_v42, %v8693_v53 }
 0x512   :  { %5676 = vrot.lane.b32.xlu0 %v5675_v33, %s6173_s28  ;;  %v3863_v9 = vsel %vm1361_vm1, %v3823_v16, %v5393_v6  ;;  %v3864_v43 = vsel %vm1361_vm1, %v3824_v54, %v5394_v3  ;;  %v5273_v16 = vunpack.i.l.bf16 %v8949_v30 }
 0x513   :  { %v4061_v35 = vsel %vm1566_vm6, %v4021_v44, %v5388_v34  ;;  %v4062_v31 = vsel %vm1566_vm6, %v4022_v22, %v5389_v36  ;;  %v5402_v24 = vpop.permute.xlu1 %5401  ;;  %v2747_v36 = vld [vmem:[#allocation2 + $0xdf] sm:$0xff]  ;;  %v2748_v34 = vld [vmem:[#allocation2 + $0xe7] sm:$0xff] }
 0x514   :  { %v5397_v38 = vpop.permute.xlu0 %5396  ;;  %v4101_v26 = vpack.c.bf16 %v4062_v31, %v4061_v35  ;;  %v5404_v15 = vunpack.i.h.bf16 %v5402_v24  ;;  %v5403_v50 = vunpack.i.l.bf16 %v5402_v24  ;;  %v5710_v24 = vpack.i.bf16 %v2748_v34, %v2747_v36 }
 0x515   :  { %v5399_v2 = vunpack.i.h.bf16 %v5397_v38  ;;  %v5398_v1 = vunpack.i.l.bf16 %v5397_v38  ;;  %5691 = vrot.lane.b32.xlu1 %v5675_v33, %s6170_s5  ;;  %v5705_v38 = vpack.i.bf16 %v8773_v39, %v8771_v11 }
 0x516   :  { %5686 = vrot.lane.b32.xlu0 %v8681_v25, %s6175_s30  ;;  %4306 = vmatmul.mubr.bf16.vlgmr.msra.gmra.mxu1 %v4101_v26  ;;  %v5274_v26 = vunpack.i.h.bf16 %v8949_v30  ;;  %v3825_v30 = vsel %vm85_vm0, %v8828_v14, %v5273_v16 }
 0x517   :  { %v3904_v58 = vsel %vm1402_vm2, %v3864_v43, %v5399_v2  ;;  %v3903_v55 = vsel %vm1402_vm2, %v3863_v9, %v5398_v1  ;;  %5222 = vmatprep.mubr.msk.bf16.mxu1 %vm85_vm0, %v11168_v18  ;;  %v5412_v51 = vpop.permute.xlu1 %5411 }
 0x518   :  { %v5407_v20 = vpop.permute.xlu0 %5406  ;;  %v5414_v33 = vunpack.i.h.bf16 %v5412_v51  ;;  %v5413_v44 = vunpack.i.l.bf16 %v5412_v51  ;;  %v3943_v22 = vsel %vm1443_vm3, %v3903_v55, %v5403_v50  ;;  %v3944_v35 = vsel %vm1443_vm3, %v3904_v58, %v5404_v15 }
 0x519   :  { %v5409_v3 = vunpack.i.h.bf16 %v5407_v20  ;;  %v5408_v6 = vunpack.i.l.bf16 %v5407_v20  ;;  %5701 = vrot.lane.b32.xlu1 %v8681_v25, %s6165_s1  ;;  %v3826_v51 = vsel %vm85_vm0, %v8830_v28, %v5274_v26  ;;  %v11169_v28 = vpack.c.bf16 %v8699_v63, %v8697_v5 }
 0x51a   :  { %5696 = vrot.lane.b32.xlu0 %v5680_v8, %s6171_s27 }
 0x51b   :  { %v3983_v53 = vsel %vm1484_vm4, %v3943_v22, %v5408_v6  ;;  %v3984_v42 = vsel %vm1484_vm4, %v3944_v35, %v5409_v3  ;;  %v5422_v9 = vpop.permute.xlu1 %5421 }
 0x51c   :  { %v5417_v31 = vpop.permute.xlu0 %5416  ;;  %v5424_v1 = vunpack.i.h.bf16 %v5422_v9  ;;  %v5423_v25 = vunpack.i.l.bf16 %v5422_v9  ;;  %v4023_v8 = vsel %vm1525_vm5, %v3983_v53, %v5413_v44  ;;  %v4024_v43 = vsel %vm1525_vm5, %v3984_v42, %v5414_v33  ;;  %v2749_v53 = vld [vmem:[#allocation2 + $0xef] sm:$0xff]  ;;  %v2750_v42 = vld [vmem:[#allocation2 + $0xf7] sm:$0xff] }
 0x51d   :  { %v5419_v54 = vunpack.i.h.bf16 %v5417_v31  ;;  %v5418_v2 = vunpack.i.l.bf16 %v5417_v31  ;;  %5711 = vrot.lane.b32.xlu1 %v5710_v24, %s6174_s29 }
 0x51e   :  { %5706 = vrot.lane.b32.xlu0 %v5705_v38, %s6173_s28  ;;  %v3866_v34 = vsel %vm1361_vm1, %v3826_v51, %v5424_v1  ;;  %v3865_v3 = vsel %vm1361_vm1, %v3825_v30, %v5423_v25  ;;  %v5740_v25 = vpack.i.bf16 %v2750_v42, %v2749_v53 }
 0x51f   :  { %v4063_v15 = vsel %vm1566_vm6, %v4023_v8, %v5418_v2  ;;  %v4064_v50 = vsel %vm1566_vm6, %v4024_v43, %v5419_v54  ;;  %v5432_v58 = vpop.permute.xlu1 %5431  ;;  %v5735_v8 = vpack.i.bf16 %v8781_v49, %v8779_v57  ;;  %v5279_v43 = vunpack.i.h.bf16 %v8961_v13 }
 0x520   :  { %v5427_v55 = vpop.permute.xlu0 %5426  ;;  %v4103_v18 = vpack.c.bf16 %v4064_v50, %v4063_v15  ;;  %v5434_v6 = vunpack.i.h.bf16 %v5432_v58  ;;  %v5433_v33 = vunpack.i.l.bf16 %v5432_v58  ;;  %v5278_v15 = vunpack.i.l.bf16 %v8961_v13 }
 0x521   :  { %v5429_v20 = vunpack.i.h.bf16 %v5427_v55  ;;  %v5428_v36 = vunpack.i.l.bf16 %v5427_v55  ;;  %5721 = vrot.lane.b32.xlu1 %v5705_v38, %s6170_s5  ;;  %v3828_v13 = vsel %vm85_vm0, %v8861_v32, %v5279_v43  ;;  %v11171_v43 = vld [vmem:[#allocation132_spill] sm:$0xff] }
 0x522   :  { %5716 = vrot.lane.b32.xlu0 %v8683_v62, %s6175_s30  ;;  %4314 = vmatmul.mubr.bf16.gmra.mxu1 %v4103_v18 }
 0x523   :  { %v3906_v44 = vsel %vm1402_vm2, %v3866_v34, %v5429_v20  ;;  %v3905_v14 = vsel %vm1402_vm2, %v3865_v3, %v5428_v36  ;;  %5223 = vmatprep.mubr.msk.bf16.mxu1 %vm85_vm0, %v11169_v28  ;;  %v5442_v22 = vpop.permute.xlu1 %5441  ;;  %v3827_v3 = vsel %vm85_vm0, %v8859_v23, %v5278_v15  ;;  %v11170_v23 = vpack.c.bf16 %v8711_v37, %v8705_v47  ;;  %v11172_v15 = vld [vmem:[#allocation56_spill] sm:$0xff] }
 0x524   :  { %v5437_v35 = vpop.permute.xlu0 %5436  ;;  %v5444_v38 = vunpack.i.h.bf16 %v5442_v22  ;;  %v5443_v26 = vunpack.i.l.bf16 %v5442_v22  ;;  %v3945_v16 = vsel %vm1443_vm3, %v3905_v14, %v5433_v33  ;;  %v3946_v54 = vsel %vm1443_vm3, %v3906_v44, %v5434_v6 }
 0x525   :  { %v5439_v9 = vunpack.i.h.bf16 %v5437_v35  ;;  %v5438_v31 = vunpack.i.l.bf16 %v5437_v35  ;;  %5731 = vrot.lane.b32.xlu1 %v8683_v62, %s6165_s1 }
 0x526   :  { %5726 = vrot.lane.b32.xlu0 %v5710_v24, %s6171_s27 }
 0x527   :  { %v3985_v5 = vsel %vm1484_vm4, %v3945_v16, %v5438_v31  ;;  %v3986_v63 = vsel %vm1484_vm4, %v3946_v54, %v5439_v9  ;;  %v5452_v2 = vpop.permute.xlu1 %5451  ;;  %v2751_v9 = vld [vmem:[#allocation2 + $0xff] sm:$0xff]  ;;  %v2752_v31 = vld [vmem:[#allocation2 + $0x107] sm:$0xff] }
 0x528   :  { %v5447_v1 = vpop.permute.xlu0 %5446  ;;  %v5454_v55 = vunpack.i.h.bf16 %v5452_v2  ;;  %v5453_v62 = vunpack.i.l.bf16 %v5452_v2  ;;  %v4025_v24 = vsel %vm1525_vm5, %v3985_v5, %v5443_v26  ;;  %v4026_v18 = vsel %vm1525_vm5, %v3986_v63, %v5444_v38 }
 0x529   :  { %v5449_v50 = vunpack.i.h.bf16 %v5447_v1  ;;  %v5448_v58 = vunpack.i.l.bf16 %v5447_v1  ;;  %5741 = vrot.lane.b32.xlu1 %v5740_v25, %s6174_s29 }
 0x52a   :  { %5736 = vrot.lane.b32.xlu0 %v5735_v8, %s6173_s28  ;;  %v3867_v44 = vsel %vm1361_vm1, %v3827_v3, %v5453_v62  ;;  %v3868_v14 = vsel %vm1361_vm1, %v3828_v13, %v5454_v55  ;;  %v5283_v55 = vunpack.i.l.bf16 %v8959_v21 }
 0x52b   :  { %v4065_v30 = vsel %vm1566_vm6, %v4025_v24, %v5448_v58  ;;  %v4066_v51 = vsel %vm1566_vm6, %v4026_v18, %v5449_v50  ;;  %v5462_v20 = vpop.permute.xlu1 %5461  ;;  %v5765_v50 = vpack.i.bf16 %v11172_v15, %v11171_v43  ;;  %v5284_v58 = vunpack.i.h.bf16 %v8959_v21 }
 0x52c   :  { %v5457_v36 = vpop.permute.xlu0 %5456  ;;  %v4105_v34 = vpack.c.bf16 %v4066_v51, %v4065_v30  ;;  %v5464_v28 = vunpack.i.h.bf16 %v5462_v20  ;;  %v5463_v22 = vunpack.i.l.bf16 %v5462_v20  ;;  %v3829_v3 = vsel %vm85_vm0, %v8876_v60, %v5283_v55 }
 0x52d   :  { %v5459_v6 = vunpack.i.h.bf16 %v5457_v36  ;;  %v5458_v33 = vunpack.i.l.bf16 %v5457_v36  ;;  %5751 = vrot.lane.b32.xlu1 %v5735_v8, %s6170_s5  ;;  %v5770_v8 = vpack.i.bf16 %v2752_v31, %v2751_v9  ;;  %v3830_v21 = vsel %vm85_vm0, %v8878_v46, %v5284_v58  ;;  %v2754_v9 = vld [vmem:[#allocation2 + $0x117] sm:$0xff] }
 0x52e   :  { %5746 = vrot.lane.b32.xlu0 %v8685_v59, %s6175_s30  ;;  %4322 = vmatmul.mubr.bf16.gmra.mxu1 %v4105_v34  ;;  %v11174_v60 = vpack.c.bf16 %v8717_v41, %v8715_v45 }
 0x52f   :  { %v3908_v35 = vsel %vm1402_vm2, %v3868_v14, %v5459_v6  ;;  %v3907_v32 = vsel %vm1402_vm2, %v3867_v44, %v5458_v33  ;;  %5224 = vmatprep.mubr.msk.bf16.mxu1 %vm85_vm0, %v11170_v23  ;;  %v5472_v53 = vpop.permute.xlu1 %5471 }
 0x530   :  { %v5467_v42 = vpop.permute.xlu0 %5466  ;;  %v5474_v16 = vunpack.i.h.bf16 %v5472_v53  ;;  %v5473_v54 = vunpack.i.l.bf16 %v5472_v53  ;;  %v3947_v5 = vsel %vm1443_vm3, %v3907_v32, %v5463_v22  ;;  %v3948_v63 = vsel %vm1443_vm3, %v3908_v35, %v5464_v28  ;;  %v11173_v35 = vld [vmem:[#allocation52_spill] sm:$0xff] }
 0x531   :  { %v5469_v38 = vunpack.i.h.bf16 %v5467_v42  ;;  %v5468_v26 = vunpack.i.l.bf16 %v5467_v42  ;;  %5761 = vrot.lane.b32.xlu1 %v8685_v59, %s6165_s1  ;;  %v2753_v42 = vld [vmem:[#allocation2 + $0x10f] sm:$0xff] }
 0x532   :  { %5756 = vrot.lane.b32.xlu0 %v5740_v25, %s6171_s27 }
 0x533   :  { %v3987_v47 = vsel %vm1484_vm4, %v3947_v5, %v5468_v26  ;;  %v3988_v37 = vsel %vm1484_vm4, %v3948_v63, %v5469_v38  ;;  %v5482_v2 = vpop.permute.xlu1 %5481 }
 0x534   :  { %v5477_v1 = vpop.permute.xlu0 %5476  ;;  %v5484_v18 = vunpack.i.h.bf16 %v5482_v2  ;;  %v5483_v59 = vunpack.i.l.bf16 %v5482_v2  ;;  %v4027_v25 = vsel %vm1525_vm5, %v3987_v47, %v5473_v54  ;;  %v4028_v30 = vsel %vm1525_vm5, %v3988_v37, %v5474_v16 }
 0x535   :  { %v5479_v62 = vunpack.i.h.bf16 %v5477_v1  ;;  %v5478_v24 = vunpack.i.l.bf16 %v5477_v1  ;;  %5771 = vrot.lane.b32.xlu1 %v5770_v8, %s6174_s29  ;;  %v5800_v37 = vpack.i.bf16 %v2754_v9, %v2753_v42  ;;  %v5795_v2 = vpack.i.bf16 %v8800_v27, %v8794_v48 }
 0x536   :  { %5766 = vrot.lane.b32.xlu0 %v5765_v50, %s6173_s28  ;;  %v3870_v44 = vsel %vm1361_vm1, %v3830_v21, %v5484_v18  ;;  %v3869_v14 = vsel %vm1361_vm1, %v3829_v3, %v5483_v59  ;;  %v5289_v1 = vunpack.i.h.bf16 %v8968_v0 }
 0x537   :  { %v4067_v51 = vsel %vm1566_vm6, %v4027_v25, %v5478_v24  ;;  %v4068_v20 = vsel %vm1566_vm6, %v4028_v30, %v5479_v62  ;;  %v5492_v36 = vpop.permute.xlu1 %5491 }
 0x538   :  { %v5487_v34 = vpop.permute.xlu0 %5486  ;;  %v4107_v13 = vpack.c.bf16 %v4068_v20, %v4067_v51  ;;  %v5494_v28 = vunpack.i.h.bf16 %v5492_v36  ;;  %v5493_v22 = vunpack.i.l.bf16 %v5492_v36 }
 0x539   :  { %v5489_v6 = vunpack.i.h.bf16 %v5487_v34  ;;  %v5488_v33 = vunpack.i.l.bf16 %v5487_v34  ;;  %5781 = vrot.lane.b32.xlu1 %v5765_v50, %s6170_s5  ;;  %v5288_v50 = vunpack.i.l.bf16 %v8968_v0  ;;  %v3832_v0 = vsel %vm85_vm0, %v8894_v17, %v5289_v1 }
 0x53a   :  { %5776 = vrot.lane.b32.xlu0 %v11173_v35, %s6175_s30  ;;  %4330 = vmatmul.mubr.bf16.gmra.mxu1 %v4107_v13 }
 0x53b   :  { %v3910_v32 = vsel %vm1402_vm2, %v3870_v44, %v5489_v6  ;;  %v3909_v46 = vsel %vm1402_vm2, %v3869_v14, %v5488_v33  ;;  %5225 = vmatprep.mubr.msk.bf16.mxu1 %vm85_vm0, %v11174_v60  ;;  %v5502_v23 = vpop.permute.xlu1 %5501  ;;  %v3831_v36 = vsel %vm85_vm0, %v8892_v56, %v5288_v50  ;;  %v11175_v44 = vld [vmem:[#allocation53_spill] sm:$0xff]  ;;  %v11176_v56 = vpack.c.bf16 %v8721_v12, %v8719_v40 }
 0x53c   :  { %v5497_v53 = vpop.permute.xlu0 %5496  ;;  %v5504_v26 = vunpack.i.h.bf16 %v5502_v23  ;;  %v5503_v16 = vunpack.i.l.bf16 %v5502_v23  ;;  %v3949_v54 = vsel %vm1443_vm3, %v3909_v46, %v5493_v22  ;;  %v3950_v5 = vsel %vm1443_vm3, %v3910_v32, %v5494_v28  ;;  %v2756_v32 = vld [vmem:[#allocation2 + $0x127] sm:$0xff] }
 0x53d   :  { %v5499_v31 = vunpack.i.h.bf16 %v5497_v53  ;;  %v5498_v38 = vunpack.i.l.bf16 %v5497_v53  ;;  %5791 = vrot.lane.b32.xlu1 %v11173_v35, %s6165_s1  ;;  %v2755_v35 = vld [vmem:[#allocation2 + $0x11f] sm:$0xff] }
 0x53e   :  { %5786 = vrot.lane.b32.xlu0 %v5770_v8, %s6171_s27 }
 0x53f   :  { %v3989_v41 = vsel %vm1484_vm4, %v3949_v54, %v5498_v38  ;;  %v3990_v45 = vsel %vm1484_vm4, %v3950_v5, %v5499_v31  ;;  %v5512_v63 = vpop.permute.xlu1 %5511  ;;  %v5294_v54 = vunpack.i.h.bf16 %v8966_v52  ;;  %v5293_v5 = vunpack.i.l.bf16 %v8966_v52 }
 0x540   :  { %v5507_v47 = vpop.permute.xlu0 %5506  ;;  %v5514_v62 = vunpack.i.h.bf16 %v5512_v63  ;;  %v5513_v24 = vunpack.i.l.bf16 %v5512_v63  ;;  %v4029_v8 = vsel %vm1525_vm5, %v3989_v41, %v5503_v16  ;;  %v4030_v18 = vsel %vm1525_vm5, %v3990_v45, %v5504_v26 }
 0x541   :  { %v5509_v58 = vunpack.i.h.bf16 %v5507_v47  ;;  %v5508_v55 = vunpack.i.l.bf16 %v5507_v47  ;;  %5801 = vrot.lane.b32.xlu1 %v5800_v37, %s6174_s29  ;;  %v5830_v26 = vpack.i.bf16 %v2756_v32, %v2755_v35  ;;  %v5825_v16 = vpack.i.bf16 %v8804_v19, %v8802_v29 }
 0x542   :  { %5796 = vrot.lane.b32.xlu0 %v5795_v2, %s6173_s28  ;;  %v3871_v21 = vsel %vm1361_vm1, %v3831_v36, %v5513_v24  ;;  %v3872_v3 = vsel %vm1361_vm1, %v3832_v0, %v5514_v62  ;;  %v3834_v52 = vsel %vm85_vm0, %v8910_v7, %v5294_v54  ;;  %v3833_v24 = vsel %vm85_vm0, %v8908_v61, %v5293_v5  ;;  %v11178_v61 = vld [vmem:[#allocation107_spill] sm:$0xff] }
 0x543   :  { %v4069_v59 = vsel %vm1566_vm6, %v4029_v8, %v5508_v55  ;;  %v4070_v25 = vsel %vm1566_vm6, %v4030_v18, %v5509_v58  ;;  %v5522_v30 = vpop.permute.xlu1 %5521  ;;  %v11179_v36 = vpack.c.bf16 %v8733_v4, %v11178_v61 }
 0x544   :  { %v5517_v51 = vpop.permute.xlu0 %5516  ;;  %v4109_v20 = vpack.c.bf16 %v4070_v25, %v4069_v59  ;;  %v5524_v6 = vunpack.i.h.bf16 %v5522_v30  ;;  %v5523_v33 = vunpack.i.l.bf16 %v5522_v30 }
 0x545   :  { %v5519_v34 = vunpack.i.h.bf16 %v5517_v51  ;;  %v5518_v13 = vunpack.i.l.bf16 %v5517_v51  ;;  %5811 = vrot.lane.b32.xlu1 %v5795_v2, %s6170_s5 }
 0x546   :  { %5806 = vrot.lane.b32.xlu0 %v11175_v44, %s6175_s30  ;;  %4338 = vmatmul.mubr.bf16.gmra.mxu1 %v4109_v20  ;;  %v11177_v20 = vld [vmem:[#allocation108_spill] sm:$0xff] }
 0x547   :  { %v3912_v14 = vsel %vm1402_vm2, %v3872_v3, %v5519_v34  ;;  %v3911_v17 = vsel %vm1402_vm2, %v3871_v21, %v5518_v13  ;;  %5226 = vmatprep.mubr.msk.bf16.mxu1 %vm85_vm0, %v11176_v56  ;;  %v5532_v28 = vpop.permute.xlu1 %5531  ;;  %v2757_v21 = vld [vmem:[#allocation2 + $0x12f] sm:$0xff]  ;;  %v2758_v3 = vld [vmem:[#allocation2 + $0x137] sm:$0xff] }
 0x548   :  { %v5527_v22 = vpop.permute.xlu0 %5526  ;;  %v5534_v23 = vunpack.i.h.bf16 %v5532_v28  ;;  %v5533_v53 = vunpack.i.l.bf16 %v5532_v28  ;;  %v3951_v42 = vsel %vm1443_vm3, %v3911_v17, %v5523_v33  ;;  %v3952_v9 = vsel %vm1443_vm3, %v3912_v14, %v5524_v6 }
 0x549   :  { %v5529_v46 = vunpack.i.h.bf16 %v5527_v22  ;;  %v5528_v60 = vunpack.i.l.bf16 %v5527_v22  ;;  %5821 = vrot.lane.b32.xlu1 %v11175_v44, %s6165_s1  ;;  %v5860_v32 = vpack.i.bf16 %v2758_v3, %v2757_v21 }
 0x54a   :  { %5816 = vrot.lane.b32.xlu0 %v5800_v37, %s6171_s27 }
 0x54b   :  { %v3991_v40 = vsel %vm1484_vm4, %v3951_v42, %v5528_v60  ;;  %v3992_v12 = vsel %vm1484_vm4, %v3952_v9, %v5529_v46  ;;  %v5542_v31 = vpop.permute.xlu1 %5541  ;;  %v11180_v46 = vld [vmem:[#allocation111_spill] sm:$0xff]  ;;  %v11181_v60 = vld [vmem:[#allocation112_spill] sm:$0xff] }
 0x54c   :  { %v5537_v38 = vpop.permute.xlu0 %5536  ;;  %v5544_v63 = vunpack.i.h.bf16 %v5542_v31  ;;  %v5543_v47 = vunpack.i.l.bf16 %v5542_v31  ;;  %v4031_v37 = vsel %vm1525_vm5, %v3991_v40, %v5533_v53  ;;  %v4032_v2 = vsel %vm1525_vm5, %v3992_v12, %v5534_v23  ;;  %v11182_v53 = vld [vmem:[#allocation137_spill] sm:$0xff] }
 0x54d   :  { %v5539_v41 = vunpack.i.h.bf16 %v5537_v38  ;;  %v5538_v45 = vunpack.i.l.bf16 %v5537_v38  ;;  %5831 = vrot.lane.b32.xlu1 %v5830_v26, %s6174_s29  ;;  %v5855_v23 = vpack.i.bf16 %v11181_v60, %v11180_v46  ;;  %v5299_v42 = vunpack.i.h.bf16 %v11182_v53 }
 0x54e   :  { %5826 = vrot.lane.b32.xlu0 %v5825_v16, %s6173_s28  ;;  %v3874_v59 = vsel %vm1361_vm1, %v3834_v52, %v5544_v63  ;;  %v3873_v25 = vsel %vm1361_vm1, %v3833_v24, %v5543_v47  ;;  %v5298_v9 = vunpack.i.l.bf16 %v11182_v53  ;;  %v6046_v63 = vld [vmem:[#allocation2 + $0x121] sm:$0xff]  ;;  %v6047_v47 = vld [vmem:[#allocation2 + $0x129] sm:$0xff] }
 0x54f   :  { %v4071_v1 = vsel %vm1566_vm6, %v4031_v37, %v5538_v45  ;;  %v4072_v50 = vsel %vm1566_vm6, %v4032_v2, %v5539_v41  ;;  %v5552_v58 = vpop.permute.xlu1 %5551  ;;  %v5870_v37 = vpack.i.bf16 %v6047_v47, %v6046_v63  ;;  %v11190_v47 = vld [vmem:[#allocation60_spill] sm:$0xff] }
 0x550   :  { %v5547_v55 = vpop.permute.xlu0 %5546  ;;  %v4111_v62 = vpack.c.bf16 %v4072_v50, %v4071_v1  ;;  %v5554_v30 = vunpack.i.h.bf16 %v5552_v58  ;;  %v5553_v51 = vunpack.i.l.bf16 %v5552_v58  ;;  %v11183_v1 = vld [vmem:[#allocation135_spill] sm:$0xff]  ;;  %v11184_v58 = vld [vmem:[#allocation114_spill] sm:$0xff] }
 0x551   :  { %v5549_v8 = vunpack.i.h.bf16 %v5547_v55  ;;  %v5548_v18 = vunpack.i.l.bf16 %v5547_v55  ;;  %5841 = vrot.lane.b32.xlu1 %v5825_v16, %s6170_s5  ;;  %v3836_v50 = vsel %vm85_vm0, %v11183_v1, %v5299_v42  ;;  %v3835_v55 = vsel %vm85_vm0, %v11184_v58, %v5298_v9  ;;  %v11189_v42 = vld [vmem:[#allocation116_spill] sm:$0xff] }
 0x552   :  { %5836 = vrot.lane.b32.xlu0 %v11177_v20, %s6175_s30  ;;  %4346 = vmatmul.mubr.bf16.gmra.mxu1 %v4111_v62  ;;  %v5304_v9 = vunpack.i.h.bf16 %v11189_v42 }
 0x553   :  { %v3914_v0 = vsel %vm1402_vm2, %v3874_v59, %v5549_v8  ;;  %v3913_v7 = vsel %vm1402_vm2, %v3873_v25, %v5548_v18  ;;  %5227 = vmatprep.mubr.msk.bf16.mxu1 %vm85_vm0, %v11179_v36  ;;  %v5562_v34 = vpop.permute.xlu1 %5561  ;;  %v11185_v25 = vld [vmem:[#allocation54_spill] sm:$0xff] }
 0x554   :  { %v5557_v13 = vpop.permute.xlu0 %5556  ;;  %v5564_v44 = vunpack.i.h.bf16 %v5562_v34  ;;  %v5563_v14 = vunpack.i.l.bf16 %v5562_v34  ;;  %v3953_v17 = vsel %vm1443_vm3, %v3913_v7, %v5553_v51  ;;  %v3954_v56 = vsel %vm1443_vm3, %v3914_v0, %v5554_v30  ;;  %v11187_v0 = vld [vmem:[#allocation129_spill] sm:$0xff]  ;;  %v2759_v34 = vld [vmem:[#allocation2 + $0x13f] sm:$0xff] }
 0x555   :  { %v5559_v6 = vunpack.i.h.bf16 %v5557_v13  ;;  %v5558_v33 = vunpack.i.l.bf16 %v5557_v13  ;;  %5851 = vrot.lane.b32.xlu1 %v11177_v20, %s6165_s1  ;;  %v11186_v20 = vld [vmem:[#allocation130_spill] sm:$0xff]  ;;  %v2760_v13 = vld [vmem:[#allocation2 + $0x147] sm:$0xff] }
 0x556   :  { %5846 = vrot.lane.b32.xlu0 %v5830_v26, %s6171_s27  ;;  %v11188_v7 = vpack.c.bf16 %v11186_v20, %v11187_v0 }
 0x557   :  { %v3993_v4 = vsel %vm1484_vm4, %v3953_v17, %v5558_v33  ;;  %v3994_v28 = vsel %vm1484_vm4, %v3954_v56, %v5559_v6  ;;  %v5572_v22 = vpop.permute.xlu1 %5571 }
 0x558   :  { %v5567_v35 = vpop.permute.xlu0 %5566  ;;  %v5574_v31 = vunpack.i.h.bf16 %v5572_v22  ;;  %v5573_v38 = vunpack.i.l.bf16 %v5572_v22  ;;  %v4033_v26 = vsel %vm1525_vm5, %v3993_v4, %v5563_v14  ;;  %v4034_v16 = vsel %vm1525_vm5, %v3994_v28, %v5564_v44 }
 0x559   :  { %v5569_v40 = vunpack.i.h.bf16 %v5567_v35  ;;  %v5568_v12 = vunpack.i.l.bf16 %v5567_v35  ;;  %5861 = vrot.lane.b32.xlu1 %v5860_v32, %s6174_s29  ;;  %v5890_v22 = vpack.i.bf16 %v2760_v13, %v2759_v34  ;;  %v6048_v35 = vld [vmem:[#allocation2 + $0x131] sm:$0xff] }
 0x55a   :  { %5856 = vrot.lane.b32.xlu0 %v5855_v23, %s6173_s28  ;;  %v3875_v24 = vsel %vm1361_vm1, %v3835_v55, %v5573_v38  ;;  %v3876_v8 = vsel %vm1361_vm1, %v3836_v50, %v5574_v31  ;;  %v6049_v23 = vld [vmem:[#allocation2 + $0x139] sm:$0xff] }
 0x55b   :  { %v4073_v54 = vsel %vm1566_vm6, %v4033_v26, %v5568_v12  ;;  %v4074_v5 = vsel %vm1566_vm6, %v4034_v16, %v5569_v40  ;;  %v5582_v41 = vpop.permute.xlu1 %5581  ;;  %v5885_v53 = vpack.i.bf16 %v6049_v23, %v6048_v35  ;;  %v5303_v40 = vunpack.i.l.bf16 %v11189_v42  ;;  %v2842_v34 = vld [vmem:[#allocation2 + $0x157] sm:$0xff] }
 0x55c   :  { %v5577_v45 = vpop.permute.xlu0 %5576  ;;  %v4113_v2 = vpack.c.bf16 %v4074_v5, %v4073_v54  ;;  %v5584_v18 = vunpack.i.h.bf16 %v5582_v41  ;;  %v5583_v59 = vunpack.i.l.bf16 %v5582_v41  ;;  %v11196_v23 = vld [vmem:[#allocation62_spill] sm:$0xff] }
 0x55d   :  { %v5579_v62 = vunpack.i.h.bf16 %v5577_v45  ;;  %v5578_v52 = vunpack.i.l.bf16 %v5577_v45  ;;  %5871 = vrot.lane.b32.xlu1 %v5870_v37, %s6170_s5  ;;  %v3838_v37 = vsel %vm85_vm0, %v11190_v47, %v5304_v9  ;;  %v5308_v42 = vunpack.i.l.bf16 %v11196_v23  ;;  %v11197_v47 = vld [vmem:[#allocation115_spill] sm:$0xff] }
 0x55e   :  { %5866 = vrot.lane.b32.xlu0 %v11185_v25, %s6175_s30  ;;  %4354 = vmatmul.mubr.bf16.gmra.mxu1 %v4113_v2  ;;  %v11191_v2 = vld [vmem:[#allocation136_spill] sm:$0xff] }
 0x55f   :  { %v3916_v30 = vsel %vm1402_vm2, %v3876_v8, %v5579_v62  ;;  %v3915_v51 = vsel %vm1402_vm2, %v3875_v24, %v5578_v52  ;;  %5228 = vmatprep.mubr.msk.bf16.mxu1 %vm85_vm0, %v11188_v7  ;;  %v5592_v61 = vpop.permute.xlu1 %5591  ;;  %v3837_v1 = vsel %vm85_vm0, %v11191_v2, %v5303_v40  ;;  %v11192_v8 = vld [vmem:[#allocation55_spill] sm:$0xff]  ;;  %v11198_v2 = vld [vmem:[#allocation61_spill] sm:$0xff] }
 0x560   :  { %v5587_v36 = vpop.permute.xlu0 %5586  ;;  %v5594_v6 = vunpack.i.h.bf16 %v5592_v61  ;;  %v5593_v33 = vunpack.i.l.bf16 %v5592_v61  ;;  %v3955_v44 = vsel %vm1443_vm3, %v3915_v51, %v5583_v59  ;;  %v3956_v14 = vsel %vm1443_vm3, %v3916_v30, %v5584_v18  ;;  %v11194_v30 = vld [vmem:[#allocation109_spill] sm:$0xff] }
 0x561   :  { %v5589_v21 = vunpack.i.h.bf16 %v5587_v36  ;;  %v5588_v3 = vunpack.i.l.bf16 %v5587_v36  ;;  %5881 = vrot.lane.b32.xlu1 %v11185_v25, %s6165_s1  ;;  %v11193_v25 = vld [vmem:[#allocation110_spill] sm:$0xff]  ;;  %v2841_v36 = vld [vmem:[#allocation2 + $0x14f] sm:$0xff] }
 0x562   :  { %5876 = vrot.lane.b32.xlu0 %v5860_v32, %s6171_s27  ;;  %v11195_v51 = vpack.c.bf16 %v11193_v25, %v11194_v30 }
 0x563   :  { %v3995_v17 = vsel %vm1484_vm4, %v3955_v44, %v5588_v3  ;;  %v3996_v56 = vsel %vm1484_vm4, %v3956_v14, %v5589_v21  ;;  %v5602_v4 = vpop.permute.xlu1 %5601 }
 0x564   :  { %v5597_v28 = vpop.permute.xlu0 %5596  ;;  %v5604_v38 = vunpack.i.h.bf16 %v5602_v4  ;;  %v5603_v26 = vunpack.i.l.bf16 %v5602_v4  ;;  %v4035_v32 = vsel %vm1525_vm5, %v3995_v17, %v5593_v33  ;;  %v4036_v16 = vsel %vm1525_vm5, %v3996_v56, %v5594_v6  ;;  %v6050_v4 = vld [vmem:[#allocation2 + $0x141] sm:$0xff] }
 0x565   :  { %v5599_v12 = vunpack.i.h.bf16 %v5597_v28  ;;  %v5598_v31 = vunpack.i.l.bf16 %v5597_v28  ;;  %5891 = vrot.lane.b32.xlu1 %v5890_v22, %s6174_s29  ;;  %v5920_v56 = vpack.i.bf16 %v2842_v34, %v2841_v36  ;;  %v6051_v28 = vld [vmem:[#allocation2 + $0x149] sm:$0xff] }
 0x566   :  { %5886 = vrot.lane.b32.xlu0 %v5885_v53, %s6173_s28  ;;  %v3878_v55 = vsel %vm1361_vm1, %v3838_v37, %v5604_v38  ;;  %v3877_v62 = vsel %vm1361_vm1, %v3837_v1, %v5603_v26  ;;  %v5915_v35 = vpack.i.bf16 %v6051_v28, %v6050_v4  ;;  %v3839_v1 = vsel %vm85_vm0, %v11198_v2, %v5308_v42 }
 0x567   :  { %v4075_v54 = vsel %vm1566_vm6, %v4035_v32, %v5598_v31  ;;  %v4076_v5 = vsel %vm1566_vm6, %v4036_v16, %v5599_v12  ;;  %v5612_v41 = vpop.permute.xlu1 %5611  ;;  %v2843_v12 = vld [vmem:[#allocation2 + $0x150] sm:$0xff]  ;;  %v2844_v31 = vld [vmem:[#allocation2 + $0x158] sm:$0xff] }
 0x568   :  { %v5607_v45 = vpop.permute.xlu0 %5606  ;;  %v4115_v63 = vpack.c.bf16 %v4076_v5, %v4075_v54  ;;  %v5614_v52 = vunpack.i.h.bf16 %v5612_v41  ;;  %v5613_v24 = vunpack.i.l.bf16 %v5612_v41 }
 0x569   :  { %v5609_v50 = vunpack.i.h.bf16 %v5607_v45  ;;  %v5608_v58 = vunpack.i.l.bf16 %v5607_v45  ;;  %5901 = vrot.lane.b32.xlu1 %v5885_v53, %s6170_s5  ;;  %v5309_v53 = vunpack.i.h.bf16 %v11196_v23  ;;  %v5925_v45 = vpack.i.bf16 %v2844_v31, %v2843_v12  ;;  %v6053_v23 = vld [vmem:[#allocation2 + $0x151] sm:$0xff] }
 0x56a   :  { %5896 = vrot.lane.b32.xlu0 %v11192_v8, %s6175_s30  ;;  %4362 = vmatmul.mubr.bf16.gmra.mxu1 %v4115_v63 }
 0x56b   :  { %v3918_v18 = vsel %vm1402_vm2, %v3878_v55, %v5609_v50  ;;  %v3917_v59 = vsel %vm1402_vm2, %v3877_v62, %v5608_v58  ;;  %5229 = vmatprep.mubr.msk.bf16.mxu1 %vm85_vm0, %v11195_v51  ;;  %v5622_v20 = vpop.permute.xlu1 %5621  ;;  %v3840_v37 = vsel %vm85_vm0, %v11197_v47, %v5309_v53 }
 0x56c   :  { %v5617_v0 = vpop.permute.xlu0 %5616  ;;  %v5624_v13 = vunpack.i.h.bf16 %v5622_v20  ;;  %v5623_v21 = vunpack.i.l.bf16 %v5622_v20  ;;  %v3957_v3 = vsel %vm1443_vm3, %v3917_v59, %v5613_v24  ;;  %v3958_v6 = vsel %vm1443_vm3, %v3918_v18, %v5614_v52  ;;  %v11199_v59 = vld [vmem:[#allocation131_spill] sm:$0xff] }
 0x56d   :  { %v5619_v7 = vunpack.i.h.bf16 %v5617_v0  ;;  %v5618_v61 = vunpack.i.l.bf16 %v5617_v0  ;;  %5911 = vrot.lane.b32.xlu1 %v11192_v8, %s6165_s1  ;;  %v11200_v25 = vpack.c.bf16 %v8769_v10, %v11199_v59  ;;  %v2850_v10 = vld [vmem:[#allocation2 + $0x168] sm:$0xff] }
 0x56e   :  { %5906 = vrot.lane.b32.xlu0 %v5890_v22, %s6171_s27 }
 0x56f   :  { %v3997_v33 = vsel %vm1484_vm4, %v3957_v3, %v5618_v61  ;;  %v3998_v44 = vsel %vm1484_vm4, %v3958_v6, %v5619_v7  ;;  %v5632_v14 = vpop.permute.xlu1 %5631  ;;  %v2847_v7 = vld [vmem:[#allocation2 + $0x15f] sm:$0xff]  ;;  %v2848_v61 = vld [vmem:[#allocation2 + $0x167] sm:$0xff] }
 0x570   :  { %v5627_v17 = vpop.permute.xlu0 %5626  ;;  %v5634_v38 = vunpack.i.h.bf16 %v5632_v14  ;;  %v5633_v22 = vunpack.i.l.bf16 %v5632_v14  ;;  %v4037_v26 = vsel %vm1525_vm5, %v3997_v33, %v5623_v21  ;;  %v4038_v32 = vsel %vm1525_vm5, %v3998_v44, %v5624_v13  ;;  %v2849_v3 = vld [vmem:[#allocation2 + $0x160] sm:$0xff]  ;;  %v11201_v44 = vld [vmem:[#allocation138_spill] sm:$0xff] }
 0x571   :  { %v5629_v9 = vunpack.i.h.bf16 %v5627_v17  ;;  %v5628_v40 = vunpack.i.l.bf16 %v5627_v17  ;;  %5921 = vrot.lane.b32.xlu1 %v5920_v56, %s6174_s29  ;;  %v5314_v14 = vunpack.i.h.bf16 %v11201_v44  ;;  %v5950_v28 = vpack.i.bf16 %v2848_v61, %v2847_v7  ;;  %v11204_v61 = vld [vmem:[#allocation66_spill] sm:$0xff] }
 0x572   :  { %5916 = vrot.lane.b32.xlu0 %v5915_v35, %s6173_s28  ;;  %v3879_v55 = vsel %vm1361_vm1, %v3839_v1, %v5633_v22  ;;  %v3880_v62 = vsel %vm1361_vm1, %v3840_v37, %v5634_v38  ;;  %v5313_v42 = vunpack.i.l.bf16 %v11201_v44  ;;  %v5955_v12 = vpack.i.bf16 %v2850_v10, %v2849_v3 }
 0x573   :  { %v4077_v16 = vsel %vm1566_vm6, %v4037_v26, %v5628_v40  ;;  %v4078_v54 = vsel %vm1566_vm6, %v4038_v32, %v5629_v9  ;;  %v5642_v5 = vpop.permute.xlu1 %5641 }
 0x574   :  { %v5637_v41 = vpop.permute.xlu0 %5636  ;;  %v4117_v63 = vpack.c.bf16 %v4078_v54, %v4077_v16  ;;  %v5644_v52 = vunpack.i.h.bf16 %v5642_v5  ;;  %v5643_v24 = vunpack.i.l.bf16 %v5642_v5 }
 0x575   :  { %v5639_v50 = vunpack.i.h.bf16 %v5637_v41  ;;  %v5638_v58 = vunpack.i.l.bf16 %v5637_v41  ;;  %5931 = vrot.lane.b32.xlu1 %v5915_v35, %s6170_s5  ;;  %v6052_v35 = vld [vmem:[#allocation2 + $0x159] sm:$0xff] }
 0x576   :  { %5926 = vrot.lane.b32.xlu0 %v5925_v45, %s6175_s30  ;;  %4370 = vmatmul.mubr.bf16.gmra.mxu1 %v4117_v63  ;;  %v5945_v53 = vpack.i.bf16 %v6052_v35, %v6053_v23  ;;  %v6054_v41 = vld [vmem:[#allocation2 + $0xb7] sm:$0xff]  ;;  %v6055_v63 = vld [vmem:[#allocation2 + $0xaf] sm:$0xff] }
 0x577   :  { %v3920_v8 = vsel %vm1402_vm2, %v3880_v62, %v5639_v50  ;;  %v3919_v18 = vsel %vm1402_vm2, %v3879_v55, %v5638_v58  ;;  %5230 = vmatprep.mubr.msk.bf16.mxu1 %vm85_vm0, %v11200_v25  ;;  %v5652_v30 = vpop.permute.xlu1 %5651  ;;  %v3841_v47 = vsel %vm85_vm0, %v6055_v63, %v5313_v42  ;;  %v11202_v62 = vld [vmem:[#allocation140_spill] sm:$0xff] }
 0x578   :  { %v5647_v51 = vpop.permute.xlu0 %5646  ;;  %v5654_v36 = vunpack.i.h.bf16 %v5652_v30  ;;  %v5653_v34 = vunpack.i.l.bf16 %v5652_v30  ;;  %v3959_v13 = vsel %vm1443_vm3, %v3919_v18, %v5643_v24  ;;  %v3960_v21 = vsel %vm1443_vm3, %v3920_v8, %v5644_v52 }
 0x579   :  { %v5649_v20 = vunpack.i.h.bf16 %v5647_v51  ;;  %v5648_v0 = vunpack.i.l.bf16 %v5647_v51  ;;  %5941 = vrot.lane.b32.xlu1 %v5925_v45, %s6165_s1  ;;  %v3842_v45 = vsel %vm85_vm0, %v6054_v41, %v5314_v14  ;;  %v11203_v8 = vpack.c.bf16 %v8773_v39, %v8771_v11  ;;  %v11209_v41 = vld [vmem:[#allocation19_spill] sm:$0xff] }
 0x57a   :  { %5936 = vrot.lane.b32.xlu0 %v5920_v56, %s6171_s27 }
 0x57b   :  { %v3999_v6 = vsel %vm1484_vm4, %v3959_v13, %v5648_v0  ;;  %v4000_v33 = vsel %vm1484_vm4, %v3960_v21, %v5649_v20  ;;  %v5662_v17 = vpop.permute.xlu1 %5661  ;;  %v11206_v21 = vld [vmem:[#allocation117_spill] sm:$0xff] }
 0x57c   :  { %v5657_v4 = vpop.permute.xlu0 %5656  ;;  %v5664_v56 = vunpack.i.h.bf16 %v5662_v17  ;;  %v5663_v31 = vunpack.i.l.bf16 %v5662_v17  ;;  %v4039_v38 = vsel %vm1525_vm5, %v3999_v6, %v5653_v34  ;;  %v4040_v22 = vsel %vm1525_vm5, %v4000_v33, %v5654_v36  ;;  %v11205_v36 = vld [vmem:[#allocation139_spill] sm:$0xff]  ;;  %v11207_v17 = vld [vmem:[#allocation16_spill] sm:$0xff] }
 0x57d   :  { %v5659_v9 = vunpack.i.h.bf16 %v5657_v4  ;;  %v5658_v40 = vunpack.i.l.bf16 %v5657_v4  ;;  %5951 = vrot.lane.b32.xlu1 %v5950_v28, %s6174_s29  ;;  %v5319_v3 = vunpack.i.h.bf16 %v11206_v21  ;;  %v5318_v10 = vunpack.i.l.bf16 %v11206_v21  ;;  %v11208_v4 = vld [vmem:[#allocation15_spill] sm:$0xff] }
 0x57e   :  { %5946 = vrot.lane.b32.xlu0 %v5945_v53, %s6173_s28  ;;  %v3882_v1 = vsel %vm1361_vm1, %v3842_v45, %v5664_v56  ;;  %v3881_v50 = vsel %vm1361_vm1, %v3841_v47, %v5663_v31  ;;  %v6057_v31 = vld [vmem:[#allocation2 + $0xbf] sm:$0xff] }
 0x57f   :  { %v4079_v26 = vsel %vm1566_vm6, %v4039_v38, %v5658_v40  ;;  %v4080_v32 = vsel %vm1566_vm6, %v4040_v22, %v5659_v9  ;;  %v5672_v16 = vpop.permute.xlu1 %5671  ;;  %v3843_v38 = vsel %vm85_vm0, %v6057_v31, %v5318_v10  ;;  %v11210_v45 = vld [vmem:[#allocation67_spill] sm:$0xff] }
 0x580   :  { %v5667_v54 = vpop.permute.xlu0 %5666  ;;  %v4119_v5 = vpack.c.bf16 %v4080_v32, %v4079_v26  ;;  %v5674_v58 = vunpack.i.h.bf16 %v5672_v16  ;;  %v5673_v55 = vunpack.i.l.bf16 %v5672_v16 }
 0x581   :  { %v5669_v37 = vunpack.i.h.bf16 %v5667_v54  ;;  %v5668_v2 = vunpack.i.l.bf16 %v5667_v54  ;;  %4935 = vrot.lane.b32.xlu1 %v11202_v62, %s6165_s1 }
 0x582   :  { %5956 = vrot.lane.b32.xlu0 %v5955_v12, %s6175_s30  ;;  %4378 = vmatmul.mubr.bf16.gmra.mxu1 %v4119_v5  ;;  %v6056_v12 = vld [vmem:[#allocation2 + $0xc7] sm:$0xff] }
 0x583   :  { %v3922_v52 = vsel %vm1402_vm2, %v3882_v1, %v5669_v37  ;;  %v3921_v24 = vsel %vm1402_vm2, %v3881_v50, %v5668_v2  ;;  %5231 = vmatprep.mubr.msk.bf16.mxu1 %vm85_vm0, %v11203_v8  ;;  %v5682_v18 = vpop.permute.xlu1 %5681  ;;  %v3844_v56 = vsel %vm85_vm0, %v6056_v12, %v5319_v3  ;;  %v11211_v37 = vpack.c.bf16 %v8781_v49, %v8779_v57  ;;  %v11212_v8 = vld [vmem:[#allocation68_spill] sm:$0xff]  ;;  %v11218_v12 = vld [vmem:[#allocation69_spill] sm:$0xff] }
 0x584   :  { %v5677_v59 = vpop.permute.xlu0 %5676  ;;  %v5684_v51 = vunpack.i.h.bf16 %v5682_v18  ;;  %v5683_v20 = vunpack.i.l.bf16 %v5682_v18  ;;  %v3961_v0 = vsel %vm1443_vm3, %v3921_v24, %v5673_v55  ;;  %v3962_v7 = vsel %vm1443_vm3, %v3922_v52, %v5674_v58  ;;  %v11213_v18 = vld [vmem:[#allocation48_spill] sm:$0xff] }
 0x585   :  { %v5679_v25 = vunpack.i.h.bf16 %v5677_v59  ;;  %v5678_v30 = vunpack.i.l.bf16 %v5677_v59  ;;  %4939 = vrot.lane.b32.xlu1 %v11204_v61, %s6165_s1 }
 0x586   :  { %4937 = vrot.lane.b32.xlu0 %v11205_v36, %s6165_s1 }
 0x587   :  { %v4001_v39 = vsel %vm1484_vm4, %v3961_v0, %v5678_v30  ;;  %v4002_v11 = vsel %vm1484_vm4, %v3962_v7, %v5679_v25  ;;  %v5692_v34 = vpop.permute.xlu1 %5691  ;;  %v11214_v30 = vld [vmem:[#allocation63_spill] sm:$0xff] }
 0x588   :  { %v5687_v13 = vpop.permute.xlu0 %5686  ;;  %v5694_v44 = vunpack.i.h.bf16 %v5692_v34  ;;  %v5693_v14 = vunpack.i.l.bf16 %v5692_v34  ;;  %v4041_v28 = vsel %vm1525_vm5, %v4001_v39, %v5683_v20  ;;  %v4042_v35 = vsel %vm1525_vm5, %v4002_v11, %v5684_v51  ;;  %v11215_v39 = vld [vmem:[#allocation13_spill] sm:$0xff] }
 0x589   :  { %v5689_v6 = vunpack.i.h.bf16 %v5687_v13  ;;  %v5688_v33 = vunpack.i.l.bf16 %v5687_v13  ;;  %4943 = vrot.lane.b32.xlu1 %v11207_v17, %s6165_s1  ;;  %v5324_v51 = vunpack.i.h.bf16 %v11214_v30  ;;  %v5323_v20 = vunpack.i.l.bf16 %v11214_v30  ;;  %v11216_v11 = vld [vmem:[#allocation49_spill] sm:$0xff] }
 0x58a   :  { %4941 = vrot.lane.b32.xlu0 %v11208_v4, %s6165_s1  ;;  %v3883_v32 = vsel %vm1361_vm1, %v3843_v38, %v5693_v14  ;;  %v3884_v16 = vsel %vm1361_vm1, %v3844_v56, %v5694_v44  ;;  %v6058_v44 = vld [vmem:[#allocation2 + $0xd7] sm:$0xff]  ;;  %v6059_v17 = vld [vmem:[#allocation2 + $0xcf] sm:$0xff]  ;;  %v11219_v38 = vpack.c.bf16 %v11172_v15, %v11171_v43 }
 0x58b   :  { %v4081_v23 = vsel %vm1566_vm6, %v4041_v28, %v5688_v33  ;;  %v4082_v53 = vsel %vm1566_vm6, %v4042_v35, %v5689_v6  ;;  %v5702_v42 = vpop.permute.xlu1 %5701  ;;  %v3846_v14 = vsel %vm85_vm0, %v6058_v44, %v5324_v51  ;;  %v3845_v4 = vsel %vm85_vm0, %v6059_v17, %v5323_v20 }
 0x58c   :  { %v5697_v9 = vpop.permute.xlu0 %5696  ;;  %v4121_v40 = vpack.c.bf16 %v4082_v53, %v4081_v23  ;;  %v5704_v54 = vunpack.i.h.bf16 %v5702_v42  ;;  %v5703_v5 = vunpack.i.l.bf16 %v5702_v42 }
 0x58d   :  { %v5699_v22 = vunpack.i.h.bf16 %v5697_v9  ;;  %v5698_v26 = vunpack.i.l.bf16 %v5697_v9  ;;  %4947 = vrot.lane.b32.xlu1 %v11209_v41, %s6165_s1 }
 0x58e   :  { %4945 = vrot.lane.b32.xlu0 %v11210_v45, %s6165_s1  ;;  %4386 = vmatmul.mubr.bf16.gmra.mxu1 %v4121_v40  ;;  %v11217_v40 = vld [vmem:[#allocation17_spill] sm:$0xff] }
 0x58f   :  { %v3924_v63 = vsel %vm1402_vm2, %v3884_v16, %v5699_v22  ;;  %v3923_v47 = vsel %vm1402_vm2, %v3883_v32, %v5698_v26  ;;  %5232 = vmatprep.mubr.msk.bf16.mxu1 %vm85_vm0, %v11211_v37  ;;  %v5712_v2 = vpop.permute.xlu1 %5711 }
 0x590   :  { %v5707_v1 = vpop.permute.xlu0 %5706  ;;  %v5714_v55 = vunpack.i.h.bf16 %v5712_v2  ;;  %v5713_v62 = vunpack.i.l.bf16 %v5712_v2  ;;  %v3963_v52 = vsel %vm1443_vm3, %v3923_v47, %v5703_v5  ;;  %v3964_v24 = vsel %vm1443_vm3, %v3924_v63, %v5704_v54  ;;  %v11220_v63 = vld [vmem:[#allocation70_spill] sm:$0xff] }
 0x591   :  { %v5709_v50 = vunpack.i.h.bf16 %v5707_v1  ;;  %v5708_v58 = vunpack.i.l.bf16 %v5707_v1  ;;  %4951 = vrot.lane.b32.xlu1 %v11212_v8, %s6165_s1  ;;  %v11221_v47 = vld [vmem:[#allocation14_spill] sm:$0xff]  ;;  %v11222_v1 = vld [vmem:[#allocation64_spill] sm:$0xff] }
 0x592   :  { %4949 = vrot.lane.b32.xlu0 %v11213_v18, %s6165_s1  ;;  %v11223_v8 = vld [vmem:[#allocation22_spill] sm:$0xff] }
 0x593   :  { %v4003_v49 = vsel %vm1484_vm4, %v3963_v52, %v5708_v58  ;;  %v4004_v57 = vsel %vm1484_vm4, %v3964_v24, %v5709_v50  ;;  %v5722_v59 = vpop.permute.xlu1 %5721  ;;  %v5329_v50 = vunpack.i.h.bf16 %v11222_v1  ;;  %v5328_v58 = vunpack.i.l.bf16 %v11222_v1  ;;  %v11224_v18 = vld [vmem:[#allocation18_spill] sm:$0xff] }
 0x594   :  { %v5717_v25 = vpop.permute.xlu0 %5716  ;;  %v5724_v61 = vunpack.i.h.bf16 %v5722_v59  ;;  %v5723_v36 = vunpack.i.l.bf16 %v5722_v59  ;;  %v4043_v34 = vsel %vm1525_vm5, %v4003_v49, %v5713_v62  ;;  %v4044_v13 = vsel %vm1525_vm5, %v4004_v57, %v5714_v55 }
 0x595   :  { %v5719_v0 = vunpack.i.h.bf16 %v5717_v25  ;;  %v5718_v7 = vunpack.i.l.bf16 %v5717_v25  ;;  %4955 = vrot.lane.b32.xlu1 %v11215_v39, %s6165_s1 }
 0x596   :  { %4953 = vrot.lane.b32.xlu0 %v11216_v11, %s6165_s1  ;;  %v3886_v23 = vsel %vm1361_vm1, %v3846_v14, %v5724_v61  ;;  %v3885_v53 = vsel %vm1361_vm1, %v3845_v4, %v5723_v36  ;;  %v6061_v61 = vld [vmem:[#allocation2 + $0xdf] sm:$0xff]  ;;  %v11227_v14 = vpack.c.bf16 %v8800_v27, %v8794_v48 }
 0x597   :  { %v4083_v21 = vsel %vm1566_vm6, %v4043_v34, %v5718_v7  ;;  %v4084_v3 = vsel %vm1566_vm6, %v4044_v13, %v5719_v0  ;;  %v5732_v10 = vpop.permute.xlu1 %5731  ;;  %v6060_v0 = vld [vmem:[#allocation2 + $0xe7] sm:$0xff]  ;;  %v3847_v36 = vsel %vm85_vm0, %v6061_v61, %v5328_v58 }
 0x598   :  { %v5727_v6 = vpop.permute.xlu0 %5726  ;;  %v4123_v33 = vpack.c.bf16 %v4084_v3, %v4083_v21  ;;  %v5734_v42 = vunpack.i.h.bf16 %v5732_v10  ;;  %v5733_v9 = vunpack.i.l.bf16 %v5732_v10  ;;  %v3848_v7 = vsel %vm85_vm0, %v6060_v0, %v5329_v50  ;;  %v11225_v10 = vld [vmem:[#allocation72_spill] sm:$0xff]  ;;  %v6062_v50 = vld [vmem:[#allocation2 + $0xf7] sm:$0xff] }
 0x599   :  { %v5729_v28 = vunpack.i.h.bf16 %v5727_v6  ;;  %v5728_v35 = vunpack.i.l.bf16 %v5727_v6  ;;  %4959 = vrot.lane.b32.xlu1 %v11217_v40, %s6165_s1  ;;  %v11226_v6 = vld [vmem:[#allocation71_spill] sm:$0xff]  ;;  %v11228_v40 = vld [vmem:[#allocation20_spill] sm:$0xff] }
 0x59a   :  { %4957 = vrot.lane.b32.xlu0 %v11218_v12, %s6165_s1  ;;  %4394 = vmatmul.mubr.bf16.gmra.mxu1 %v4123_v33  ;;  %v11229_v12 = vld [vmem:[#allocation23_spill] sm:$0xff] }
 0x59b   :  { %v3926_v56 = vsel %vm1402_vm2, %v3886_v23, %v5729_v28  ;;  %v3925_v31 = vsel %vm1402_vm2, %v3885_v53, %v5728_v35  ;;  %5233 = vmatprep.mubr.msk.bf16.mxu1 %vm85_vm0, %v11219_v38  ;;  %v5742_v22 = vpop.permute.xlu1 %5741  ;;  %v11230_v38 = vld [vmem:[#allocation118_spill] sm:$0xff] }
 0x59c   :  { %v5737_v26 = vpop.permute.xlu0 %5736  ;;  %v5744_v54 = vunpack.i.h.bf16 %v5742_v22  ;;  %v5743_v5 = vunpack.i.l.bf16 %v5742_v22  ;;  %v3965_v41 = vsel %vm1443_vm3, %v3925_v31, %v5733_v9  ;;  %v3966_v45 = vsel %vm1443_vm3, %v3926_v56, %v5734_v42 }
 0x59d   :  { %v5739_v32 = vunpack.i.h.bf16 %v5737_v26  ;;  %v5738_v16 = vunpack.i.l.bf16 %v5737_v26  ;;  %4963 = vrot.lane.b32.xlu1 %v11220_v63, %s6165_s1  ;;  %v5334_v22 = vunpack.i.h.bf16 %v11230_v38  ;;  %v5333_v26 = vunpack.i.l.bf16 %v11230_v38 }
 0x59e   :  { %4961 = vrot.lane.b32.xlu0 %v11221_v47, %s6165_s1 }
 0x59f   :  { %v4005_v43 = vsel %vm1484_vm4, %v3965_v41, %v5738_v16  ;;  %v4006_v15 = vsel %vm1484_vm4, %v3966_v45, %v5739_v32  ;;  %v5752_v37 = vpop.permute.xlu1 %5751  ;;  %v11231_v41 = vld [vmem:[#allocation74_spill] sm:$0xff]  ;;  %v11232_v45 = vld [vmem:[#allocation73_spill] sm:$0xff]  ;;  %v3850_v58 = vsel %vm85_vm0, %v6062_v50, %v5334_v22 }
 0x5a0   :  { %v5747_v2 = vpop.permute.xlu0 %5746  ;;  %v5754_v52 = vunpack.i.h.bf16 %v5752_v37  ;;  %v5753_v24 = vunpack.i.l.bf16 %v5752_v37  ;;  %v4045_v49 = vsel %vm1525_vm5, %v4005_v43, %v5743_v5  ;;  %v4046_v57 = vsel %vm1525_vm5, %v4006_v15, %v5744_v54  ;;  %v6065_v22 = vld [vmem:[#allocation2 + $0xff] sm:$0xff] }
 0x5a1   :  { %v5749_v55 = vunpack.i.h.bf16 %v5747_v2  ;;  %v5748_v62 = vunpack.i.l.bf16 %v5747_v2  ;;  %4967 = vrot.lane.b32.xlu1 %v11223_v8, %s6165_s1 }
 0x5a2   :  { %4965 = vrot.lane.b32.xlu0 %v11224_v18, %s6165_s1  ;;  %v3887_v34 = vsel %vm1361_vm1, %v3847_v36, %v5753_v24  ;;  %v3888_v13 = vsel %vm1361_vm1, %v3848_v7, %v5754_v52 }
 0x5a3   :  { %v4085_v59 = vsel %vm1566_vm6, %v4045_v49, %v5748_v62  ;;  %v4086_v25 = vsel %vm1566_vm6, %v4046_v57, %v5749_v55  ;;  %v5762_v30 = vpop.permute.xlu1 %5761  ;;  %v6063_v55 = vld [vmem:[#allocation2 + $0xef] sm:$0xff] }
 0x5a4   :  { %v5757_v51 = vpop.permute.xlu0 %5756  ;;  %v4125_v20 = vpack.c.bf16 %v4086_v25, %v4085_v59  ;;  %v5764_v21 = vunpack.i.h.bf16 %v5762_v30  ;;  %v5763_v3 = vunpack.i.l.bf16 %v5762_v30  ;;  %v3849_v62 = vsel %vm85_vm0, %v6063_v55, %v5333_v26  ;;  %v11233_v59 = vld [vmem:[#allocation26_spill] sm:$0xff]  ;;  %v11234_v25 = vld [vmem:[#allocation21_spill] sm:$0xff] }
 0x5a5   :  { %v5759_v39 = vunpack.i.h.bf16 %v5757_v51  ;;  %v5758_v11 = vunpack.i.l.bf16 %v5757_v51  ;;  %4971 = vrot.lane.b32.xlu1 %v11225_v10, %s6165_s1 }
 0x5a6   :  { %4969 = vrot.lane.b32.xlu0 %v11226_v6, %s6165_s1  ;;  %4402 = vmatmul.mubr.bf16.gmra.mxu1 %v4125_v20  ;;  %v11235_v20 = vpack.c.bf16 %v8804_v19, %v8802_v29 }
 0x5a7   :  { %v3928_v33 = vsel %vm1402_vm2, %v3888_v13, %v5759_v39  ;;  %v3927_v44 = vsel %vm1402_vm2, %v3887_v34, %v5758_v11  ;;  %5234 = vmatprep.mubr.msk.bf16.mxu1 %vm85_vm0, %v11227_v14  ;;  %v5772_v17 = vpop.permute.xlu1 %5771 }
 0x5a8   :  { %v5767_v4 = vpop.permute.xlu0 %5766  ;;  %v5774_v23 = vunpack.i.h.bf16 %v5772_v17  ;;  %v5773_v53 = vunpack.i.l.bf16 %v5772_v17  ;;  %v3967_v42 = vsel %vm1443_vm3, %v3927_v44, %v5763_v3  ;;  %v3968_v9 = vsel %vm1443_vm3, %v3928_v33, %v5764_v21  ;;  %v11236_v21 = vld [vmem:[#allocation76_spill] sm:$0xff]  ;;  %v11237_v3 = vld [vmem:[#allocation75_spill] sm:$0xff] }
 0x5a9   :  { %v5769_v28 = vunpack.i.h.bf16 %v5767_v4  ;;  %v5768_v35 = vunpack.i.l.bf16 %v5767_v4  ;;  %4975 = vrot.lane.b32.xlu1 %v11228_v40, %s6165_s1  ;;  %v11238_v33 = vld [vmem:[#allocation119_spill] sm:$0xff] }
 0x5aa   :  { %4973 = vrot.lane.b32.xlu0 %v11229_v12, %s6165_s1  ;;  %v5339_v44 = vunpack.i.h.bf16 %v11238_v33  ;;  %v5338_v14 = vunpack.i.l.bf16 %v11238_v33 }
 0x5ab   :  { %v4007_v27 = vsel %vm1484_vm4, %v3967_v42, %v5768_v35  ;;  %v4008_v48 = vsel %vm1484_vm4, %v3968_v9, %v5769_v28  ;;  %v5782_v56 = vpop.permute.xlu1 %5781 }
 0x5ac   :  { %v5777_v31 = vpop.permute.xlu0 %5776  ;;  %v5784_v54 = vunpack.i.h.bf16 %v5782_v56  ;;  %v5783_v5 = vunpack.i.l.bf16 %v5782_v56  ;;  %v4047_v63 = vsel %vm1525_vm5, %v4007_v27, %v5773_v53  ;;  %v4048_v47 = vsel %vm1525_vm5, %v4008_v48, %v5774_v23  ;;  %v11239_v23 = vld [vmem:[#allocation24_spill] sm:$0xff]  ;;  %v11240_v53 = vld [vmem:[#allocation27_spill] sm:$0xff] }
 0x5ad   :  { %v5779_v32 = vunpack.i.h.bf16 %v5777_v31  ;;  %v5778_v16 = vunpack.i.l.bf16 %v5777_v31  ;;  %4979 = vrot.lane.b32.xlu1 %v11231_v41, %s6165_s1  ;;  %v6064_v31 = vld [vmem:[#allocation2 + $0x107] sm:$0xff]  ;;  %v3851_v26 = vsel %vm85_vm0, %v6065_v22, %v5338_v14 }
 0x5ae   :  { %4977 = vrot.lane.b32.xlu0 %v11232_v45, %s6165_s1  ;;  %v3890_v8 = vsel %vm1361_vm1, %v3850_v58, %v5784_v54  ;;  %v3889_v18 = vsel %vm1361_vm1, %v3849_v62, %v5783_v5  ;;  %v3852_v38 = vsel %vm85_vm0, %v6064_v31, %v5339_v44 }
 0x5af   :  { %v4087_v43 = vsel %vm1566_vm6, %v4047_v63, %v5778_v16  ;;  %v4088_v15 = vsel %vm1566_vm6, %v4048_v47, %v5779_v32  ;;  %v5792_v37 = vpop.permute.xlu1 %5791  ;;  %v11241_v63 = vld [vmem:[#allocation78_spill] sm:$0xff]  ;;  %v11242_v47 = vld [vmem:[#allocation77_spill] sm:$0xff] }
 0x5b0   :  { %v5787_v2 = vpop.permute.xlu0 %5786  ;;  %v4127_v1 = vpack.c.bf16 %v4088_v15, %v4087_v43  ;;  %v5794_v49 = vunpack.i.h.bf16 %v5792_v37  ;;  %v5793_v57 = vunpack.i.l.bf16 %v5792_v37  ;;  %v11243_v37 = vpack.c.bf16 %v11181_v60, %v11180_v46 }
 0x5b1   :  { %v5789_v52 = vunpack.i.h.bf16 %v5787_v2  ;;  %v5788_v24 = vunpack.i.l.bf16 %v5787_v2  ;;  %4983 = vrot.lane.b32.xlu1 %v11233_v59, %s6165_s1  ;;  %v11246_v59 = vld [vmem:[#allocation65_spill] sm:$0xff] }
 0x5b2   :  { %4981 = vrot.lane.b32.xlu0 %v11234_v25, %s6165_s1  ;;  %4410 = vmatmul.mubr.bf16.gmra.mxu1 %v4127_v1  ;;  %v5344_v25 = vunpack.i.h.bf16 %v11246_v59 }
 0x5b3   :  { %v3930_v30 = vsel %vm1402_vm2, %v3890_v8, %v5789_v52  ;;  %v3929_v51 = vsel %vm1402_vm2, %v3889_v18, %v5788_v24  ;;  %5235 = vmatprep.mubr.msk.bf16.mxu1 %vm85_vm0, %v11235_v20  ;;  %v5802_v0 = vpop.permute.xlu1 %5801  ;;  %v11244_v8 = vld [vmem:[#allocation30_spill] sm:$0xff]  ;;  %v11245_v18 = vld [vmem:[#allocation25_spill] sm:$0xff] }
 0x5b4   :  { %v5797_v7 = vpop.permute.xlu0 %5796  ;;  %v5804_v39 = vunpack.i.h.bf16 %v5802_v0  ;;  %v5803_v11 = vunpack.i.l.bf16 %v5802_v0  ;;  %v3969_v34 = vsel %vm1443_vm3, %v3929_v51, %v5793_v57  ;;  %v3970_v13 = vsel %vm1443_vm3, %v3930_v30, %v5794_v49 }
 0x5b5   :  { %v5799_v61 = vunpack.i.h.bf16 %v5797_v7  ;;  %v5798_v36 = vunpack.i.l.bf16 %v5797_v7  ;;  %4987 = vrot.lane.b32.xlu1 %v11236_v21, %s6165_s1  ;;  %v5343_v30 = vunpack.i.l.bf16 %v11246_v59 }
 0x5b6   :  { %4985 = vrot.lane.b32.xlu0 %v11237_v3, %s6165_s1 }
 0x5b7   :  { %v4009_v19 = vsel %vm1484_vm4, %v3969_v34, %v5798_v36  ;;  %v4010_v29 = vsel %vm1484_vm4, %v3970_v13, %v5799_v61  ;;  %v5812_v10 = vpop.permute.xlu1 %5811  ;;  %v11247_v61 = vld [vmem:[#allocation80_spill] sm:$0xff]  ;;  %v11248_v36 = vld [vmem:[#allocation79_spill] sm:$0xff] }
 0x5b8   :  { %v5807_v6 = vpop.permute.xlu0 %5806  ;;  %v5814_v28 = vunpack.i.h.bf16 %v5812_v10  ;;  %v5813_v35 = vunpack.i.l.bf16 %v5812_v10  ;;  %v4049_v42 = vsel %vm1525_vm5, %v4009_v19, %v5803_v11  ;;  %v4050_v9 = vsel %vm1525_vm5, %v4010_v29, %v5804_v39  ;;  %v6066_v29 = vld [vmem:[#allocation2 + $0x117] sm:$0xff] }
 0x5b9   :  { %v5809_v17 = vunpack.i.h.bf16 %v5807_v6  ;;  %v5808_v4 = vunpack.i.l.bf16 %v5807_v6  ;;  %4991 = vrot.lane.b32.xlu1 %v11239_v23, %s6165_s1  ;;  %v3854_v10 = vsel %vm85_vm0, %v6066_v29, %v5344_v25  ;;  %v6067_v6 = vld [vmem:[#allocation2 + $0x10f] sm:$0xff] }
 0x5ba   :  { %4989 = vrot.lane.b32.xlu0 %v11240_v53, %s6165_s1  ;;  %v3891_v54 = vsel %vm1361_vm1, %v3851_v26, %v5813_v35  ;;  %v3892_v5 = vsel %vm1361_vm1, %v3852_v38, %v5814_v28  ;;  %v3853_v33 = vsel %vm85_vm0, %v6067_v6, %v5343_v30  ;;  %v11249_v23 = vld [vmem:[#allocation28_spill] sm:$0xff]  ;;  %v11250_v53 = vld [vmem:[#allocation31_spill] sm:$0xff] }
 0x5bb   :  { %v4089_v40 = vsel %vm1566_vm6, %v4049_v42, %v5808_v4  ;;  %v4090_v12 = vsel %vm1566_vm6, %v4050_v9, %v5809_v17  ;;  %v5822_v27 = vpop.permute.xlu1 %5821  ;;  %v6069_v30 = vld [vmem:[#allocation2 + $0x127] sm:$0xff] }
 0x5bc   :  { %v5817_v48 = vpop.permute.xlu0 %5816  ;;  %v4129_v56 = vpack.c.bf16 %v4090_v12, %v4089_v40  ;;  %v5824_v41 = vunpack.i.h.bf16 %v5822_v27  ;;  %v5823_v45 = vunpack.i.l.bf16 %v5822_v27  ;;  %v11251_v40 = vld [vmem:[#allocation134_spill] sm:$0xff]  ;;  %v11252_v12 = vld [vmem:[#allocation133_spill] sm:$0xff] }
 0x5bd   :  { %v5819_v32 = vunpack.i.h.bf16 %v5817_v48  ;;  %v5818_v16 = vunpack.i.l.bf16 %v5817_v48  ;;  %4995 = vrot.lane.b32.xlu1 %v11241_v63, %s6165_s1  ;;  %v11253_v27 = vpack.c.bf16 %v11251_v40, %v11252_v12 }
 0x5be   :  { %4993 = vrot.lane.b32.xlu0 %v11242_v47, %s6165_s1  ;;  %4418 = vmatmul.mubr.bf16.gmra.mxu1 %v4129_v56 }
 0x5bf   :  { %v3932_v43 = vsel %vm1402_vm2, %v3892_v5, %v5819_v32  ;;  %v3931_v15 = vsel %vm1402_vm2, %v3891_v54, %v5818_v16  ;;  %5236 = vmatprep.mubr.msk.bf16.mxu1 %vm85_vm0, %v11243_v37  ;;  %v5832_v2 = vpop.permute.xlu1 %5831  ;;  %v11254_v54 = vld [vmem:[#allocation82_spill] sm:$0xff]  ;;  %v11255_v5 = vld [vmem:[#allocation81_spill] sm:$0xff] }
 0x5c0   :  { %v5827_v1 = vpop.permute.xlu0 %5826  ;;  %v5834_v55 = vunpack.i.h.bf16 %v5832_v2  ;;  %v5833_v62 = vunpack.i.l.bf16 %v5832_v2  ;;  %v3971_v52 = vsel %vm1443_vm3, %v3931_v15, %v5823_v45  ;;  %v3972_v24 = vsel %vm1443_vm3, %v3932_v43, %v5824_v41  ;;  %v11256_v43 = vld [vmem:[#allocation83_spill] sm:$0xff] }
 0x5c1   :  { %v5829_v50 = vunpack.i.h.bf16 %v5827_v1  ;;  %v5828_v58 = vunpack.i.l.bf16 %v5827_v1  ;;  %4999 = vrot.lane.b32.xlu1 %v11244_v8, %s6165_s1  ;;  %v5348_v15 = vunpack.i.l.bf16 %v11256_v43  ;;  %v5349_v1 = vunpack.i.h.bf16 %v11256_v43 }
 0x5c2   :  { %4997 = vrot.lane.b32.xlu0 %v11245_v18, %s6165_s1 }
 0x5c3   :  { %v4011_v46 = vsel %vm1484_vm4, %v3971_v52, %v5828_v58  ;;  %v4012_v60 = vsel %vm1484_vm4, %v3972_v24, %v5829_v50  ;;  %v5842_v49 = vpop.permute.xlu1 %5841  ;;  %v11257_v58 = vld [vmem:[#allocation29_spill] sm:$0xff] }
 0x5c4   :  { %v5837_v57 = vpop.permute.xlu0 %5836  ;;  %v5844_v0 = vunpack.i.h.bf16 %v5842_v49  ;;  %v5843_v7 = vunpack.i.l.bf16 %v5842_v49  ;;  %v4051_v39 = vsel %vm1525_vm5, %v4011_v46, %v5833_v62  ;;  %v4052_v11 = vsel %vm1525_vm5, %v4012_v60, %v5834_v55  ;;  %v6068_v49 = vld [vmem:[#allocation2 + $0x11f] sm:$0xff] }
 0x5c5   :  { %v5839_v51 = vunpack.i.h.bf16 %v5837_v57  ;;  %v5838_v20 = vunpack.i.l.bf16 %v5837_v57  ;;  %5003 = vrot.lane.b32.xlu1 %v11247_v61, %s6165_s1  ;;  %v3855_v57 = vsel %vm85_vm0, %v6068_v49, %v5348_v15 }
 0x5c6   :  { %5001 = vrot.lane.b32.xlu0 %v11248_v36, %s6165_s1  ;;  %v3894_v17 = vsel %vm1361_vm1, %v3854_v10, %v5844_v0  ;;  %v3893_v4 = vsel %vm1361_vm1, %v3853_v33, %v5843_v7 }
 0x5c7   :  { %v4091_v34 = vsel %vm1566_vm6, %v4051_v39, %v5838_v20  ;;  %v4092_v13 = vsel %vm1566_vm6, %v4052_v11, %v5839_v51  ;;  %v5852_v21 = vpop.permute.xlu1 %5851  ;;  %v3856_v51 = vsel %vm85_vm0, %v6069_v30, %v5349_v1  ;;  %v11258_v11 = vld [vmem:[#allocation59_spill] sm:$0xff] }
 0x5c8   :  { %v5847_v3 = vpop.permute.xlu0 %5846  ;;  %v4131_v19 = vpack.c.bf16 %v4092_v13, %v4091_v34  ;;  %v5854_v28 = vunpack.i.h.bf16 %v5852_v21  ;;  %v5853_v35 = vunpack.i.l.bf16 %v5852_v21  ;;  %v11259_v34 = vld [vmem:[#allocation58_spill] sm:$0xff] }
 0x5c9   :  { %v5849_v44 = vunpack.i.h.bf16 %v5847_v3  ;;  %v5848_v14 = vunpack.i.l.bf16 %v5847_v3  ;;  %5007 = vrot.lane.b32.xlu1 %v11249_v23, %s6165_s1  ;;  %v11260_v13 = vpack.c.bf16 %v11258_v11, %v11259_v34 }
 0x5ca   :  { %5005 = vrot.lane.b32.xlu0 %v11250_v53, %s6165_s1  ;;  %4426 = vmatmul.mubr.bf16.gmra.mxu1 %v4131_v19 }
 0x5cb   :  { %v3934_v42 = vsel %vm1402_vm2, %v3894_v17, %v5849_v44  ;;  %v3933_v9 = vsel %vm1402_vm2, %v3893_v4, %v5848_v14  ;;  %5237 = vmatprep.mubr.msk.bf16.mxu1 %vm85_vm0, %v11253_v27  ;;  %v5862_v48 = vpop.permute.xlu1 %5861 }
 0x5cc   :  { %v5857_v56 = vpop.permute.xlu0 %5856  ;;  %v5864_v22 = vunpack.i.h.bf16 %v5862_v48  ;;  %v5863_v26 = vunpack.i.l.bf16 %v5862_v48  ;;  %v3973_v32 = vsel %vm1443_vm3, %v3933_v9, %v5853_v35  ;;  %v3974_v16 = vsel %vm1443_vm3, %v3934_v42, %v5854_v28  ;;  %v11261_v42 = vld [vmem:[#allocation120_spill] sm:$0xff] }
 0x5cd   :  { %v5859_v31 = vunpack.i.h.bf16 %v5857_v56  ;;  %v5858_v38 = vunpack.i.l.bf16 %v5857_v56  ;;  %5011 = vrot.lane.b32.xlu1 %v11254_v54, %s6165_s1  ;;  %v5353_v9 = vunpack.i.l.bf16 %v11261_v42  ;;  %v5354_v48 = vunpack.i.h.bf16 %v11261_v42 }
 0x5ce   :  { %5009 = vrot.lane.b32.xlu0 %v11255_v5, %s6165_s1  ;;  %v6070_v5 = vld [vmem:[#allocation2 + $0x12f] sm:$0xff] }
 0x5cf   :  { %v4013_v41 = vsel %vm1484_vm4, %v3973_v32, %v5858_v38  ;;  %v4014_v45 = vsel %vm1484_vm4, %v3974_v16, %v5859_v31  ;;  %v5872_v63 = vpop.permute.xlu1 %5871 }
 0x5d0   :  { %v5867_v47 = vpop.permute.xlu0 %5866  ;;  %v5873_v50 = vunpack.i.l.bf16 %v5872_v63  ;;  %v4053_v55 = vsel %vm1525_vm5, %v4013_v41, %v5863_v26  ;;  %v4054_v62 = vsel %vm1525_vm5, %v4014_v45, %v5864_v22  ;;  %v5874_v52 = vunpack.i.h.bf16 %v5872_v63 }
 0x5d1   :  { %v5869_v37 = vunpack.i.h.bf16 %v5867_v47  ;;  %v5868_v2 = vunpack.i.l.bf16 %v5867_v47  ;;  %v3857_v41 = vsel %vm85_vm0, %v6070_v5, %v5353_v9  ;;  %v6071_v47 = vld [vmem:[#allocation2 + $0x137] sm:$0xff] }
 0x5d2   :  { %5013 = vrot.lane.b32.xlu0 %v11257_v58, %s6165_s1  ;;  %v3895_v20 = vsel %vm1361_vm1, %v3855_v57, %v5873_v50  ;;  %v3896_v7 = vsel %vm1361_vm1, %v3856_v51, %v5874_v52  ;;  %v3858_v43 = vsel %vm85_vm0, %v6071_v47, %v5354_v48 }
 0x5d3   :  { %v4093_v24 = vsel %vm1566_vm6, %v4053_v55, %v5868_v2  ;;  %v4094_v8 = vsel %vm1566_vm6, %v4054_v62, %v5869_v37  ;;  %v5882_v18 = vpop.permute.xlu1 %5881 }
 0x5d4   :  { %v5877_v46 = vpop.permute.xlu0 %5876  ;;  %v4133_v60 = vpack.c.bf16 %v4094_v8, %v4093_v24  ;;  %v5883_v0 = vunpack.i.l.bf16 %v5882_v18  ;;  %v5884_v61 = vunpack.i.h.bf16 %v5882_v18  ;;  %v11262_v8 = vld [vmem:[#allocation57_spill] sm:$0xff] }
 0x5d5   :  { %v5879_v59 = vunpack.i.h.bf16 %v5877_v46  ;;  %v5878_v25 = vunpack.i.l.bf16 %v5877_v46  ;;  %v11263_v18 = vld [vmem:[#allocation113_spill] sm:$0xff] }
 0x5d6   :  { %4434 = vmatmul.mubr.bf16.gmra.mxu1 %v4133_v60  ;;  %v9563_v39 = vpop.f32.mrf.mxu1  ;;  %v11264_v46 = vpack.c.bf16 %v11262_v8, %v11263_v18 }
 0x5d7   :  { %v3935_v36 = vsel %vm1402_vm2, %v3895_v20, %v5878_v25  ;;  %5238 = vmatprep.mubr.msk.bf16.mxu1 %vm85_vm0, %v11260_v13  ;;  %v3936_v21 = vsel %vm1402_vm2, %v3896_v7, %v5879_v59  ;;  %v5892_v3 = vpop.permute.xlu1 %5891  ;;  %v11265_v7 = vld [vmem:[#allocation34_spill] sm:$0xff] }
 0x5d8   :  { %v5887_v19 = vpop.permute.xlu0 %5886  ;;  %v4309_v6 = vpop.f32.mrf.mxu1  ;;  %v5893_v33 = vunpack.i.l.bf16 %v5892_v3  ;;  %v3975_v44 = vsel %vm1443_vm3, %v3935_v36, %v5883_v0  ;;  %v5894_v14 = vunpack.i.h.bf16 %v5892_v3  ;;  %v3976_v17 = vsel %vm1443_vm3, %v3936_v21, %v5884_v61 }
 0x5d9   :  { %v5889_v29 = vunpack.i.h.bf16 %v5887_v19  ;;  %v5888_v10 = vunpack.i.l.bf16 %v5887_v19  ;;  %v5359_v61 = vunpack.i.h.bf16 %v11265_v7  ;;  %v5358_v36 = vunpack.i.l.bf16 %v11265_v7 }
 0x5da   :  { %v9573_v28 = vpop.f32.mrf.mxu1 }
 0x5db   :  { %v4015_v4 = vsel %vm1484_vm4, %v3975_v44, %v5888_v10  ;;  %v4016_v35 = vsel %vm1484_vm4, %v3976_v17, %v5889_v29  ;;  %v5902_v23 = vpop.permute.xlu1 %5901  ;;  %v2852_v44 = vld [vmem:[#allocation2 + $0x169] sm:$0xff] }
 0x5dc   :  { %v5897_v53 = vpop.permute.xlu0 %5896  ;;  %v4312_v27 = vpop.f32.mrf.mxu1  ;;  %v5903_v56 = vunpack.i.l.bf16 %v5902_v23  ;;  %v4055_v31 = vsel %vm1525_vm5, %v4015_v4, %v5893_v33  ;;  %v5904_v38 = vunpack.i.h.bf16 %v5902_v23  ;;  %v4056_v22 = vsel %vm1525_vm5, %v4016_v35, %v5894_v14  ;;  %v2851_v33 = vld [vmem:[#allocation2 + $0x161] sm:$0xff] }
 0x5dd   :  { %v5899_v40 = vunpack.i.h.bf16 %v5897_v53  ;;  %v5898_v12 = vunpack.i.l.bf16 %v5897_v53  ;;  %v6072_v4 = vld [vmem:[#allocation2 + $0x147] sm:$0xff]  ;;  %v6073_v23 = vld [vmem:[#allocation2 + $0x13f] sm:$0xff] }
 0x5de   :  { %v3897_v15 = vsel %vm1361_vm1, %v3857_v41, %v5903_v56  ;;  %v3898_v1 = vsel %vm1361_vm1, %v3858_v43, %v5904_v38  ;;  %v3860_v35 = vsel %vm85_vm0, %v6072_v4, %v5359_v61  ;;  %v3859_v53 = vsel %vm85_vm0, %v6073_v23, %v5358_v36 }
 0x5df   :  { %v4095_v26 = vsel %vm1566_vm6, %v4055_v31, %v5898_v12  ;;  %v5912_v32 = vpop.permute.xlu1 %5911  ;;  %v4096_v54 = vsel %vm1566_vm6, %v4056_v22, %v5899_v40  ;;  %v4140_v56 = vpack.c.bf16 %v2852_v44, %v2851_v33 }
 0x5e0   :  { %v5907_v16 = vpop.permute.xlu0 %5906  ;;  %v5913_v37 = vunpack.i.l.bf16 %v5912_v32  ;;  %v4135_v2 = vpack.c.bf16 %v4096_v54, %v4095_v26  ;;  %v5914_v50 = vunpack.i.h.bf16 %v5912_v32 }
 0x5e1   :  { %v5909_v45 = vunpack.i.h.bf16 %v5907_v16  ;;  %v5908_v63 = vunpack.i.l.bf16 %v5907_v16 }
 0x5e2   :  { %v9587_v55 = vpop.f32.mrf.mxu1  ;;  %4442 = vmatmul.mubr.bf16.gmra.mxu1 %v4135_v2 }
 0x5e3   :  { %v3937_v58 = vsel %vm1402_vm2, %v3897_v15, %v5908_v63  ;;  %v3938_v62 = vsel %vm1402_vm2, %v3898_v1, %v5909_v45  ;;  %v5922_v52 = vpop.permute.xlu1 %5921  ;;  %5239 = vmatprep.mubr.msk.bf16.mxu1 %vm85_vm0, %v11264_v46 }
 0x5e4   :  { %v5917_v24 = vpop.permute.xlu0 %5916  ;;  %v4317_v57 = vpop.f32.mrf.mxu1  ;;  %v5923_v59 = vunpack.i.l.bf16 %v5922_v52  ;;  %v3977_v25 = vsel %vm1443_vm3, %v3937_v58, %v5913_v37  ;;  %v5924_v30 = vunpack.i.h.bf16 %v5922_v52  ;;  %v3978_v51 = vsel %vm1443_vm3, %v3938_v62, %v5914_v50 }
 0x5e5   :  { %v5919_v60 = vunpack.i.h.bf16 %v5917_v24  ;;  %v5918_v49 = vunpack.i.l.bf16 %v5917_v24 }
 0x5e6   :  { %v9597_v0 = vpop.f32.mrf.mxu1 }
 0x5e7   :  { %v4017_v20 = vsel %vm1484_vm4, %v3977_v25, %v5918_v49  ;;  %v4018_v11 = vsel %vm1484_vm4, %v3978_v51, %v5919_v60  ;;  %v5932_v34 = vpop.permute.xlu1 %5931 }
 0x5e8   :  { %v5927_v13 = vpop.permute.xlu0 %5926  ;;  %v5933_v21 = vunpack.i.l.bf16 %v5932_v34  ;;  %v4320_v29 = vpop.f32.mrf.mxu1  ;;  %v5934_v10 = vunpack.i.h.bf16 %v5932_v34  ;;  %v4057_v6 = vsel %vm1525_vm5, %v4017_v20, %v5923_v59  ;;  %v4058_v14 = vsel %vm1525_vm5, %v4018_v11, %v5924_v30 }
 0x5e9   :  { %v5929_v3 = vunpack.i.h.bf16 %v5927_v13  ;;  %v5928_v19 = vunpack.i.l.bf16 %v5927_v13 }
 0x5ea   :  { %v3899_v12 = vsel %vm1361_vm1, %v3859_v53, %v5933_v21  ;;  %v3900_v31 = vsel %vm1361_vm1, %v3860_v35, %v5934_v10 }
 0x5eb   :  { %v4097_v17 = vsel %vm1566_vm6, %v4057_v6, %v5928_v19  ;;  %v5942_v42 = vpop.permute.xlu1 %5941  ;;  %v4098_v40 = vsel %vm1566_vm6, %v4058_v14, %v5929_v3 }
 0x5ec   :  { %v5937_v9 = vpop.permute.xlu0 %5936  ;;  %v5944_v38 = vunpack.i.h.bf16 %v5942_v42  ;;  %v5943_v22 = vunpack.i.l.bf16 %v5942_v42  ;;  %v4137_v26 = vpack.c.bf16 %v4098_v40, %v4097_v17 }
 0x5ed   :  { %v5939_v27 = vunpack.i.h.bf16 %v5937_v9  ;;  %v5938_v48 = vunpack.i.l.bf16 %v5937_v9 }
 0x5ee   :  { %v9612_v54 = vpop.f32.mrf.mxu1  ;;  %4450 = vmatmul.mubr.bf16.gmra.mxu1 %v4137_v26 }
 0x5ef   :  { %v3940_v32 = vsel %vm1402_vm2, %v3900_v31, %v5939_v27  ;;  %v3939_v16 = vsel %vm1402_vm2, %v3899_v12, %v5938_v48  ;;  %v5952_v5 = vpop.permute.xlu1 %5951  ;;  %5240 = vmatprep.mubr.msk.bf16.mxu1 %vm85_vm0, %v4140_v56 }
 0x5f0   :  { %v5947_v41 = vpop.permute.xlu0 %5946  ;;  %v4325_v47 = vpop.f32.mrf.mxu1  ;;  %v5954_v43 = vunpack.i.h.bf16 %v5952_v5  ;;  %v5953_v15 = vunpack.i.l.bf16 %v5952_v5  ;;  %v3979_v37 = vsel %vm1443_vm3, %v3939_v16, %v5943_v22  ;;  %v3980_v2 = vsel %vm1443_vm3, %v3940_v32, %v5944_v38  ;;  %v11269_v22 = vld [vmem:[#allocation33_spill] sm:$0xff]  ;;  %v11271_v16 = vld [vmem:[#allocation86_spill] sm:$0xff] }
 0x5f1   :  { %v5949_v45 = vunpack.i.h.bf16 %v5947_v41  ;;  %v5948_v63 = vunpack.i.l.bf16 %v5947_v41  ;;  %v4469_v26 = vmul.f32 %v9573_v28, %v11269_v22  ;;  %v4468_v5 = vmul.f32 %v9563_v39, %v11271_v16  ;;  %v11272_v41 = vld [vmem:[#allocation87_spill] sm:$0xff] }
 0x5f2   :  { %v9619_v58 = vpop.f32.mrf.mxu1 }
 0x5f3   :  { %v4019_v1 = vsel %vm1484_vm4, %v3979_v37, %v5948_v63  ;;  %v4020_v50 = vsel %vm1484_vm4, %v3980_v2, %v5949_v45  ;;  %v4470_v45 = vmul.f32 %v9587_v55, %v11272_v41  ;;  %v4509_v47 = vsel %vm85_vm0, %v4469_v26, 0.0  ;;  %v11282_v26 = vld [vmem:[#allocation39_spill] sm:$0xff] }
 0x5f4   :  { %v5957_v62 = vpop.permute.xlu0 %5956  ;;  %v4328_v8 = vpop.f32.mrf.mxu1  ;;  %v4059_v18 = vsel %vm1525_vm5, %v4019_v1, %v5953_v15  ;;  %v4060_v46 = vsel %vm1525_vm5, %v4020_v50, %v5954_v43  ;;  %v11273_v43 = vld [vmem:[#allocation36_spill] sm:$0xff]  ;;  %v4508_v37 = vsel %vm85_vm0, %v4468_v5, 0.0  ;;  %v11274_v1 = vld [vmem:[#allocation37_spill] sm:$0xff] }
 0x5f5   :  { %v5959_v52 = vunpack.i.h.bf16 %v5957_v62  ;;  %v5958_v24 = vunpack.i.l.bf16 %v5957_v62  ;;  %v4471_v15 = vmul.f32 %v9597_v0, %v11273_v43  ;;  %v4511_v2 = vsel %vm85_vm0, %v4470_v45, 0.0 }
 0x5f6   :  { %v4472_v50 = vmul.f32 %v9612_v54, %v11274_v1  ;;  %v4510_v62 = vadd.f32 %v4509_v47, %v4508_v37  ;;  %v11283_v47 = vld [vmem:[#allocation92_spill] sm:$0xff] }
 0x5f7   :  { %v4099_v60 = vsel %vm1566_vm6, %v4059_v18, %v5958_v24  ;;  %v4100_v49 = vsel %vm1566_vm6, %v4060_v46, %v5959_v52  ;;  %v4513_v52 = vsel %vm85_vm0, %v4471_v15, 0.0  ;;  %v11275_v24 = vld [vmem:[#allocation88_spill] sm:$0xff] }
 0x5f8   :  { %v4139_v57 = vpack.c.bf16 %v4100_v49, %v4099_v60  ;;  %v4473_v8 = vmul.f32 %v9619_v58, %v11275_v24  ;;  %v4512_v46 = vadd.f32 %v4511_v2, %v4510_v62  ;;  %v4515_v60 = vsel %vm85_vm0, %v4472_v50, 0.0  ;;  %v11277_v49 = vld [vmem:[#allocation89_spill] sm:$0xff] }
 0x5f9   :  { %v11285_v62 = vld [vmem:[#allocation93_spill] sm:$0xff] }
 0x5fa   :  { %4458 = vmatmul.mubr.bf16.gmra.mxu1 %v4139_v57  ;;  %v9625_v59 = vpop.f32.mrf.mxu1 }
 0x5fb   :  { %v4474_v57 = vmul.f32 %v9625_v59, %v11277_v49 }
 0x5fc   :  { %v4333_v25 = vpop.f32.mrf.mxu1 }
 0x5fe   :  { %v9627_v30 = vpop.f32.mrf.mxu1 }
 0x600   :  { %v4336_v51 = vpop.f32.mrf.mxu1 }
 0x601   :  { %v4514_v51 = vadd.f32 %v4513_v52, %v4512_v46 }
 0x606   :  { %v9629_v20 = vpop.f32.mrf.mxu1 }
 0x608   :  { %v4341_v7 = vpop.f32.mrf.mxu1 }
 0x609   :  { %v4517_v7 = vsel %vm85_vm0, %v4473_v8, 0.0 }
 0x60a   :  { %v9631_v61 = vpop.f32.mrf.mxu1 }
 0x60c   :  { %v4344_v36 = vpop.f32.mrf.mxu1 }
 0x60d   :  { %v11278_v36 = vld [vmem:[#allocation90_spill] sm:$0xff] }
 0x612   :  { %v9633_v11 = vpop.f32.mrf.mxu1 }
 0x613   :  { %v4478_v5 = vmul.f32 %v9633_v11, %v11282_v26 }
 0x614   :  { %v4349_v34 = vpop.f32.mrf.mxu1 }
 0x615   :  { %v4475_v34 = vmul.f32 %v9627_v30, %v11278_v36  ;;  %v4527_v50 = vsel %vm85_vm0, %v4478_v5, 0.0  ;;  %v11290_v5 = vld [vmem:[#allocation41_spill] sm:$0xff] }
 0x616   :  { %v9635_v13 = vpop.f32.mrf.mxu1 }
 0x617   :  { %v4479_v15 = vmul.f32 %v9635_v13, %v11283_v47 }
 0x618   :  { %v4352_v21 = vpop.f32.mrf.mxu1 }
 0x61e   :  { %v9637_v3 = vpop.f32.mrf.mxu1 }
 0x61f   :  { %v4480_v52 = vmul.f32 %v9637_v3, %v11285_v62 }
 0x620   :  { %v4357_v19 = vpop.f32.mrf.mxu1 }
 0x621   :  { %v4516_v19 = vadd.f32 %v4515_v60, %v4514_v51  ;;  %v4529_v60 = vsel %vm85_vm0, %v4479_v15, 0.0 }
 0x622   :  { %v9639_v29 = vpop.f32.mrf.mxu1 }
 0x624   :  { %v4360_v10 = vpop.f32.mrf.mxu1 }
 0x625   :  { %v4519_v10 = vsel %vm85_vm0, %v4474_v57, 0.0  ;;  %v11286_v57 = vld [vmem:[#allocation94_spill] sm:$0xff] }
 0x62a   :  { %v9641_v6 = vpop.f32.mrf.mxu1 }
 0x62c   :  { %v4365_v33 = vpop.f32.mrf.mxu1 }
 0x62d   :  { %v11280_v33 = vld [vmem:[#allocation91_spill] sm:$0xff] }
 0x62e   :  { %v9643_v44 = vpop.f32.mrf.mxu1 }
 0x630   :  { %v4368_v14 = vpop.f32.mrf.mxu1 }
 0x631   :  { %v4476_v14 = vmul.f32 %v9629_v20, %v11280_v33 }
 0x636   :  { %v9645_v17 = vpop.f32.mrf.mxu1 }
 0x638   :  { %v4373_v4 = vpop.f32.mrf.mxu1 }
 0x63a   :  { %v9647_v35 = vpop.f32.mrf.mxu1 }
 0x63c   :  { %v4376_v23 = vpop.f32.mrf.mxu1 }
 0x63d   :  { %v4518_v23 = vadd.f32 %v4517_v7, %v4516_v19  ;;  %v11288_v19 = vld [vmem:[#allocation95_spill] sm:$0xff] }
 0x642   :  { %v9649_v53 = vpop.f32.mrf.mxu1 }
 0x644   :  { %v4381_v42 = vpop.f32.mrf.mxu1 }
 0x645   :  { %v4521_v42 = vsel %vm85_vm0, %v4475_v34, 0.0  ;;  %v4531_v34 = vsel %vm85_vm0, %v4480_v52, 0.0 }
 0x646   :  { %v9651_v9 = vpop.f32.mrf.mxu1 }
 0x647   :  { %11266 = vst [vmem:[#allocation35_spill] sm:$0xff] %v9651_v9 }
 0x648   :  { %v4384_v40 = vpop.f32.mrf.mxu1 }
 0x649   :  { %v11281_v40 = vld [vmem:[#allocation38_spill] sm:$0xff] }
 0x64e   :  { %v9653_v12 = vpop.f32.mrf.mxu1 }
 0x650   :  { %v4389_v27 = vpop.f32.mrf.mxu1 }
 0x651   :  { %v4477_v27 = vmul.f32 %v9631_v61, %v11281_v40 }
 0x652   :  { %v9655_v48 = vpop.f32.mrf.mxu1 }
 0x653   :  { %11267 = vst [vmem:[#allocation84_spill] sm:$0xff] %v9655_v48 }
 0x654   :  { %v4392_v56 = vpop.f32.mrf.mxu1 }
 0x655   :  { %v4520_v56 = vadd.f32 %v4519_v10, %v4518_v23  ;;  %v4482_v10 = vmul.f32 %v9641_v6, %v11288_v19 }
 0x657   :  { %v4522_v45 = vadd.f32 %v4521_v42, %v4520_v56  ;;  %v11289_v42 = vld [vmem:[#allocation40_spill] sm:$0xff] }
 0x65a   :  { %v9657_v31 = vpop.f32.mrf.mxu1 }
 0x65b   :  { %11268 = vst [vmem:[#allocation85_spill] sm:$0xff] %v9657_v31 }
 0x65c   :  { %v4397_v38 = vpop.f32.mrf.mxu1 }
 0x65d   :  { %v4523_v38 = vsel %vm85_vm0, %v4476_v14, 0.0 }
 0x65e   :  { %v9661_v32 = vpop.f32.mrf.mxu1  ;;  %v4524_v2 = vadd.f32 %v4523_v38, %v4522_v45  ;;  %v4535_v38 = vsel %vm85_vm0, %v4482_v10, 0.0  ;;  %v4484_v45 = vmul.f32 %v9645_v17, %v11290_v5 }
 0x65f   :  { %11270 = vst [vmem:[#allocation32_spill] sm:$0xff] %v9661_v32 }
 0x660   :  { %v4400_v63 = vpop.f32.mrf.mxu1 }
 0x661   :  { %v4525_v63 = vsel %vm85_vm0, %v4477_v27, 0.0  ;;  %v4483_v27 = vmul.f32 %v9643_v44, %v11289_v42 }
 0x662   :  { %v4526_v46 = vadd.f32 %v4525_v63, %v4524_v2  ;;  %v11291_v2 = vld [vmem:[#allocation96_spill] sm:$0xff] }
 0x663   :  { %v4537_v15 = vsel %vm85_vm0, %v4483_v27, 0.0 }
 0x664   :  { %v4528_v7 = vadd.f32 %v4527_v50, %v4526_v46  ;;  %v4485_v50 = vmul.f32 %v9647_v35, %v11291_v2  ;;  %v4539_v46 = vsel %vm85_vm0, %v4484_v45, 0.0  ;;  %v11296_v2 = vld [vmem:[#allocation42_spill] sm:$0xff] }
 0x666   :  { %v9677_v18 = vpop.f32.mrf.mxu1  ;;  %v4541_v10 = vsel %vm85_vm0, %v4485_v50, 0.0 }
 0x667   :  { %11276 = vst [vmem:[#allocation97_spill] sm:$0xff] %v9677_v18 }
 0x668   :  { %v4405_v25 = vpop.f32.mrf.mxu1 }
 0x669   :  { %v4481_v25 = vmul.f32 %v9639_v29, %v11286_v57 }
 0x66a   :  { %v9685_v21 = vpop.f32.mrf.mxu1 }
 0x66b   :  { %11279 = vst [vmem:[#allocation122_spill] sm:$0xff] %v9685_v21  ;;  %v4533_v23 = vsel %vm85_vm0, %v4481_v25, 0.0 }
 0x66c   :  { %v4408_v4 = vpop.f32.mrf.mxu1 }
 0x66d   :  { %v4530_v4 = vadd.f32 %v4529_v60, %v4528_v7  ;;  %v11293_v60 = vld [vmem:[#allocation121_spill] sm:$0xff] }
 0x66e   :  { %v4486_v25 = vmul.f32 %v9649_v53, %v11293_v60  ;;  %v11297_v60 = vld [vmem:[#allocation43_spill] sm:$0xff] }
 0x66f   :  { %v4532_v56 = vadd.f32 %v4531_v34, %v4530_v4 }
 0x671   :  { %v4534_v63 = vadd.f32 %v4533_v23, %v4532_v56  ;;  %v4543_v56 = vsel %vm85_vm0, %v4486_v25, 0.0  ;;  %v11299_v25 = vld [vmem:[#allocation100_spill] sm:$0xff] }
 0x672   :  { %v9699_v37 = vpop.f32.mrf.mxu1 }
 0x673   :  { %11284 = vst [vmem:[#allocation101_spill] sm:$0xff] %v9699_v37 }
 0x674   :  { %v4413_v8 = vpop.f32.mrf.mxu1 }
 0x675   :  { %v4536_v8 = vadd.f32 %v4535_v38, %v4534_v63  ;;  %v4488_v38 = vmul.f32 %v9653_v12, %v11296_v2 }
 0x676   :  { %v9707_v51 = vpop.f32.mrf.mxu1 }
 0x677   :  { %11287 = vst [vmem:[#allocation132_spill] sm:$0xff] %v9707_v51  ;;  %v4538_v34 = vadd.f32 %v4537_v15, %v4536_v8  ;;  %v4489_v15 = vmul.f32 %v9655_v48, %v11297_v60  ;;  %v4547_v50 = vsel %vm85_vm0, %v4488_v38, 0.0  ;;  %v11302_v60 = vld [vmem:[#allocation45_spill] sm:$0xff] }
 0x678   :  { %v4416_v14 = vpop.f32.mrf.mxu1 }
 0x679   :  { %v11294_v14 = vld [vmem:[#allocation98_spill] sm:$0xff]  ;;  %v4540_v27 = vadd.f32 %v4539_v46, %v4538_v34  ;;  %v4549_v46 = vsel %vm85_vm0, %v4489_v15, 0.0  ;;  %v4491_v34 = vmul.f32 %v9661_v32, %v11299_v25 }
 0x67a   :  { %v4487_v4 = vmul.f32 %v9651_v9, %v11294_v14 }
 0x67b   :  { %v4542_v45 = vadd.f32 %v4541_v10, %v4540_v27  ;;  %v11301_v27 = vld [vmem:[#allocation44_spill] sm:$0xff]  ;;  %v4553_v38 = vsel %vm85_vm0, %v4491_v34, 0.0 }
 0x67c   :  { %v4545_v5 = vsel %vm85_vm0, %v4487_v4, 0.0 }
 0x67d   :  { %v4544_v8 = vadd.f32 %v4543_v56, %v4542_v45 }
 0x67e   :  { %v9721_v52 = vpop.f32.mrf.mxu1 }
 0x67f   :  { %11292 = vst [vmem:[#allocation56_spill] sm:$0xff] %v9721_v52  ;;  %v4546_v9 = vadd.f32 %v4545_v5, %v4544_v8  ;;  %v4493_v5 = vmul.f32 %v9685_v21, %v11302_v60 }
 0x680   :  { %v4421_v7 = vpop.f32.mrf.mxu1 }
 0x681   :  { %v11298_v7 = vld [vmem:[#allocation99_spill] sm:$0xff]  ;;  %v4548_v10 = vadd.f32 %v4547_v50, %v4546_v9  ;;  %v4557_v32 = vsel %vm85_vm0, %v4493_v5, 0.0 }
 0x682   :  { %v9729_v23 = vpop.f32.mrf.mxu1  ;;  %v4490_v14 = vmul.f32 %v9657_v31, %v11298_v7  ;;  %v11304_v7 = vld [vmem:[#allocation102_spill] sm:$0xff] }
 0x683   :  { %11295 = vst [vmem:[#allocation52_spill] sm:$0xff] %v9729_v23  ;;  %v4550_v45 = vadd.f32 %v4549_v46, %v4548_v10  ;;  %v4494_v9 = vmul.f32 %v9699_v37, %v11304_v7  ;;  %v11309_v7 = vld [vmem:[#allocation47_spill] sm:$0xff] }
 0x684   :  { %v4424_v63 = vpop.f32.mrf.mxu1  ;;  %v4551_v4 = vsel %vm85_vm0, %v4490_v14, 0.0 }
 0x685   :  { %v4492_v63 = vmul.f32 %v9677_v18, %v11301_v27  ;;  %v4552_v15 = vadd.f32 %v4551_v4, %v4550_v45  ;;  %v11305_v27 = vld [vmem:[#allocation123_spill] sm:$0xff]  ;;  %v4559_v34 = vsel %vm85_vm0, %v4494_v9, 0.0  ;;  %v11308_v45 = vld [vmem:[#allocation46_spill] sm:$0xff] }
 0x686   :  { %v4495_v46 = vmul.f32 %v9707_v51, %v11305_v27  ;;  %v11311_v51 = vld [vmem:[#allocation104_spill] sm:$0xff] }
 0x687   :  { %v4555_v25 = vsel %vm85_vm0, %v4492_v63, 0.0  ;;  %v4554_v14 = vadd.f32 %v4553_v38, %v4552_v15 }
 0x688   :  { %v4561_v63 = vsel %vm85_vm0, %v4495_v46, 0.0 }
 0x689   :  { %v4556_v10 = vadd.f32 %v4555_v25, %v4554_v14 }
 0x68a   :  { %v9743_v2 = vpop.f32.mrf.mxu1 }
 0x68b   :  { %11300 = vst [vmem:[#allocation53_spill] sm:$0xff] %v9743_v2  ;;  %v4558_v21 = vadd.f32 %v4557_v32, %v4556_v10  ;;  %v4498_v25 = vmul.f32 %v9743_v2, %v11309_v7 }
 0x68c   :  { %v4429_v56 = vpop.f32.mrf.mxu1 }
 0x68d   :  { %v11306_v56 = vld [vmem:[#allocation124_spill] sm:$0xff]  ;;  %v4560_v38 = vadd.f32 %v4559_v34, %v4558_v21  ;;  %v4567_v46 = vsel %vm85_vm0, %v4498_v25, 0.0 }
 0x68e   :  { %v9751_v8 = vpop.f32.mrf.mxu1  ;;  %v4496_v60 = vmul.f32 %v9721_v52, %v11306_v56  ;;  %v11310_v56 = vld [vmem:[#allocation103_spill] sm:$0xff] }
 0x68f   :  { %11303 = vst [vmem:[#allocation108_spill] sm:$0xff] %v9751_v8  ;;  %v4562_v14 = vadd.f32 %v4561_v63, %v4560_v38  ;;  %v4499_v32 = vmul.f32 %v9751_v8, %v11310_v56 }
 0x690   :  { %v4432_v50 = vpop.f32.mrf.mxu1  ;;  %v4563_v5 = vsel %vm85_vm0, %v4496_v60, 0.0 }
 0x691   :  { %v4497_v50 = vmul.f32 %v9729_v23, %v11308_v45  ;;  %v4564_v10 = vadd.f32 %v4563_v5, %v4562_v14  ;;  %v4569_v60 = vsel %vm85_vm0, %v4499_v32, 0.0  ;;  %v11313_v5 = vld [vmem:[#allocation126_spill] sm:$0xff] }
 0x693   :  { %v4565_v27 = vsel %vm85_vm0, %v4497_v50, 0.0 }
 0x694   :  { %v4566_v34 = vadd.f32 %v4565_v27, %v4564_v10 }
 0x696   :  { %v9762_v4 = vpop.f32.mrf.mxu1  ;;  %v4568_v7 = vadd.f32 %v4567_v46, %v4566_v34 }
 0x697   :  { %11307 = vst [vmem:[#allocation107_spill] sm:$0xff] %v9762_v4  ;;  %v4500_v21 = vmul.f32 %v9762_v4, %v11311_v51 }
 0x698   :  { %v4437_v15 = vpop.f32.mrf.mxu1  ;;  %v4570_v38 = vadd.f32 %v4569_v60, %v4568_v7 }
 0x699   :  { %v11312_v15 = vld [vmem:[#allocation125_spill] sm:$0xff]  ;;  %v4571_v63 = vsel %vm85_vm0, %v4500_v21, 0.0  ;;  %v11315_v21 = vld [vmem:[#allocation51_spill] sm:$0xff] }
 0x69a   :  { %v4438_v9 = vpop.f32.mrf.mxu1  ;;  %v4572_v2 = vadd.f32 %v4571_v63, %v4570_v38  ;;  %v11316_v63 = vld [vmem:[#allocation105_spill] sm:$0xff] }
 0x69b   :  { %v4501_v45 = vmul.f32 %v4438_v9, %v11312_v15  ;;  %v11314_v15 = vld [vmem:[#allocation50_spill] sm:$0xff] }
 0x69c   :  { %v4440_v52 = vpop.f32.mrf.mxu1 }
 0x69d   :  { %v4573_v50 = vsel %vm85_vm0, %v4501_v45, 0.0 }
 0x69e   :  { %v4574_v14 = vadd.f32 %v4573_v50, %v4572_v2 }
 0x6a2   :  { %v4443_v56 = vpop.f32.mrf.mxu1 }
 0x6a3   :  { %v4502_v52 = vmul.f32 %v4443_v56, %v11313_v5 }
 0x6a4   :  { %v4445_v25 = vpop.f32.mrf.mxu1 }
 0x6a5   :  { %v4575_v8 = vsel %vm85_vm0, %v4502_v52, 0.0  ;;  %v11317_v52 = vld [vmem:[#allocation106_spill] sm:$0xff] }
 0x6a6   :  { %v4576_v51 = vadd.f32 %v4575_v8, %v4574_v14  ;;  %v4446_v27 = vpop.f32.mrf.mxu1 }
 0x6a7   :  { %v4503_v46 = vmul.f32 %v4446_v27, %v11314_v15 }
 0x6a8   :  { %v4448_v10 = vpop.f32.mrf.mxu1 }
 0x6a9   :  { %v4577_v45 = vsel %vm85_vm0, %v4503_v46, 0.0 }
 0x6aa   :  { %v4578_v50 = vadd.f32 %v4577_v45, %v4576_v51 }
 0x6ae   :  { %v4451_v32 = vpop.f32.mrf.mxu1 }
 0x6af   :  { %v4504_v7 = vmul.f32 %v4451_v32, %v11315_v21  ;;  %v11318_v21 = vld [vmem:[#allocation127_spill] sm:$0xff] }
 0x6b0   :  { %v4453_v4 = vpop.f32.mrf.mxu1 }
 0x6b1   :  { %v4579_v2 = vsel %vm85_vm0, %v4504_v7, 0.0 }
 0x6b2   :  { %v4454_v34 = vpop.f32.mrf.mxu1  ;;  %v4580_v10 = vadd.f32 %v4579_v2, %v4578_v50 }
 0x6b3   :  { %v4505_v38 = vmul.f32 %v4454_v34, %v11316_v63 }
 0x6b4   :  { %v4456_v60 = vpop.f32.mrf.mxu1 }
 0x6b5   :  { %v4581_v8 = vsel %vm85_vm0, %v4505_v38, 0.0 }
 0x6b6   :  { %v4582_v5 = vadd.f32 %v4581_v8, %v4580_v10 }
 0x6ba   :  { %v4459_v25 = vpop.f32.mrf.mxu1 }
 0x6bb   :  { %v4506_v14 = vmul.f32 %v4459_v25, %v11317_v52 }
 0x6bc   :  { %v4461_v4 = vpop.f32.mrf.mxu1 }
 0x6bd   :  { %v4583_v15 = vsel %vm85_vm0, %v4506_v14, 0.0 }
 0x6be   :  { %v4462_v23 = vpop.f32.mrf.mxu1  ;;  %v4584_v37 = vadd.f32 %v4583_v15, %v4582_v5 }
 0x6bf   :  { %v4507_v60 = vmul.f32 %v4462_v23, %v11318_v21 }
 0x6c0   :  { %v4464_v46 = vpop.f32.mrf.mxu1 }
 0x6c1   :  { %v4585_v63 = vsel %vm85_vm0, %v4507_v60, 0.0 }
 0x6c2   :  { %v4586_v18 = vadd.f32 %v4585_v63, %v4584_v37 }
 0x6c4   :  { %v4587_v7 = vrot.slane %v4586_v18, 4 }
 0x6c6   :  { %v4588_v51 = vadd.f32 %v4587_v7, %v4586_v18 }
 0x6c8   :  { %v4589_v45 = vrot.slane %v4588_v51, 2 }
 0x6ca   :  { %v4590_v31 = vadd.f32 %v4589_v45, %v4588_v51 }
 0x6cc   :  { %v4591_v38 = vrot.slane %v4590_v31, 1 }
 0x6ce   :  { %v4592_v48 = vadd.f32 %v4591_v38, %v4590_v31 }
 0x6d0   :  { %v9792_v52 = vmul.f32 0.0078125, %v4592_v48 }
 0x6d2   :  { %v9795_v2 = vsub.f32 %v4438_v9, %v9792_v52  ;;  %v9798_v50 = vsub.f32 %v4443_v56, %v9792_v52  ;;  %v9801_v15 = vsub.f32 %v4446_v27, %v9792_v52  ;;  %v9804_v5 = vsub.f32 %v4451_v32, %v9792_v52 }
 0x6d3   :  { %v9807_v18 = vsub.f32 %v4454_v34, %v9792_v52  ;;  %v9810_v37 = vsub.f32 %v4459_v25, %v9792_v52  ;;  %v9813_v48 = vsub.f32 %v4462_v23, %v9792_v52  ;;  %v9817_v31 = vsub.f32 %v9563_v39, %v9792_v52 }
 0x6d4   :  { %v9821_v56 = vsub.f32 %v9573_v28, %v9792_v52  ;;  %v9825_v9 = vsub.f32 %v9587_v55, %v9792_v52  ;;  %v9829_v27 = vsub.f32 %v9597_v0, %v9792_v52  ;;  %v9837_v39 = vsub.f32 %v9612_v54, %v9792_v52 }
 0x6d5   :  { %v4634_v23 = vmul.f32 %v9817_v31, %v11271_v16  ;;  %v9843_v55 = vsub.f32 %v9619_v58, %v9792_v52  ;;  %v9849_v16 = vsub.f32 %v9625_v59, %v9792_v52  ;;  %v9863_v59 = vsub.f32 %v9629_v20, %v9792_v52 }
 0x6d6   :  { %v4635_v32 = vmul.f32 %v9821_v56, %v11269_v22  ;;  %v4636_v28 = vmul.f32 %v9825_v9, %v11272_v41  ;;  %v4637_v0 = vmul.f32 %v9829_v27, %v11273_v43  ;;  %v4638_v54 = vmul.f32 %v9837_v39, %v11274_v1 }
 0x6d7   :  { %v4674_v34 = vmul.f32 %v4634_v23, %v4634_v23  ;;  %v9855_v41 = vsub.f32 %v9627_v30, %v9792_v52  ;;  %v4639_v58 = vmul.f32 %v9843_v55, %v11275_v24  ;;  %v4640_v1 = vmul.f32 %v9849_v16, %v11277_v49 }
 0x6d8   :  { %v4675_v63 = vmul.f32 %v4635_v32, %v4635_v32  ;;  %v4676_v22 = vmul.f32 %v4636_v28, %v4636_v28  ;;  %v4677_v25 = vmul.f32 %v4637_v0, %v4637_v0  ;;  %v4678_v10 = vmul.f32 %v4638_v54, %v4638_v54 }
 0x6d9   :  { %v4714_v43 = vsel %vm85_vm0, %v4674_v34, 0.0  ;;  %v9870_v24 = vsub.f32 %v9631_v61, %v9792_v52  ;;  %v4641_v60 = vmul.f32 %v9855_v41, %v11278_v36  ;;  %v4679_v46 = vmul.f32 %v4639_v58, %v4639_v58 }
 0x6da   :  { %v4715_v8 = vsel %vm85_vm0, %v4675_v63, 0.0  ;;  %v4717_v30 = vsel %vm85_vm0, %v4676_v22, 0.0  ;;  %v4719_v7 = vsel %vm85_vm0, %v4677_v25, 0.0  ;;  %v9877_v20 = vsub.f32 %v9633_v11, %v9792_v52 }
 0x6db   :  { %v4716_v14 = vadd.f32 %v4715_v8, %v4714_v43  ;;  %v4642_v49 = vmul.f32 %v9863_v59, %v11280_v33  ;;  %v4680_v45 = vmul.f32 %v4640_v1, %v4640_v1  ;;  %v4721_v38 = vsel %vm85_vm0, %v4678_v10, 0.0 }
 0x6dc   :  { %v9884_v61 = vsub.f32 %v9635_v13, %v9792_v52  ;;  %v4643_v36 = vmul.f32 %v9870_v24, %v11281_v40  ;;  %v4681_v32 = vmul.f32 %v4641_v60, %v4641_v60  ;;  %v4723_v28 = vsel %vm85_vm0, %v4679_v46, 0.0 }
 0x6dd   :  { %v4718_v4 = vadd.f32 %v4717_v30, %v4716_v14  ;;  %v9891_v11 = vsub.f32 %v9637_v3, %v9792_v52  ;;  %v4644_v33 = vmul.f32 %v9877_v20, %v11282_v26  ;;  %v4682_v34 = vmul.f32 %v4642_v49, %v4642_v49 }
 0x6de   :  { %v4725_v63 = vsel %vm85_vm0, %v4680_v45, 0.0  ;;  %v9898_v13 = vsub.f32 %v9639_v29, %v9792_v52  ;;  %v4645_v40 = vmul.f32 %v9884_v61, %v11283_v47  ;;  %v4683_v22 = vmul.f32 %v4643_v36, %v4643_v36 }
 0x6df   :  { %v4720_v51 = vadd.f32 %v4719_v7, %v4718_v4  ;;  %v4727_v58 = vsel %vm85_vm0, %v4681_v32, 0.0  ;;  %v9905_v3 = vsub.f32 %v9641_v6, %v9792_v52  ;;  %v4646_v26 = vmul.f32 %v9891_v11, %v11285_v62 }
 0x6e0   :  { %v4684_v43 = vmul.f32 %v4644_v33, %v4644_v33  ;;  %v4729_v8 = vsel %vm85_vm0, %v4682_v34, 0.0  ;;  %v9912_v29 = vsub.f32 %v9643_v44, %v9792_v52  ;;  %v4647_v47 = vmul.f32 %v9898_v13, %v11286_v57 }
 0x6e1   :  { %v4722_v23 = vadd.f32 %v4721_v38, %v4720_v51  ;;  %v4685_v1 = vmul.f32 %v4645_v40, %v4645_v40  ;;  %v4731_v10 = vsel %vm85_vm0, %v4683_v22, 0.0  ;;  %v9919_v6 = vsub.f32 %v9645_v17, %v9792_v52 }
 0x6e2   :  { %v4648_v62 = vmul.f32 %v9905_v3, %v11288_v19  ;;  %v4686_v4 = vmul.f32 %v4646_v26, %v4646_v26  ;;  %v4733_v60 = vsel %vm85_vm0, %v4684_v43, 0.0  ;;  %v9926_v44 = vsub.f32 %v9647_v35, %v9792_v52  ;;  %v11319_v19 = vld [vmem:[#allocation41_spill] sm:$0xff]  ;;  %v11320_v35 = vld [vmem:[#allocation35_spill] sm:$0xff]  ;;  %v11323_v43 = vld [vmem:[#allocation84_spill] sm:$0xff] }
 0x6e3   :  { %v4724_v0 = vadd.f32 %v4723_v28, %v4722_v23  ;;  %v4649_v57 = vmul.f32 %v9912_v29, %v11289_v42  ;;  %v4687_v7 = vmul.f32 %v4647_v47, %v4647_v47  ;;  %v4735_v51 = vsel %vm85_vm0, %v4685_v1, 0.0  ;;  %v11321_v42 = vld [vmem:[#allocation96_spill] sm:$0xff] }
 0x6e4   :  { %v9933_v17 = vsub.f32 %v9649_v53, %v9792_v52  ;;  %v4650_v45 = vmul.f32 %v9919_v6, %v11319_v19  ;;  %v4688_v38 = vmul.f32 %v4648_v62, %v4648_v62  ;;  %v4737_v23 = vsel %vm85_vm0, %v4686_v4, 0.0  ;;  %v11326_v4 = vld [vmem:[#allocation42_spill] sm:$0xff]  ;;  %v11328_v19 = vld [vmem:[#allocation43_spill] sm:$0xff] }
 0x6e5   :  { %v4726_v54 = vadd.f32 %v4725_v63, %v4724_v0  ;;  %v9940_v32 = vsub.f32 %v11320_v35, %v9792_v52  ;;  %v4651_v28 = vmul.f32 %v9926_v44, %v11321_v42  ;;  %v4689_v0 = vmul.f32 %v4649_v57, %v4649_v57  ;;  %v11322_v63 = vld [vmem:[#allocation121_spill] sm:$0xff] }
 0x6e6   :  { %v4739_v33 = vsel %vm85_vm0, %v4687_v7, 0.0  ;;  %v9947_v53 = vsub.f32 %v9653_v12, %v9792_v52  ;;  %v4690_v40 = vmul.f32 %v4650_v45, %v4650_v45  ;;  %v4741_v22 = vsel %vm85_vm0, %v4688_v38, 0.0 }
 0x6e7   :  { %v4728_v25 = vadd.f32 %v4727_v58, %v4726_v54  ;;  %v4652_v54 = vmul.f32 %v9933_v17, %v11322_v63  ;;  %v9952_v58 = vpop.permute.xlu1 %4935  ;;  %v4691_v12 = vmul.f32 %v4651_v28, %v4651_v28  ;;  %v4743_v1 = vsel %vm85_vm0, %v4689_v0, 0.0  ;;  %v11331_v28 = vld [vmem:[#allocation97_spill] sm:$0xff] }
 0x6e8   :  { %v4745_v57 = vsel %vm85_vm0, %v4690_v40, 0.0  ;;  %v9983_v0 = vsub.f32 %v11331_v28, %v9792_v52 }
 0x6e9   :  { %v4730_v14 = vadd.f32 %v4729_v8, %v4728_v25  ;;  %v9954_v25 = vpop.permute.xlu0 %4937  ;;  %v9958_v8 = vsub.f32 %v11323_v43, %v9792_v52  ;;  %v11334_v43 = vld [vmem:[#allocation100_spill] sm:$0xff] }
 0x6eb   :  { %v4732_v30 = vadd.f32 %v4731_v10, %v4730_v14  ;;  %v11324_v14 = vld [vmem:[#allocation98_spill] sm:$0xff]  ;;  %v4655_v45 = vmul.f32 %v9958_v8, %v11328_v19 }
 0x6ec   :  { %v4653_v47 = vmul.f32 %v9940_v32, %v11324_v14 }
 0x6ed   :  { %v4734_v46 = vadd.f32 %v4733_v60, %v4732_v30  ;;  %v11325_v30 = vld [vmem:[#allocation85_spill] sm:$0xff]  ;;  %v4654_v60 = vmul.f32 %v9947_v53, %v11326_v4  ;;  %v9979_v35 = vpop.permute.xlu0 %4941  ;;  %v11336_v4 = vld [vmem:[#allocation44_spill] sm:$0xff] }
 0x6ee   :  { %v9965_v62 = vsub.f32 %v11325_v30, %v9792_v52  ;;  %v4693_v38 = vmul.f32 %v4653_v47, %v4653_v47  ;;  %11330 = vst [vmem:[#allocation112_spill] sm:$0xff] %v9979_v35  ;;  %v4695_v47 = vmul.f32 %v4655_v45, %v4655_v45  ;;  %v11339_v45 = vld [vmem:[#allocation132_spill] sm:$0xff] }
 0x6ef   :  { %v4736_v49 = vadd.f32 %v4735_v51, %v4734_v46  ;;  %v4692_v46 = vmul.f32 %v4652_v54, %v4652_v54  ;;  %v11327_v51 = vld [vmem:[#allocation32_spill] sm:$0xff]  ;;  %v4694_v63 = vmul.f32 %v4654_v60, %v4654_v60  ;;  %v4658_v60 = vmul.f32 %v9983_v0, %v11336_v4 }
 0x6f1   :  { %v4738_v36 = vadd.f32 %v4737_v23, %v4736_v49  ;;  %v9972_v49 = vsub.f32 %v11327_v51, %v9792_v52  ;;  %v4747_v23 = vsel %vm85_vm0, %v4691_v12, 0.0  ;;  %v4749_v54 = vsel %vm85_vm0, %v4692_v46, 0.0  ;;  %v10004_v51 = vpop.permute.xlu0 %4945 }
 0x6f2   :  { %v4751_v12 = vsel %vm85_vm0, %v4693_v38, 0.0  ;;  %11338 = vst [vmem:[#allocation135_spill] sm:$0xff] %v10004_v51  ;;  %v11340_v38 = vld [vmem:[#allocation45_spill] sm:$0xff] }
 0x6f3   :  { %v4740_v34 = vadd.f32 %v4739_v33, %v4738_v36  ;;  %v9977_v36 = vpop.permute.xlu1 %4939  ;;  %v11332_v33 = vld [vmem:[#allocation99_spill] sm:$0xff]  ;;  %v4657_v14 = vmul.f32 %v9972_v49, %v11334_v43  ;;  %v4698_v43 = vmul.f32 %v4658_v60, %v4658_v60  ;;  %v11347_v60 = vld [vmem:[#allocation53_spill] sm:$0xff] }
 0x6f4   :  { %11329 = vst [vmem:[#allocation111_spill] sm:$0xff] %v9977_v36 }
 0x6f5   :  { %v4742_v26 = vadd.f32 %v4741_v22, %v4740_v34  ;;  %v4656_v34 = vmul.f32 %v9965_v62, %v11332_v33  ;;  %v11333_v22 = vld [vmem:[#allocation122_spill] sm:$0xff]  ;;  %v4697_v28 = vmul.f32 %v4657_v14, %v4657_v14  ;;  %v4755_v33 = vsel %vm85_vm0, %v4695_v47, 0.0 }
 0x6f7   :  { %v4744_v10 = vadd.f32 %v4743_v1, %v4742_v26  ;;  %v9990_v26 = vsub.f32 %v11333_v22, %v9792_v52  ;;  %v4696_v46 = vmul.f32 %v4656_v34, %v4656_v34  ;;  %v11341_v34 = vld [vmem:[#allocation56_spill] sm:$0xff] }
 0x6f9   :  { %v4746_v7 = vadd.f32 %v4745_v57, %v4744_v10  ;;  %v11335_v10 = vld [vmem:[#allocation101_spill] sm:$0xff]  ;;  %v4753_v57 = vsel %vm85_vm0, %v4694_v63, 0.0  ;;  %v11342_v63 = vld [vmem:[#allocation102_spill] sm:$0xff] }
 0x6fa   :  { %v9997_v30 = vsub.f32 %v11335_v10, %v9792_v52  ;;  %v11343_v10 = vld [vmem:[#allocation52_spill] sm:$0xff] }
 0x6fb   :  { %v4748_v42 = vadd.f32 %v4747_v23, %v4746_v7  ;;  %v10002_v7 = vpop.permute.xlu1 %4943  ;;  %v10008_v23 = vsub.f32 %v11339_v45, %v9792_v52  ;;  %v10022_v4 = vsub.f32 %v11343_v10, %v9792_v52 }
 0x6fc   :  { %11337 = vst [vmem:[#allocation137_spill] sm:$0xff] %v10002_v7  ;;  %v4660_v22 = vmul.f32 %v9997_v30, %v11342_v63 }
 0x6fd   :  { %v4750_v40 = vadd.f32 %v4749_v54, %v4748_v42  ;;  %v4659_v42 = vmul.f32 %v9990_v26, %v11340_v38  ;;  %v10029_v38 = vpop.permute.xlu0 %4949 }
 0x6fe   :  { %11346 = vst [vmem:[#allocation54_spill] sm:$0xff] %v10029_v38  ;;  %v4700_v63 = vmul.f32 %v4660_v22, %v4660_v22 }
 0x6ff   :  { %v4752_v1 = vadd.f32 %v4751_v12, %v4750_v40  ;;  %v10015_v40 = vsub.f32 %v11341_v34, %v9792_v52  ;;  %v4757_v12 = vsel %vm85_vm0, %v4696_v46, 0.0  ;;  %v4699_v47 = vmul.f32 %v4659_v42, %v4659_v42  ;;  %v10027_v45 = vpop.permute.xlu1 %4947  ;;  %v11348_v46 = vld [vmem:[#allocation124_spill] sm:$0xff] }
 0x700   :  { %11345 = vst [vmem:[#allocation114_spill] sm:$0xff] %v10027_v45  ;;  %v10033_v34 = vsub.f32 %v11347_v60, %v9792_v52  ;;  %v11349_v42 = vld [vmem:[#allocation108_spill] sm:$0xff]  ;;  %v11351_v60 = vld [vmem:[#allocation107_spill] sm:$0xff] }
 0x701   :  { %v4754_v19 = vadd.f32 %v4753_v57, %v4752_v1  ;;  %v11344_v57 = vld [vmem:[#allocation123_spill] sm:$0xff]  ;;  %v10047_v51 = vsub.f32 %v11351_v60, %v9792_v52 }
 0x702   :  { %v4661_v14 = vmul.f32 %v10008_v23, %v11344_v57  ;;  %v10040_v57 = vsub.f32 %v11349_v42, %v9792_v52  ;;  %v10054_v42 = vpop.permute.xlu0 %4953  ;;  %v11356_v52 = vld [vmem:[#allocation104_spill] sm:$0xff] }
 0x703   :  { %v4756_v54 = vadd.f32 %v4755_v33, %v4754_v19  ;;  %v4759_v19 = vsel %vm85_vm0, %v4697_v28, 0.0  ;;  %v11350_v28 = vld [vmem:[#allocation46_spill] sm:$0xff]  ;;  %11354 = vst [vmem:[#allocation129_spill] sm:$0xff] %v10054_v42  ;;  %v4666_v60 = vmul.f32 %v10047_v51, %v11356_v52 }
 0x704   :  { %v4663_v45 = vmul.f32 %v10022_v4, %v11350_v28  ;;  %v4701_v38 = vmul.f32 %v4661_v14, %v4661_v14  ;;  %v11355_v28 = vld [vmem:[#allocation103_spill] sm:$0xff] }
 0x705   :  { %v4758_v1 = vadd.f32 %v4757_v12, %v4756_v54  ;;  %v4662_v54 = vmul.f32 %v10015_v40, %v11348_v46  ;;  %v4761_v12 = vsel %vm85_vm0, %v4698_v43, 0.0  ;;  %v11352_v46 = vld [vmem:[#allocation47_spill] sm:$0xff]  ;;  %v4665_v14 = vmul.f32 %v10040_v57, %v11355_v28 }
 0x706   :  { %v4664_v22 = vmul.f32 %v10033_v34, %v11352_v46  ;;  %v10067_v28 = vpop.permute.xlu0 %4957 }
 0x707   :  { %v4760_v33 = vadd.f32 %v4759_v19, %v4758_v1  ;;  %v4763_v1 = vsel %vm85_vm0, %v4699_v47, 0.0  ;;  %v4702_v43 = vmul.f32 %v4662_v54, %v4662_v54  ;;  %v4703_v47 = vmul.f32 %v4663_v45, %v4663_v45 }
 0x708   :  { %v4704_v35 = vmul.f32 %v4664_v22, %v4664_v22  ;;  %v4705_v36 = vmul.f32 %v4665_v14, %v4665_v14 }
 0x709   :  { %v4762_v10 = vadd.f32 %v4761_v12, %v4760_v33  ;;  %v4765_v33 = vsel %vm85_vm0, %v4700_v63, 0.0  ;;  %v10052_v12 = vpop.permute.xlu1 %4951  ;;  %v4769_v54 = vsel %vm85_vm0, %v4702_v43, 0.0  ;;  %v11357_v63 = vld [vmem:[#allocation125_spill] sm:$0xff]  ;;  %v11360_v43 = vld [vmem:[#allocation50_spill] sm:$0xff] }
 0x70a   :  { %11353 = vst [vmem:[#allocation130_spill] sm:$0xff] %v10052_v12  ;;  %v4667_v12 = vmul.f32 %v9795_v2, %v11357_v63  ;;  %v4773_v22 = vsel %vm85_vm0, %v4704_v35, 0.0  ;;  %v4775_v14 = vsel %vm85_vm0, %v4705_v36, 0.0  ;;  %v11364_v35 = vld [vmem:[#allocation105_spill] sm:$0xff]  ;;  %v11365_v36 = vld [vmem:[#allocation106_spill] sm:$0xff] }
 0x70b   :  { %v4764_v19 = vadd.f32 %v4763_v1, %v4762_v10  ;;  %v4767_v10 = vsel %vm85_vm0, %v4701_v38, 0.0  ;;  %v11359_v38 = vld [vmem:[#allocation126_spill] sm:$0xff] }
 0x70d   :  { %v4766_v7 = vadd.f32 %v4765_v33, %v4764_v19  ;;  %v4771_v19 = vsel %vm85_vm0, %v4703_v47, 0.0  ;;  %v10065_v33 = vpop.permute.xlu1 %4955  ;;  %v11361_v47 = vld [vmem:[#allocation51_spill] sm:$0xff] }
 0x70e   :  { %11358 = vst [vmem:[#allocation116_spill] sm:$0xff] %v10065_v33  ;;  %v4670_v33 = vmul.f32 %v9804_v5, %v11361_v47 }
 0x70f   :  { %v4768_v1 = vadd.f32 %v4767_v10, %v4766_v7  ;;  %v4668_v7 = vmul.f32 %v9798_v50, %v11359_v38  ;;  %v4706_v10 = vmul.f32 %v4666_v60, %v4666_v60  ;;  %v10080_v38 = vpop.permute.xlu0 %4961 }
 0x710   :  { %11363 = vst [vmem:[#allocation136_spill] sm:$0xff] %v10080_v38 }
 0x711   :  { %v4770_v46 = vadd.f32 %v4769_v54, %v4768_v1  ;;  %v4669_v1 = vmul.f32 %v9801_v15, %v11360_v43  ;;  %v4707_v54 = vmul.f32 %v4667_v12, %v4667_v12  ;;  %v4708_v42 = vmul.f32 %v4668_v7, %v4668_v7 }
 0x713   :  { %v4772_v45 = vadd.f32 %v4771_v19, %v4770_v46  ;;  %v4777_v46 = vsel %vm85_vm0, %v4706_v10, 0.0  ;;  %v10078_v19 = vpop.permute.xlu1 %4959  ;;  %v4779_v12 = vsel %vm85_vm0, %v4707_v54, 0.0  ;;  %v4781_v7 = vsel %vm85_vm0, %v4708_v42, 0.0 }
 0x714   :  { %11362 = vst [vmem:[#allocation60_spill] sm:$0xff] %v10078_v19  ;;  %v4673_v10 = vmul.f32 %v9813_v48, %v11318_v21 }
 0x715   :  { %v4774_v52 = vadd.f32 %v4773_v22, %v4772_v45  ;;  %v4671_v45 = vmul.f32 %v9807_v18, %v11364_v35  ;;  %v4709_v22 = vmul.f32 %v4669_v1, %v4669_v1  ;;  %v10093_v35 = vpop.permute.xlu0 %4965 }
 0x716   :  { %11367 = vst [vmem:[#allocation110_spill] sm:$0xff] %v10093_v35 }
 0x717   :  { %v4776_v63 = vadd.f32 %v4775_v14, %v4774_v52  ;;  %v4672_v52 = vmul.f32 %v9810_v37, %v11365_v36  ;;  %v4710_v14 = vmul.f32 %v4670_v33, %v4670_v33  ;;  %v4711_v19 = vmul.f32 %v4671_v45, %v4671_v45 }
 0x718   :  { %v4713_v36 = vmul.f32 %v4673_v10, %v4673_v10 }
 0x719   :  { %v4778_v60 = vadd.f32 %v4777_v46, %v4776_v63  ;;  %v4783_v63 = vsel %vm85_vm0, %v4709_v22, 0.0  ;;  %v10091_v46 = vpop.permute.xlu1 %4963  ;;  %v4712_v54 = vmul.f32 %v4672_v52, %v4672_v52  ;;  %v4787_v33 = vsel %vm85_vm0, %v4711_v19, 0.0  ;;  %v10100_v21 = vpop.permute.xlu0 %4969 }
 0x71a   :  { %11366 = vst [vmem:[#allocation55_spill] sm:$0xff] %v10091_v46  ;;  %11369 = vst [vmem:[#allocation62_spill] sm:$0xff] %v10100_v21  ;;  %v4791_v22 = vsel %vm85_vm0, %v4713_v36, 0.0 }
 0x71b   :  { %v4780_v43 = vadd.f32 %v4779_v12, %v4778_v60  ;;  %v4785_v60 = vsel %vm85_vm0, %v4710_v14, 0.0 }
 0x71d   :  { %v4782_v47 = vadd.f32 %v4781_v7, %v4780_v43  ;;  %v4789_v43 = vsel %vm85_vm0, %v4712_v54, 0.0  ;;  %v10098_v7 = vpop.permute.xlu1 %4967  ;;  %v10105_v52 = vpop.permute.xlu0 %4973 }
 0x71e   :  { %11368 = vst [vmem:[#allocation109_spill] sm:$0xff] %v10098_v7  ;;  %11371 = vst [vmem:[#allocation61_spill] sm:$0xff] %v10105_v52 }
 0x71f   :  { %v4784_v1 = vadd.f32 %v4783_v63, %v4782_v47 }
 0x721   :  { %v4786_v12 = vadd.f32 %v4785_v60, %v4784_v1  ;;  %v10103_v47 = vpop.permute.xlu1 %4971  ;;  %v10109_v1 = vpop.permute.xlu0 %4977 }
 0x722   :  { %11370 = vst [vmem:[#allocation115_spill] sm:$0xff] %v10103_v47  ;;  %11373 = vst [vmem:[#allocation138_spill] sm:$0xff] %v10109_v1 }
 0x723   :  { %v4788_v42 = vadd.f32 %v4787_v33, %v4786_v12 }
 0x725   :  { %v4790_v45 = vadd.f32 %v4789_v43, %v4788_v42  ;;  %v10107_v19 = vpop.permute.xlu1 %4975  ;;  %v10113_v42 = vpop.permute.xlu0 %4981 }
 0x726   :  { %11372 = vst [vmem:[#allocation131_spill] sm:$0xff] %v10107_v19  ;;  %11375 = vst [vmem:[#allocation66_spill] sm:$0xff] %v10113_v42 }
 0x727   :  { %v4792_v46 = vadd.f32 %v4791_v22, %v4790_v45  ;;  %v4466_v22 = vld [vmem:[%s10479_s6] sm:$0x1] }
 0x729   :  { %v4793_v35 = vrot.slane %v4792_v46, 4  ;;  %v10111_v33 = vpop.permute.xlu1 %4979  ;;  %v10117_v45 = vpop.permute.xlu0 %4985 }
 0x72a   :  { %11374 = vst [vmem:[#allocation140_spill] sm:$0xff] %v10111_v33  ;;  %11377 = vst [vmem:[#allocation117_spill] sm:$0xff] %v10117_v45 }
 0x72b   :  { %v4794_v14 = vadd.f32 %v4793_v35, %v4792_v46 }
 0x72d   :  { %v4795_v10 = vrot.slane %v4794_v14, 2  ;;  %v10115_v43 = vpop.permute.xlu1 %4983  ;;  %v10121_v35 = vpop.permute.xlu0 %4989 }
 0x72e   :  { %11376 = vst [vmem:[#allocation139_spill] sm:$0xff] %v10115_v43  ;;  %11379 = vst [vmem:[#allocation15_spill] sm:$0xff] %v10121_v35 }
 0x72f   :  { %v4796_v63 = vadd.f32 %v4795_v10, %v4794_v14 }
 0x731   :  { %v4797_v54 = vrot.slane %v4796_v63, 1  ;;  %v10119_v46 = vpop.permute.xlu1 %4987 }
 0x732   :  { %11378 = vst [vmem:[#allocation16_spill] sm:$0xff] %v10119_v46 }
 0x733   :  { %v4798_v60 = vadd.f32 %v4797_v54, %v4796_v63  ;;  %v10128_v54 = vpop.permute.xlu0 %4993 }
 0x734   :  { %11381 = vst [vmem:[#allocation67_spill] sm:$0xff] %v10128_v54 }
 0x735   :  { %v4799_v12 = vmul.f32 0.0078125, %v4798_v60  ;;  %v10126_v63 = vpop.permute.xlu1 %4991  ;;  %v11382_v60 = vld [vmem:[#allocation128_spill] sm:$0xff] }
 0x736   :  { %11380 = vst [vmem:[#allocation19_spill] sm:$0xff] %v10126_v63 }
 0x737   :  { %v4800_v36 = vadd.f32 1e-05, %v4799_v12  ;;  %v11383_v12 = vsub.s32 0, %v11382_v60 }
 0x739   :  { %5980 = vrsqrt.f32 %v4800_v36  ;;  %v10148_v60 = vpop.permute.xlu1 %4995 }
 0x73a   :  { %11384 = vst [vmem:[#allocation68_spill] sm:$0xff] %v10148_v60 }
 0x73d   :  { %v10179_v60 = vpop.permute.xlu1 %4999 }
 0x73e   :  { %11386 = vst [vmem:[#allocation63_spill] sm:$0xff] %v10179_v60 }
 0x746   :  { %v5981_v14 = vpop.eup %5980 }
 0x747   :  { %v4802_v10 = vmul.f32 %v5981_v14, %v4466_v22 }
 0x749   :  { %v4807_v36 = vrot.slane %v4802_v10, %v11383_v12 }
 0x74b   :  { %v4809_v43 = vmul.f32 %v4807_v36, %v9817_v31  ;;  %v4810_v45 = vmul.f32 %v4807_v36, %v9821_v56  ;;  %v4811_v46 = vmul.f32 %v4807_v36, %v9825_v9  ;;  %v4812_v35 = vmul.f32 %v4807_v36, %v9829_v27 }
 0x74c   :  { %v4813_v42 = vmul.f32 %v4807_v36, %v9837_v39  ;;  %v4814_v33 = vmul.f32 %v4807_v36, %v9843_v55  ;;  %v4815_v22 = vmul.f32 %v4807_v36, %v9849_v16  ;;  %v4816_v14 = vmul.f32 %v4807_v36, %v9855_v41  ;;  %v10150_v16 = vpop.permute.xlu0 %4997 }
 0x74d   :  { %v4817_v54 = vmul.f32 %v4807_v36, %v9863_v59  ;;  %v4818_v10 = vmul.f32 %v4807_v36, %v9870_v24  ;;  %v4819_v31 = vmul.f32 %v4807_v36, %v9877_v20  ;;  %v4820_v56 = vmul.f32 %v4807_v36, %v9884_v61  ;;  %11385 = vst [vmem:[#allocation48_spill] sm:$0xff] %v10150_v16 }
 0x74e   :  { %v4821_v9 = vmul.f32 %v4807_v36, %v9891_v11  ;;  %v4822_v27 = vmul.f32 %v4807_v36, %v9898_v13  ;;  %v4823_v39 = vmul.f32 %v4807_v36, %v9905_v3  ;;  %v4824_v55 = vmul.f32 %v4807_v36, %v9912_v29 }
 0x74f   :  { %v4825_v41 = vmul.f32 %v4807_v36, %v9919_v6  ;;  %v4826_v59 = vmul.f32 %v4807_v36, %v9926_v44  ;;  %v4827_v24 = vmul.f32 %v4807_v36, %v9933_v17  ;;  %v4828_v20 = vmul.f32 %v4807_v36, %v9940_v32  ;;  %v5241_v17 = vld [vmem:[%s10480_s7] ss:$0 sm:$0xff] }
 0x750   :  { %v4829_v61 = vmul.f32 %v4807_v36, %v9947_v53  ;;  %v4830_v11 = vmul.f32 %v4807_v36, %v9958_v8  ;;  %v4831_v13 = vmul.f32 %v4807_v36, %v9965_v62  ;;  %v4832_v3 = vmul.f32 %v4807_v36, %v9972_v49 }
 0x751   :  { %v4833_v29 = vmul.f32 %v4807_v36, %v9983_v0  ;;  %v4834_v12 = vmul.f32 %v4807_v36, %v9990_v26  ;;  %v4835_v6 = vmul.f32 %v4807_v36, %v9997_v30  ;;  %v4836_v44 = vmul.f32 %v4807_v36, %v10008_v23 }
 0x752   :  { %v4837_v32 = vmul.f32 %v4807_v36, %v10015_v40  ;;  %v4838_v53 = vmul.f32 %v4807_v36, %v10022_v4  ;;  %v4839_v8 = vmul.f32 %v4807_v36, %v10033_v34  ;;  %v4840_v62 = vmul.f32 %v4807_v36, %v10040_v57  ;;  %v10181_v34 = vpop.permute.xlu0 %5001 }
 0x753   :  { %v4841_v49 = vmul.f32 %v4807_v36, %v10047_v51  ;;  %v4842_v0 = vmul.f32 %v4807_v36, %v9795_v2  ;;  %v4843_v26 = vmul.f32 %v4807_v36, %v9798_v50  ;;  %v4844_v30 = vmul.f32 %v4807_v36, %v9801_v15  ;;  %11387 = vst [vmem:[#allocation13_spill] sm:$0xff] %v10181_v34 }
 0x754   :  { %v4845_v23 = vmul.f32 %v4807_v36, %v9804_v5  ;;  %v4846_v16 = vmul.f32 %v4807_v36, %v9807_v18  ;;  %v4847_v40 = vmul.f32 %v4807_v36, %v9810_v37  ;;  %v4848_v4 = vmul.f32 %v4807_v36, %v9813_v48 }
 0x755   :  { %v4855_v57 = vadd.f32 %v5241_v17, %v4809_v43  ;;  %v4856_v51 = vadd.f32 %v5241_v17, %v4810_v45  ;;  %v4857_v63 = vadd.f32 %v5241_v17, %v4811_v46  ;;  %v4858_v2 = vadd.f32 %v5241_v17, %v4812_v35 }
 0x756   :  { %v4859_v1 = vadd.f32 %v5241_v17, %v4813_v42  ;;  %v4860_v50 = vadd.f32 %v5241_v17, %v4814_v33  ;;  %v4861_v19 = vadd.f32 %v5241_v17, %v4815_v22  ;;  %v4862_v15 = vadd.f32 %v5241_v17, %v4816_v14  ;;  %v5004_v42 = vpop.permute.xlu1 %5003  ;;  %v5006_v33 = vpop.permute.xlu0 %5005 }
 0x757   :  { %v4863_v52 = vadd.f32 %v5241_v17, %v4817_v54  ;;  %v4864_v5 = vadd.f32 %v5241_v17, %v4818_v10  ;;  %v4865_v47 = vadd.f32 %v5241_v17, %v4819_v31  ;;  %v4866_v18 = vadd.f32 %v5241_v17, %v4820_v56 }
 0x758   :  { %v4867_v21 = vadd.f32 %v5241_v17, %v4821_v9  ;;  %v4868_v37 = vadd.f32 %v5241_v17, %v4822_v27  ;;  %v4869_v7 = vadd.f32 %v5241_v17, %v4823_v39  ;;  %v4870_v48 = vadd.f32 %v5241_v17, %v4824_v55 }
 0x759   :  { %v4871_v36 = vadd.f32 %v5241_v17, %v4825_v41  ;;  %v4872_v60 = vadd.f32 %v5241_v17, %v4826_v59  ;;  %v4873_v38 = vadd.f32 %v5241_v17, %v4827_v24  ;;  %v4874_v34 = vadd.f32 %v5241_v17, %v4828_v20 }
 0x75a   :  { %v4875_v43 = vadd.f32 %v5241_v17, %v4829_v61  ;;  %v4876_v45 = vadd.f32 %v5241_v17, %v4830_v11  ;;  %v4877_v46 = vadd.f32 %v5241_v17, %v4831_v13  ;;  %v4878_v35 = vadd.f32 %v5241_v17, %v4832_v3 }
 0x75b   :  { %v4879_v22 = vadd.f32 %v5241_v17, %v4833_v29  ;;  %v4880_v14 = vadd.f32 %v5241_v17, %v4834_v12  ;;  %v4881_v54 = vadd.f32 %v5241_v17, %v4835_v6  ;;  %v4882_v10 = vadd.f32 %v5241_v17, %v4836_v44  ;;  %v11388_v29 = vld [vmem:[#allocation111_spill] sm:$0xff]  ;;  %v11389_v6 = vld [vmem:[#allocation112_spill] sm:$0xff] }
 0x75c   :  { %v4883_v31 = vadd.f32 %v5241_v17, %v4837_v32  ;;  %v4884_v56 = vadd.f32 %v5241_v17, %v4838_v53  ;;  %v4885_v9 = vadd.f32 %v5241_v17, %v4839_v8  ;;  %v4886_v27 = vadd.f32 %v5241_v17, %v4840_v62  ;;  %v11390_v32 = vld [vmem:[#allocation137_spill] sm:$0xff]  ;;  %v11391_v8 = vld [vmem:[#allocation135_spill] sm:$0xff] }
 0x75d   :  { %v4887_v39 = vadd.f32 %v5241_v17, %v4841_v49  ;;  %v4888_v55 = vadd.f32 %v5241_v17, %v4842_v0  ;;  %v4889_v41 = vadd.f32 %v5241_v17, %v4843_v26  ;;  %v4890_v59 = vadd.f32 %v5241_v17, %v4844_v30  ;;  %v11392_v49 = vld [vmem:[#allocation114_spill] sm:$0xff] }
 0x75e   :  { %v4891_v24 = vadd.f32 %v5241_v17, %v4845_v23  ;;  %v4892_v20 = vadd.f32 %v5241_v17, %v4846_v16  ;;  %v4893_v61 = vadd.f32 %v5241_v17, %v4847_v40  ;;  %v4894_v11 = vadd.f32 %v5241_v17, %v4848_v4  ;;  %v11393_v26 = vld [vmem:[#allocation54_spill] sm:$0xff]  ;;  %v5008_v23 = vpop.permute.xlu1 %5007  ;;  %v5010_v16 = vpop.permute.xlu0 %5009 }
 0x75f   :  { %v5055_v13 = vadd.f32 %v9952_v58, %v4855_v57  ;;  %v5056_v3 = vadd.f32 %v9954_v25, %v4856_v51  ;;  %v5057_v12 = vadd.f32 %v11388_v29, %v4857_v63  ;;  %v5058_v44 = vadd.f32 %v11389_v6, %v4858_v2  ;;  %v11394_v40 = vld [vmem:[#allocation130_spill] sm:$0xff]  ;;  %v11395_v58 = vld [vmem:[#allocation129_spill] sm:$0xff]  ;;  %v11396_v25 = vld [vmem:[#allocation116_spill] sm:$0xff] }
 0x760   :  { %v5059_v53 = vadd.f32 %v11390_v32, %v4859_v1  ;;  %v5060_v62 = vadd.f32 %v11391_v8, %v4860_v50  ;;  %v5061_v0 = vadd.f32 %v11392_v49, %v4861_v19  ;;  %v5062_v30 = vadd.f32 %v11393_v26, %v4862_v15  ;;  %v11397_v1 = vld [vmem:[#allocation60_spill] sm:$0xff]  ;;  %v11399_v50 = vld [vmem:[#allocation55_spill] sm:$0xff] }
 0x761   :  { %v10192_v17 = vadd.f32 %v11394_v40, %v4863_v52  ;;  %v10195_v4 = vadd.f32 %v11395_v58, %v4864_v5  ;;  %v10198_v63 = vadd.f32 %v11396_v25, %v4865_v47  ;;  %v10201_v57 = vadd.f32 %v10067_v28, %v4866_v18  ;;  %v11398_v19 = vld [vmem:[#allocation136_spill] sm:$0xff]  ;;  %v11400_v52 = vld [vmem:[#allocation110_spill] sm:$0xff]  ;;  %v11401_v5 = vld [vmem:[#allocation109_spill] sm:$0xff] }
 0x762   :  { %v10204_v51 = vadd.f32 %v11397_v1, %v4867_v21  ;;  %v10207_v2 = vadd.f32 %v11398_v19, %v4868_v37  ;;  %v10210_v15 = vadd.f32 %v11399_v50, %v4869_v7  ;;  %v10213_v29 = vadd.f32 %v11400_v52, %v4870_v48  ;;  %v11402_v47 = vld [vmem:[#allocation62_spill] sm:$0xff]  ;;  %v11403_v28 = vld [vmem:[#allocation115_spill] sm:$0xff]  ;;  %v11404_v21 = vld [vmem:[#allocation61_spill] sm:$0xff] }
 0x763   :  { %v10216_v6 = vadd.f32 %v11401_v5, %v4871_v36  ;;  %v10219_v32 = vadd.f32 %v11402_v47, %v4872_v60  ;;  %v10222_v18 = vadd.f32 %v11403_v28, %v4873_v38  ;;  %v10225_v8 = vadd.f32 %v11404_v21, %v4874_v34  ;;  %v11405_v37 = vld [vmem:[#allocation131_spill] sm:$0xff]  ;;  %v11406_v7 = vld [vmem:[#allocation138_spill] sm:$0xff]  ;;  %v11407_v48 = vld [vmem:[#allocation140_spill] sm:$0xff]  ;;  %v5014_v21 = vpop.permute.xlu0 %5013 }
 0x764   :  { %v10228_v49 = vadd.f32 %v11405_v37, %v4875_v43  ;;  %v10231_v26 = vadd.f32 %v11406_v7, %v4876_v45  ;;  %v10234_v40 = vadd.f32 %v11407_v48, %v4877_v46  ;;  %v11408_v36 = vld [vmem:[#allocation66_spill] sm:$0xff]  ;;  %v11409_v60 = vld [vmem:[#allocation139_spill] sm:$0xff]  ;;  %v11410_v38 = vld [vmem:[#allocation117_spill] sm:$0xff]  ;;  %v10269_v48 = vadd.f32 %v5004_v42, %v4889_v41 }
 0x765   :  { %v10237_v58 = vadd.f32 %v11408_v36, %v4878_v35  ;;  %v10240_v25 = vadd.f32 %v11409_v60, %v4879_v22  ;;  %v10243_v1 = vadd.f32 %v11410_v38, %v4880_v14  ;;  %v11411_v34 = vld [vmem:[#allocation16_spill] sm:$0xff]  ;;  %v11412_v43 = vld [vmem:[#allocation15_spill] sm:$0xff]  ;;  %v5012_v14 = vpop.permute.xlu1 %5011  ;;  %v11418_v7 = vld [vmem:[#allocation13_spill] sm:$0xff]  ;;  %v10275_v36 = vadd.f32 %v5010_v16, %v4892_v20 }
 0x766   :  { %v10246_v19 = vadd.f32 %v11411_v34, %v4881_v54  ;;  %v10249_v50 = vadd.f32 %v11412_v43, %v4882_v10  ;;  %v11413_v45 = vld [vmem:[#allocation19_spill] sm:$0xff]  ;;  %v11415_v35 = vld [vmem:[#allocation68_spill] sm:$0xff]  ;;  %v10267_v10 = vadd.f32 %v11418_v7, %v4888_v55  ;;  %v5095_v60 = vmax.f32 %v5055_v13, 0.0 }
 0x767   :  { %v10252_v52 = vadd.f32 %v11413_v45, %v4883_v31  ;;  %v11414_v46 = vld [vmem:[#allocation67_spill] sm:$0xff]  ;;  %v10258_v47 = vadd.f32 %v11415_v35, %v4885_v9  ;;  %v11416_v22 = vld [vmem:[#allocation48_spill] sm:$0xff]  ;;  %v10271_v31 = vadd.f32 %v5006_v33, %v4890_v59  ;;  %v10277_v9 = vadd.f32 %v5012_v14, %v4893_v61 }
 0x768   :  { %v10255_v5 = vadd.f32 %v11414_v46, %v4884_v56  ;;  %v10261_v28 = vadd.f32 %v11416_v22, %v4886_v27  ;;  %v11417_v37 = vld [vmem:[#allocation63_spill] sm:$0xff]  ;;  %v10273_v56 = vadd.f32 %v5008_v23, %v4891_v24  ;;  %v10279_v27 = vadd.f32 %v5014_v21, %v4894_v11  ;;  %5135 = vst.msk [vmem:[%s10481_s8] sm:$0xff] %vm85_vm0, %v5095_v60 }
 0x769   :  { %v10264_v54 = vadd.f32 %v11417_v37, %v4887_v39  ;;  %v5096_v38 = vmax.f32 %v5056_v3, 0.0  ;;  %v5097_v34 = vmax.f32 %v5057_v12, 0.0  ;;  %v5098_v39 = vmax.f32 %v5058_v44, 0.0 }
 0x76a   :  { %v5099_v43 = vmax.f32 %v5059_v53, 0.0  ;;  %v5100_v45 = vmax.f32 %v5060_v62, 0.0  ;;  %v5101_v55 = vmax.f32 %v5061_v0, 0.0  ;;  %v5102_v46 = vmax.f32 %v5062_v30, 0.0 }
 0x76b   :  { %v5103_v42 = vmax.f32 %v10192_v17, 0.0  ;;  %v5104_v33 = vmax.f32 %v10195_v4, 0.0  ;;  %v5105_v41 = vmax.f32 %v10198_v63, 0.0  ;;  %v5106_v59 = vmax.f32 %v10201_v57, 0.0  ;;  %5136 = vst.msk [vmem:[%s10481_s8 + $0x8] sm:$0xff] %vm85_vm0, %v5096_v38  ;;  %5137 = vst.msk [vmem:[%s10481_s8 + $0x10] sm:$0xff] %vm85_vm0, %v5097_v34 }
 0x76c   :  { %5138 = vst.msk [vmem:[%s10481_s8 + $0x18] sm:$0xff] %vm85_vm0, %v5098_v39  ;;  %v5107_v24 = vmax.f32 %v10204_v51, 0.0  ;;  %v5108_v20 = vmax.f32 %v10207_v2, 0.0  ;;  %v5109_v61 = vmax.f32 %v10210_v15, 0.0  ;;  %v5110_v11 = vmax.f32 %v10213_v29, 0.0  ;;  %5139 = vst.msk [vmem:[%s10481_s8 + $0x20] sm:$0xff] %vm85_vm0, %v5099_v43 }
 0x76d   :  { %5140 = vst.msk [vmem:[%s10481_s8 + $0x28] sm:$0xff] %vm85_vm0, %v5100_v45  ;;  %5141 = vst.msk [vmem:[%s10481_s8 + $0x30] sm:$0xff] %vm85_vm0, %v5101_v55  ;;  %v5111_v13 = vmax.f32 %v10216_v6, 0.0  ;;  %v5112_v3 = vmax.f32 %v10219_v32, 0.0  ;;  %v5113_v12 = vmax.f32 %v10222_v18, 0.0  ;;  %v5114_v44 = vmax.f32 %v10225_v8, 0.0 }
 0x76e   :  { %5142 = vst.msk [vmem:[%s10481_s8 + $0x38] sm:$0xff] %vm85_vm0, %v5102_v46  ;;  %5143 = vst.msk [vmem:[%s10481_s8 + $0x40] sm:$0xff] %vm85_vm0, %v5103_v42  ;;  %v5115_v53 = vmax.f32 %v10228_v49, 0.0  ;;  %v5116_v62 = vmax.f32 %v10231_v26, 0.0  ;;  %v5117_v0 = vmax.f32 %v10234_v40, 0.0  ;;  %v5118_v30 = vmax.f32 %v10237_v58, 0.0 }
 0x76f   :  { %5144 = vst.msk [vmem:[%s10481_s8 + $0x48] sm:$0xff] %vm85_vm0, %v5104_v33  ;;  %5145 = vst.msk [vmem:[%s10481_s8 + $0x50] sm:$0xff] %vm85_vm0, %v5105_v41  ;;  %v5119_v23 = vmax.f32 %v10240_v25, 0.0  ;;  %v5120_v16 = vmax.f32 %v10243_v1, 0.0  ;;  %v5121_v17 = vmax.f32 %v10246_v19, 0.0  ;;  %v5122_v4 = vmax.f32 %v10249_v50, 0.0 }
 0x770   :  { %5146 = vst.msk [vmem:[%s10481_s8 + $0x58] sm:$0xff] %vm85_vm0, %v5106_v59  ;;  %5147 = vst.msk [vmem:[%s10481_s8 + $0x60] sm:$0xff] %vm85_vm0, %v5107_v24  ;;  %v5123_v63 = vmax.f32 %v10252_v52, 0.0  ;;  %v5124_v57 = vmax.f32 %v10255_v5, 0.0  ;;  %v5125_v51 = vmax.f32 %v10258_v47, 0.0  ;;  %v5126_v2 = vmax.f32 %v10261_v28, 0.0 }
 0x771   :  { %5148 = vst.msk [vmem:[%s10481_s8 + $0x68] sm:$0xff] %vm85_vm0, %v5108_v20  ;;  %5149 = vst.msk [vmem:[%s10481_s8 + $0x70] sm:$0xff] %vm85_vm0, %v5109_v61  ;;  %v5127_v15 = vmax.f32 %v10264_v54, 0.0  ;;  %v5128_v29 = vmax.f32 %v10267_v10, 0.0  ;;  %v5129_v6 = vmax.f32 %v10269_v48, 0.0  ;;  %v5130_v32 = vmax.f32 %v10271_v31, 0.0 }
 0x772   :  { %5150 = vst.msk [vmem:[%s10481_s8 + $0x78] sm:$0xff] %vm85_vm0, %v5110_v11  ;;  %5151 = vst.msk [vmem:[%s10481_s8 + $0x80] sm:$0xff] %vm85_vm0, %v5111_v13  ;;  %v5131_v18 = vmax.f32 %v10273_v56, 0.0  ;;  %v5132_v8 = vmax.f32 %v10275_v36, 0.0  ;;  %v5133_v49 = vmax.f32 %v10277_v9, 0.0  ;;  %v5134_v26 = vmax.f32 %v10279_v27, 0.0 }
 0x773   :  { %5152 = vst.msk [vmem:[%s10481_s8 + $0x88] sm:$0xff] %vm85_vm0, %v5112_v3  ;;  %5153 = vst.msk [vmem:[%s10481_s8 + $0x90] sm:$0xff] %vm85_vm0, %v5113_v12 }
 0x774   :  { %5154 = vst.msk [vmem:[%s10481_s8 + $0x98] sm:$0xff] %vm85_vm0, %v5114_v44  ;;  %5155 = vst.msk [vmem:[%s10481_s8 + $0xa0] sm:$0xff] %vm85_vm0, %v5115_v53 }
 0x775   :  { %5156 = vst.msk [vmem:[%s10481_s8 + $0xa8] sm:$0xff] %vm85_vm0, %v5116_v62  ;;  %5157 = vst.msk [vmem:[%s10481_s8 + $0xb0] sm:$0xff] %vm85_vm0, %v5117_v0 }
 0x776   :  { %5158 = vst.msk [vmem:[%s10481_s8 + $0xb8] sm:$0xff] %vm85_vm0, %v5118_v30  ;;  %5159 = vst.msk [vmem:[%s10481_s8 + $0xc0] sm:$0xff] %vm85_vm0, %v5119_v23 }
 0x777   :  { %5160 = vst.msk [vmem:[%s10481_s8 + $0xc8] sm:$0xff] %vm85_vm0, %v5120_v16  ;;  %5161 = vst.msk [vmem:[%s10481_s8 + $0xd0] sm:$0xff] %vm85_vm0, %v5121_v17 }
 0x778   :  { %5162 = vst.msk [vmem:[%s10481_s8 + $0xd8] sm:$0xff] %vm85_vm0, %v5122_v4  ;;  %5163 = vst.msk [vmem:[%s10481_s8 + $0xe0] sm:$0xff] %vm85_vm0, %v5123_v63 }
 0x779   :  { %5164 = vst.msk [vmem:[%s10481_s8 + $0xe8] sm:$0xff] %vm85_vm0, %v5124_v57  ;;  %5165 = vst.msk [vmem:[%s10481_s8 + $0xf0] sm:$0xff] %vm85_vm0, %v5125_v51 }
 0x77a   :  { %5166 = vst.msk [vmem:[%s10481_s8 + $0xf8] sm:$0xff] %vm85_vm0, %v5126_v2  ;;  %5167 = vst.msk [vmem:[%s10481_s8 + $0x100] sm:$0xff] %vm85_vm0, %v5127_v15 }
 0x77b   :  { %5168 = vst.msk [vmem:[%s10481_s8 + $0x108] sm:$0xff] %vm85_vm0, %v5128_v29  ;;  %5169 = vst.msk [vmem:[%s10481_s8 + $0x110] sm:$0xff] %vm85_vm0, %v5129_v6 }
 0x77c   :  { %5170 = vst.msk [vmem:[%s10481_s8 + $0x118] sm:$0xff] %vm85_vm0, %v5130_v32  ;;  %5171 = vst.msk [vmem:[%s10481_s8 + $0x120] sm:$0xff] %vm85_vm0, %v5131_v18 }
 0x77d   :  { %5172 = vst.msk [vmem:[%s10481_s8 + $0x128] sm:$0xff] %vm85_vm0, %v5132_v8  ;;  %5173 = vst.msk [vmem:[%s10481_s8 + $0x130] sm:$0xff] %vm85_vm0, %v5133_v49 }
 0x77e   :  { %5174 = vst.msk [vmem:[%s10481_s8 + $0x138] sm:$0xff] %vm85_vm0, %v5134_v26 }
 0x77f   :  { %5179 = vsyncpa [#allocation4], 1 }
 0x780   :  { %5180 = vsyncpa [#allocation6], 1 }
 0x781   :  { %5181 = vsyncpa [#allocation9], 1 }

</bundles_post_ra>
